<compile_context>
chip_gen: v6e
topology: v6e:2x2x1
jax: 0.10.0
libtpu: 0.0.40
codegen_flags: <defaults>
</compile_context>

<pallas_src>
import jax
import jax.numpy as jnp
from jax.experimental import pallas as pl
from jax.experimental.pallas import tpu as pltpu


def _round_up(x, m):
    return (x + m - 1) // m * m


def simple_rnn_forward(x, params):
    """x: (B, T, input_size) batch-first, like the PyTorch module.

    Returns (B, num_classes) float32.
    """
    B, T, Din = x.shape
    wih0 = params["wih0"].astype(jnp.bfloat16)      # (Din, 3H)  layer-0 W_ih^T
    wihr = params["wihr"].astype(jnp.bfloat16)      # (L-1, H, 3H) layers 1..L-1
    whh = params["whh"].astype(jnp.bfloat16)        # (L, H, 3H) recurrent W_hh^T
    b = params["b"].astype(jnp.float32)             # (L, 2, 3H) row0=b_ih row1=b_hh
    fc_w = params["fc_w"]                           # (H, C)
    fc_b = params["fc_b"]                           # (C,)
    L, H, H3 = whh.shape
    C = fc_w.shape[1]

    BP = _round_up(max(B, 8), 8)        # batch padded to f32 sublane tile
    CP = _round_up(max(C, 128), 128)    # lane-dense FC output width

    # Time-major flatten with padded batch (row index = t*BP + b). Padding
    # rows are zero; their outputs are discarded after the kernel.
    xt = jnp.transpose(x, (1, 0, 2)).astype(jnp.float32)      # (T, B, Din)
    xt = jnp.pad(xt, ((0, 0), (0, BP - B), (0, 0)))           # (T, BP, Din)
    x2d = xt.reshape(T * BP, Din)

    # FC head padded to 128 lanes (avoids a masked 3-wide store / N=3 drain).
    wfc = jnp.zeros((H, CP), jnp.bfloat16).at[:, :C].set(fc_w.astype(jnp.bfloat16))
    bfc = jnp.zeros((1, CP), jnp.float32).at[0, :C].set(fc_b.astype(jnp.float32))

    def kernel(x_ref, wih0_ref, wihr_ref, whh_ref, b_ref, wfc_ref, bfc_ref,
               out_ref):
        bf16 = jnp.bfloat16
        f32 = jnp.float32

        # Layer-0 input projection: one batched MXU matmul. x does not depend
        # on the recurrence, so batching it is off the critical path.
        x_bf = x_ref[...].astype(bf16)                          # (T*BP, Din)
        b_ih0 = b_ref[0][0:1, :]
        gi0 = jnp.dot(x_bf, wih0_ref[...],
                      preferred_element_type=f32) + b_ih0       # (T*BP, 3H)
        gi = [gi0[t * BP:(t + 1) * BP, :] for t in range(T)]    # T x (BP, 3H)

        h = jnp.zeros((BP, H), f32)
        for l in range(L):                       # static: fully unrolled
            whh_l = whh_ref[l]                   # (H, 3H) bf16, hoisted
            b_hh = b_ref[l][1:2, :]              # (1, 3H) f32
            if l + 1 < L:
                wih_nx = wihr_ref[l]             # (H, 3H) bf16 = layer l+1 W_ih
                b_ih_nx = b_ref[l + 1][0:1, :]

            h = jnp.zeros((BP, H), f32)          # h0 = 0 for every layer
            gi_next = []
            for t in range(T):                   # static: fully unrolled
                gh = jnp.dot(h.astype(bf16), whh_l,
                             preferred_element_type=f32) + b_hh
                g = gi[t]
                r = jax.nn.sigmoid(g[:, 0:H] + gh[:, 0:H])
                z = jax.nn.sigmoid(g[:, H:2 * H] + gh[:, H:2 * H])
                n = jnp.tanh(g[:, 2 * H:3 * H] + r * gh[:, 2 * H:3 * H])
                h = (1.0 - z) * n + z * h
                if l + 1 < L:
                    # Wavefront: layer l+1's input projection for timestep t
                    # depends only on h_t, not on later timesteps, so it can
                    # overlap with the rest of this layer's recurrence.
                    gi_next.append(
                        jnp.dot(h.astype(bf16), wih_nx,
                                preferred_element_type=f32) + b_ih_nx)
            gi = gi_next

        # FC head on the top layer's last hidden state; lane-dense (BP, CP).
        out_ref[...] = (jnp.dot(h.astype(bf16), wfc_ref[...],
                                preferred_element_type=f32) + bfc_ref[...])

    out_padded = pl.pallas_call(
        kernel,
        out_shape=jax.ShapeDtypeStruct((BP, CP), jnp.float32),
        grid=(1,),
        in_specs=[
            pl.BlockSpec((T * BP, Din), lambda i: (0, 0)),
            pl.BlockSpec((Din, H3), lambda i: (0, 0)),
            pl.BlockSpec((L - 1, H, H3), lambda i: (0, 0, 0)),
            pl.BlockSpec((L, H, H3), lambda i: (0, 0, 0)),
            pl.BlockSpec((L, 2, H3), lambda i: (0, 0, 0)),
            pl.BlockSpec((H, CP), lambda i: (0, 0)),
            pl.BlockSpec((1, CP), lambda i: (0, 0)),
        ],
        out_specs=pl.BlockSpec((BP, CP), lambda i: (0, 0)),
        compiler_params=pltpu.CompilerParams(
            dimension_semantics=("arbitrary",)),
    )(x2d, wih0, wihr, whh, b, wfc, bfc)

    return out_padded[:B, :C]


if __name__ == "__main__":
    INPUT_SIZE, HIDDEN, NUM_LAYERS, NUM_CLASSES = 512, 128, 4, 3
    B, T = 2, 8

    key = jax.random.PRNGKey(0)
    keys = jax.random.split(key, NUM_LAYERS * 4 + 3)
    k = 1.0 / float(jnp.sqrt(HIDDEN))

    # Weights built in f32 with the torch uniform(-k, k) init, pre-transposed
    # to (in, 3H); the wrapper stores/DMAs them as bf16 (f32 accumulation).
    wih_list, whh_list, b_list = [], [], []
    idx = 0
    for l in range(NUM_LAYERS):
        din = INPUT_SIZE if l == 0 else HIDDEN
        w_ih = jax.random.uniform(keys[idx], (3 * HIDDEN, din), jnp.float32, -k, k); idx += 1
        w_hh = jax.random.uniform(keys[idx], (3 * HIDDEN, HIDDEN), jnp.float32, -k, k); idx += 1
        b_ih = jax.random.uniform(keys[idx], (3 * HIDDEN,), jnp.float32, -k, k); idx += 1
        b_hh = jax.random.uniform(keys[idx], (3 * HIDDEN,), jnp.float32, -k, k); idx += 1
        wih_list.append(w_ih.T)                               # (din, 3H)
        whh_list.append(w_hh.T)                               # (H, 3H)
        b_list.append(jnp.stack([b_ih, b_hh], axis=0))        # (2, 3H)

    fc_w = jax.random.uniform(keys[idx], (NUM_CLASSES, HIDDEN), jnp.float32, -k, k); idx += 1
    fc_b = jax.random.uniform(keys[idx], (NUM_CLASSES,), jnp.float32, -k, k); idx += 1

    params = {
        "wih0": wih_list[0],                                  # (512, 384)
        "wihr": jnp.stack(wih_list[1:], axis=0),              # (3, 128, 384)
        "whh": jnp.stack(whh_list, axis=0),                   # (4, 128, 384)
        "b": jnp.stack(b_list, axis=0),                       # (4, 2, 384)
        "fc_w": fc_w.T,                                       # (128, 3)
        "fc_b": fc_b,                                         # (3,)
    }

    x = jax.random.normal(keys[idx], (B, T, INPUT_SIZE), jnp.float32)

    out = jax.jit(simple_rnn_forward)(x, params)
    jax.block_until_ready(out)
    assert out.shape == (B, NUM_CLASSES)
    print("KERNEL_OK")
</pallas_src>

<mosaic_0001>
module attributes {stable_mosaic.version = 11 : i64} {
  func.func @kernel(%arg0: i32, %arg1: memref<64x512xf32, #tpu.memory_space<vmem>>, %arg2: memref<512x384xbf16, #tpu.memory_space<vmem>>, %arg3: memref<3x128x384xbf16, #tpu.memory_space<vmem>>, %arg4: memref<4x128x384xbf16, #tpu.memory_space<vmem>>, %arg5: memref<4x2x384xf32, #tpu.memory_space<vmem>>, %arg6: memref<128x128xbf16, #tpu.memory_space<vmem>>, %arg7: memref<1x128xf32, #tpu.memory_space<vmem>>, %arg8: memref<8x128xf32, #tpu.memory_space<vmem>>) attributes {dimension_semantics = [#tpu.dimension_semantics<arbitrary>], iteration_bounds = array<i64: 1>, scalar_prefetch = 0 : i64, scratch_operands = 0 : i64, tpu.core_type = #tpu.core_type<tc>, window_params = [{pipeline_mode = #tpu.pipeline_mode<synchronous>, transform_indices = @transform_0, window_bounds = array<i64: 64, 512>}, {pipeline_mode = #tpu.pipeline_mode<synchronous>, transform_indices = @transform_1, window_bounds = array<i64: 512, 384>}, {pipeline_mode = #tpu.pipeline_mode<synchronous>, transform_indices = @transform_2, window_bounds = array<i64: 3, 128, 384>}, {pipeline_mode = #tpu.pipeline_mode<synchronous>, transform_indices = @transform_3, window_bounds = array<i64: 4, 128, 384>}, {pipeline_mode = #tpu.pipeline_mode<synchronous>, transform_indices = @transform_4, window_bounds = array<i64: 4, 2, 384>}, {pipeline_mode = #tpu.pipeline_mode<synchronous>, transform_indices = @transform_5, window_bounds = array<i64: 128, 128>}, {pipeline_mode = #tpu.pipeline_mode<synchronous>, transform_indices = @transform_6, window_bounds = array<i64: 1, 128>}, {pipeline_mode = #tpu.pipeline_mode<synchronous>, transform_indices = @transform_7, window_bounds = array<i64: 8, 128>}]} {
    %c0 = arith.constant 0 : index
    %c0_0 = arith.constant 0 : index
    %0 = vector.load %arg1[%c0, %c0_0] : memref<64x512xf32, #tpu.memory_space<vmem>>, vector<64x512xf32>
    %1 = arith.truncf %0 : vector<64x512xf32> to vector<64x512xbf16>
    %c0_1 = arith.constant 0 : index
    %c0_2 = arith.constant 0 : index
    %c0_3 = arith.constant 0 : index
    %2 = vector.load %arg5[%c0_1, %c0_2, %c0_3] : memref<4x2x384xf32, #tpu.memory_space<vmem>>, vector<1x2x384xf32>
    %3 = vector.shape_cast %2 : vector<1x2x384xf32> to vector<2x384xf32>
    %4 = vector.extract_strided_slice %3 {offsets = [0, 0], sizes = [1, 384], strides = [1, 1]} : vector<2x384xf32> to vector<1x384xf32>
    %c0_4 = arith.constant 0 : index
    %c0_5 = arith.constant 0 : index
    %5 = vector.load %arg2[%c0_4, %c0_5] : memref<512x384xbf16, #tpu.memory_space<vmem>>, vector<512x384xbf16>
    %cst = arith.constant dense<0.000000e+00> : vector<64x384xf32>
    %6 = tpu.matmul %1, %5, %cst {dimension_numbers = #tpu.dot_dimension_numbers<[1], [0], [0], [1], [0, 0, 1, 1], [], []>} : vector<64x512xbf16>, vector<512x384xbf16>, vector<64x384xf32> -> vector<64x384xf32>
    %7 = vector.broadcast %4 : vector<1x384xf32> to vector<64x384xf32>
    %8 = arith.addf %6, %7 : vector<64x384xf32>
    %9 = vector.extract_strided_slice %8 {offsets = [0, 0], sizes = [8, 384], strides = [1, 1]} : vector<64x384xf32> to vector<8x384xf32>
    %10 = vector.extract_strided_slice %8 {offsets = [8, 0], sizes = [8, 384], strides = [1, 1]} : vector<64x384xf32> to vector<8x384xf32>
    %11 = vector.extract_strided_slice %8 {offsets = [16, 0], sizes = [8, 384], strides = [1, 1]} : vector<64x384xf32> to vector<8x384xf32>
    %12 = vector.extract_strided_slice %8 {offsets = [24, 0], sizes = [8, 384], strides = [1, 1]} : vector<64x384xf32> to vector<8x384xf32>
    %13 = vector.extract_strided_slice %8 {offsets = [32, 0], sizes = [8, 384], strides = [1, 1]} : vector<64x384xf32> to vector<8x384xf32>
    %14 = vector.extract_strided_slice %8 {offsets = [40, 0], sizes = [8, 384], strides = [1, 1]} : vector<64x384xf32> to vector<8x384xf32>
    %15 = vector.extract_strided_slice %8 {offsets = [48, 0], sizes = [8, 384], strides = [1, 1]} : vector<64x384xf32> to vector<8x384xf32>
    %16 = vector.extract_strided_slice %8 {offsets = [56, 0], sizes = [8, 384], strides = [1, 1]} : vector<64x384xf32> to vector<8x384xf32>
    %c0_6 = arith.constant 0 : index
    %c0_7 = arith.constant 0 : index
    %c0_8 = arith.constant 0 : index
    %17 = vector.load %arg4[%c0_6, %c0_7, %c0_8] : memref<4x128x384xbf16, #tpu.memory_space<vmem>>, vector<1x128x384xbf16>
    %18 = vector.shape_cast %17 : vector<1x128x384xbf16> to vector<128x384xbf16>
    %c0_9 = arith.constant 0 : index
    %c0_10 = arith.constant 0 : index
    %c0_11 = arith.constant 0 : index
    %19 = vector.load %arg5[%c0_9, %c0_10, %c0_11] : memref<4x2x384xf32, #tpu.memory_space<vmem>>, vector<1x2x384xf32>
    %20 = vector.shape_cast %19 : vector<1x2x384xf32> to vector<2x384xf32>
    %21 = vector.extract_strided_slice %20 {offsets = [1, 0], sizes = [1, 384], strides = [1, 1]} : vector<2x384xf32> to vector<1x384xf32>
    %c0_12 = arith.constant 0 : index
    %c0_13 = arith.constant 0 : index
    %c0_14 = arith.constant 0 : index
    %22 = vector.load %arg3[%c0_12, %c0_13, %c0_14] : memref<3x128x384xbf16, #tpu.memory_space<vmem>>, vector<1x128x384xbf16>
    %23 = vector.shape_cast %22 : vector<1x128x384xbf16> to vector<128x384xbf16>
    %c1 = arith.constant 1 : index
    %c0_15 = arith.constant 0 : index
    %c0_16 = arith.constant 0 : index
    %24 = vector.load %arg5[%c1, %c0_15, %c0_16] : memref<4x2x384xf32, #tpu.memory_space<vmem>>, vector<1x2x384xf32>
    %25 = vector.shape_cast %24 : vector<1x2x384xf32> to vector<2x384xf32>
    %26 = vector.extract_strided_slice %25 {offsets = [0, 0], sizes = [1, 384], strides = [1, 1]} : vector<2x384xf32> to vector<1x384xf32>
    %cst_17 = arith.constant 0.000000e+00 : f32
    %27 = vector.broadcast %cst_17 : f32 to vector<8x128xf32>
    %28 = arith.truncf %27 : vector<8x128xf32> to vector<8x128xbf16>
    %cst_18 = arith.constant dense<0.000000e+00> : vector<8x384xf32>
    %29 = tpu.matmul %28, %18, %cst_18 {dimension_numbers = #tpu.dot_dimension_numbers<[1], [0], [0], [1], [0, 0, 1, 1], [], []>} : vector<8x128xbf16>, vector<128x384xbf16>, vector<8x384xf32> -> vector<8x384xf32>
    %30 = vector.broadcast %21 : vector<1x384xf32> to vector<8x384xf32>
    %31 = arith.addf %29, %30 : vector<8x384xf32>
    %32 = vector.extract_strided_slice %9 {offsets = [0, 0], sizes = [8, 128], strides = [1, 1]} : vector<8x384xf32> to vector<8x128xf32>
    %33 = vector.extract_strided_slice %31 {offsets = [0, 0], sizes = [8, 128], strides = [1, 1]} : vector<8x384xf32> to vector<8x128xf32>
    %34 = arith.addf %32, %33 : vector<8x128xf32>
    %35 = arith.negf %34 : vector<8x128xf32>
    %36 = math.exp %35 : vector<8x128xf32>
    %cst_19 = arith.constant 1.000000e+00 : f32
    %37 = vector.broadcast %cst_19 : f32 to vector<8x128xf32>
    %38 = arith.addf %37, %36 : vector<8x128xf32>
    %39 = arith.divf %37, %38 : vector<8x128xf32>
    %40 = vector.extract_strided_slice %9 {offsets = [0, 128], sizes = [8, 128], strides = [1, 1]} : vector<8x384xf32> to vector<8x128xf32>
    %41 = vector.extract_strided_slice %31 {offsets = [0, 128], sizes = [8, 128], strides = [1, 1]} : vector<8x384xf32> to vector<8x128xf32>
    %42 = arith.addf %40, %41 : vector<8x128xf32>
    %43 = arith.negf %42 : vector<8x128xf32>
    %44 = math.exp %43 : vector<8x128xf32>
    %cst_20 = arith.constant 1.000000e+00 : f32
    %45 = vector.broadcast %cst_20 : f32 to vector<8x128xf32>
    %46 = arith.addf %45, %44 : vector<8x128xf32>
    %47 = arith.divf %45, %46 : vector<8x128xf32>
    %48 = vector.extract_strided_slice %9 {offsets = [0, 256], sizes = [8, 128], strides = [1, 1]} : vector<8x384xf32> to vector<8x128xf32>
    %49 = vector.extract_strided_slice %31 {offsets = [0, 256], sizes = [8, 128], strides = [1, 1]} : vector<8x384xf32> to vector<8x128xf32>
    %50 = arith.mulf %39, %49 : vector<8x128xf32>
    %51 = arith.addf %48, %50 : vector<8x128xf32>
    %52 = math.tanh %51 : vector<8x128xf32>
    %cst_21 = arith.constant 1.000000e+00 : f32
    %53 = vector.broadcast %cst_21 : f32 to vector<8x128xf32>
    %54 = arith.subf %53, %47 : vector<8x128xf32>
    %55 = arith.mulf %54, %52 : vector<8x128xf32>
    %56 = arith.mulf %47, %27 : vector<8x128xf32>
    %57 = arith.addf %55, %56 : vector<8x128xf32>
    %58 = arith.truncf %57 : vector<8x128xf32> to vector<8x128xbf16>
    %cst_22 = arith.constant dense<0.000000e+00> : vector<8x384xf32>
    %59 = tpu.matmul %58, %23, %cst_22 {dimension_numbers = #tpu.dot_dimension_numbers<[1], [0], [0], [1], [0, 0, 1, 1], [], []>} : vector<8x128xbf16>, vector<128x384xbf16>, vector<8x384xf32> -> vector<8x384xf32>
    %60 = vector.broadcast %26 : vector<1x384xf32> to vector<8x384xf32>
    %61 = arith.addf %59, %60 : vector<8x384xf32>
    %62 = arith.truncf %57 : vector<8x128xf32> to vector<8x128xbf16>
    %cst_23 = arith.constant dense<0.000000e+00> : vector<8x384xf32>
    %63 = tpu.matmul %62, %18, %cst_23 {dimension_numbers = #tpu.dot_dimension_numbers<[1], [0], [0], [1], [0, 0, 1, 1], [], []>} : vector<8x128xbf16>, vector<128x384xbf16>, vector<8x384xf32> -> vector<8x384xf32>
    %64 = vector.broadcast %21 : vector<1x384xf32> to vector<8x384xf32>
    %65 = arith.addf %63, %64 : vector<8x384xf32>
    %66 = vector.extract_strided_slice %10 {offsets = [0, 0], sizes = [8, 128], strides = [1, 1]} : vector<8x384xf32> to vector<8x128xf32>
    %67 = vector.extract_strided_slice %65 {offsets = [0, 0], sizes = [8, 128], strides = [1, 1]} : vector<8x384xf32> to vector<8x128xf32>
    %68 = arith.addf %66, %67 : vector<8x128xf32>
    %69 = arith.negf %68 : vector<8x128xf32>
    %70 = math.exp %69 : vector<8x128xf32>
    %cst_24 = arith.constant 1.000000e+00 : f32
    %71 = vector.broadcast %cst_24 : f32 to vector<8x128xf32>
    %72 = arith.addf %71, %70 : vector<8x128xf32>
    %73 = arith.divf %71, %72 : vector<8x128xf32>
    %74 = vector.extract_strided_slice %10 {offsets = [0, 128], sizes = [8, 128], strides = [1, 1]} : vector<8x384xf32> to vector<8x128xf32>
    %75 = vector.extract_strided_slice %65 {offsets = [0, 128], sizes = [8, 128], strides = [1, 1]} : vector<8x384xf32> to vector<8x128xf32>
    %76 = arith.addf %74, %75 : vector<8x128xf32>
    %77 = arith.negf %76 : vector<8x128xf32>
    %78 = math.exp %77 : vector<8x128xf32>
    %cst_25 = arith.constant 1.000000e+00 : f32
    %79 = vector.broadcast %cst_25 : f32 to vector<8x128xf32>
    %80 = arith.addf %79, %78 : vector<8x128xf32>
    %81 = arith.divf %79, %80 : vector<8x128xf32>
    %82 = vector.extract_strided_slice %10 {offsets = [0, 256], sizes = [8, 128], strides = [1, 1]} : vector<8x384xf32> to vector<8x128xf32>
    %83 = vector.extract_strided_slice %65 {offsets = [0, 256], sizes = [8, 128], strides = [1, 1]} : vector<8x384xf32> to vector<8x128xf32>
    %84 = arith.mulf %73, %83 : vector<8x128xf32>
    %85 = arith.addf %82, %84 : vector<8x128xf32>
    %86 = math.tanh %85 : vector<8x128xf32>
    %cst_26 = arith.constant 1.000000e+00 : f32
    %87 = vector.broadcast %cst_26 : f32 to vector<8x128xf32>
    %88 = arith.subf %87, %81 : vector<8x128xf32>
    %89 = arith.mulf %88, %86 : vector<8x128xf32>
    %90 = arith.mulf %81, %57 : vector<8x128xf32>
    %91 = arith.addf %89, %90 : vector<8x128xf32>
    %92 = arith.truncf %91 : vector<8x128xf32> to vector<8x128xbf16>
    %cst_27 = arith.constant dense<0.000000e+00> : vector<8x384xf32>
    %93 = tpu.matmul %92, %23, %cst_27 {dimension_numbers = #tpu.dot_dimension_numbers<[1], [0], [0], [1], [0, 0, 1, 1], [], []>} : vector<8x128xbf16>, vector<128x384xbf16>, vector<8x384xf32> -> vector<8x384xf32>
    %94 = vector.broadcast %26 : vector<1x384xf32> to vector<8x384xf32>
    %95 = arith.addf %93, %94 : vector<8x384xf32>
    %96 = arith.truncf %91 : vector<8x128xf32> to vector<8x128xbf16>
    %cst_28 = arith.constant dense<0.000000e+00> : vector<8x384xf32>
    %97 = tpu.matmul %96, %18, %cst_28 {dimension_numbers = #tpu.dot_dimension_numbers<[1], [0], [0], [1], [0, 0, 1, 1], [], []>} : vector<8x128xbf16>, vector<128x384xbf16>, vector<8x384xf32> -> vector<8x384xf32>
    %98 = vector.broadcast %21 : vector<1x384xf32> to vector<8x384xf32>
    %99 = arith.addf %97, %98 : vector<8x384xf32>
    %100 = vector.extract_strided_slice %11 {offsets = [0, 0], sizes = [8, 128], strides = [1, 1]} : vector<8x384xf32> to vector<8x128xf32>
    %101 = vector.extract_strided_slice %99 {offsets = [0, 0], sizes = [8, 128], strides = [1, 1]} : vector<8x384xf32> to vector<8x128xf32>
    %102 = arith.addf %100, %101 : vector<8x128xf32>
    %103 = arith.negf %102 : vector<8x128xf32>
    %104 = math.exp %103 : vector<8x128xf32>
    %cst_29 = arith.constant 1.000000e+00 : f32
    %105 = vector.broadcast %cst_29 : f32 to vector<8x128xf32>
    %106 = arith.addf %105, %104 : vector<8x128xf32>
    %107 = arith.divf %105, %106 : vector<8x128xf32>
    %108 = vector.extract_strided_slice %11 {offsets = [0, 128], sizes = [8, 128], strides = [1, 1]} : vector<8x384xf32> to vector<8x128xf32>
    %109 = vector.extract_strided_slice %99 {offsets = [0, 128], sizes = [8, 128], strides = [1, 1]} : vector<8x384xf32> to vector<8x128xf32>
    %110 = arith.addf %108, %109 : vector<8x128xf32>
    %111 = arith.negf %110 : vector<8x128xf32>
    %112 = math.exp %111 : vector<8x128xf32>
    %cst_30 = arith.constant 1.000000e+00 : f32
    %113 = vector.broadcast %cst_30 : f32 to vector<8x128xf32>
    %114 = arith.addf %113, %112 : vector<8x128xf32>
    %115 = arith.divf %113, %114 : vector<8x128xf32>
    %116 = vector.extract_strided_slice %11 {offsets = [0, 256], sizes = [8, 128], strides = [1, 1]} : vector<8x384xf32> to vector<8x128xf32>
    %117 = vector.extract_strided_slice %99 {offsets = [0, 256], sizes = [8, 128], strides = [1, 1]} : vector<8x384xf32> to vector<8x128xf32>
    %118 = arith.mulf %107, %117 : vector<8x128xf32>
    %119 = arith.addf %116, %118 : vector<8x128xf32>
    %120 = math.tanh %119 : vector<8x128xf32>
    %cst_31 = arith.constant 1.000000e+00 : f32
    %121 = vector.broadcast %cst_31 : f32 to vector<8x128xf32>
    %122 = arith.subf %121, %115 : vector<8x128xf32>
    %123 = arith.mulf %122, %120 : vector<8x128xf32>
    %124 = arith.mulf %115, %91 : vector<8x128xf32>
    %125 = arith.addf %123, %124 : vector<8x128xf32>
    %126 = arith.truncf %125 : vector<8x128xf32> to vector<8x128xbf16>
    %cst_32 = arith.constant dense<0.000000e+00> : vector<8x384xf32>
    %127 = tpu.matmul %126, %23, %cst_32 {dimension_numbers = #tpu.dot_dimension_numbers<[1], [0], [0], [1], [0, 0, 1, 1], [], []>} : vector<8x128xbf16>, vector<128x384xbf16>, vector<8x384xf32> -> vector<8x384xf32>
    %128 = vector.broadcast %26 : vector<1x384xf32> to vector<8x384xf32>
    %129 = arith.addf %127, %128 : vector<8x384xf32>
    %130 = arith.truncf %125 : vector<8x128xf32> to vector<8x128xbf16>
    %cst_33 = arith.constant dense<0.000000e+00> : vector<8x384xf32>
    %131 = tpu.matmul %130, %18, %cst_33 {dimension_numbers = #tpu.dot_dimension_numbers<[1], [0], [0], [1], [0, 0, 1, 1], [], []>} : vector<8x128xbf16>, vector<128x384xbf16>, vector<8x384xf32> -> vector<8x384xf32>
    %132 = vector.broadcast %21 : vector<1x384xf32> to vector<8x384xf32>
    %133 = arith.addf %131, %132 : vector<8x384xf32>
    %134 = vector.extract_strided_slice %12 {offsets = [0, 0], sizes = [8, 128], strides = [1, 1]} : vector<8x384xf32> to vector<8x128xf32>
    %135 = vector.extract_strided_slice %133 {offsets = [0, 0], sizes = [8, 128], strides = [1, 1]} : vector<8x384xf32> to vector<8x128xf32>
    %136 = arith.addf %134, %135 : vector<8x128xf32>
    %137 = arith.negf %136 : vector<8x128xf32>
    %138 = math.exp %137 : vector<8x128xf32>
    %cst_34 = arith.constant 1.000000e+00 : f32
    %139 = vector.broadcast %cst_34 : f32 to vector<8x128xf32>
    %140 = arith.addf %139, %138 : vector<8x128xf32>
    %141 = arith.divf %139, %140 : vector<8x128xf32>
    %142 = vector.extract_strided_slice %12 {offsets = [0, 128], sizes = [8, 128], strides = [1, 1]} : vector<8x384xf32> to vector<8x128xf32>
    %143 = vector.extract_strided_slice %133 {offsets = [0, 128], sizes = [8, 128], strides = [1, 1]} : vector<8x384xf32> to vector<8x128xf32>
    %144 = arith.addf %142, %143 : vector<8x128xf32>
    %145 = arith.negf %144 : vector<8x128xf32>
    %146 = math.exp %145 : vector<8x128xf32>
    %cst_35 = arith.constant 1.000000e+00 : f32
    %147 = vector.broadcast %cst_35 : f32 to vector<8x128xf32>
    %148 = arith.addf %147, %146 : vector<8x128xf32>
    %149 = arith.divf %147, %148 : vector<8x128xf32>
    %150 = vector.extract_strided_slice %12 {offsets = [0, 256], sizes = [8, 128], strides = [1, 1]} : vector<8x384xf32> to vector<8x128xf32>
    %151 = vector.extract_strided_slice %133 {offsets = [0, 256], sizes = [8, 128], strides = [1, 1]} : vector<8x384xf32> to vector<8x128xf32>
    %152 = arith.mulf %141, %151 : vector<8x128xf32>
    %153 = arith.addf %150, %152 : vector<8x128xf32>
    %154 = math.tanh %153 : vector<8x128xf32>
    %cst_36 = arith.constant 1.000000e+00 : f32
    %155 = vector.broadcast %cst_36 : f32 to vector<8x128xf32>
    %156 = arith.subf %155, %149 : vector<8x128xf32>
    %157 = arith.mulf %156, %154 : vector<8x128xf32>
    %158 = arith.mulf %149, %125 : vector<8x128xf32>
    %159 = arith.addf %157, %158 : vector<8x128xf32>
    %160 = arith.truncf %159 : vector<8x128xf32> to vector<8x128xbf16>
    %cst_37 = arith.constant dense<0.000000e+00> : vector<8x384xf32>
    %161 = tpu.matmul %160, %23, %cst_37 {dimension_numbers = #tpu.dot_dimension_numbers<[1], [0], [0], [1], [0, 0, 1, 1], [], []>} : vector<8x128xbf16>, vector<128x384xbf16>, vector<8x384xf32> -> vector<8x384xf32>
    %162 = vector.broadcast %26 : vector<1x384xf32> to vector<8x384xf32>
    %163 = arith.addf %161, %162 : vector<8x384xf32>
    %164 = arith.truncf %159 : vector<8x128xf32> to vector<8x128xbf16>
    %cst_38 = arith.constant dense<0.000000e+00> : vector<8x384xf32>
    %165 = tpu.matmul %164, %18, %cst_38 {dimension_numbers = #tpu.dot_dimension_numbers<[1], [0], [0], [1], [0, 0, 1, 1], [], []>} : vector<8x128xbf16>, vector<128x384xbf16>, vector<8x384xf32> -> vector<8x384xf32>
    %166 = vector.broadcast %21 : vector<1x384xf32> to vector<8x384xf32>
    %167 = arith.addf %165, %166 : vector<8x384xf32>
    %168 = vector.extract_strided_slice %13 {offsets = [0, 0], sizes = [8, 128], strides = [1, 1]} : vector<8x384xf32> to vector<8x128xf32>
    %169 = vector.extract_strided_slice %167 {offsets = [0, 0], sizes = [8, 128], strides = [1, 1]} : vector<8x384xf32> to vector<8x128xf32>
    %170 = arith.addf %168, %169 : vector<8x128xf32>
    %171 = arith.negf %170 : vector<8x128xf32>
    %172 = math.exp %171 : vector<8x128xf32>
    %cst_39 = arith.constant 1.000000e+00 : f32
    %173 = vector.broadcast %cst_39 : f32 to vector<8x128xf32>
    %174 = arith.addf %173, %172 : vector<8x128xf32>
    %175 = arith.divf %173, %174 : vector<8x128xf32>
    %176 = vector.extract_strided_slice %13 {offsets = [0, 128], sizes = [8, 128], strides = [1, 1]} : vector<8x384xf32> to vector<8x128xf32>
    %177 = vector.extract_strided_slice %167 {offsets = [0, 128], sizes = [8, 128], strides = [1, 1]} : vector<8x384xf32> to vector<8x128xf32>
    %178 = arith.addf %176, %177 : vector<8x128xf32>
    %179 = arith.negf %178 : vector<8x128xf32>
    %180 = math.exp %179 : vector<8x128xf32>
    %cst_40 = arith.constant 1.000000e+00 : f32
    %181 = vector.broadcast %cst_40 : f32 to vector<8x128xf32>
    %182 = arith.addf %181, %180 : vector<8x128xf32>
    %183 = arith.divf %181, %182 : vector<8x128xf32>
    %184 = vector.extract_strided_slice %13 {offsets = [0, 256], sizes = [8, 128], strides = [1, 1]} : vector<8x384xf32> to vector<8x128xf32>
    %185 = vector.extract_strided_slice %167 {offsets = [0, 256], sizes = [8, 128], strides = [1, 1]} : vector<8x384xf32> to vector<8x128xf32>
    %186 = arith.mulf %175, %185 : vector<8x128xf32>
    %187 = arith.addf %184, %186 : vector<8x128xf32>
    %188 = math.tanh %187 : vector<8x128xf32>
    %cst_41 = arith.constant 1.000000e+00 : f32
    %189 = vector.broadcast %cst_41 : f32 to vector<8x128xf32>
    %190 = arith.subf %189, %183 : vector<8x128xf32>
    %191 = arith.mulf %190, %188 : vector<8x128xf32>
    %192 = arith.mulf %183, %159 : vector<8x128xf32>
    %193 = arith.addf %191, %192 : vector<8x128xf32>
    %194 = arith.truncf %193 : vector<8x128xf32> to vector<8x128xbf16>
    %cst_42 = arith.constant dense<0.000000e+00> : vector<8x384xf32>
    %195 = tpu.matmul %194, %23, %cst_42 {dimension_numbers = #tpu.dot_dimension_numbers<[1], [0], [0], [1], [0, 0, 1, 1], [], []>} : vector<8x128xbf16>, vector<128x384xbf16>, vector<8x384xf32> -> vector<8x384xf32>
    %196 = vector.broadcast %26 : vector<1x384xf32> to vector<8x384xf32>
    %197 = arith.addf %195, %196 : vector<8x384xf32>
    %198 = arith.truncf %193 : vector<8x128xf32> to vector<8x128xbf16>
    %cst_43 = arith.constant dense<0.000000e+00> : vector<8x384xf32>
    %199 = tpu.matmul %198, %18, %cst_43 {dimension_numbers = #tpu.dot_dimension_numbers<[1], [0], [0], [1], [0, 0, 1, 1], [], []>} : vector<8x128xbf16>, vector<128x384xbf16>, vector<8x384xf32> -> vector<8x384xf32>
    %200 = vector.broadcast %21 : vector<1x384xf32> to vector<8x384xf32>
    %201 = arith.addf %199, %200 : vector<8x384xf32>
    %202 = vector.extract_strided_slice %14 {offsets = [0, 0], sizes = [8, 128], strides = [1, 1]} : vector<8x384xf32> to vector<8x128xf32>
    %203 = vector.extract_strided_slice %201 {offsets = [0, 0], sizes = [8, 128], strides = [1, 1]} : vector<8x384xf32> to vector<8x128xf32>
    %204 = arith.addf %202, %203 : vector<8x128xf32>
    %205 = arith.negf %204 : vector<8x128xf32>
    %206 = math.exp %205 : vector<8x128xf32>
    %cst_44 = arith.constant 1.000000e+00 : f32
    %207 = vector.broadcast %cst_44 : f32 to vector<8x128xf32>
    %208 = arith.addf %207, %206 : vector<8x128xf32>
    %209 = arith.divf %207, %208 : vector<8x128xf32>
    %210 = vector.extract_strided_slice %14 {offsets = [0, 128], sizes = [8, 128], strides = [1, 1]} : vector<8x384xf32> to vector<8x128xf32>
    %211 = vector.extract_strided_slice %201 {offsets = [0, 128], sizes = [8, 128], strides = [1, 1]} : vector<8x384xf32> to vector<8x128xf32>
    %212 = arith.addf %210, %211 : vector<8x128xf32>
    %213 = arith.negf %212 : vector<8x128xf32>
    %214 = math.exp %213 : vector<8x128xf32>
    %cst_45 = arith.constant 1.000000e+00 : f32
    %215 = vector.broadcast %cst_45 : f32 to vector<8x128xf32>
    %216 = arith.addf %215, %214 : vector<8x128xf32>
    %217 = arith.divf %215, %216 : vector<8x128xf32>
    %218 = vector.extract_strided_slice %14 {offsets = [0, 256], sizes = [8, 128], strides = [1, 1]} : vector<8x384xf32> to vector<8x128xf32>
    %219 = vector.extract_strided_slice %201 {offsets = [0, 256], sizes = [8, 128], strides = [1, 1]} : vector<8x384xf32> to vector<8x128xf32>
    %220 = arith.mulf %209, %219 : vector<8x128xf32>
    %221 = arith.addf %218, %220 : vector<8x128xf32>
    %222 = math.tanh %221 : vector<8x128xf32>
    %cst_46 = arith.constant 1.000000e+00 : f32
    %223 = vector.broadcast %cst_46 : f32 to vector<8x128xf32>
    %224 = arith.subf %223, %217 : vector<8x128xf32>
    %225 = arith.mulf %224, %222 : vector<8x128xf32>
    %226 = arith.mulf %217, %193 : vector<8x128xf32>
    %227 = arith.addf %225, %226 : vector<8x128xf32>
    %228 = arith.truncf %227 : vector<8x128xf32> to vector<8x128xbf16>
    %cst_47 = arith.constant dense<0.000000e+00> : vector<8x384xf32>
    %229 = tpu.matmul %228, %23, %cst_47 {dimension_numbers = #tpu.dot_dimension_numbers<[1], [0], [0], [1], [0, 0, 1, 1], [], []>} : vector<8x128xbf16>, vector<128x384xbf16>, vector<8x384xf32> -> vector<8x384xf32>
    %230 = vector.broadcast %26 : vector<1x384xf32> to vector<8x384xf32>
    %231 = arith.addf %229, %230 : vector<8x384xf32>
    %232 = arith.truncf %227 : vector<8x128xf32> to vector<8x128xbf16>
    %cst_48 = arith.constant dense<0.000000e+00> : vector<8x384xf32>
    %233 = tpu.matmul %232, %18, %cst_48 {dimension_numbers = #tpu.dot_dimension_numbers<[1], [0], [0], [1], [0, 0, 1, 1], [], []>} : vector<8x128xbf16>, vector<128x384xbf16>, vector<8x384xf32> -> vector<8x384xf32>
    %234 = vector.broadcast %21 : vector<1x384xf32> to vector<8x384xf32>
    %235 = arith.addf %233, %234 : vector<8x384xf32>
    %236 = vector.extract_strided_slice %15 {offsets = [0, 0], sizes = [8, 128], strides = [1, 1]} : vector<8x384xf32> to vector<8x128xf32>
    %237 = vector.extract_strided_slice %235 {offsets = [0, 0], sizes = [8, 128], strides = [1, 1]} : vector<8x384xf32> to vector<8x128xf32>
    %238 = arith.addf %236, %237 : vector<8x128xf32>
    %239 = arith.negf %238 : vector<8x128xf32>
    %240 = math.exp %239 : vector<8x128xf32>
    %cst_49 = arith.constant 1.000000e+00 : f32
    %241 = vector.broadcast %cst_49 : f32 to vector<8x128xf32>
    %242 = arith.addf %241, %240 : vector<8x128xf32>
    %243 = arith.divf %241, %242 : vector<8x128xf32>
    %244 = vector.extract_strided_slice %15 {offsets = [0, 128], sizes = [8, 128], strides = [1, 1]} : vector<8x384xf32> to vector<8x128xf32>
    %245 = vector.extract_strided_slice %235 {offsets = [0, 128], sizes = [8, 128], strides = [1, 1]} : vector<8x384xf32> to vector<8x128xf32>
    %246 = arith.addf %244, %245 : vector<8x128xf32>
    %247 = arith.negf %246 : vector<8x128xf32>
    %248 = math.exp %247 : vector<8x128xf32>
    %cst_50 = arith.constant 1.000000e+00 : f32
    %249 = vector.broadcast %cst_50 : f32 to vector<8x128xf32>
    %250 = arith.addf %249, %248 : vector<8x128xf32>
    %251 = arith.divf %249, %250 : vector<8x128xf32>
    %252 = vector.extract_strided_slice %15 {offsets = [0, 256], sizes = [8, 128], strides = [1, 1]} : vector<8x384xf32> to vector<8x128xf32>
    %253 = vector.extract_strided_slice %235 {offsets = [0, 256], sizes = [8, 128], strides = [1, 1]} : vector<8x384xf32> to vector<8x128xf32>
    %254 = arith.mulf %243, %253 : vector<8x128xf32>
    %255 = arith.addf %252, %254 : vector<8x128xf32>
    %256 = math.tanh %255 : vector<8x128xf32>
    %cst_51 = arith.constant 1.000000e+00 : f32
    %257 = vector.broadcast %cst_51 : f32 to vector<8x128xf32>
    %258 = arith.subf %257, %251 : vector<8x128xf32>
    %259 = arith.mulf %258, %256 : vector<8x128xf32>
    %260 = arith.mulf %251, %227 : vector<8x128xf32>
    %261 = arith.addf %259, %260 : vector<8x128xf32>
    %262 = arith.truncf %261 : vector<8x128xf32> to vector<8x128xbf16>
    %cst_52 = arith.constant dense<0.000000e+00> : vector<8x384xf32>
    %263 = tpu.matmul %262, %23, %cst_52 {dimension_numbers = #tpu.dot_dimension_numbers<[1], [0], [0], [1], [0, 0, 1, 1], [], []>} : vector<8x128xbf16>, vector<128x384xbf16>, vector<8x384xf32> -> vector<8x384xf32>
    %264 = vector.broadcast %26 : vector<1x384xf32> to vector<8x384xf32>
    %265 = arith.addf %263, %264 : vector<8x384xf32>
    %266 = arith.truncf %261 : vector<8x128xf32> to vector<8x128xbf16>
    %cst_53 = arith.constant dense<0.000000e+00> : vector<8x384xf32>
    %267 = tpu.matmul %266, %18, %cst_53 {dimension_numbers = #tpu.dot_dimension_numbers<[1], [0], [0], [1], [0, 0, 1, 1], [], []>} : vector<8x128xbf16>, vector<128x384xbf16>, vector<8x384xf32> -> vector<8x384xf32>
    %268 = vector.broadcast %21 : vector<1x384xf32> to vector<8x384xf32>
    %269 = arith.addf %267, %268 : vector<8x384xf32>
    %270 = vector.extract_strided_slice %16 {offsets = [0, 0], sizes = [8, 128], strides = [1, 1]} : vector<8x384xf32> to vector<8x128xf32>
    %271 = vector.extract_strided_slice %269 {offsets = [0, 0], sizes = [8, 128], strides = [1, 1]} : vector<8x384xf32> to vector<8x128xf32>
    %272 = arith.addf %270, %271 : vector<8x128xf32>
    %273 = arith.negf %272 : vector<8x128xf32>
    %274 = math.exp %273 : vector<8x128xf32>
    %cst_54 = arith.constant 1.000000e+00 : f32
    %275 = vector.broadcast %cst_54 : f32 to vector<8x128xf32>
    %276 = arith.addf %275, %274 : vector<8x128xf32>
    %277 = arith.divf %275, %276 : vector<8x128xf32>
    %278 = vector.extract_strided_slice %16 {offsets = [0, 128], sizes = [8, 128], strides = [1, 1]} : vector<8x384xf32> to vector<8x128xf32>
    %279 = vector.extract_strided_slice %269 {offsets = [0, 128], sizes = [8, 128], strides = [1, 1]} : vector<8x384xf32> to vector<8x128xf32>
    %280 = arith.addf %278, %279 : vector<8x128xf32>
    %281 = arith.negf %280 : vector<8x128xf32>
    %282 = math.exp %281 : vector<8x128xf32>
    %cst_55 = arith.constant 1.000000e+00 : f32
    %283 = vector.broadcast %cst_55 : f32 to vector<8x128xf32>
    %284 = arith.addf %283, %282 : vector<8x128xf32>
    %285 = arith.divf %283, %284 : vector<8x128xf32>
    %286 = vector.extract_strided_slice %16 {offsets = [0, 256], sizes = [8, 128], strides = [1, 1]} : vector<8x384xf32> to vector<8x128xf32>
    %287 = vector.extract_strided_slice %269 {offsets = [0, 256], sizes = [8, 128], strides = [1, 1]} : vector<8x384xf32> to vector<8x128xf32>
    %288 = arith.mulf %277, %287 : vector<8x128xf32>
    %289 = arith.addf %286, %288 : vector<8x128xf32>
    %290 = math.tanh %289 : vector<8x128xf32>
    %cst_56 = arith.constant 1.000000e+00 : f32
    %291 = vector.broadcast %cst_56 : f32 to vector<8x128xf32>
    %292 = arith.subf %291, %285 : vector<8x128xf32>
    %293 = arith.mulf %292, %290 : vector<8x128xf32>
    %294 = arith.mulf %285, %261 : vector<8x128xf32>
    %295 = arith.addf %293, %294 : vector<8x128xf32>
    %296 = arith.truncf %295 : vector<8x128xf32> to vector<8x128xbf16>
    %cst_57 = arith.constant dense<0.000000e+00> : vector<8x384xf32>
    %297 = tpu.matmul %296, %23, %cst_57 {dimension_numbers = #tpu.dot_dimension_numbers<[1], [0], [0], [1], [0, 0, 1, 1], [], []>} : vector<8x128xbf16>, vector<128x384xbf16>, vector<8x384xf32> -> vector<8x384xf32>
    %298 = vector.broadcast %26 : vector<1x384xf32> to vector<8x384xf32>
    %299 = arith.addf %297, %298 : vector<8x384xf32>
    %c1_58 = arith.constant 1 : index
    %c0_59 = arith.constant 0 : index
    %c0_60 = arith.constant 0 : index
    %300 = vector.load %arg4[%c1_58, %c0_59, %c0_60] : memref<4x128x384xbf16, #tpu.memory_space<vmem>>, vector<1x128x384xbf16>
    %301 = vector.shape_cast %300 : vector<1x128x384xbf16> to vector<128x384xbf16>
    %c1_61 = arith.constant 1 : index
    %c0_62 = arith.constant 0 : index
    %c0_63 = arith.constant 0 : index
    %302 = vector.load %arg5[%c1_61, %c0_62, %c0_63] : memref<4x2x384xf32, #tpu.memory_space<vmem>>, vector<1x2x384xf32>
    %303 = vector.shape_cast %302 : vector<1x2x384xf32> to vector<2x384xf32>
    %304 = vector.extract_strided_slice %303 {offsets = [1, 0], sizes = [1, 384], strides = [1, 1]} : vector<2x384xf32> to vector<1x384xf32>
    %c1_64 = arith.constant 1 : index
    %c0_65 = arith.constant 0 : index
    %c0_66 = arith.constant 0 : index
    %305 = vector.load %arg3[%c1_64, %c0_65, %c0_66] : memref<3x128x384xbf16, #tpu.memory_space<vmem>>, vector<1x128x384xbf16>
    %306 = vector.shape_cast %305 : vector<1x128x384xbf16> to vector<128x384xbf16>
    %c2 = arith.constant 2 : index
    %c0_67 = arith.constant 0 : index
    %c0_68 = arith.constant 0 : index
    %307 = vector.load %arg5[%c2, %c0_67, %c0_68] : memref<4x2x384xf32, #tpu.memory_space<vmem>>, vector<1x2x384xf32>
    %308 = vector.shape_cast %307 : vector<1x2x384xf32> to vector<2x384xf32>
    %309 = vector.extract_strided_slice %308 {offsets = [0, 0], sizes = [1, 384], strides = [1, 1]} : vector<2x384xf32> to vector<1x384xf32>
    %cst_69 = arith.constant 0.000000e+00 : f32
    %310 = vector.broadcast %cst_69 : f32 to vector<8x128xf32>
    %311 = arith.truncf %310 : vector<8x128xf32> to vector<8x128xbf16>
    %cst_70 = arith.constant dense<0.000000e+00> : vector<8x384xf32>
    %312 = tpu.matmul %311, %301, %cst_70 {dimension_numbers = #tpu.dot_dimension_numbers<[1], [0], [0], [1], [0, 0, 1, 1], [], []>} : vector<8x128xbf16>, vector<128x384xbf16>, vector<8x384xf32> -> vector<8x384xf32>
    %313 = vector.broadcast %304 : vector<1x384xf32> to vector<8x384xf32>
    %314 = arith.addf %312, %313 : vector<8x384xf32>
    %315 = vector.extract_strided_slice %61 {offsets = [0, 0], sizes = [8, 128], strides = [1, 1]} : vector<8x384xf32> to vector<8x128xf32>
    %316 = vector.extract_strided_slice %314 {offsets = [0, 0], sizes = [8, 128], strides = [1, 1]} : vector<8x384xf32> to vector<8x128xf32>
    %317 = arith.addf %315, %316 : vector<8x128xf32>
    %318 = arith.negf %317 : vector<8x128xf32>
    %319 = math.exp %318 : vector<8x128xf32>
    %cst_71 = arith.constant 1.000000e+00 : f32
    %320 = vector.broadcast %cst_71 : f32 to vector<8x128xf32>
    %321 = arith.addf %320, %319 : vector<8x128xf32>
    %322 = arith.divf %320, %321 : vector<8x128xf32>
    %323 = vector.extract_strided_slice %61 {offsets = [0, 128], sizes = [8, 128], strides = [1, 1]} : vector<8x384xf32> to vector<8x128xf32>
    %324 = vector.extract_strided_slice %314 {offsets = [0, 128], sizes = [8, 128], strides = [1, 1]} : vector<8x384xf32> to vector<8x128xf32>
    %325 = arith.addf %323, %324 : vector<8x128xf32>
    %326 = arith.negf %325 : vector<8x128xf32>
    %327 = math.exp %326 : vector<8x128xf32>
    %cst_72 = arith.constant 1.000000e+00 : f32
    %328 = vector.broadcast %cst_72 : f32 to vector<8x128xf32>
    %329 = arith.addf %328, %327 : vector<8x128xf32>
    %330 = arith.divf %328, %329 : vector<8x128xf32>
    %331 = vector.extract_strided_slice %61 {offsets = [0, 256], sizes = [8, 128], strides = [1, 1]} : vector<8x384xf32> to vector<8x128xf32>
    %332 = vector.extract_strided_slice %314 {offsets = [0, 256], sizes = [8, 128], strides = [1, 1]} : vector<8x384xf32> to vector<8x128xf32>
    %333 = arith.mulf %322, %332 : vector<8x128xf32>
    %334 = arith.addf %331, %333 : vector<8x128xf32>
    %335 = math.tanh %334 : vector<8x128xf32>
    %cst_73 = arith.constant 1.000000e+00 : f32
    %336 = vector.broadcast %cst_73 : f32 to vector<8x128xf32>
    %337 = arith.subf %336, %330 : vector<8x128xf32>
    %338 = arith.mulf %337, %335 : vector<8x128xf32>
    %339 = arith.mulf %330, %310 : vector<8x128xf32>
    %340 = arith.addf %338, %339 : vector<8x128xf32>
    %341 = arith.truncf %340 : vector<8x128xf32> to vector<8x128xbf16>
    %cst_74 = arith.constant dense<0.000000e+00> : vector<8x384xf32>
    %342 = tpu.matmul %341, %306, %cst_74 {dimension_numbers = #tpu.dot_dimension_numbers<[1], [0], [0], [1], [0, 0, 1, 1], [], []>} : vector<8x128xbf16>, vector<128x384xbf16>, vector<8x384xf32> -> vector<8x384xf32>
    %343 = vector.broadcast %309 : vector<1x384xf32> to vector<8x384xf32>
    %344 = arith.addf %342, %343 : vector<8x384xf32>
    %345 = arith.truncf %340 : vector<8x128xf32> to vector<8x128xbf16>
    %cst_75 = arith.constant dense<0.000000e+00> : vector<8x384xf32>
    %346 = tpu.matmul %345, %301, %cst_75 {dimension_numbers = #tpu.dot_dimension_numbers<[1], [0], [0], [1], [0, 0, 1, 1], [], []>} : vector<8x128xbf16>, vector<128x384xbf16>, vector<8x384xf32> -> vector<8x384xf32>
    %347 = vector.broadcast %304 : vector<1x384xf32> to vector<8x384xf32>
    %348 = arith.addf %346, %347 : vector<8x384xf32>
    %349 = vector.extract_strided_slice %95 {offsets = [0, 0], sizes = [8, 128], strides = [1, 1]} : vector<8x384xf32> to vector<8x128xf32>
    %350 = vector.extract_strided_slice %348 {offsets = [0, 0], sizes = [8, 128], strides = [1, 1]} : vector<8x384xf32> to vector<8x128xf32>
    %351 = arith.addf %349, %350 : vector<8x128xf32>
    %352 = arith.negf %351 : vector<8x128xf32>
    %353 = math.exp %352 : vector<8x128xf32>
    %cst_76 = arith.constant 1.000000e+00 : f32
    %354 = vector.broadcast %cst_76 : f32 to vector<8x128xf32>
    %355 = arith.addf %354, %353 : vector<8x128xf32>
    %356 = arith.divf %354, %355 : vector<8x128xf32>
    %357 = vector.extract_strided_slice %95 {offsets = [0, 128], sizes = [8, 128], strides = [1, 1]} : vector<8x384xf32> to vector<8x128xf32>
    %358 = vector.extract_strided_slice %348 {offsets = [0, 128], sizes = [8, 128], strides = [1, 1]} : vector<8x384xf32> to vector<8x128xf32>
    %359 = arith.addf %357, %358 : vector<8x128xf32>
    %360 = arith.negf %359 : vector<8x128xf32>
    %361 = math.exp %360 : vector<8x128xf32>
    %cst_77 = arith.constant 1.000000e+00 : f32
    %362 = vector.broadcast %cst_77 : f32 to vector<8x128xf32>
    %363 = arith.addf %362, %361 : vector<8x128xf32>
    %364 = arith.divf %362, %363 : vector<8x128xf32>
    %365 = vector.extract_strided_slice %95 {offsets = [0, 256], sizes = [8, 128], strides = [1, 1]} : vector<8x384xf32> to vector<8x128xf32>
    %366 = vector.extract_strided_slice %348 {offsets = [0, 256], sizes = [8, 128], strides = [1, 1]} : vector<8x384xf32> to vector<8x128xf32>
    %367 = arith.mulf %356, %366 : vector<8x128xf32>
    %368 = arith.addf %365, %367 : vector<8x128xf32>
    %369 = math.tanh %368 : vector<8x128xf32>
    %cst_78 = arith.constant 1.000000e+00 : f32
    %370 = vector.broadcast %cst_78 : f32 to vector<8x128xf32>
    %371 = arith.subf %370, %364 : vector<8x128xf32>
    %372 = arith.mulf %371, %369 : vector<8x128xf32>
    %373 = arith.mulf %364, %340 : vector<8x128xf32>
    %374 = arith.addf %372, %373 : vector<8x128xf32>
    %375 = arith.truncf %374 : vector<8x128xf32> to vector<8x128xbf16>
    %cst_79 = arith.constant dense<0.000000e+00> : vector<8x384xf32>
    %376 = tpu.matmul %375, %306, %cst_79 {dimension_numbers = #tpu.dot_dimension_numbers<[1], [0], [0], [1], [0, 0, 1, 1], [], []>} : vector<8x128xbf16>, vector<128x384xbf16>, vector<8x384xf32> -> vector<8x384xf32>
    %377 = vector.broadcast %309 : vector<1x384xf32> to vector<8x384xf32>
    %378 = arith.addf %376, %377 : vector<8x384xf32>
    %379 = arith.truncf %374 : vector<8x128xf32> to vector<8x128xbf16>
    %cst_80 = arith.constant dense<0.000000e+00> : vector<8x384xf32>
    %380 = tpu.matmul %379, %301, %cst_80 {dimension_numbers = #tpu.dot_dimension_numbers<[1], [0], [0], [1], [0, 0, 1, 1], [], []>} : vector<8x128xbf16>, vector<128x384xbf16>, vector<8x384xf32> -> vector<8x384xf32>
    %381 = vector.broadcast %304 : vector<1x384xf32> to vector<8x384xf32>
    %382 = arith.addf %380, %381 : vector<8x384xf32>
    %383 = vector.extract_strided_slice %129 {offsets = [0, 0], sizes = [8, 128], strides = [1, 1]} : vector<8x384xf32> to vector<8x128xf32>
    %384 = vector.extract_strided_slice %382 {offsets = [0, 0], sizes = [8, 128], strides = [1, 1]} : vector<8x384xf32> to vector<8x128xf32>
    %385 = arith.addf %383, %384 : vector<8x128xf32>
    %386 = arith.negf %385 : vector<8x128xf32>
    %387 = math.exp %386 : vector<8x128xf32>
    %cst_81 = arith.constant 1.000000e+00 : f32
    %388 = vector.broadcast %cst_81 : f32 to vector<8x128xf32>
    %389 = arith.addf %388, %387 : vector<8x128xf32>
    %390 = arith.divf %388, %389 : vector<8x128xf32>
    %391 = vector.extract_strided_slice %129 {offsets = [0, 128], sizes = [8, 128], strides = [1, 1]} : vector<8x384xf32> to vector<8x128xf32>
    %392 = vector.extract_strided_slice %382 {offsets = [0, 128], sizes = [8, 128], strides = [1, 1]} : vector<8x384xf32> to vector<8x128xf32>
    %393 = arith.addf %391, %392 : vector<8x128xf32>
    %394 = arith.negf %393 : vector<8x128xf32>
    %395 = math.exp %394 : vector<8x128xf32>
    %cst_82 = arith.constant 1.000000e+00 : f32
    %396 = vector.broadcast %cst_82 : f32 to vector<8x128xf32>
    %397 = arith.addf %396, %395 : vector<8x128xf32>
    %398 = arith.divf %396, %397 : vector<8x128xf32>
    %399 = vector.extract_strided_slice %129 {offsets = [0, 256], sizes = [8, 128], strides = [1, 1]} : vector<8x384xf32> to vector<8x128xf32>
    %400 = vector.extract_strided_slice %382 {offsets = [0, 256], sizes = [8, 128], strides = [1, 1]} : vector<8x384xf32> to vector<8x128xf32>
    %401 = arith.mulf %390, %400 : vector<8x128xf32>
    %402 = arith.addf %399, %401 : vector<8x128xf32>
    %403 = math.tanh %402 : vector<8x128xf32>
    %cst_83 = arith.constant 1.000000e+00 : f32
    %404 = vector.broadcast %cst_83 : f32 to vector<8x128xf32>
    %405 = arith.subf %404, %398 : vector<8x128xf32>
    %406 = arith.mulf %405, %403 : vector<8x128xf32>
    %407 = arith.mulf %398, %374 : vector<8x128xf32>
    %408 = arith.addf %406, %407 : vector<8x128xf32>
    %409 = arith.truncf %408 : vector<8x128xf32> to vector<8x128xbf16>
    %cst_84 = arith.constant dense<0.000000e+00> : vector<8x384xf32>
    %410 = tpu.matmul %409, %306, %cst_84 {dimension_numbers = #tpu.dot_dimension_numbers<[1], [0], [0], [1], [0, 0, 1, 1], [], []>} : vector<8x128xbf16>, vector<128x384xbf16>, vector<8x384xf32> -> vector<8x384xf32>
    %411 = vector.broadcast %309 : vector<1x384xf32> to vector<8x384xf32>
    %412 = arith.addf %410, %411 : vector<8x384xf32>
    %413 = arith.truncf %408 : vector<8x128xf32> to vector<8x128xbf16>
    %cst_85 = arith.constant dense<0.000000e+00> : vector<8x384xf32>
    %414 = tpu.matmul %413, %301, %cst_85 {dimension_numbers = #tpu.dot_dimension_numbers<[1], [0], [0], [1], [0, 0, 1, 1], [], []>} : vector<8x128xbf16>, vector<128x384xbf16>, vector<8x384xf32> -> vector<8x384xf32>
    %415 = vector.broadcast %304 : vector<1x384xf32> to vector<8x384xf32>
    %416 = arith.addf %414, %415 : vector<8x384xf32>
    %417 = vector.extract_strided_slice %163 {offsets = [0, 0], sizes = [8, 128], strides = [1, 1]} : vector<8x384xf32> to vector<8x128xf32>
    %418 = vector.extract_strided_slice %416 {offsets = [0, 0], sizes = [8, 128], strides = [1, 1]} : vector<8x384xf32> to vector<8x128xf32>
    %419 = arith.addf %417, %418 : vector<8x128xf32>
    %420 = arith.negf %419 : vector<8x128xf32>
    %421 = math.exp %420 : vector<8x128xf32>
    %cst_86 = arith.constant 1.000000e+00 : f32
    %422 = vector.broadcast %cst_86 : f32 to vector<8x128xf32>
    %423 = arith.addf %422, %421 : vector<8x128xf32>
    %424 = arith.divf %422, %423 : vector<8x128xf32>
    %425 = vector.extract_strided_slice %163 {offsets = [0, 128], sizes = [8, 128], strides = [1, 1]} : vector<8x384xf32> to vector<8x128xf32>
    %426 = vector.extract_strided_slice %416 {offsets = [0, 128], sizes = [8, 128], strides = [1, 1]} : vector<8x384xf32> to vector<8x128xf32>
    %427 = arith.addf %425, %426 : vector<8x128xf32>
    %428 = arith.negf %427 : vector<8x128xf32>
    %429 = math.exp %428 : vector<8x128xf32>
    %cst_87 = arith.constant 1.000000e+00 : f32
    %430 = vector.broadcast %cst_87 : f32 to vector<8x128xf32>
    %431 = arith.addf %430, %429 : vector<8x128xf32>
    %432 = arith.divf %430, %431 : vector<8x128xf32>
    %433 = vector.extract_strided_slice %163 {offsets = [0, 256], sizes = [8, 128], strides = [1, 1]} : vector<8x384xf32> to vector<8x128xf32>
    %434 = vector.extract_strided_slice %416 {offsets = [0, 256], sizes = [8, 128], strides = [1, 1]} : vector<8x384xf32> to vector<8x128xf32>
    %435 = arith.mulf %424, %434 : vector<8x128xf32>
    %436 = arith.addf %433, %435 : vector<8x128xf32>
    %437 = math.tanh %436 : vector<8x128xf32>
    %cst_88 = arith.constant 1.000000e+00 : f32
    %438 = vector.broadcast %cst_88 : f32 to vector<8x128xf32>
    %439 = arith.subf %438, %432 : vector<8x128xf32>
    %440 = arith.mulf %439, %437 : vector<8x128xf32>
    %441 = arith.mulf %432, %408 : vector<8x128xf32>
    %442 = arith.addf %440, %441 : vector<8x128xf32>
    %443 = arith.truncf %442 : vector<8x128xf32> to vector<8x128xbf16>
    %cst_89 = arith.constant dense<0.000000e+00> : vector<8x384xf32>
    %444 = tpu.matmul %443, %306, %cst_89 {dimension_numbers = #tpu.dot_dimension_numbers<[1], [0], [0], [1], [0, 0, 1, 1], [], []>} : vector<8x128xbf16>, vector<128x384xbf16>, vector<8x384xf32> -> vector<8x384xf32>
    %445 = vector.broadcast %309 : vector<1x384xf32> to vector<8x384xf32>
    %446 = arith.addf %444, %445 : vector<8x384xf32>
    %447 = arith.truncf %442 : vector<8x128xf32> to vector<8x128xbf16>
    %cst_90 = arith.constant dense<0.000000e+00> : vector<8x384xf32>
    %448 = tpu.matmul %447, %301, %cst_90 {dimension_numbers = #tpu.dot_dimension_numbers<[1], [0], [0], [1], [0, 0, 1, 1], [], []>} : vector<8x128xbf16>, vector<128x384xbf16>, vector<8x384xf32> -> vector<8x384xf32>
    %449 = vector.broadcast %304 : vector<1x384xf32> to vector<8x384xf32>
    %450 = arith.addf %448, %449 : vector<8x384xf32>
    %451 = vector.extract_strided_slice %197 {offsets = [0, 0], sizes = [8, 128], strides = [1, 1]} : vector<8x384xf32> to vector<8x128xf32>
    %452 = vector.extract_strided_slice %450 {offsets = [0, 0], sizes = [8, 128], strides = [1, 1]} : vector<8x384xf32> to vector<8x128xf32>
    %453 = arith.addf %451, %452 : vector<8x128xf32>
    %454 = arith.negf %453 : vector<8x128xf32>
    %455 = math.exp %454 : vector<8x128xf32>
    %cst_91 = arith.constant 1.000000e+00 : f32
    %456 = vector.broadcast %cst_91 : f32 to vector<8x128xf32>
    %457 = arith.addf %456, %455 : vector<8x128xf32>
    %458 = arith.divf %456, %457 : vector<8x128xf32>
    %459 = vector.extract_strided_slice %197 {offsets = [0, 128], sizes = [8, 128], strides = [1, 1]} : vector<8x384xf32> to vector<8x128xf32>
    %460 = vector.extract_strided_slice %450 {offsets = [0, 128], sizes = [8, 128], strides = [1, 1]} : vector<8x384xf32> to vector<8x128xf32>
    %461 = arith.addf %459, %460 : vector<8x128xf32>
    %462 = arith.negf %461 : vector<8x128xf32>
    %463 = math.exp %462 : vector<8x128xf32>
    %cst_92 = arith.constant 1.000000e+00 : f32
    %464 = vector.broadcast %cst_92 : f32 to vector<8x128xf32>
    %465 = arith.addf %464, %463 : vector<8x128xf32>
    %466 = arith.divf %464, %465 : vector<8x128xf32>
    %467 = vector.extract_strided_slice %197 {offsets = [0, 256], sizes = [8, 128], strides = [1, 1]} : vector<8x384xf32> to vector<8x128xf32>
    %468 = vector.extract_strided_slice %450 {offsets = [0, 256], sizes = [8, 128], strides = [1, 1]} : vector<8x384xf32> to vector<8x128xf32>
    %469 = arith.mulf %458, %468 : vector<8x128xf32>
    %470 = arith.addf %467, %469 : vector<8x128xf32>
    %471 = math.tanh %470 : vector<8x128xf32>
    %cst_93 = arith.constant 1.000000e+00 : f32
    %472 = vector.broadcast %cst_93 : f32 to vector<8x128xf32>
    %473 = arith.subf %472, %466 : vector<8x128xf32>
    %474 = arith.mulf %473, %471 : vector<8x128xf32>
    %475 = arith.mulf %466, %442 : vector<8x128xf32>
    %476 = arith.addf %474, %475 : vector<8x128xf32>
    %477 = arith.truncf %476 : vector<8x128xf32> to vector<8x128xbf16>
    %cst_94 = arith.constant dense<0.000000e+00> : vector<8x384xf32>
    %478 = tpu.matmul %477, %306, %cst_94 {dimension_numbers = #tpu.dot_dimension_numbers<[1], [0], [0], [1], [0, 0, 1, 1], [], []>} : vector<8x128xbf16>, vector<128x384xbf16>, vector<8x384xf32> -> vector<8x384xf32>
    %479 = vector.broadcast %309 : vector<1x384xf32> to vector<8x384xf32>
    %480 = arith.addf %478, %479 : vector<8x384xf32>
    %481 = arith.truncf %476 : vector<8x128xf32> to vector<8x128xbf16>
    %cst_95 = arith.constant dense<0.000000e+00> : vector<8x384xf32>
    %482 = tpu.matmul %481, %301, %cst_95 {dimension_numbers = #tpu.dot_dimension_numbers<[1], [0], [0], [1], [0, 0, 1, 1], [], []>} : vector<8x128xbf16>, vector<128x384xbf16>, vector<8x384xf32> -> vector<8x384xf32>
    %483 = vector.broadcast %304 : vector<1x384xf32> to vector<8x384xf32>
    %484 = arith.addf %482, %483 : vector<8x384xf32>
    %485 = vector.extract_strided_slice %231 {offsets = [0, 0], sizes = [8, 128], strides = [1, 1]} : vector<8x384xf32> to vector<8x128xf32>
    %486 = vector.extract_strided_slice %484 {offsets = [0, 0], sizes = [8, 128], strides = [1, 1]} : vector<8x384xf32> to vector<8x128xf32>
    %487 = arith.addf %485, %486 : vector<8x128xf32>
    %488 = arith.negf %487 : vector<8x128xf32>
    %489 = math.exp %488 : vector<8x128xf32>
    %cst_96 = arith.constant 1.000000e+00 : f32
    %490 = vector.broadcast %cst_96 : f32 to vector<8x128xf32>
    %491 = arith.addf %490, %489 : vector<8x128xf32>
    %492 = arith.divf %490, %491 : vector<8x128xf32>
    %493 = vector.extract_strided_slice %231 {offsets = [0, 128], sizes = [8, 128], strides = [1, 1]} : vector<8x384xf32> to vector<8x128xf32>
    %494 = vector.extract_strided_slice %484 {offsets = [0, 128], sizes = [8, 128], strides = [1, 1]} : vector<8x384xf32> to vector<8x128xf32>
    %495 = arith.addf %493, %494 : vector<8x128xf32>
    %496 = arith.negf %495 : vector<8x128xf32>
    %497 = math.exp %496 : vector<8x128xf32>
    %cst_97 = arith.constant 1.000000e+00 : f32
    %498 = vector.broadcast %cst_97 : f32 to vector<8x128xf32>
    %499 = arith.addf %498, %497 : vector<8x128xf32>
    %500 = arith.divf %498, %499 : vector<8x128xf32>
    %501 = vector.extract_strided_slice %231 {offsets = [0, 256], sizes = [8, 128], strides = [1, 1]} : vector<8x384xf32> to vector<8x128xf32>
    %502 = vector.extract_strided_slice %484 {offsets = [0, 256], sizes = [8, 128], strides = [1, 1]} : vector<8x384xf32> to vector<8x128xf32>
    %503 = arith.mulf %492, %502 : vector<8x128xf32>
    %504 = arith.addf %501, %503 : vector<8x128xf32>
    %505 = math.tanh %504 : vector<8x128xf32>
    %cst_98 = arith.constant 1.000000e+00 : f32
    %506 = vector.broadcast %cst_98 : f32 to vector<8x128xf32>
    %507 = arith.subf %506, %500 : vector<8x128xf32>
    %508 = arith.mulf %507, %505 : vector<8x128xf32>
    %509 = arith.mulf %500, %476 : vector<8x128xf32>
    %510 = arith.addf %508, %509 : vector<8x128xf32>
    %511 = arith.truncf %510 : vector<8x128xf32> to vector<8x128xbf16>
    %cst_99 = arith.constant dense<0.000000e+00> : vector<8x384xf32>
    %512 = tpu.matmul %511, %306, %cst_99 {dimension_numbers = #tpu.dot_dimension_numbers<[1], [0], [0], [1], [0, 0, 1, 1], [], []>} : vector<8x128xbf16>, vector<128x384xbf16>, vector<8x384xf32> -> vector<8x384xf32>
    %513 = vector.broadcast %309 : vector<1x384xf32> to vector<8x384xf32>
    %514 = arith.addf %512, %513 : vector<8x384xf32>
    %515 = arith.truncf %510 : vector<8x128xf32> to vector<8x128xbf16>
    %cst_100 = arith.constant dense<0.000000e+00> : vector<8x384xf32>
    %516 = tpu.matmul %515, %301, %cst_100 {dimension_numbers = #tpu.dot_dimension_numbers<[1], [0], [0], [1], [0, 0, 1, 1], [], []>} : vector<8x128xbf16>, vector<128x384xbf16>, vector<8x384xf32> -> vector<8x384xf32>
    %517 = vector.broadcast %304 : vector<1x384xf32> to vector<8x384xf32>
    %518 = arith.addf %516, %517 : vector<8x384xf32>
    %519 = vector.extract_strided_slice %265 {offsets = [0, 0], sizes = [8, 128], strides = [1, 1]} : vector<8x384xf32> to vector<8x128xf32>
    %520 = vector.extract_strided_slice %518 {offsets = [0, 0], sizes = [8, 128], strides = [1, 1]} : vector<8x384xf32> to vector<8x128xf32>
    %521 = arith.addf %519, %520 : vector<8x128xf32>
    %522 = arith.negf %521 : vector<8x128xf32>
    %523 = math.exp %522 : vector<8x128xf32>
    %cst_101 = arith.constant 1.000000e+00 : f32
    %524 = vector.broadcast %cst_101 : f32 to vector<8x128xf32>
    %525 = arith.addf %524, %523 : vector<8x128xf32>
    %526 = arith.divf %524, %525 : vector<8x128xf32>
    %527 = vector.extract_strided_slice %265 {offsets = [0, 128], sizes = [8, 128], strides = [1, 1]} : vector<8x384xf32> to vector<8x128xf32>
    %528 = vector.extract_strided_slice %518 {offsets = [0, 128], sizes = [8, 128], strides = [1, 1]} : vector<8x384xf32> to vector<8x128xf32>
    %529 = arith.addf %527, %528 : vector<8x128xf32>
    %530 = arith.negf %529 : vector<8x128xf32>
    %531 = math.exp %530 : vector<8x128xf32>
    %cst_102 = arith.constant 1.000000e+00 : f32
    %532 = vector.broadcast %cst_102 : f32 to vector<8x128xf32>
    %533 = arith.addf %532, %531 : vector<8x128xf32>
    %534 = arith.divf %532, %533 : vector<8x128xf32>
    %535 = vector.extract_strided_slice %265 {offsets = [0, 256], sizes = [8, 128], strides = [1, 1]} : vector<8x384xf32> to vector<8x128xf32>
    %536 = vector.extract_strided_slice %518 {offsets = [0, 256], sizes = [8, 128], strides = [1, 1]} : vector<8x384xf32> to vector<8x128xf32>
    %537 = arith.mulf %526, %536 : vector<8x128xf32>
    %538 = arith.addf %535, %537 : vector<8x128xf32>
    %539 = math.tanh %538 : vector<8x128xf32>
    %cst_103 = arith.constant 1.000000e+00 : f32
    %540 = vector.broadcast %cst_103 : f32 to vector<8x128xf32>
    %541 = arith.subf %540, %534 : vector<8x128xf32>
    %542 = arith.mulf %541, %539 : vector<8x128xf32>
    %543 = arith.mulf %534, %510 : vector<8x128xf32>
    %544 = arith.addf %542, %543 : vector<8x128xf32>
    %545 = arith.truncf %544 : vector<8x128xf32> to vector<8x128xbf16>
    %cst_104 = arith.constant dense<0.000000e+00> : vector<8x384xf32>
    %546 = tpu.matmul %545, %306, %cst_104 {dimension_numbers = #tpu.dot_dimension_numbers<[1], [0], [0], [1], [0, 0, 1, 1], [], []>} : vector<8x128xbf16>, vector<128x384xbf16>, vector<8x384xf32> -> vector<8x384xf32>
    %547 = vector.broadcast %309 : vector<1x384xf32> to vector<8x384xf32>
    %548 = arith.addf %546, %547 : vector<8x384xf32>
    %549 = arith.truncf %544 : vector<8x128xf32> to vector<8x128xbf16>
    %cst_105 = arith.constant dense<0.000000e+00> : vector<8x384xf32>
    %550 = tpu.matmul %549, %301, %cst_105 {dimension_numbers = #tpu.dot_dimension_numbers<[1], [0], [0], [1], [0, 0, 1, 1], [], []>} : vector<8x128xbf16>, vector<128x384xbf16>, vector<8x384xf32> -> vector<8x384xf32>
    %551 = vector.broadcast %304 : vector<1x384xf32> to vector<8x384xf32>
    %552 = arith.addf %550, %551 : vector<8x384xf32>
    %553 = vector.extract_strided_slice %299 {offsets = [0, 0], sizes = [8, 128], strides = [1, 1]} : vector<8x384xf32> to vector<8x128xf32>
    %554 = vector.extract_strided_slice %552 {offsets = [0, 0], sizes = [8, 128], strides = [1, 1]} : vector<8x384xf32> to vector<8x128xf32>
    %555 = arith.addf %553, %554 : vector<8x128xf32>
    %556 = arith.negf %555 : vector<8x128xf32>
    %557 = math.exp %556 : vector<8x128xf32>
    %cst_106 = arith.constant 1.000000e+00 : f32
    %558 = vector.broadcast %cst_106 : f32 to vector<8x128xf32>
    %559 = arith.addf %558, %557 : vector<8x128xf32>
    %560 = arith.divf %558, %559 : vector<8x128xf32>
    %561 = vector.extract_strided_slice %299 {offsets = [0, 128], sizes = [8, 128], strides = [1, 1]} : vector<8x384xf32> to vector<8x128xf32>
    %562 = vector.extract_strided_slice %552 {offsets = [0, 128], sizes = [8, 128], strides = [1, 1]} : vector<8x384xf32> to vector<8x128xf32>
    %563 = arith.addf %561, %562 : vector<8x128xf32>
    %564 = arith.negf %563 : vector<8x128xf32>
    %565 = math.exp %564 : vector<8x128xf32>
    %cst_107 = arith.constant 1.000000e+00 : f32
    %566 = vector.broadcast %cst_107 : f32 to vector<8x128xf32>
    %567 = arith.addf %566, %565 : vector<8x128xf32>
    %568 = arith.divf %566, %567 : vector<8x128xf32>
    %569 = vector.extract_strided_slice %299 {offsets = [0, 256], sizes = [8, 128], strides = [1, 1]} : vector<8x384xf32> to vector<8x128xf32>
    %570 = vector.extract_strided_slice %552 {offsets = [0, 256], sizes = [8, 128], strides = [1, 1]} : vector<8x384xf32> to vector<8x128xf32>
    %571 = arith.mulf %560, %570 : vector<8x128xf32>
    %572 = arith.addf %569, %571 : vector<8x128xf32>
    %573 = math.tanh %572 : vector<8x128xf32>
    %cst_108 = arith.constant 1.000000e+00 : f32
    %574 = vector.broadcast %cst_108 : f32 to vector<8x128xf32>
    %575 = arith.subf %574, %568 : vector<8x128xf32>
    %576 = arith.mulf %575, %573 : vector<8x128xf32>
    %577 = arith.mulf %568, %544 : vector<8x128xf32>
    %578 = arith.addf %576, %577 : vector<8x128xf32>
    %579 = arith.truncf %578 : vector<8x128xf32> to vector<8x128xbf16>
    %cst_109 = arith.constant dense<0.000000e+00> : vector<8x384xf32>
    %580 = tpu.matmul %579, %306, %cst_109 {dimension_numbers = #tpu.dot_dimension_numbers<[1], [0], [0], [1], [0, 0, 1, 1], [], []>} : vector<8x128xbf16>, vector<128x384xbf16>, vector<8x384xf32> -> vector<8x384xf32>
    %581 = vector.broadcast %309 : vector<1x384xf32> to vector<8x384xf32>
    %582 = arith.addf %580, %581 : vector<8x384xf32>
    %c2_110 = arith.constant 2 : index
    %c0_111 = arith.constant 0 : index
    %c0_112 = arith.constant 0 : index
    %583 = vector.load %arg4[%c2_110, %c0_111, %c0_112] : memref<4x128x384xbf16, #tpu.memory_space<vmem>>, vector<1x128x384xbf16>
    %584 = vector.shape_cast %583 : vector<1x128x384xbf16> to vector<128x384xbf16>
    %c2_113 = arith.constant 2 : index
    %c0_114 = arith.constant 0 : index
    %c0_115 = arith.constant 0 : index
    %585 = vector.load %arg5[%c2_113, %c0_114, %c0_115] : memref<4x2x384xf32, #tpu.memory_space<vmem>>, vector<1x2x384xf32>
    %586 = vector.shape_cast %585 : vector<1x2x384xf32> to vector<2x384xf32>
    %587 = vector.extract_strided_slice %586 {offsets = [1, 0], sizes = [1, 384], strides = [1, 1]} : vector<2x384xf32> to vector<1x384xf32>
    %c2_116 = arith.constant 2 : index
    %c0_117 = arith.constant 0 : index
    %c0_118 = arith.constant 0 : index
    %588 = vector.load %arg3[%c2_116, %c0_117, %c0_118] : memref<3x128x384xbf16, #tpu.memory_space<vmem>>, vector<1x128x384xbf16>
    %589 = vector.shape_cast %588 : vector<1x128x384xbf16> to vector<128x384xbf16>
    %c3 = arith.constant 3 : index
    %c0_119 = arith.constant 0 : index
    %c0_120 = arith.constant 0 : index
    %590 = vector.load %arg5[%c3, %c0_119, %c0_120] : memref<4x2x384xf32, #tpu.memory_space<vmem>>, vector<1x2x384xf32>
    %591 = vector.shape_cast %590 : vector<1x2x384xf32> to vector<2x384xf32>
    %592 = vector.extract_strided_slice %591 {offsets = [0, 0], sizes = [1, 384], strides = [1, 1]} : vector<2x384xf32> to vector<1x384xf32>
    %cst_121 = arith.constant 0.000000e+00 : f32
    %593 = vector.broadcast %cst_121 : f32 to vector<8x128xf32>
    %594 = arith.truncf %593 : vector<8x128xf32> to vector<8x128xbf16>
    %cst_122 = arith.constant dense<0.000000e+00> : vector<8x384xf32>
    %595 = tpu.matmul %594, %584, %cst_122 {dimension_numbers = #tpu.dot_dimension_numbers<[1], [0], [0], [1], [0, 0, 1, 1], [], []>} : vector<8x128xbf16>, vector<128x384xbf16>, vector<8x384xf32> -> vector<8x384xf32>
    %596 = vector.broadcast %587 : vector<1x384xf32> to vector<8x384xf32>
    %597 = arith.addf %595, %596 : vector<8x384xf32>
    %598 = vector.extract_strided_slice %344 {offsets = [0, 0], sizes = [8, 128], strides = [1, 1]} : vector<8x384xf32> to vector<8x128xf32>
    %599 = vector.extract_strided_slice %597 {offsets = [0, 0], sizes = [8, 128], strides = [1, 1]} : vector<8x384xf32> to vector<8x128xf32>
    %600 = arith.addf %598, %599 : vector<8x128xf32>
    %601 = arith.negf %600 : vector<8x128xf32>
    %602 = math.exp %601 : vector<8x128xf32>
    %cst_123 = arith.constant 1.000000e+00 : f32
    %603 = vector.broadcast %cst_123 : f32 to vector<8x128xf32>
    %604 = arith.addf %603, %602 : vector<8x128xf32>
    %605 = arith.divf %603, %604 : vector<8x128xf32>
    %606 = vector.extract_strided_slice %344 {offsets = [0, 128], sizes = [8, 128], strides = [1, 1]} : vector<8x384xf32> to vector<8x128xf32>
    %607 = vector.extract_strided_slice %597 {offsets = [0, 128], sizes = [8, 128], strides = [1, 1]} : vector<8x384xf32> to vector<8x128xf32>
    %608 = arith.addf %606, %607 : vector<8x128xf32>
    %609 = arith.negf %608 : vector<8x128xf32>
    %610 = math.exp %609 : vector<8x128xf32>
    %cst_124 = arith.constant 1.000000e+00 : f32
    %611 = vector.broadcast %cst_124 : f32 to vector<8x128xf32>
    %612 = arith.addf %611, %610 : vector<8x128xf32>
    %613 = arith.divf %611, %612 : vector<8x128xf32>
    %614 = vector.extract_strided_slice %344 {offsets = [0, 256], sizes = [8, 128], strides = [1, 1]} : vector<8x384xf32> to vector<8x128xf32>
    %615 = vector.extract_strided_slice %597 {offsets = [0, 256], sizes = [8, 128], strides = [1, 1]} : vector<8x384xf32> to vector<8x128xf32>
    %616 = arith.mulf %605, %615 : vector<8x128xf32>
    %617 = arith.addf %614, %616 : vector<8x128xf32>
    %618 = math.tanh %617 : vector<8x128xf32>
    %cst_125 = arith.constant 1.000000e+00 : f32
    %619 = vector.broadcast %cst_125 : f32 to vector<8x128xf32>
    %620 = arith.subf %619, %613 : vector<8x128xf32>
    %621 = arith.mulf %620, %618 : vector<8x128xf32>
    %622 = arith.mulf %613, %593 : vector<8x128xf32>
    %623 = arith.addf %621, %622 : vector<8x128xf32>
    %624 = arith.truncf %623 : vector<8x128xf32> to vector<8x128xbf16>
    %cst_126 = arith.constant dense<0.000000e+00> : vector<8x384xf32>
    %625 = tpu.matmul %624, %589, %cst_126 {dimension_numbers = #tpu.dot_dimension_numbers<[1], [0], [0], [1], [0, 0, 1, 1], [], []>} : vector<8x128xbf16>, vector<128x384xbf16>, vector<8x384xf32> -> vector<8x384xf32>
    %626 = vector.broadcast %592 : vector<1x384xf32> to vector<8x384xf32>
    %627 = arith.addf %625, %626 : vector<8x384xf32>
    %628 = arith.truncf %623 : vector<8x128xf32> to vector<8x128xbf16>
    %cst_127 = arith.constant dense<0.000000e+00> : vector<8x384xf32>
    %629 = tpu.matmul %628, %584, %cst_127 {dimension_numbers = #tpu.dot_dimension_numbers<[1], [0], [0], [1], [0, 0, 1, 1], [], []>} : vector<8x128xbf16>, vector<128x384xbf16>, vector<8x384xf32> -> vector<8x384xf32>
    %630 = vector.broadcast %587 : vector<1x384xf32> to vector<8x384xf32>
    %631 = arith.addf %629, %630 : vector<8x384xf32>
    %632 = vector.extract_strided_slice %378 {offsets = [0, 0], sizes = [8, 128], strides = [1, 1]} : vector<8x384xf32> to vector<8x128xf32>
    %633 = vector.extract_strided_slice %631 {offsets = [0, 0], sizes = [8, 128], strides = [1, 1]} : vector<8x384xf32> to vector<8x128xf32>
    %634 = arith.addf %632, %633 : vector<8x128xf32>
    %635 = arith.negf %634 : vector<8x128xf32>
    %636 = math.exp %635 : vector<8x128xf32>
    %cst_128 = arith.constant 1.000000e+00 : f32
    %637 = vector.broadcast %cst_128 : f32 to vector<8x128xf32>
    %638 = arith.addf %637, %636 : vector<8x128xf32>
    %639 = arith.divf %637, %638 : vector<8x128xf32>
    %640 = vector.extract_strided_slice %378 {offsets = [0, 128], sizes = [8, 128], strides = [1, 1]} : vector<8x384xf32> to vector<8x128xf32>
    %641 = vector.extract_strided_slice %631 {offsets = [0, 128], sizes = [8, 128], strides = [1, 1]} : vector<8x384xf32> to vector<8x128xf32>
    %642 = arith.addf %640, %641 : vector<8x128xf32>
    %643 = arith.negf %642 : vector<8x128xf32>
    %644 = math.exp %643 : vector<8x128xf32>
    %cst_129 = arith.constant 1.000000e+00 : f32
    %645 = vector.broadcast %cst_129 : f32 to vector<8x128xf32>
    %646 = arith.addf %645, %644 : vector<8x128xf32>
    %647 = arith.divf %645, %646 : vector<8x128xf32>
    %648 = vector.extract_strided_slice %378 {offsets = [0, 256], sizes = [8, 128], strides = [1, 1]} : vector<8x384xf32> to vector<8x128xf32>
    %649 = vector.extract_strided_slice %631 {offsets = [0, 256], sizes = [8, 128], strides = [1, 1]} : vector<8x384xf32> to vector<8x128xf32>
    %650 = arith.mulf %639, %649 : vector<8x128xf32>
    %651 = arith.addf %648, %650 : vector<8x128xf32>
    %652 = math.tanh %651 : vector<8x128xf32>
    %cst_130 = arith.constant 1.000000e+00 : f32
    %653 = vector.broadcast %cst_130 : f32 to vector<8x128xf32>
    %654 = arith.subf %653, %647 : vector<8x128xf32>
    %655 = arith.mulf %654, %652 : vector<8x128xf32>
    %656 = arith.mulf %647, %623 : vector<8x128xf32>
    %657 = arith.addf %655, %656 : vector<8x128xf32>
    %658 = arith.truncf %657 : vector<8x128xf32> to vector<8x128xbf16>
    %cst_131 = arith.constant dense<0.000000e+00> : vector<8x384xf32>
    %659 = tpu.matmul %658, %589, %cst_131 {dimension_numbers = #tpu.dot_dimension_numbers<[1], [0], [0], [1], [0, 0, 1, 1], [], []>} : vector<8x128xbf16>, vector<128x384xbf16>, vector<8x384xf32> -> vector<8x384xf32>
    %660 = vector.broadcast %592 : vector<1x384xf32> to vector<8x384xf32>
    %661 = arith.addf %659, %660 : vector<8x384xf32>
    %662 = arith.truncf %657 : vector<8x128xf32> to vector<8x128xbf16>
    %cst_132 = arith.constant dense<0.000000e+00> : vector<8x384xf32>
    %663 = tpu.matmul %662, %584, %cst_132 {dimension_numbers = #tpu.dot_dimension_numbers<[1], [0], [0], [1], [0, 0, 1, 1], [], []>} : vector<8x128xbf16>, vector<128x384xbf16>, vector<8x384xf32> -> vector<8x384xf32>
    %664 = vector.broadcast %587 : vector<1x384xf32> to vector<8x384xf32>
    %665 = arith.addf %663, %664 : vector<8x384xf32>
    %666 = vector.extract_strided_slice %412 {offsets = [0, 0], sizes = [8, 128], strides = [1, 1]} : vector<8x384xf32> to vector<8x128xf32>
    %667 = vector.extract_strided_slice %665 {offsets = [0, 0], sizes = [8, 128], strides = [1, 1]} : vector<8x384xf32> to vector<8x128xf32>
    %668 = arith.addf %666, %667 : vector<8x128xf32>
    %669 = arith.negf %668 : vector<8x128xf32>
    %670 = math.exp %669 : vector<8x128xf32>
    %cst_133 = arith.constant 1.000000e+00 : f32
    %671 = vector.broadcast %cst_133 : f32 to vector<8x128xf32>
    %672 = arith.addf %671, %670 : vector<8x128xf32>
    %673 = arith.divf %671, %672 : vector<8x128xf32>
    %674 = vector.extract_strided_slice %412 {offsets = [0, 128], sizes = [8, 128], strides = [1, 1]} : vector<8x384xf32> to vector<8x128xf32>
    %675 = vector.extract_strided_slice %665 {offsets = [0, 128], sizes = [8, 128], strides = [1, 1]} : vector<8x384xf32> to vector<8x128xf32>
    %676 = arith.addf %674, %675 : vector<8x128xf32>
    %677 = arith.negf %676 : vector<8x128xf32>
    %678 = math.exp %677 : vector<8x128xf32>
    %cst_134 = arith.constant 1.000000e+00 : f32
    %679 = vector.broadcast %cst_134 : f32 to vector<8x128xf32>
    %680 = arith.addf %679, %678 : vector<8x128xf32>
    %681 = arith.divf %679, %680 : vector<8x128xf32>
    %682 = vector.extract_strided_slice %412 {offsets = [0, 256], sizes = [8, 128], strides = [1, 1]} : vector<8x384xf32> to vector<8x128xf32>
    %683 = vector.extract_strided_slice %665 {offsets = [0, 256], sizes = [8, 128], strides = [1, 1]} : vector<8x384xf32> to vector<8x128xf32>
    %684 = arith.mulf %673, %683 : vector<8x128xf32>
    %685 = arith.addf %682, %684 : vector<8x128xf32>
    %686 = math.tanh %685 : vector<8x128xf32>
    %cst_135 = arith.constant 1.000000e+00 : f32
    %687 = vector.broadcast %cst_135 : f32 to vector<8x128xf32>
    %688 = arith.subf %687, %681 : vector<8x128xf32>
    %689 = arith.mulf %688, %686 : vector<8x128xf32>
    %690 = arith.mulf %681, %657 : vector<8x128xf32>
    %691 = arith.addf %689, %690 : vector<8x128xf32>
    %692 = arith.truncf %691 : vector<8x128xf32> to vector<8x128xbf16>
    %cst_136 = arith.constant dense<0.000000e+00> : vector<8x384xf32>
    %693 = tpu.matmul %692, %589, %cst_136 {dimension_numbers = #tpu.dot_dimension_numbers<[1], [0], [0], [1], [0, 0, 1, 1], [], []>} : vector<8x128xbf16>, vector<128x384xbf16>, vector<8x384xf32> -> vector<8x384xf32>
    %694 = vector.broadcast %592 : vector<1x384xf32> to vector<8x384xf32>
    %695 = arith.addf %693, %694 : vector<8x384xf32>
    %696 = arith.truncf %691 : vector<8x128xf32> to vector<8x128xbf16>
    %cst_137 = arith.constant dense<0.000000e+00> : vector<8x384xf32>
    %697 = tpu.matmul %696, %584, %cst_137 {dimension_numbers = #tpu.dot_dimension_numbers<[1], [0], [0], [1], [0, 0, 1, 1], [], []>} : vector<8x128xbf16>, vector<128x384xbf16>, vector<8x384xf32> -> vector<8x384xf32>
    %698 = vector.broadcast %587 : vector<1x384xf32> to vector<8x384xf32>
    %699 = arith.addf %697, %698 : vector<8x384xf32>
    %700 = vector.extract_strided_slice %446 {offsets = [0, 0], sizes = [8, 128], strides = [1, 1]} : vector<8x384xf32> to vector<8x128xf32>
    %701 = vector.extract_strided_slice %699 {offsets = [0, 0], sizes = [8, 128], strides = [1, 1]} : vector<8x384xf32> to vector<8x128xf32>
    %702 = arith.addf %700, %701 : vector<8x128xf32>
    %703 = arith.negf %702 : vector<8x128xf32>
    %704 = math.exp %703 : vector<8x128xf32>
    %cst_138 = arith.constant 1.000000e+00 : f32
    %705 = vector.broadcast %cst_138 : f32 to vector<8x128xf32>
    %706 = arith.addf %705, %704 : vector<8x128xf32>
    %707 = arith.divf %705, %706 : vector<8x128xf32>
    %708 = vector.extract_strided_slice %446 {offsets = [0, 128], sizes = [8, 128], strides = [1, 1]} : vector<8x384xf32> to vector<8x128xf32>
    %709 = vector.extract_strided_slice %699 {offsets = [0, 128], sizes = [8, 128], strides = [1, 1]} : vector<8x384xf32> to vector<8x128xf32>
    %710 = arith.addf %708, %709 : vector<8x128xf32>
    %711 = arith.negf %710 : vector<8x128xf32>
    %712 = math.exp %711 : vector<8x128xf32>
    %cst_139 = arith.constant 1.000000e+00 : f32
    %713 = vector.broadcast %cst_139 : f32 to vector<8x128xf32>
    %714 = arith.addf %713, %712 : vector<8x128xf32>
    %715 = arith.divf %713, %714 : vector<8x128xf32>
    %716 = vector.extract_strided_slice %446 {offsets = [0, 256], sizes = [8, 128], strides = [1, 1]} : vector<8x384xf32> to vector<8x128xf32>
    %717 = vector.extract_strided_slice %699 {offsets = [0, 256], sizes = [8, 128], strides = [1, 1]} : vector<8x384xf32> to vector<8x128xf32>
    %718 = arith.mulf %707, %717 : vector<8x128xf32>
    %719 = arith.addf %716, %718 : vector<8x128xf32>
    %720 = math.tanh %719 : vector<8x128xf32>
    %cst_140 = arith.constant 1.000000e+00 : f32
    %721 = vector.broadcast %cst_140 : f32 to vector<8x128xf32>
    %722 = arith.subf %721, %715 : vector<8x128xf32>
    %723 = arith.mulf %722, %720 : vector<8x128xf32>
    %724 = arith.mulf %715, %691 : vector<8x128xf32>
    %725 = arith.addf %723, %724 : vector<8x128xf32>
    %726 = arith.truncf %725 : vector<8x128xf32> to vector<8x128xbf16>
    %cst_141 = arith.constant dense<0.000000e+00> : vector<8x384xf32>
    %727 = tpu.matmul %726, %589, %cst_141 {dimension_numbers = #tpu.dot_dimension_numbers<[1], [0], [0], [1], [0, 0, 1, 1], [], []>} : vector<8x128xbf16>, vector<128x384xbf16>, vector<8x384xf32> -> vector<8x384xf32>
    %728 = vector.broadcast %592 : vector<1x384xf32> to vector<8x384xf32>
    %729 = arith.addf %727, %728 : vector<8x384xf32>
    %730 = arith.truncf %725 : vector<8x128xf32> to vector<8x128xbf16>
    %cst_142 = arith.constant dense<0.000000e+00> : vector<8x384xf32>
    %731 = tpu.matmul %730, %584, %cst_142 {dimension_numbers = #tpu.dot_dimension_numbers<[1], [0], [0], [1], [0, 0, 1, 1], [], []>} : vector<8x128xbf16>, vector<128x384xbf16>, vector<8x384xf32> -> vector<8x384xf32>
    %732 = vector.broadcast %587 : vector<1x384xf32> to vector<8x384xf32>
    %733 = arith.addf %731, %732 : vector<8x384xf32>
    %734 = vector.extract_strided_slice %480 {offsets = [0, 0], sizes = [8, 128], strides = [1, 1]} : vector<8x384xf32> to vector<8x128xf32>
    %735 = vector.extract_strided_slice %733 {offsets = [0, 0], sizes = [8, 128], strides = [1, 1]} : vector<8x384xf32> to vector<8x128xf32>
    %736 = arith.addf %734, %735 : vector<8x128xf32>
    %737 = arith.negf %736 : vector<8x128xf32>
    %738 = math.exp %737 : vector<8x128xf32>
    %cst_143 = arith.constant 1.000000e+00 : f32
    %739 = vector.broadcast %cst_143 : f32 to vector<8x128xf32>
    %740 = arith.addf %739, %738 : vector<8x128xf32>
    %741 = arith.divf %739, %740 : vector<8x128xf32>
    %742 = vector.extract_strided_slice %480 {offsets = [0, 128], sizes = [8, 128], strides = [1, 1]} : vector<8x384xf32> to vector<8x128xf32>
    %743 = vector.extract_strided_slice %733 {offsets = [0, 128], sizes = [8, 128], strides = [1, 1]} : vector<8x384xf32> to vector<8x128xf32>
    %744 = arith.addf %742, %743 : vector<8x128xf32>
    %745 = arith.negf %744 : vector<8x128xf32>
    %746 = math.exp %745 : vector<8x128xf32>
    %cst_144 = arith.constant 1.000000e+00 : f32
    %747 = vector.broadcast %cst_144 : f32 to vector<8x128xf32>
    %748 = arith.addf %747, %746 : vector<8x128xf32>
    %749 = arith.divf %747, %748 : vector<8x128xf32>
    %750 = vector.extract_strided_slice %480 {offsets = [0, 256], sizes = [8, 128], strides = [1, 1]} : vector<8x384xf32> to vector<8x128xf32>
    %751 = vector.extract_strided_slice %733 {offsets = [0, 256], sizes = [8, 128], strides = [1, 1]} : vector<8x384xf32> to vector<8x128xf32>
    %752 = arith.mulf %741, %751 : vector<8x128xf32>
    %753 = arith.addf %750, %752 : vector<8x128xf32>
    %754 = math.tanh %753 : vector<8x128xf32>
    %cst_145 = arith.constant 1.000000e+00 : f32
    %755 = vector.broadcast %cst_145 : f32 to vector<8x128xf32>
    %756 = arith.subf %755, %749 : vector<8x128xf32>
    %757 = arith.mulf %756, %754 : vector<8x128xf32>
    %758 = arith.mulf %749, %725 : vector<8x128xf32>
    %759 = arith.addf %757, %758 : vector<8x128xf32>
    %760 = arith.truncf %759 : vector<8x128xf32> to vector<8x128xbf16>
    %cst_146 = arith.constant dense<0.000000e+00> : vector<8x384xf32>
    %761 = tpu.matmul %760, %589, %cst_146 {dimension_numbers = #tpu.dot_dimension_numbers<[1], [0], [0], [1], [0, 0, 1, 1], [], []>} : vector<8x128xbf16>, vector<128x384xbf16>, vector<8x384xf32> -> vector<8x384xf32>
    %762 = vector.broadcast %592 : vector<1x384xf32> to vector<8x384xf32>
    %763 = arith.addf %761, %762 : vector<8x384xf32>
    %764 = arith.truncf %759 : vector<8x128xf32> to vector<8x128xbf16>
    %cst_147 = arith.constant dense<0.000000e+00> : vector<8x384xf32>
    %765 = tpu.matmul %764, %584, %cst_147 {dimension_numbers = #tpu.dot_dimension_numbers<[1], [0], [0], [1], [0, 0, 1, 1], [], []>} : vector<8x128xbf16>, vector<128x384xbf16>, vector<8x384xf32> -> vector<8x384xf32>
    %766 = vector.broadcast %587 : vector<1x384xf32> to vector<8x384xf32>
    %767 = arith.addf %765, %766 : vector<8x384xf32>
    %768 = vector.extract_strided_slice %514 {offsets = [0, 0], sizes = [8, 128], strides = [1, 1]} : vector<8x384xf32> to vector<8x128xf32>
    %769 = vector.extract_strided_slice %767 {offsets = [0, 0], sizes = [8, 128], strides = [1, 1]} : vector<8x384xf32> to vector<8x128xf32>
    %770 = arith.addf %768, %769 : vector<8x128xf32>
    %771 = arith.negf %770 : vector<8x128xf32>
    %772 = math.exp %771 : vector<8x128xf32>
    %cst_148 = arith.constant 1.000000e+00 : f32
    %773 = vector.broadcast %cst_148 : f32 to vector<8x128xf32>
    %774 = arith.addf %773, %772 : vector<8x128xf32>
    %775 = arith.divf %773, %774 : vector<8x128xf32>
    %776 = vector.extract_strided_slice %514 {offsets = [0, 128], sizes = [8, 128], strides = [1, 1]} : vector<8x384xf32> to vector<8x128xf32>
    %777 = vector.extract_strided_slice %767 {offsets = [0, 128], sizes = [8, 128], strides = [1, 1]} : vector<8x384xf32> to vector<8x128xf32>
    %778 = arith.addf %776, %777 : vector<8x128xf32>
    %779 = arith.negf %778 : vector<8x128xf32>
    %780 = math.exp %779 : vector<8x128xf32>
    %cst_149 = arith.constant 1.000000e+00 : f32
    %781 = vector.broadcast %cst_149 : f32 to vector<8x128xf32>
    %782 = arith.addf %781, %780 : vector<8x128xf32>
    %783 = arith.divf %781, %782 : vector<8x128xf32>
    %784 = vector.extract_strided_slice %514 {offsets = [0, 256], sizes = [8, 128], strides = [1, 1]} : vector<8x384xf32> to vector<8x128xf32>
    %785 = vector.extract_strided_slice %767 {offsets = [0, 256], sizes = [8, 128], strides = [1, 1]} : vector<8x384xf32> to vector<8x128xf32>
    %786 = arith.mulf %775, %785 : vector<8x128xf32>
    %787 = arith.addf %784, %786 : vector<8x128xf32>
    %788 = math.tanh %787 : vector<8x128xf32>
    %cst_150 = arith.constant 1.000000e+00 : f32
    %789 = vector.broadcast %cst_150 : f32 to vector<8x128xf32>
    %790 = arith.subf %789, %783 : vector<8x128xf32>
    %791 = arith.mulf %790, %788 : vector<8x128xf32>
    %792 = arith.mulf %783, %759 : vector<8x128xf32>
    %793 = arith.addf %791, %792 : vector<8x128xf32>
    %794 = arith.truncf %793 : vector<8x128xf32> to vector<8x128xbf16>
    %cst_151 = arith.constant dense<0.000000e+00> : vector<8x384xf32>
    %795 = tpu.matmul %794, %589, %cst_151 {dimension_numbers = #tpu.dot_dimension_numbers<[1], [0], [0], [1], [0, 0, 1, 1], [], []>} : vector<8x128xbf16>, vector<128x384xbf16>, vector<8x384xf32> -> vector<8x384xf32>
    %796 = vector.broadcast %592 : vector<1x384xf32> to vector<8x384xf32>
    %797 = arith.addf %795, %796 : vector<8x384xf32>
    %798 = arith.truncf %793 : vector<8x128xf32> to vector<8x128xbf16>
    %cst_152 = arith.constant dense<0.000000e+00> : vector<8x384xf32>
    %799 = tpu.matmul %798, %584, %cst_152 {dimension_numbers = #tpu.dot_dimension_numbers<[1], [0], [0], [1], [0, 0, 1, 1], [], []>} : vector<8x128xbf16>, vector<128x384xbf16>, vector<8x384xf32> -> vector<8x384xf32>
    %800 = vector.broadcast %587 : vector<1x384xf32> to vector<8x384xf32>
    %801 = arith.addf %799, %800 : vector<8x384xf32>
    %802 = vector.extract_strided_slice %548 {offsets = [0, 0], sizes = [8, 128], strides = [1, 1]} : vector<8x384xf32> to vector<8x128xf32>
    %803 = vector.extract_strided_slice %801 {offsets = [0, 0], sizes = [8, 128], strides = [1, 1]} : vector<8x384xf32> to vector<8x128xf32>
    %804 = arith.addf %802, %803 : vector<8x128xf32>
    %805 = arith.negf %804 : vector<8x128xf32>
    %806 = math.exp %805 : vector<8x128xf32>
    %cst_153 = arith.constant 1.000000e+00 : f32
    %807 = vector.broadcast %cst_153 : f32 to vector<8x128xf32>
    %808 = arith.addf %807, %806 : vector<8x128xf32>
    %809 = arith.divf %807, %808 : vector<8x128xf32>
    %810 = vector.extract_strided_slice %548 {offsets = [0, 128], sizes = [8, 128], strides = [1, 1]} : vector<8x384xf32> to vector<8x128xf32>
    %811 = vector.extract_strided_slice %801 {offsets = [0, 128], sizes = [8, 128], strides = [1, 1]} : vector<8x384xf32> to vector<8x128xf32>
    %812 = arith.addf %810, %811 : vector<8x128xf32>
    %813 = arith.negf %812 : vector<8x128xf32>
    %814 = math.exp %813 : vector<8x128xf32>
    %cst_154 = arith.constant 1.000000e+00 : f32
    %815 = vector.broadcast %cst_154 : f32 to vector<8x128xf32>
    %816 = arith.addf %815, %814 : vector<8x128xf32>
    %817 = arith.divf %815, %816 : vector<8x128xf32>
    %818 = vector.extract_strided_slice %548 {offsets = [0, 256], sizes = [8, 128], strides = [1, 1]} : vector<8x384xf32> to vector<8x128xf32>
    %819 = vector.extract_strided_slice %801 {offsets = [0, 256], sizes = [8, 128], strides = [1, 1]} : vector<8x384xf32> to vector<8x128xf32>
    %820 = arith.mulf %809, %819 : vector<8x128xf32>
    %821 = arith.addf %818, %820 : vector<8x128xf32>
    %822 = math.tanh %821 : vector<8x128xf32>
    %cst_155 = arith.constant 1.000000e+00 : f32
    %823 = vector.broadcast %cst_155 : f32 to vector<8x128xf32>
    %824 = arith.subf %823, %817 : vector<8x128xf32>
    %825 = arith.mulf %824, %822 : vector<8x128xf32>
    %826 = arith.mulf %817, %793 : vector<8x128xf32>
    %827 = arith.addf %825, %826 : vector<8x128xf32>
    %828 = arith.truncf %827 : vector<8x128xf32> to vector<8x128xbf16>
    %cst_156 = arith.constant dense<0.000000e+00> : vector<8x384xf32>
    %829 = tpu.matmul %828, %589, %cst_156 {dimension_numbers = #tpu.dot_dimension_numbers<[1], [0], [0], [1], [0, 0, 1, 1], [], []>} : vector<8x128xbf16>, vector<128x384xbf16>, vector<8x384xf32> -> vector<8x384xf32>
    %830 = vector.broadcast %592 : vector<1x384xf32> to vector<8x384xf32>
    %831 = arith.addf %829, %830 : vector<8x384xf32>
    %832 = arith.truncf %827 : vector<8x128xf32> to vector<8x128xbf16>
    %cst_157 = arith.constant dense<0.000000e+00> : vector<8x384xf32>
    %833 = tpu.matmul %832, %584, %cst_157 {dimension_numbers = #tpu.dot_dimension_numbers<[1], [0], [0], [1], [0, 0, 1, 1], [], []>} : vector<8x128xbf16>, vector<128x384xbf16>, vector<8x384xf32> -> vector<8x384xf32>
    %834 = vector.broadcast %587 : vector<1x384xf32> to vector<8x384xf32>
    %835 = arith.addf %833, %834 : vector<8x384xf32>
    %836 = vector.extract_strided_slice %582 {offsets = [0, 0], sizes = [8, 128], strides = [1, 1]} : vector<8x384xf32> to vector<8x128xf32>
    %837 = vector.extract_strided_slice %835 {offsets = [0, 0], sizes = [8, 128], strides = [1, 1]} : vector<8x384xf32> to vector<8x128xf32>
    %838 = arith.addf %836, %837 : vector<8x128xf32>
    %839 = arith.negf %838 : vector<8x128xf32>
    %840 = math.exp %839 : vector<8x128xf32>
    %cst_158 = arith.constant 1.000000e+00 : f32
    %841 = vector.broadcast %cst_158 : f32 to vector<8x128xf32>
    %842 = arith.addf %841, %840 : vector<8x128xf32>
    %843 = arith.divf %841, %842 : vector<8x128xf32>
    %844 = vector.extract_strided_slice %582 {offsets = [0, 128], sizes = [8, 128], strides = [1, 1]} : vector<8x384xf32> to vector<8x128xf32>
    %845 = vector.extract_strided_slice %835 {offsets = [0, 128], sizes = [8, 128], strides = [1, 1]} : vector<8x384xf32> to vector<8x128xf32>
    %846 = arith.addf %844, %845 : vector<8x128xf32>
    %847 = arith.negf %846 : vector<8x128xf32>
    %848 = math.exp %847 : vector<8x128xf32>
    %cst_159 = arith.constant 1.000000e+00 : f32
    %849 = vector.broadcast %cst_159 : f32 to vector<8x128xf32>
    %850 = arith.addf %849, %848 : vector<8x128xf32>
    %851 = arith.divf %849, %850 : vector<8x128xf32>
    %852 = vector.extract_strided_slice %582 {offsets = [0, 256], sizes = [8, 128], strides = [1, 1]} : vector<8x384xf32> to vector<8x128xf32>
    %853 = vector.extract_strided_slice %835 {offsets = [0, 256], sizes = [8, 128], strides = [1, 1]} : vector<8x384xf32> to vector<8x128xf32>
    %854 = arith.mulf %843, %853 : vector<8x128xf32>
    %855 = arith.addf %852, %854 : vector<8x128xf32>
    %856 = math.tanh %855 : vector<8x128xf32>
    %cst_160 = arith.constant 1.000000e+00 : f32
    %857 = vector.broadcast %cst_160 : f32 to vector<8x128xf32>
    %858 = arith.subf %857, %851 : vector<8x128xf32>
    %859 = arith.mulf %858, %856 : vector<8x128xf32>
    %860 = arith.mulf %851, %827 : vector<8x128xf32>
    %861 = arith.addf %859, %860 : vector<8x128xf32>
    %862 = arith.truncf %861 : vector<8x128xf32> to vector<8x128xbf16>
    %cst_161 = arith.constant dense<0.000000e+00> : vector<8x384xf32>
    %863 = tpu.matmul %862, %589, %cst_161 {dimension_numbers = #tpu.dot_dimension_numbers<[1], [0], [0], [1], [0, 0, 1, 1], [], []>} : vector<8x128xbf16>, vector<128x384xbf16>, vector<8x384xf32> -> vector<8x384xf32>
    %864 = vector.broadcast %592 : vector<1x384xf32> to vector<8x384xf32>
    %865 = arith.addf %863, %864 : vector<8x384xf32>
    %c3_162 = arith.constant 3 : index
    %c0_163 = arith.constant 0 : index
    %c0_164 = arith.constant 0 : index
    %866 = vector.load %arg4[%c3_162, %c0_163, %c0_164] : memref<4x128x384xbf16, #tpu.memory_space<vmem>>, vector<1x128x384xbf16>
    %867 = vector.shape_cast %866 : vector<1x128x384xbf16> to vector<128x384xbf16>
    %c3_165 = arith.constant 3 : index
    %c0_166 = arith.constant 0 : index
    %c0_167 = arith.constant 0 : index
    %868 = vector.load %arg5[%c3_165, %c0_166, %c0_167] : memref<4x2x384xf32, #tpu.memory_space<vmem>>, vector<1x2x384xf32>
    %869 = vector.shape_cast %868 : vector<1x2x384xf32> to vector<2x384xf32>
    %870 = vector.extract_strided_slice %869 {offsets = [1, 0], sizes = [1, 384], strides = [1, 1]} : vector<2x384xf32> to vector<1x384xf32>
    %cst_168 = arith.constant 0.000000e+00 : f32
    %871 = vector.broadcast %cst_168 : f32 to vector<8x128xf32>
    %872 = arith.truncf %871 : vector<8x128xf32> to vector<8x128xbf16>
    %cst_169 = arith.constant dense<0.000000e+00> : vector<8x384xf32>
    %873 = tpu.matmul %872, %867, %cst_169 {dimension_numbers = #tpu.dot_dimension_numbers<[1], [0], [0], [1], [0, 0, 1, 1], [], []>} : vector<8x128xbf16>, vector<128x384xbf16>, vector<8x384xf32> -> vector<8x384xf32>
    %874 = vector.broadcast %870 : vector<1x384xf32> to vector<8x384xf32>
    %875 = arith.addf %873, %874 : vector<8x384xf32>
    %876 = vector.extract_strided_slice %627 {offsets = [0, 0], sizes = [8, 128], strides = [1, 1]} : vector<8x384xf32> to vector<8x128xf32>
    %877 = vector.extract_strided_slice %875 {offsets = [0, 0], sizes = [8, 128], strides = [1, 1]} : vector<8x384xf32> to vector<8x128xf32>
    %878 = arith.addf %876, %877 : vector<8x128xf32>
    %879 = arith.negf %878 : vector<8x128xf32>
    %880 = math.exp %879 : vector<8x128xf32>
    %cst_170 = arith.constant 1.000000e+00 : f32
    %881 = vector.broadcast %cst_170 : f32 to vector<8x128xf32>
    %882 = arith.addf %881, %880 : vector<8x128xf32>
    %883 = arith.divf %881, %882 : vector<8x128xf32>
    %884 = vector.extract_strided_slice %627 {offsets = [0, 128], sizes = [8, 128], strides = [1, 1]} : vector<8x384xf32> to vector<8x128xf32>
    %885 = vector.extract_strided_slice %875 {offsets = [0, 128], sizes = [8, 128], strides = [1, 1]} : vector<8x384xf32> to vector<8x128xf32>
    %886 = arith.addf %884, %885 : vector<8x128xf32>
    %887 = arith.negf %886 : vector<8x128xf32>
    %888 = math.exp %887 : vector<8x128xf32>
    %cst_171 = arith.constant 1.000000e+00 : f32
    %889 = vector.broadcast %cst_171 : f32 to vector<8x128xf32>
    %890 = arith.addf %889, %888 : vector<8x128xf32>
    %891 = arith.divf %889, %890 : vector<8x128xf32>
    %892 = vector.extract_strided_slice %627 {offsets = [0, 256], sizes = [8, 128], strides = [1, 1]} : vector<8x384xf32> to vector<8x128xf32>
    %893 = vector.extract_strided_slice %875 {offsets = [0, 256], sizes = [8, 128], strides = [1, 1]} : vector<8x384xf32> to vector<8x128xf32>
    %894 = arith.mulf %883, %893 : vector<8x128xf32>
    %895 = arith.addf %892, %894 : vector<8x128xf32>
    %896 = math.tanh %895 : vector<8x128xf32>
    %cst_172 = arith.constant 1.000000e+00 : f32
    %897 = vector.broadcast %cst_172 : f32 to vector<8x128xf32>
    %898 = arith.subf %897, %891 : vector<8x128xf32>
    %899 = arith.mulf %898, %896 : vector<8x128xf32>
    %900 = arith.mulf %891, %871 : vector<8x128xf32>
    %901 = arith.addf %899, %900 : vector<8x128xf32>
    %902 = arith.truncf %901 : vector<8x128xf32> to vector<8x128xbf16>
    %cst_173 = arith.constant dense<0.000000e+00> : vector<8x384xf32>
    %903 = tpu.matmul %902, %867, %cst_173 {dimension_numbers = #tpu.dot_dimension_numbers<[1], [0], [0], [1], [0, 0, 1, 1], [], []>} : vector<8x128xbf16>, vector<128x384xbf16>, vector<8x384xf32> -> vector<8x384xf32>
    %904 = vector.broadcast %870 : vector<1x384xf32> to vector<8x384xf32>
    %905 = arith.addf %903, %904 : vector<8x384xf32>
    %906 = vector.extract_strided_slice %661 {offsets = [0, 0], sizes = [8, 128], strides = [1, 1]} : vector<8x384xf32> to vector<8x128xf32>
    %907 = vector.extract_strided_slice %905 {offsets = [0, 0], sizes = [8, 128], strides = [1, 1]} : vector<8x384xf32> to vector<8x128xf32>
    %908 = arith.addf %906, %907 : vector<8x128xf32>
    %909 = arith.negf %908 : vector<8x128xf32>
    %910 = math.exp %909 : vector<8x128xf32>
    %cst_174 = arith.constant 1.000000e+00 : f32
    %911 = vector.broadcast %cst_174 : f32 to vector<8x128xf32>
    %912 = arith.addf %911, %910 : vector<8x128xf32>
    %913 = arith.divf %911, %912 : vector<8x128xf32>
    %914 = vector.extract_strided_slice %661 {offsets = [0, 128], sizes = [8, 128], strides = [1, 1]} : vector<8x384xf32> to vector<8x128xf32>
    %915 = vector.extract_strided_slice %905 {offsets = [0, 128], sizes = [8, 128], strides = [1, 1]} : vector<8x384xf32> to vector<8x128xf32>
    %916 = arith.addf %914, %915 : vector<8x128xf32>
    %917 = arith.negf %916 : vector<8x128xf32>
    %918 = math.exp %917 : vector<8x128xf32>
    %cst_175 = arith.constant 1.000000e+00 : f32
    %919 = vector.broadcast %cst_175 : f32 to vector<8x128xf32>
    %920 = arith.addf %919, %918 : vector<8x128xf32>
    %921 = arith.divf %919, %920 : vector<8x128xf32>
    %922 = vector.extract_strided_slice %661 {offsets = [0, 256], sizes = [8, 128], strides = [1, 1]} : vector<8x384xf32> to vector<8x128xf32>
    %923 = vector.extract_strided_slice %905 {offsets = [0, 256], sizes = [8, 128], strides = [1, 1]} : vector<8x384xf32> to vector<8x128xf32>
    %924 = arith.mulf %913, %923 : vector<8x128xf32>
    %925 = arith.addf %922, %924 : vector<8x128xf32>
    %926 = math.tanh %925 : vector<8x128xf32>
    %cst_176 = arith.constant 1.000000e+00 : f32
    %927 = vector.broadcast %cst_176 : f32 to vector<8x128xf32>
    %928 = arith.subf %927, %921 : vector<8x128xf32>
    %929 = arith.mulf %928, %926 : vector<8x128xf32>
    %930 = arith.mulf %921, %901 : vector<8x128xf32>
    %931 = arith.addf %929, %930 : vector<8x128xf32>
    %932 = arith.truncf %931 : vector<8x128xf32> to vector<8x128xbf16>
    %cst_177 = arith.constant dense<0.000000e+00> : vector<8x384xf32>
    %933 = tpu.matmul %932, %867, %cst_177 {dimension_numbers = #tpu.dot_dimension_numbers<[1], [0], [0], [1], [0, 0, 1, 1], [], []>} : vector<8x128xbf16>, vector<128x384xbf16>, vector<8x384xf32> -> vector<8x384xf32>
    %934 = vector.broadcast %870 : vector<1x384xf32> to vector<8x384xf32>
    %935 = arith.addf %933, %934 : vector<8x384xf32>
    %936 = vector.extract_strided_slice %695 {offsets = [0, 0], sizes = [8, 128], strides = [1, 1]} : vector<8x384xf32> to vector<8x128xf32>
    %937 = vector.extract_strided_slice %935 {offsets = [0, 0], sizes = [8, 128], strides = [1, 1]} : vector<8x384xf32> to vector<8x128xf32>
    %938 = arith.addf %936, %937 : vector<8x128xf32>
    %939 = arith.negf %938 : vector<8x128xf32>
    %940 = math.exp %939 : vector<8x128xf32>
    %cst_178 = arith.constant 1.000000e+00 : f32
    %941 = vector.broadcast %cst_178 : f32 to vector<8x128xf32>
    %942 = arith.addf %941, %940 : vector<8x128xf32>
    %943 = arith.divf %941, %942 : vector<8x128xf32>
    %944 = vector.extract_strided_slice %695 {offsets = [0, 128], sizes = [8, 128], strides = [1, 1]} : vector<8x384xf32> to vector<8x128xf32>
    %945 = vector.extract_strided_slice %935 {offsets = [0, 128], sizes = [8, 128], strides = [1, 1]} : vector<8x384xf32> to vector<8x128xf32>
    %946 = arith.addf %944, %945 : vector<8x128xf32>
    %947 = arith.negf %946 : vector<8x128xf32>
    %948 = math.exp %947 : vector<8x128xf32>
    %cst_179 = arith.constant 1.000000e+00 : f32
    %949 = vector.broadcast %cst_179 : f32 to vector<8x128xf32>
    %950 = arith.addf %949, %948 : vector<8x128xf32>
    %951 = arith.divf %949, %950 : vector<8x128xf32>
    %952 = vector.extract_strided_slice %695 {offsets = [0, 256], sizes = [8, 128], strides = [1, 1]} : vector<8x384xf32> to vector<8x128xf32>
    %953 = vector.extract_strided_slice %935 {offsets = [0, 256], sizes = [8, 128], strides = [1, 1]} : vector<8x384xf32> to vector<8x128xf32>
    %954 = arith.mulf %943, %953 : vector<8x128xf32>
    %955 = arith.addf %952, %954 : vector<8x128xf32>
    %956 = math.tanh %955 : vector<8x128xf32>
    %cst_180 = arith.constant 1.000000e+00 : f32
    %957 = vector.broadcast %cst_180 : f32 to vector<8x128xf32>
    %958 = arith.subf %957, %951 : vector<8x128xf32>
    %959 = arith.mulf %958, %956 : vector<8x128xf32>
    %960 = arith.mulf %951, %931 : vector<8x128xf32>
    %961 = arith.addf %959, %960 : vector<8x128xf32>
    %962 = arith.truncf %961 : vector<8x128xf32> to vector<8x128xbf16>
    %cst_181 = arith.constant dense<0.000000e+00> : vector<8x384xf32>
    %963 = tpu.matmul %962, %867, %cst_181 {dimension_numbers = #tpu.dot_dimension_numbers<[1], [0], [0], [1], [0, 0, 1, 1], [], []>} : vector<8x128xbf16>, vector<128x384xbf16>, vector<8x384xf32> -> vector<8x384xf32>
    %964 = vector.broadcast %870 : vector<1x384xf32> to vector<8x384xf32>
    %965 = arith.addf %963, %964 : vector<8x384xf32>
    %966 = vector.extract_strided_slice %729 {offsets = [0, 0], sizes = [8, 128], strides = [1, 1]} : vector<8x384xf32> to vector<8x128xf32>
    %967 = vector.extract_strided_slice %965 {offsets = [0, 0], sizes = [8, 128], strides = [1, 1]} : vector<8x384xf32> to vector<8x128xf32>
    %968 = arith.addf %966, %967 : vector<8x128xf32>
    %969 = arith.negf %968 : vector<8x128xf32>
    %970 = math.exp %969 : vector<8x128xf32>
    %cst_182 = arith.constant 1.000000e+00 : f32
    %971 = vector.broadcast %cst_182 : f32 to vector<8x128xf32>
    %972 = arith.addf %971, %970 : vector<8x128xf32>
    %973 = arith.divf %971, %972 : vector<8x128xf32>
    %974 = vector.extract_strided_slice %729 {offsets = [0, 128], sizes = [8, 128], strides = [1, 1]} : vector<8x384xf32> to vector<8x128xf32>
    %975 = vector.extract_strided_slice %965 {offsets = [0, 128], sizes = [8, 128], strides = [1, 1]} : vector<8x384xf32> to vector<8x128xf32>
    %976 = arith.addf %974, %975 : vector<8x128xf32>
    %977 = arith.negf %976 : vector<8x128xf32>
    %978 = math.exp %977 : vector<8x128xf32>
    %cst_183 = arith.constant 1.000000e+00 : f32
    %979 = vector.broadcast %cst_183 : f32 to vector<8x128xf32>
    %980 = arith.addf %979, %978 : vector<8x128xf32>
    %981 = arith.divf %979, %980 : vector<8x128xf32>
    %982 = vector.extract_strided_slice %729 {offsets = [0, 256], sizes = [8, 128], strides = [1, 1]} : vector<8x384xf32> to vector<8x128xf32>
    %983 = vector.extract_strided_slice %965 {offsets = [0, 256], sizes = [8, 128], strides = [1, 1]} : vector<8x384xf32> to vector<8x128xf32>
    %984 = arith.mulf %973, %983 : vector<8x128xf32>
    %985 = arith.addf %982, %984 : vector<8x128xf32>
    %986 = math.tanh %985 : vector<8x128xf32>
    %cst_184 = arith.constant 1.000000e+00 : f32
    %987 = vector.broadcast %cst_184 : f32 to vector<8x128xf32>
    %988 = arith.subf %987, %981 : vector<8x128xf32>
    %989 = arith.mulf %988, %986 : vector<8x128xf32>
    %990 = arith.mulf %981, %961 : vector<8x128xf32>
    %991 = arith.addf %989, %990 : vector<8x128xf32>
    %992 = arith.truncf %991 : vector<8x128xf32> to vector<8x128xbf16>
    %cst_185 = arith.constant dense<0.000000e+00> : vector<8x384xf32>
    %993 = tpu.matmul %992, %867, %cst_185 {dimension_numbers = #tpu.dot_dimension_numbers<[1], [0], [0], [1], [0, 0, 1, 1], [], []>} : vector<8x128xbf16>, vector<128x384xbf16>, vector<8x384xf32> -> vector<8x384xf32>
    %994 = vector.broadcast %870 : vector<1x384xf32> to vector<8x384xf32>
    %995 = arith.addf %993, %994 : vector<8x384xf32>
    %996 = vector.extract_strided_slice %763 {offsets = [0, 0], sizes = [8, 128], strides = [1, 1]} : vector<8x384xf32> to vector<8x128xf32>
    %997 = vector.extract_strided_slice %995 {offsets = [0, 0], sizes = [8, 128], strides = [1, 1]} : vector<8x384xf32> to vector<8x128xf32>
    %998 = arith.addf %996, %997 : vector<8x128xf32>
    %999 = arith.negf %998 : vector<8x128xf32>
    %1000 = math.exp %999 : vector<8x128xf32>
    %cst_186 = arith.constant 1.000000e+00 : f32
    %1001 = vector.broadcast %cst_186 : f32 to vector<8x128xf32>
    %1002 = arith.addf %1001, %1000 : vector<8x128xf32>
    %1003 = arith.divf %1001, %1002 : vector<8x128xf32>
    %1004 = vector.extract_strided_slice %763 {offsets = [0, 128], sizes = [8, 128], strides = [1, 1]} : vector<8x384xf32> to vector<8x128xf32>
    %1005 = vector.extract_strided_slice %995 {offsets = [0, 128], sizes = [8, 128], strides = [1, 1]} : vector<8x384xf32> to vector<8x128xf32>
    %1006 = arith.addf %1004, %1005 : vector<8x128xf32>
    %1007 = arith.negf %1006 : vector<8x128xf32>
    %1008 = math.exp %1007 : vector<8x128xf32>
    %cst_187 = arith.constant 1.000000e+00 : f32
    %1009 = vector.broadcast %cst_187 : f32 to vector<8x128xf32>
    %1010 = arith.addf %1009, %1008 : vector<8x128xf32>
    %1011 = arith.divf %1009, %1010 : vector<8x128xf32>
    %1012 = vector.extract_strided_slice %763 {offsets = [0, 256], sizes = [8, 128], strides = [1, 1]} : vector<8x384xf32> to vector<8x128xf32>
    %1013 = vector.extract_strided_slice %995 {offsets = [0, 256], sizes = [8, 128], strides = [1, 1]} : vector<8x384xf32> to vector<8x128xf32>
    %1014 = arith.mulf %1003, %1013 : vector<8x128xf32>
    %1015 = arith.addf %1012, %1014 : vector<8x128xf32>
    %1016 = math.tanh %1015 : vector<8x128xf32>
    %cst_188 = arith.constant 1.000000e+00 : f32
    %1017 = vector.broadcast %cst_188 : f32 to vector<8x128xf32>
    %1018 = arith.subf %1017, %1011 : vector<8x128xf32>
    %1019 = arith.mulf %1018, %1016 : vector<8x128xf32>
    %1020 = arith.mulf %1011, %991 : vector<8x128xf32>
    %1021 = arith.addf %1019, %1020 : vector<8x128xf32>
    %1022 = arith.truncf %1021 : vector<8x128xf32> to vector<8x128xbf16>
    %cst_189 = arith.constant dense<0.000000e+00> : vector<8x384xf32>
    %1023 = tpu.matmul %1022, %867, %cst_189 {dimension_numbers = #tpu.dot_dimension_numbers<[1], [0], [0], [1], [0, 0, 1, 1], [], []>} : vector<8x128xbf16>, vector<128x384xbf16>, vector<8x384xf32> -> vector<8x384xf32>
    %1024 = vector.broadcast %870 : vector<1x384xf32> to vector<8x384xf32>
    %1025 = arith.addf %1023, %1024 : vector<8x384xf32>
    %1026 = vector.extract_strided_slice %797 {offsets = [0, 0], sizes = [8, 128], strides = [1, 1]} : vector<8x384xf32> to vector<8x128xf32>
    %1027 = vector.extract_strided_slice %1025 {offsets = [0, 0], sizes = [8, 128], strides = [1, 1]} : vector<8x384xf32> to vector<8x128xf32>
    %1028 = arith.addf %1026, %1027 : vector<8x128xf32>
    %1029 = arith.negf %1028 : vector<8x128xf32>
    %1030 = math.exp %1029 : vector<8x128xf32>
    %cst_190 = arith.constant 1.000000e+00 : f32
    %1031 = vector.broadcast %cst_190 : f32 to vector<8x128xf32>
    %1032 = arith.addf %1031, %1030 : vector<8x128xf32>
    %1033 = arith.divf %1031, %1032 : vector<8x128xf32>
    %1034 = vector.extract_strided_slice %797 {offsets = [0, 128], sizes = [8, 128], strides = [1, 1]} : vector<8x384xf32> to vector<8x128xf32>
    %1035 = vector.extract_strided_slice %1025 {offsets = [0, 128], sizes = [8, 128], strides = [1, 1]} : vector<8x384xf32> to vector<8x128xf32>
    %1036 = arith.addf %1034, %1035 : vector<8x128xf32>
    %1037 = arith.negf %1036 : vector<8x128xf32>
    %1038 = math.exp %1037 : vector<8x128xf32>
    %cst_191 = arith.constant 1.000000e+00 : f32
    %1039 = vector.broadcast %cst_191 : f32 to vector<8x128xf32>
    %1040 = arith.addf %1039, %1038 : vector<8x128xf32>
    %1041 = arith.divf %1039, %1040 : vector<8x128xf32>
    %1042 = vector.extract_strided_slice %797 {offsets = [0, 256], sizes = [8, 128], strides = [1, 1]} : vector<8x384xf32> to vector<8x128xf32>
    %1043 = vector.extract_strided_slice %1025 {offsets = [0, 256], sizes = [8, 128], strides = [1, 1]} : vector<8x384xf32> to vector<8x128xf32>
    %1044 = arith.mulf %1033, %1043 : vector<8x128xf32>
    %1045 = arith.addf %1042, %1044 : vector<8x128xf32>
    %1046 = math.tanh %1045 : vector<8x128xf32>
    %cst_192 = arith.constant 1.000000e+00 : f32
    %1047 = vector.broadcast %cst_192 : f32 to vector<8x128xf32>
    %1048 = arith.subf %1047, %1041 : vector<8x128xf32>
    %1049 = arith.mulf %1048, %1046 : vector<8x128xf32>
    %1050 = arith.mulf %1041, %1021 : vector<8x128xf32>
    %1051 = arith.addf %1049, %1050 : vector<8x128xf32>
    %1052 = arith.truncf %1051 : vector<8x128xf32> to vector<8x128xbf16>
    %cst_193 = arith.constant dense<0.000000e+00> : vector<8x384xf32>
    %1053 = tpu.matmul %1052, %867, %cst_193 {dimension_numbers = #tpu.dot_dimension_numbers<[1], [0], [0], [1], [0, 0, 1, 1], [], []>} : vector<8x128xbf16>, vector<128x384xbf16>, vector<8x384xf32> -> vector<8x384xf32>
    %1054 = vector.broadcast %870 : vector<1x384xf32> to vector<8x384xf32>
    %1055 = arith.addf %1053, %1054 : vector<8x384xf32>
    %1056 = vector.extract_strided_slice %831 {offsets = [0, 0], sizes = [8, 128], strides = [1, 1]} : vector<8x384xf32> to vector<8x128xf32>
    %1057 = vector.extract_strided_slice %1055 {offsets = [0, 0], sizes = [8, 128], strides = [1, 1]} : vector<8x384xf32> to vector<8x128xf32>
    %1058 = arith.addf %1056, %1057 : vector<8x128xf32>
    %1059 = arith.negf %1058 : vector<8x128xf32>
    %1060 = math.exp %1059 : vector<8x128xf32>
    %cst_194 = arith.constant 1.000000e+00 : f32
    %1061 = vector.broadcast %cst_194 : f32 to vector<8x128xf32>
    %1062 = arith.addf %1061, %1060 : vector<8x128xf32>
    %1063 = arith.divf %1061, %1062 : vector<8x128xf32>
    %1064 = vector.extract_strided_slice %831 {offsets = [0, 128], sizes = [8, 128], strides = [1, 1]} : vector<8x384xf32> to vector<8x128xf32>
    %1065 = vector.extract_strided_slice %1055 {offsets = [0, 128], sizes = [8, 128], strides = [1, 1]} : vector<8x384xf32> to vector<8x128xf32>
    %1066 = arith.addf %1064, %1065 : vector<8x128xf32>
    %1067 = arith.negf %1066 : vector<8x128xf32>
    %1068 = math.exp %1067 : vector<8x128xf32>
    %cst_195 = arith.constant 1.000000e+00 : f32
    %1069 = vector.broadcast %cst_195 : f32 to vector<8x128xf32>
    %1070 = arith.addf %1069, %1068 : vector<8x128xf32>
    %1071 = arith.divf %1069, %1070 : vector<8x128xf32>
    %1072 = vector.extract_strided_slice %831 {offsets = [0, 256], sizes = [8, 128], strides = [1, 1]} : vector<8x384xf32> to vector<8x128xf32>
    %1073 = vector.extract_strided_slice %1055 {offsets = [0, 256], sizes = [8, 128], strides = [1, 1]} : vector<8x384xf32> to vector<8x128xf32>
    %1074 = arith.mulf %1063, %1073 : vector<8x128xf32>
    %1075 = arith.addf %1072, %1074 : vector<8x128xf32>
    %1076 = math.tanh %1075 : vector<8x128xf32>
    %cst_196 = arith.constant 1.000000e+00 : f32
    %1077 = vector.broadcast %cst_196 : f32 to vector<8x128xf32>
    %1078 = arith.subf %1077, %1071 : vector<8x128xf32>
    %1079 = arith.mulf %1078, %1076 : vector<8x128xf32>
    %1080 = arith.mulf %1071, %1051 : vector<8x128xf32>
    %1081 = arith.addf %1079, %1080 : vector<8x128xf32>
    %1082 = arith.truncf %1081 : vector<8x128xf32> to vector<8x128xbf16>
    %cst_197 = arith.constant dense<0.000000e+00> : vector<8x384xf32>
    %1083 = tpu.matmul %1082, %867, %cst_197 {dimension_numbers = #tpu.dot_dimension_numbers<[1], [0], [0], [1], [0, 0, 1, 1], [], []>} : vector<8x128xbf16>, vector<128x384xbf16>, vector<8x384xf32> -> vector<8x384xf32>
    %1084 = vector.broadcast %870 : vector<1x384xf32> to vector<8x384xf32>
    %1085 = arith.addf %1083, %1084 : vector<8x384xf32>
    %1086 = vector.extract_strided_slice %865 {offsets = [0, 0], sizes = [8, 128], strides = [1, 1]} : vector<8x384xf32> to vector<8x128xf32>
    %1087 = vector.extract_strided_slice %1085 {offsets = [0, 0], sizes = [8, 128], strides = [1, 1]} : vector<8x384xf32> to vector<8x128xf32>
    %1088 = arith.addf %1086, %1087 : vector<8x128xf32>
    %1089 = arith.negf %1088 : vector<8x128xf32>
    %1090 = math.exp %1089 : vector<8x128xf32>
    %cst_198 = arith.constant 1.000000e+00 : f32
    %1091 = vector.broadcast %cst_198 : f32 to vector<8x128xf32>
    %1092 = arith.addf %1091, %1090 : vector<8x128xf32>
    %1093 = arith.divf %1091, %1092 : vector<8x128xf32>
    %1094 = vector.extract_strided_slice %865 {offsets = [0, 128], sizes = [8, 128], strides = [1, 1]} : vector<8x384xf32> to vector<8x128xf32>
    %1095 = vector.extract_strided_slice %1085 {offsets = [0, 128], sizes = [8, 128], strides = [1, 1]} : vector<8x384xf32> to vector<8x128xf32>
    %1096 = arith.addf %1094, %1095 : vector<8x128xf32>
    %1097 = arith.negf %1096 : vector<8x128xf32>
    %1098 = math.exp %1097 : vector<8x128xf32>
    %cst_199 = arith.constant 1.000000e+00 : f32
    %1099 = vector.broadcast %cst_199 : f32 to vector<8x128xf32>
    %1100 = arith.addf %1099, %1098 : vector<8x128xf32>
    %1101 = arith.divf %1099, %1100 : vector<8x128xf32>
    %1102 = vector.extract_strided_slice %865 {offsets = [0, 256], sizes = [8, 128], strides = [1, 1]} : vector<8x384xf32> to vector<8x128xf32>
    %1103 = vector.extract_strided_slice %1085 {offsets = [0, 256], sizes = [8, 128], strides = [1, 1]} : vector<8x384xf32> to vector<8x128xf32>
    %1104 = arith.mulf %1093, %1103 : vector<8x128xf32>
    %1105 = arith.addf %1102, %1104 : vector<8x128xf32>
    %1106 = math.tanh %1105 : vector<8x128xf32>
    %cst_200 = arith.constant 1.000000e+00 : f32
    %1107 = vector.broadcast %cst_200 : f32 to vector<8x128xf32>
    %1108 = arith.subf %1107, %1101 : vector<8x128xf32>
    %1109 = arith.mulf %1108, %1106 : vector<8x128xf32>
    %1110 = arith.mulf %1101, %1081 : vector<8x128xf32>
    %1111 = arith.addf %1109, %1110 : vector<8x128xf32>
    %1112 = arith.truncf %1111 : vector<8x128xf32> to vector<8x128xbf16>
    %c0_201 = arith.constant 0 : index
    %c0_202 = arith.constant 0 : index
    %1113 = vector.load %arg6[%c0_201, %c0_202] : memref<128x128xbf16, #tpu.memory_space<vmem>>, vector<128x128xbf16>
    %cst_203 = arith.constant dense<0.000000e+00> : vector<8x128xf32>
    %1114 = tpu.matmul %1112, %1113, %cst_203 {dimension_numbers = #tpu.dot_dimension_numbers<[1], [0], [0], [1], [0, 0, 1, 1], [], []>} : vector<8x128xbf16>, vector<128x128xbf16>, vector<8x128xf32> -> vector<8x128xf32>
    %c0_204 = arith.constant 0 : index
    %c0_205 = arith.constant 0 : index
    %1115 = vector.load %arg7[%c0_204, %c0_205] : memref<1x128xf32, #tpu.memory_space<vmem>>, vector<1x128xf32>
    %1116 = vector.broadcast %1115 : vector<1x128xf32> to vector<8x128xf32>
    %1117 = arith.addf %1114, %1116 : vector<8x128xf32>
    %c0_206 = arith.constant 0 : index
    %c0_207 = arith.constant 0 : index
    %1118 = vector.load %arg8[%c0_206, %c0_207] : memref<8x128xf32, #tpu.memory_space<vmem>>, vector<8x128xf32>
    tpu.vector_store %arg8[%c0_206, %c0_207], %1117 {strides = array<i32>} : memref<8x128xf32, #tpu.memory_space<vmem>>, vector<8x128xf32>,
    return
  }
  func.func @transform_0(%arg0: i32) -> (i32, i32) {
    %c0_i32 = arith.constant 0 : i32
    %c0_i32_0 = arith.constant 0 : i32
    %c0_i32_1 = arith.constant 0 : i32
    return %c0_i32, %c0_i32_0 : i32, i32
  }
  func.func @transform_1(%arg0: i32) -> (i32, i32) {
    %c0_i32 = arith.constant 0 : i32
    %c0_i32_0 = arith.constant 0 : i32
    %c0_i32_1 = arith.constant 0 : i32
    return %c0_i32, %c0_i32_0 : i32, i32
  }
  func.func @transform_2(%arg0: i32) -> (i32, i32, i32) {
    %c0_i32 = arith.constant 0 : i32
    %c0_i32_0 = arith.constant 0 : i32
    %c0_i32_1 = arith.constant 0 : i32
    %c0_i32_2 = arith.constant 0 : i32
    return %c0_i32, %c0_i32_0, %c0_i32_1 : i32, i32, i32
  }
  func.func @transform_3(%arg0: i32) -> (i32, i32, i32) {
    %c0_i32 = arith.constant 0 : i32
    %c0_i32_0 = arith.constant 0 : i32
    %c0_i32_1 = arith.constant 0 : i32
    %c0_i32_2 = arith.constant 0 : i32
    return %c0_i32, %c0_i32_0, %c0_i32_1 : i32, i32, i32
  }
  func.func @transform_4(%arg0: i32) -> (i32, i32, i32) {
    %c0_i32 = arith.constant 0 : i32
    %c0_i32_0 = arith.constant 0 : i32
    %c0_i32_1 = arith.constant 0 : i32
    %c0_i32_2 = arith.constant 0 : i32
    return %c0_i32, %c0_i32_0, %c0_i32_1 : i32, i32, i32
  }
  func.func @transform_5(%arg0: i32) -> (i32, i32) {
    %c0_i32 = arith.constant 0 : i32
    %c0_i32_0 = arith.constant 0 : i32
    %c0_i32_1 = arith.constant 0 : i32
    return %c0_i32, %c0_i32_0 : i32, i32
  }
  func.func @transform_6(%arg0: i32) -> (i32, i32) {
    %c0_i32 = arith.constant 0 : i32
    %c0_i32_0 = arith.constant 0 : i32
    %c0_i32_1 = arith.constant 0 : i32
    return %c0_i32, %c0_i32_0 : i32, i32
  }
  func.func @transform_7(%arg0: i32) -> (i32, i32) {
    %c0_i32 = arith.constant 0 : i32
    %c0_i32_0 = arith.constant 0 : i32
    %c0_i32_1 = arith.constant 0 : i32
    return %c0_i32, %c0_i32_0 : i32, i32
  }
}

</mosaic_0001>

<bundles_post_ra>
// kernel: simple_rnn_forward.1
= control target key start
LH: loop header
LB: loop body
LE: loop exit
PB: predicated region body
PF: predicated region fallthrough
CT: control target
= control target key end

     0   :  { %vm10796_vm0 = vmmov 0   ;;  %s15694_s1 = inlined_call_operand.vmem [shape: bf16[512,384], index: 1, kind: input, shape index: {}]   ;;  %s15695_s0 = inlined_call_operand.vmem [shape: f32[64,512], index: 0, kind: input, shape index: {}]   ;;  %s15696_s3 = inlined_call_operand.vmem [shape: bf16[4,128,384], index: 3, kind: input, shape index: {}]   ;;  %s15697_s2 = inlined_call_operand.vmem [shape: bf16[3,128,384], index: 2, kind: input, shape index: {}]   ;;  %s15698_s4 = inlined_call_operand.vmem [shape: f32[4,2,384], index: 4, kind: input, shape index: {}]   ;;  %s15699_s5 = inlined_call_operand.vmem [shape: bf16[128,128], index: 5, kind: input, shape index: {}]   ;;  %s15700_s6 = inlined_call_operand.vmem [shape: f32[1,128], index: 6, kind: input, shape index: {}]   ;;  %s15701_s7 = inlined_call_operand.vmem [shape: f32[8,128], index: 7, kind: output, shape index: {}]  }
   0x1   :  { %v9935_v0 = vld [vmem:[%s15694_s1 + $0xac] ss:$12 sps:$4 sm:$0xff]   ;;  %v9937_v1 = vld [vmem:[%s15694_s1 + $0xa8] ss:$12 sps:$4 sm:$0xff]   ;;  %v9943_v5 = vld [vmem:[%s15694_s1 + $0x90] ss:$12 sps:$4 sm:$0xff]  }
   0x2   :  { %744 = vmatprep.subr.bf16.mxu0 %v9935_v0  ;;  %v9938_v2 = vld [vmem:[%s15694_s1 + $0x22c] ss:$12 sps:$4 sm:$0xff]   ;;  %v9940_v3 = vld [vmem:[%s15694_s1 + $0x228] ss:$12 sps:$4 sm:$0xff]   ;;  %v9946_v7 = vld [vmem:[%s15694_s1 + $0x210] ss:$12 sps:$4 sm:$0xff]  }
   0x3   :  { %745 = vmatpush1.bf16.msra.mxu0 %v9937_v1  ;;  %v9941_v4 = vld [vmem:[%s15694_s1 + $0x94] ss:$12 sps:$4 sm:$0xff]   ;;  %817 = vmatprep.subr.bf16.mxu1 %v9938_v2  ;;  %v9947_v8 = vld [vmem:[%s15694_s1 + $0x7c] ss:$12 sps:$4 sm:$0xff]   ;;  %v9949_v9 = vld [vmem:[%s15694_s1 + $0x78] ss:$12 sps:$4 sm:$0xff]  }
   0x4   :  { %v9944_v6 = vld [vmem:[%s15694_s1 + $0x214] ss:$12 sps:$4 sm:$0xff]   ;;  %818 = vmatpush1.bf16.msra.mxu1 %v9940_v3  ;;  %746 = vmatprep.subr.bf16.mxu0 %v9941_v4  ;;  %v9950_v10 = vld [vmem:[%s15694_s1 + $0x1fc] ss:$12 sps:$4 sm:$0xff]   ;;  %v9953_v11 = vld [vmem:[%s15694_s1 + $0x64] ss:$12 sps:$4 sm:$0xff]  }
   0x5   :  { %819 = vmatprep.subr.bf16.mxu1 %v9944_v6  ;;  %v9952_v12 = vld [vmem:[%s15694_s1 + $0x1f8] ss:$12 sps:$4 sm:$0xff]   ;;  %v9955_v14 = vld [vmem:[%s15694_s1 + $0x60] ss:$12 sps:$4 sm:$0xff]   ;;  %v9961_v18 = vld [vmem:[%s15694_s1 + $0x48] ss:$12 sps:$4 sm:$0xff]  }
   0x6   :  { %v9956_v13 = vld [vmem:[%s15694_s1 + $0x1e4] ss:$12 sps:$4 sm:$0xff]   ;;  %v9959_v15 = vld [vmem:[%s15694_s1 + $0x4c] ss:$12 sps:$4 sm:$0xff]   ;;  %v9965_v19 = vld [vmem:[%s15694_s1 + $0x34] ss:$12 sps:$4 sm:$0xff]  }
   0x7   :  { %747 = vmatpush1.bf16.msra.mxu0 %v9943_v5  ;;  %v9958_v16 = vld [vmem:[%s15694_s1 + $0x1e0] ss:$12 sps:$4 sm:$0xff]   ;;  %v9964_v20 = vld [vmem:[%s15694_s1 + $0x1c8] ss:$12 sps:$4 sm:$0xff]   ;;  %v9967_v22 = vld [vmem:[%s15694_s1 + $0x30] ss:$12 sps:$4 sm:$0xff]  }
   0x8   :  { %748 = vmatprep.subr.bf16.mxu0 %v9947_v8  ;;  %820 = vmatpush1.bf16.msra.mxu1 %v9946_v7  ;;  %v9962_v17 = vld [vmem:[%s15694_s1 + $0x1cc] ss:$12 sps:$4 sm:$0xff]   ;;  %v9968_v21 = vld [vmem:[%s15694_s1 + $0x1b4] ss:$12 sps:$4 sm:$0xff]   ;;  %v9971_v23 = vld [vmem:[%s15694_s1 + $0x1c] ss:$12 sps:$4 sm:$0xff]  }
   0x9   :  { %821 = vmatprep.subr.bf16.mxu1 %v9950_v10  ;;  %v9970_v24 = vld [vmem:[%s15694_s1 + $0x1b0] ss:$12 sps:$4 sm:$0xff]   ;;  %v9973_v26 = vld [vmem:[%s15694_s1 + $0x18] ss:$12 sps:$4 sm:$0xff]   ;;  %v9979_v30 = vld [vmem:[%s15694_s1] ss:$12 sps:$4 sm:$0xff]  }
   0xa   :  { %v9974_v25 = vld [vmem:[%s15694_s1 + $0x19c] ss:$12 sps:$4 sm:$0xff]   ;;  %v9977_v27 = vld [vmem:[%s15694_s1 + $0x4] ss:$12 sps:$4 sm:$0xff]   ;;  %v9983_v31 = vld [vmem:[%s15694_s1 + $0x16c] ss:$12 sps:$4 sm:$0xff]  }
   0xb   :  { %749 = vmatpush1.bf16.msra.mxu0 %v9949_v9  ;;  %v9976_v28 = vld [vmem:[%s15694_s1 + $0x198] ss:$12 sps:$4 sm:$0xff]   ;;  %v9982_v32 = vld [vmem:[%s15694_s1 + $0x180] ss:$12 sps:$4 sm:$0xff]   ;;  %v9985_v34 = vld [vmem:[%s15694_s1 + $0x168] ss:$12 sps:$4 sm:$0xff]  }
   0xc   :  { %750 = vmatprep.subr.bf16.mxu0 %v9953_v11  ;;  %822 = vmatpush1.bf16.msra.mxu1 %v9952_v12  ;;  %v9980_v29 = vld [vmem:[%s15694_s1 + $0x184] ss:$12 sps:$4 sm:$0xff]   ;;  %v9986_v33 = vld [vmem:[%s15694_s1 + $0x2ec] ss:$12 sps:$4 sm:$0xff]   ;;  %v9989_v35 = vld [vmem:[%s15694_s1 + $0x154] ss:$12 sps:$4 sm:$0xff]  }
   0xd   :  { %823 = vmatprep.subr.bf16.mxu1 %v9956_v13  ;;  %v9988_v36 = vld [vmem:[%s15694_s1 + $0x2e8] ss:$12 sps:$4 sm:$0xff]   ;;  %v9991_v38 = vld [vmem:[%s15694_s1 + $0x150] ss:$12 sps:$4 sm:$0xff]   ;;  %v9997_v42 = vld [vmem:[%s15694_s1 + $0x138] ss:$12 sps:$4 sm:$0xff]  }
   0xe   :  { %v9992_v37 = vld [vmem:[%s15694_s1 + $0x2d4] ss:$12 sps:$4 sm:$0xff]   ;;  %v9995_v39 = vld [vmem:[%s15694_s1 + $0x13c] ss:$12 sps:$4 sm:$0xff]   ;;  %v10001_v43 = vld [vmem:[%s15694_s1 + $0x124] ss:$12 sps:$4 sm:$0xff]  }
   0xf   :  { %751 = vmatpush1.bf16.msra.mxu0 %v9955_v14  ;;  %v9994_v40 = vld [vmem:[%s15694_s1 + $0x2d0] ss:$12 sps:$4 sm:$0xff]   ;;  %v10000_v44 = vld [vmem:[%s15694_s1 + $0x2b8] ss:$12 sps:$4 sm:$0xff]   ;;  %v28_v46 = vld [vmem:[%s15695_s0 + $0x8] sm:$0xff] }
  0x10   :  { %752 = vmatprep.subr.bf16.mxu0 %v9959_v15  ;;  %824 = vmatpush1.bf16.msra.mxu1 %v9958_v16  ;;  %v9998_v41 = vld [vmem:[%s15694_s1 + $0x2bc] ss:$12 sps:$4 sm:$0xff]   ;;  %v10004_v45 = vld [vmem:[%s15694_s1 + $0x2a4] ss:$12 sps:$4 sm:$0xff]   ;;  %v10003_v48 = vld [vmem:[%s15694_s1 + $0x120] ss:$12 sps:$4 sm:$0xff]  }
  0x11   :  { %825 = vmatprep.subr.bf16.mxu1 %v9962_v17  ;;  %v32_v47 = vld [vmem:[%s15695_s0 + $0x28] sm:$0xff]  ;;  %v30_v52 = vld [vmem:[%s15695_s0 + $0x18] sm:$0xff]  ;;  %v10013_v57 = vld [vmem:[%s15694_s1 + $0xf4] ss:$12 sps:$4 sm:$0xff]  }
  0x12   :  { %v10006_v49 = vld [vmem:[%s15694_s1 + $0x2a0] ss:$12 sps:$4 sm:$0xff]   ;;  %v10987_v50 = vpack.c.bf16 %v32_v47, %v28_v46  ;;  %v34_v53 = vld [vmem:[%s15695_s0 + $0x38] sm:$0xff]  ;;  %v10009_v56 = vld [vmem:[%s15694_s1 + $0x108] ss:$12 sps:$4 sm:$0xff]  }
  0x13   :  { %753 = vmatpush1.bf16.msra.mxu0 %v9961_v18  ;;  %v10007_v51 = vld [vmem:[%s15694_s1 + $0x10c] ss:$12 sps:$4 sm:$0xff]   ;;  %v11002_v55 = vpack.c.bf16 %v34_v53, %v30_v52  ;;  %v10012_v58 = vld [vmem:[%s15694_s1 + $0x288] ss:$12 sps:$4 sm:$0xff]   ;;  %v10015_v60 = vld [vmem:[%s15694_s1 + $0xf0] ss:$12 sps:$4 sm:$0xff]  }
  0x14   :  { %754 = vmatprep.subr.bf16.mxu0 %v9965_v19  ;;  %826 = vmatpush1.bf16.msra.mxu1 %v9964_v20  ;;  %v10010_v54 = vld [vmem:[%s15694_s1 + $0x28c] ss:$12 sps:$4 sm:$0xff]   ;;  %v10016_v59 = vld [vmem:[%s15694_s1 + $0x274] ss:$12 sps:$4 sm:$0xff]   ;;  %v10019_v61 = vld [vmem:[%s15694_s1 + $0xdc] ss:$12 sps:$4 sm:$0xff]  }
  0x15   :  { %827 = vmatprep.subr.bf16.mxu1 %v9968_v21  ;;  %776 = vmatprep.mubr.bf16.mxu0 %v10987_v50  ;;  %v10018_v62 = vld [vmem:[%s15694_s1 + $0x270] ss:$12 sps:$4 sm:$0xff]   ;;  %v10021_v0 = vld [vmem:[%s15694_s1 + $0xd8] ss:$12 sps:$4 sm:$0xff]   ;;  %v10027_v3 = vld [vmem:[%s15694_s1 + $0xc0] ss:$12 sps:$4 sm:$0xff]  }
  0x16   :  { %849 = vmatprep.mubr.bf16.mxu1 %v11002_v55  ;;  %v10022_v63 = vld [vmem:[%s15694_s1 + $0x25c] ss:$12 sps:$4 sm:$0xff]   ;;  %v10024_v1 = vld [vmem:[%s15694_s1 + $0x258] ss:$12 sps:$4 sm:$0xff]   ;;  %v10030_v8 = vld [vmem:[%s15694_s1 + $0x240] ss:$12 sps:$4 sm:$0xff]  }
  0x17   :  { %755 = vmatpush1.bf16.msra.mxu0 %v9967_v22  ;;  %v10025_v2 = vld [vmem:[%s15694_s1 + $0xc4] ss:$12 sps:$4 sm:$0xff]   ;;  %v36_v11 = vld [vmem:[%s15695_s0 + $0x48] sm:$0xff]  ;;  %v38_v14 = vld [vmem:[%s15695_s0 + $0x58] sm:$0xff] }
  0x18   :  { %756 = vmatprep.subr.bf16.mxu0 %v9971_v23  ;;  %828 = vmatpush1.bf16.msra.mxu1 %v9970_v24  ;;  %v10028_v4 = vld [vmem:[%s15694_s1 + $0x244] ss:$12 sps:$4 sm:$0xff]   ;;  %v40_v13 = vld [vmem:[%s15695_s0 + $0x68] sm:$0xff]  ;;  %v42_v16 = vld [vmem:[%s15695_s0 + $0x78] sm:$0xff] }
  0x19   :  { %829 = vmatprep.subr.bf16.mxu1 %v9974_v25  ;;  %v27_v5 = vld [vmem:[%s15695_s0] sm:$0xff]  ;;  %v10031_v7 = vld [vmem:[%s15694_s1 + $0x170] ss:$12 sps:$4 sm:$0xff]   ;;  %v11082_v18 = vpack.c.bf16 %v40_v13, %v36_v11  ;;  %v11098_v24 = vpack.c.bf16 %v42_v16, %v38_v14  ;;  %v10046_v47 = vld [vmem:[%s15694_s1 + $0x1e8] ss:$12 sps:$4 sm:$0xff]  }
  0x1a   :  { %v31_v6 = vld [vmem:[%s15695_s0 + $0x20] sm:$0xff]  ;;  %v29_v9 = vld [vmem:[%s15695_s0 + $0x10] sm:$0xff]  ;;  %v56_v52 = vld [vmem:[%s15695_s0 + $0xe8] sm:$0xff] }
  0x1b   :  { %757 = vmatpush1.bf16.msra.mxu0 %v9973_v26  ;;  %v33_v10 = vld [vmem:[%s15695_s0 + $0x30] sm:$0xff]  ;;  %v11074_v15 = vpack.c.bf16 %v31_v6, %v27_v5  ;;  %v10035_v21 = vld [vmem:[%s15694_s1 + $0x158] ss:$12 sps:$4 sm:$0xff]   ;;  %v10055_v6 = vld [vmem:[%s15694_s1 + $0xe0] ss:$12 sps:$4 sm:$0xff]  }
  0x1c   :  { %758 = vmatprep.subr.bf16.mxu0 %v9977_v27  ;;  %830 = vmatpush1.bf16.msra.mxu1 %v9976_v28  ;;  %v10033_v12 = vld [vmem:[%s15694_s1 + $0x2f0] ss:$12 sps:$4 sm:$0xff]   ;;  %v11084_v19 = vpack.c.bf16 %v33_v10, %v29_v9  ;;  %v10036_v22 = vld [vmem:[%s15694_s1 + $0x98] ss:$12 sps:$4 sm:$0xff]   ;;  %v10039_v27 = vld [vmem:[%s15694_s1 + $0x140] ss:$12 sps:$4 sm:$0xff]  }
  0x1d   :  { %831 = vmatprep.subr.bf16.mxu1 %v9980_v29  ;;  %v10032_v17 = vld [vmem:[%s15694_s1 + $0xb0] ss:$12 sps:$4 sm:$0xff]   ;;  %v10037_v23 = vld [vmem:[%s15694_s1 + $0x2d8] ss:$12 sps:$4 sm:$0xff]   ;;  %v10057_v10 = vld [vmem:[%s15694_s1 + $0x260] ss:$12 sps:$4 sm:$0xff]  }
  0x1e   :  { %v10034_v20 = vld [vmem:[%s15694_s1 + $0x230] ss:$12 sps:$4 sm:$0xff]   ;;  %v35_v25 = vld [vmem:[%s15695_s0 + $0x40] sm:$0xff]  ;;  %v10059_v13 = vld [vmem:[%s15694_s1 + $0xc8] ss:$12 sps:$4 sm:$0xff]  }
  0x1f   :  { %759 = vmatpush1.bf16.msra.mxu0 %v9979_v30  ;;  %v39_v26 = vld [vmem:[%s15695_s0 + $0x60] sm:$0xff]  ;;  %v37_v29 = vld [vmem:[%s15695_s0 + $0x50] sm:$0xff] }
  0x20   :  { %760 = vmatprep.subr.bf16.mxu0 %v9983_v31  ;;  %832 = vmatpush1.bf16.msra.mxu1 %v9982_v32  ;;  %v10038_v28 = vld [vmem:[%s15694_s1 + $0x218] ss:$12 sps:$4 sm:$0xff]   ;;  %v41_v30 = vld [vmem:[%s15695_s0 + $0x70] sm:$0xff]  ;;  %v10041_v31 = vld [vmem:[%s15694_s1 + $0x2c0] ss:$12 sps:$4 sm:$0xff]  }
  0x21   :  { %833 = vmatprep.subr.bf16.mxu1 %v9986_v33  ;;  %v44_v32 = vld [vmem:[%s15695_s0 + $0x88] sm:$0xff]  ;;  %v47_v46 = vld [vmem:[%s15695_s0 + $0xa0] sm:$0xff]  ;;  %v10048_v53 = vld [vmem:[%s15694_s1 + $0x50] ss:$12 sps:$4 sm:$0xff]  }
  0x22   :  { %v48_v33 = vld [vmem:[%s15695_s0 + $0xa8] sm:$0xff]  ;;  %v10054_v5 = vld [vmem:[%s15694_s1 + $0x1b8] ss:$12 sps:$4 sm:$0xff]  }
  0x23   :  { %761 = vmatpush2.bf16.msra.mxu0 %v9985_v34  ;;  %v10040_v34 = vld [vmem:[%s15694_s1 + $0x80] ss:$12 sps:$4 sm:$0xff]   ;;  %v10061_v16 = vld [vmem:[%s15694_s1 + $0x248] ss:$12 sps:$4 sm:$0xff]  }
  0x24   :  { %762 = vmatprep.subr.bf16.mxu0 %v9989_v35  ;;  %834 = vmatpush2.bf16.msra.mxu1 %v9988_v36  ;;  %v46_v35 = vld [vmem:[%s15695_s0 + $0x98] sm:$0xff]  ;;  %v11137_v36 = vpack.c.bf16 %v39_v26, %v35_v25  ;;  %v10056_v11 = vld [vmem:[%s15694_s1 + $0x20] ss:$12 sps:$4 sm:$0xff]  }
  0x25   :  { %835 = vmatprep.subr.bf16.mxu1 %v9992_v37  ;;  %v50_v37 = vld [vmem:[%s15695_s0 + $0xb8] sm:$0xff]  ;;  %v10058_v14 = vld [vmem:[%s15694_s1 + $0x1a0] ss:$12 sps:$4 sm:$0xff]  }
  0x26   :  { %v10068_v25 = vld [vmem:[%s15696_s3 + $0x90] ss:$12 sps:$4 sm:$0xff]  }
  0x27   :  { %763 = vmatpush2.bf16.msra.mxu0 %v9991_v38  ;;  %v10042_v38 = vld [vmem:[%s15694_s1 + $0x200] ss:$12 sps:$4 sm:$0xff]   ;;  %v11296_v26 = vld [vmem:[%s15696_s3 + $0x7c] ss:$12 sps:$4 sm:$0xff]  }
  0x28   :  { %764 = vmatprep.subr.bf16.mxu0 %v9995_v39  ;;  %836 = vmatpush2.bf16.msra.mxu1 %v9994_v40  ;;  %v11145_v39 = vpack.c.bf16 %v48_v33, %v44_v32  ;;  %v11147_v40 = vpack.c.bf16 %v41_v30, %v37_v29  ;;  %v11339_v29 = vld [vmem:[%s15696_s3 + $0x68] ss:$12 sps:$4 sm:$0xff]   ;;  %v11360_v32 = vld [vmem:[%s15696_s3 + $0x50] ss:$12 sps:$4 sm:$0xff]  }
  0x29   :  { %837 = vmatprep.subr.bf16.mxu1 %v9998_v41  ;;  %v10043_v41 = vld [vmem:[%s15694_s1 + $0x128] ss:$12 sps:$4 sm:$0xff]   ;;  %v11366_v33 = vld [vmem:[%s15696_s3 + $0x30] ss:$12 sps:$4 sm:$0xff]  }
  0x2a   :  { %v11347_v30 = vld [vmem:[%s15696_s3 + $0x48] ss:$12 sps:$4 sm:$0xff]  }
  0x2b   :  { %765 = vmatpush2.bf16.msra.mxu0 %v9997_v42  ;;  %v10044_v42 = vld [vmem:[%s15694_s1 + $0x68] ss:$12 sps:$4 sm:$0xff]  }
  0x2c   :  { %766 = vmatprep.subr.bf16.mxu0 %v10001_v43  ;;  %838 = vmatpush2.bf16.msra.mxu1 %v10000_v44  ;;  %v10045_v43 = vld [vmem:[%s15694_s1 + $0x2a8] ss:$12 sps:$4 sm:$0xff]   ;;  %v43_v44 = vld [vmem:[%s15695_s0 + $0x80] sm:$0xff] }
  0x2d   :  { %839 = vmatprep.subr.bf16.mxu1 %v10004_v45  ;;  %v11161_v45 = vpack.c.bf16 %v50_v37, %v46_v35  ;;  %v11381_v35 = vld [vmem:[%s15696_s3 + $0x38] ss:$12 sps:$4 sm:$0xff]  }
  0x2e   :  { %v11395_v37 = vld [vmem:[%s15696_s3 + $0x4] ss:$12 sps:$4 sm:$0xff]  }
  0x2f   :  { %767 = vmatpush2.bf16.msra.mxu0 %v10003_v48  ;;  %v10047_v48 = vld [vmem:[%s15694_s1 + $0x110] ss:$12 sps:$4 sm:$0xff]  }
  0x30   :  { %768 = vmatprep.subr.bf16.mxu0 %v10007_v51  ;;  %840 = vmatpush2.bf16.msra.mxu1 %v10006_v49  ;;  %v45_v49 = vld [vmem:[%s15695_s0 + $0x90] sm:$0xff]  ;;  %v52_v51 = vld [vmem:[%s15695_s0 + $0xc8] sm:$0xff] }
  0x31   :  { %841 = vmatprep.subr.bf16.mxu1 %v10010_v54  ;;  %v49_v54 = vld [vmem:[%s15695_s0 + $0xb0] sm:$0xff] }
  0x33   :  { %769 = vmatpush2.bf16.msra.mxu0 %v10009_v56  ;;  %v10049_v56 = vld [vmem:[%s15694_s1 + $0x290] ss:$12 sps:$4 sm:$0xff]  }
  0x34   :  { %770 = vmatprep.subr.bf16.mxu0 %v10013_v57  ;;  %842 = vmatpush2.bf16.msra.mxu1 %v10012_v58  ;;  %v11194_v57 = vpack.c.bf16 %v47_v46, %v43_v44  ;;  %v54_v58 = vld [vmem:[%s15695_s0 + $0xd8] sm:$0xff] }
  0x35   :  { %843 = vmatprep.subr.bf16.mxu1 %v10016_v59  ;;  %v58_v59 = vld [vmem:[%s15695_s0 + $0xf8] sm:$0xff] }
  0x36   :  { %v11448_v44 = vld [vmem:[%s15697_s2 + $0xb0] ss:$12 sps:$4 sm:$0xff]  }
  0x37   :  { %771 = vmatpush2.bf16.msra.mxu0 %v10015_v60  ;;  %v10050_v60 = vld [vmem:[%s15694_s1 + $0x1d0] ss:$12 sps:$4 sm:$0xff]  }
  0x38   :  { %772 = vmatprep.subr.bf16.mxu0 %v10019_v61  ;;  %844 = vmatpush2.bf16.msra.mxu1 %v10018_v62  ;;  %v10051_v61 = vld [vmem:[%s15694_s1 + $0xf8] ss:$12 sps:$4 sm:$0xff]   ;;  %v11208_v62 = vpack.c.bf16 %v56_v52, %v52_v51  ;;  %v11461_v46 = vld [vmem:[%s15697_s2 + $0x90] ss:$12 sps:$4 sm:$0xff]   ;;  %v11485_v51 = vld [vmem:[%s15697_s2 + $0x80] ss:$12 sps:$4 sm:$0xff]  }
  0x39   :  { %845 = vmatprep.subr.bf16.mxu1 %v10022_v63  ;;  %v11210_v63 = vpack.c.bf16 %v49_v54, %v45_v49  ;;  %v11480_v49 = vld [vmem:[%s15697_s2 + $0x78] ss:$12 sps:$4 sm:$0xff]   ;;  %v11504_v54 = vld [vmem:[%s15697_s2 + $0x68] ss:$12 sps:$4 sm:$0xff]  }
  0x3a   :  { %v11493_v52 = vld [vmem:[%s15697_s2 + $0x64] ss:$12 sps:$4 sm:$0xff]  }
  0x3b   :  { %773 = vmatpush2.bf16.msra.mxu0 %v10021_v0  ;;  %v10053_v0 = vld [vmem:[%s15694_s1 + $0x278] ss:$12 sps:$4 sm:$0xff]  }
  0x3c   :  { %774 = vmatprep.subr.bf16.mxu0 %v10025_v2  ;;  %846 = vmatpush2.bf16.msra.mxu1 %v10024_v1  ;;  %v10052_v1 = vld [vmem:[%s15694_s1 + $0x38] ss:$12 sps:$4 sm:$0xff]  }
  0x3d   :  { %847 = vmatprep.subr.bf16.mxu1 %v10028_v4  ;;  %v51_v2 = vld [vmem:[%s15695_s0 + $0xc0] sm:$0xff] }
  0x3e   :  { %v55_v4 = vld [vmem:[%s15695_s0 + $0xe0] sm:$0xff] }
  0x3f   :  { %775 = vmatpush2.bf16.msra.mxu0 %v10027_v3  ;;  %v11221_v3 = vpack.c.bf16 %v58_v59, %v54_v58  ;;  %v11242_v9 = vpack.c.bf16 %v55_v4, %v51_v2  ;;  %v11522_v58 = vld [vmem:[%s15697_s2 + $0x50] ss:$12 sps:$4 sm:$0xff]   ;;  %v11527_v59 = vld [vmem:[%s15697_s2 + $0x34] ss:$12 sps:$4 sm:$0xff]   ;;  %v205_v2 = vlaneseq }
  0x40   :  { %8199 = vmatprep.subr.bf16.mxu0 %v10031_v7  ;;  %848 = vmatpush2.bf16.msra.mxu1 %v10030_v8  ;;  %v53_v7 = vld [vmem:[%s15695_s0 + $0xd0] sm:$0xff] }
  0x41   :  { %8239 = vmatprep.subr.bf16.mxu1 %v10033_v12  ;;  %v57_v8 = vld [vmem:[%s15695_s0 + $0xf0] sm:$0xff] }
  0x42   :  { %777 = vmatmul.mubr.bf16.vlgmr.msra.gmra.mxu0 %v11074_v15  ;;  %v11250_v12 = vpack.c.bf16 %v57_v8, %v53_v7  ;;  %v11577_v4 = vld [vmem:[%s15697_s2 + $0x8] ss:$12 sps:$4 sm:$0xff]   ;;  %v11591_v7 = vld [vmem:[%s15698_s4] sm:$0x3f] }
  0x43   :  { %8200 = vmatpush3.bf16.msra.mxu0 %v10032_v17  ;;  %786 = vmatprep.mubr.bf16.mxu0 %v11082_v18  ;;  %v10060_v17 = vld [vmem:[%s15694_s1 + $0x8] ss:$12 sps:$4 sm:$0xff]   ;;  %15866 = vst [vmem:[#allocation9_spill] sm:$0xff] %v11577_v4 }
  0x44   :  { %850 = vmatmul.mubr.bf16.vlgmr.msra.gmra.mxu1 %v11084_v19  ;;  %8201 = vmatprep.subr.bf16.mxu0 %v10035_v21  ;;  %v10062_v21 = vld [vmem:[%s15694_s1 + $0x188] ss:$12 sps:$4 sm:$0xff]  }
  0x45   :  { %8240 = vmatpush3.bf16.msra.mxu1 %v10034_v20  ;;  %859 = vmatprep.mubr.bf16.mxu1 %v11098_v24  ;;  %v11270_v20 = vld [vmem:[%s15696_s3 + $0xac] ss:$12 sps:$4 sm:$0xff]  }
  0x46   :  { %8241 = vmatprep.subr.bf16.mxu1 %v10037_v23  ;;  %v10087_v23 = vld [vmem:[%s15696_s3 + $0xb0] ss:$12 sps:$4 sm:$0xff]  }
  0x47   :  { %8202 = vmatpush3.bf16.msra.mxu0 %v10036_v22  ;;  %v10066_v22 = vld [vmem:[%s15696_s3 + $0x94] ss:$12 sps:$4 sm:$0xff]  }
  0x48   :  { %8203 = vmatprep.subr.bf16.mxu0 %v10039_v27  ;;  %v11324_v27 = vld [vmem:[%s15696_s3 + $0x60] ss:$12 sps:$4 sm:$0xff]  }
  0x49   :  { %8242 = vmatpush3.bf16.msra.mxu1 %v10038_v28  ;;  %v11331_v28 = vld [vmem:[%s15696_s3 + $0x4c] ss:$12 sps:$4 sm:$0xff]  }
  0x4a   :  { %787 = vmatmul.mubr.bf16.gmra.mxu0 %v11137_v36  ;;  %8243 = vmatprep.subr.bf16.mxu1 %v10041_v31  ;;  %v11353_v31 = vld [vmem:[%s15696_s3 + $0x34] ss:$12 sps:$4 sm:$0xff]  }
  0x4b   :  { %8204 = vmatpush3.bf16.msra.mxu0 %v10040_v34  ;;  %796 = vmatprep.mubr.bf16.mxu0 %v11145_v39  ;;  %v11373_v34 = vld [vmem:[%s15696_s3 + $0x1c] ss:$12 sps:$4 sm:$0xff]  }
  0x4c   :  { %860 = vmatmul.mubr.bf16.gmra.mxu1 %v11147_v40  ;;  %8205 = vmatprep.subr.bf16.mxu0 %v10043_v41  ;;  %v11418_v41 = vld [vmem:[%s15696_s3 + $0x8] ss:$12 sps:$4 sm:$0xff]  }
  0x4d   :  { %8244 = vmatpush3.bf16.msra.mxu1 %v10042_v38  ;;  %869 = vmatprep.mubr.bf16.mxu1 %v11161_v45  ;;  %v11402_v38 = vld [vmem:[%s15696_s3 + $0x20] ss:$12 sps:$4 sm:$0xff]  }
  0x4e   :  { %8245 = vmatprep.subr.bf16.mxu1 %v10045_v43  ;;  %v11442_v43 = vld [vmem:[%s15697_s2 + $0xa8] ss:$12 sps:$4 sm:$0xff]  }
  0x4f   :  { %8206 = vmatpush3.bf16.msra.mxu0 %v10044_v42  ;;  %v11437_v42 = vld [vmem:[%s15697_s2 + $0xac] ss:$12 sps:$4 sm:$0xff]  }
  0x50   :  { %8207 = vmatprep.subr.bf16.mxu0 %v10047_v48  ;;  %v11474_v48 = vld [vmem:[%s15697_s2 + $0x7c] ss:$12 sps:$4 sm:$0xff]  }
  0x51   :  { %8246 = vmatpush3.bf16.msra.mxu1 %v10046_v47  ;;  %v11466_v47 = vld [vmem:[%s15697_s2 + $0x98] ss:$12 sps:$4 sm:$0xff]  }
  0x52   :  { %797 = vmatmul.mubr.bf16.gmra.mxu0 %v11194_v57  ;;  %8247 = vmatprep.subr.bf16.mxu1 %v10049_v56  ;;  %v11511_v56 = vld [vmem:[%s15697_s2 + $0x4c] ss:$12 sps:$4 sm:$0xff]  }
  0x53   :  { %8208 = vmatpush3.bf16.msra.mxu0 %v10048_v53  ;;  %806 = vmatprep.mubr.bf16.mxu0 %v11208_v62  ;;  %v11499_v53 = vld [vmem:[%s15697_s2 + $0x60] ss:$12 sps:$4 sm:$0xff]  }
  0x54   :  { %870 = vmatmul.mubr.bf16.gmra.mxu1 %v11210_v63  ;;  %8209 = vmatprep.subr.bf16.mxu0 %v10051_v61  ;;  %v11539_v61 = vld [vmem:[%s15697_s2 + $0x38] ss:$12 sps:$4 sm:$0xff]  }
  0x55   :  { %8248 = vmatpush3.bf16.msra.mxu1 %v10050_v60  ;;  %879 = vmatprep.mubr.bf16.mxu1 %v11221_v3  ;;  %v11534_v60 = vld [vmem:[%s15697_s2 + $0x30] ss:$12 sps:$4 sm:$0xff]   ;;  %15860 = vst [vmem:[#allocation3_spill] sm:$0xff] %v11539_v61 }
  0x56   :  { %8249 = vmatprep.subr.bf16.mxu1 %v10053_v0  ;;  %15859 = vst [vmem:[#allocation2_spill] sm:$0xff] %v11534_v60  ;;  %v11558_v0 = vld [vmem:[%s15697_s2 + $0x20] ss:$12 sps:$4 sm:$0xff]  }
  0x57   :  { %8210 = vmatpush3.bf16.msra.mxu0 %v10052_v1  ;;  %15863 = vst [vmem:[#allocation6_spill] sm:$0xff] %v11558_v0  ;;  %v11563_v1 = vld [vmem:[%s15697_s2 + $0x4] ss:$12 sps:$4 sm:$0xff]  }
  0x58   :  { %8211 = vmatprep.subr.bf16.mxu0 %v10055_v6  ;;  %15864 = vst [vmem:[#allocation7_spill] sm:$0xff] %v11563_v1 }
  0x59   :  { %8250 = vmatpush3.bf16.msra.mxu1 %v10054_v5  ;;  %v11579_v5 = vshrl.u32 %v205_v2, 7 }
  0x5a   :  { %807 = vmatmul.mubr.bf16.gmra.mxu0 %v11242_v9  ;;  %8251 = vmatprep.subr.bf16.mxu1 %v10057_v10 }
  0x5b   :  { %8212 = vmatpush3.bf16.msra.mxu0 %v10056_v11  ;;  %922 = vmatprep.mubr.bf16.mxu0 %v10987_v50  ;;  %v10065_v50 = vld [vmem:[%s15696_s3 + $0xa8] ss:$12 sps:$4 sm:$0xff]   ;;  %v11585_v6 = vsub.s32 2, %v11579_v5  ;;  %v11597_v8 = vsub.s32 0, %v11579_v5 }
  0x5c   :  { %880 = vmatmul.mubr.bf16.gmra.mxu1 %v11250_v12  ;;  %8213 = vmatprep.subr.bf16.mxu0 %v10059_v13 }
  0x5d   :  { %8252 = vmatpush3.bf16.msra.mxu1 %v10058_v14  ;;  %987 = vmatprep.mubr.bf16.mxu1 %v11002_v55  ;;  %v15704_v55 = vmov 0.0   ;;  %15867 = vst [vmem:[#allocation10_spill] sm:$0xff] %v11585_v6  ;;  %15868 = vst [vmem:[#allocation11_spill] sm:$0xff] %v11597_v8  ;;  %v208_v10 = vrot.slane %v11591_v7, %v11597_v8 }
  0x5e   :  { %8253 = vmatprep.subr.bf16.mxu1 %v10061_v16 }
  0x5f   :  { %8214 = vmatpush3.bf16.msra.mxu0 %v10060_v17  ;;  %v11612_v16 = vrot.slane %v208_v10, %v11597_v8 }
  0x60   :  { %1241 = vmatprep.subr.bf16.mxu0 %v11270_v20 }
  0x61   :  { %8254 = vmatpush3.bf16.msra.mxu1 %v10062_v21 }
  0x62   :  { %923 = vmatmul.mubr.bf16.vlgmr.msra.gmra.mxu0 %v11074_v15  ;;  %8792 = vmatprep.subr.bf16.mxu1 %v15704_v55  ;;  %v11302_v15 = vld [vmem:[%s15696_s3 + $0x98] ss:$12 sps:$4 sm:$0xff]  }
  0x63   :  { %1242 = vmatpush1.bf16.msra.mxu0 %v10065_v50  ;;  %930 = vmatprep.mubr.bf16.mxu0 %v11082_v18  ;;  %v11307_v18 = vld [vmem:[%s15696_s3 + $0x78] ss:$12 sps:$4 sm:$0xff]  }
  0x64   :  { %988 = vmatmul.mubr.bf16.vlgmr.msra.gmra.mxu1 %v11084_v19  ;;  %1243 = vmatprep.subr.bf16.mxu0 %v10066_v22  ;;  %v11313_v19 = vld [vmem:[%s15696_s3 + $0x64] ss:$12 sps:$4 sm:$0xff]  }
  0x65   :  { %995 = vmatprep.mubr.bf16.mxu1 %v11098_v24  ;;  %8793 = vmatpush3.bf16.msra.mxu1 %v10087_v23  ;;  %v11319_v24 = vld [vmem:[%s15696_s3 + $0x80] ss:$12 sps:$4 sm:$0xff]  }
  0x66   :  { %8794 = vmatprep.subr.bf16.mxu1 %v15704_v55 }
  0x67   :  { %1244 = vmatpush1.bf16.msra.mxu0 %v10068_v25 }
  0x68   :  { %1245 = vmatprep.subr.bf16.mxu0 %v11296_v26 }
  0x69   :  { %8795 = vmatpush3.bf16.msra.mxu1 %v11302_v15 }
  0x6a   :  { %931 = vmatmul.mubr.bf16.gmra.mxu0 %v11137_v36  ;;  %8796 = vmatprep.subr.bf16.mxu1 %v15704_v55  ;;  %v11389_v36 = vld [vmem:[%s15696_s3 + $0x18] ss:$12 sps:$4 sm:$0xff]  }
  0x6b   :  { %1246 = vmatpush1.bf16.msra.mxu0 %v11307_v18  ;;  %938 = vmatprep.mubr.bf16.mxu0 %v11145_v39  ;;  %v11408_v39 = vld [vmem:[%s15696_s3] ss:$12 sps:$4 sm:$0xff]  }
  0x6c   :  { %996 = vmatmul.mubr.bf16.gmra.mxu1 %v11147_v40  ;;  %1247 = vmatprep.subr.bf16.mxu0 %v11313_v19  ;;  %v15702_v40 = vmov 0  }
  0x6d   :  { %1003 = vmatprep.mubr.bf16.mxu1 %v11161_v45  ;;  %8797 = vmatpush3.bf16.msra.mxu1 %v11319_v24  ;;  %v11455_v45 = vld [vmem:[%s15697_s2 + $0x94] ss:$12 sps:$4 sm:$0xff]  }
  0x6e   :  { %8798 = vmatprep.subr.bf16.mxu1 %v15704_v55 }
  0x6f   :  { %1248 = vmatpush1.bf16.msra.mxu0 %v11324_v27 }
  0x70   :  { %1249 = vmatprep.subr.bf16.mxu0 %v11331_v28 }
  0x71   :  { %8799 = vmatpush3.bf16.msra.mxu1 %v11339_v29 }
  0x72   :  { %939 = vmatmul.mubr.bf16.gmra.mxu0 %v11194_v57  ;;  %8800 = vmatprep.subr.bf16.mxu1 %v15704_v55  ;;  %v11516_v57 = vld [vmem:[%s15697_s2 + $0x48] ss:$12 sps:$4 sm:$0xff]  }
  0x73   :  { %1250 = vmatpush1.bf16.msra.mxu0 %v11347_v30  ;;  %946 = vmatprep.mubr.bf16.mxu0 %v11208_v62  ;;  %v11544_v62 = vld [vmem:[%s15697_s2 + $0x1c] ss:$12 sps:$4 sm:$0xff]  }
  0x74   :  { %1004 = vmatmul.mubr.bf16.gmra.mxu1 %v11210_v63  ;;  %1251 = vmatprep.subr.bf16.mxu0 %v11353_v31  ;;  %15861 = vst [vmem:[#allocation4_spill] sm:$0xff] %v11544_v62  ;;  %v11553_v63 = vld [vmem:[%s15697_s2 + $0x18] ss:$12 sps:$4 sm:$0xff]  }
  0x75   :  { %1011 = vmatprep.mubr.bf16.mxu1 %v11221_v3  ;;  %8801 = vmatpush3.bf16.msra.mxu1 %v11360_v32  ;;  %15862 = vst [vmem:[#allocation5_spill] sm:$0xff] %v11553_v63  ;;  %v11572_v3 = vld [vmem:[%s15697_s2] ss:$12 sps:$4 sm:$0xff]  }
  0x76   :  { %8802 = vmatprep.subr.bf16.mxu1 %v15704_v55  ;;  %15865 = vst [vmem:[#allocation8_spill] sm:$0xff] %v11572_v3 }
  0x77   :  { %1252 = vmatpush1.bf16.msra.mxu0 %v11366_v33 }
  0x78   :  { %1253 = vmatprep.subr.bf16.mxu0 %v11373_v34 }
  0x79   :  { %8803 = vmatpush3.bf16.msra.mxu1 %v11381_v35 }
  0x7a   :  { %947 = vmatmul.mubr.bf16.gmra.mxu0 %v11242_v9  ;;  %8804 = vmatprep.subr.bf16.mxu1 %v15704_v55  ;;  %v212_v9 = vrot.slane %v11591_v7, %v11585_v6 }
  0x7b   :  { %1254 = vmatpush1.bf16.msra.mxu0 %v11389_v36  ;;  %1273 = vmatprep.mubr.bf16.mxu0 %v15702_v40 }
  0x7c   :  { %1012 = vmatmul.mubr.bf16.gmra.mxu1 %v11250_v12  ;;  %1255 = vmatprep.subr.bf16.mxu0 %v11395_v37  ;;  %v11605_v11 = vrot.slane %v212_v9, %v11597_v8 }
  0x7d   :  { %8805 = vmatpush3.bf16.msra.mxu1 %v11402_v38  ;;  %8808 = vmatprep.mubr.msk.bf16.mxu1 %vm10796_vm0, %v15704_v55 }
  0x7e   :  { %8806 = vmatprep.subr.bf16.mxu1 %v15704_v55  ;;  %15869 = vst [vmem:[#allocation12_spill] sm:$0xff] %v11605_v11 }
  0x7f   :  { %1256 = vmatpush1.bf16.msra.mxu0 %v11408_v39 }
  0x80   :  { %1500 = vmatprep.subr.bf16.mxu0 %v11437_v42 }
  0x81   :  { %8807 = vmatpush3.bf16.msra.mxu1 %v11418_v41 }
  0x82   :  { %1274 = vmatmul.mubr.bf16.vlgmr.msra.gmra.mxu0 %v15702_v40  ;;  %8812 = vmatprep.subr.bf16.mxu1 %v15704_v55 }
  0x83   :  { %1532 = vmatprep.mubr.bf16.mxu0 %v15702_v40  ;;  %1501 = vmatpush1.bf16.msra.mxu0 %v11442_v43 }
  0x84   :  { %8809 = vmatmul.mubr.bf16.vlgmr.msra.gmra.mxu1 %v15702_v40  ;;  %1502 = vmatprep.subr.bf16.mxu0 %v11455_v45 }
  0x85   :  { %8828 = vmatprep.mubr.msk.bf16.mxu1 %vm10796_vm0, %v15704_v55  ;;  %8813 = vmatpush3.bf16.msra.mxu1 %v11448_v44 }
  0x86   :  { %8814 = vmatprep.subr.bf16.mxu1 %v15704_v55 }
  0x87   :  { %1503 = vmatpush1.bf16.msra.mxu0 %v11461_v46 }
  0x88   :  { %1504 = vmatprep.subr.bf16.mxu0 %v11474_v48 }
  0x89   :  { %8815 = vmatpush3.bf16.msra.mxu1 %v11466_v47 }
  0x8a   :  { %8816 = vmatprep.subr.bf16.mxu1 %v15704_v55 }
  0x8b   :  { %1505 = vmatpush1.bf16.msra.mxu0 %v11480_v49 }
  0x8c   :  { %1506 = vmatprep.subr.bf16.mxu0 %v11493_v52 }
  0x8d   :  { %8817 = vmatpush3.bf16.msra.mxu1 %v11485_v51 }
  0x8e   :  { %8818 = vmatprep.subr.bf16.mxu1 %v15704_v55 }
  0x8f   :  { %1507 = vmatpush1.bf16.msra.mxu0 %v11499_v53 }
  0x90   :  { %1508 = vmatprep.subr.bf16.mxu0 %v11511_v56 }
  0x91   :  { %8819 = vmatpush3.bf16.msra.mxu1 %v11504_v54 }
  0x92   :  { %8820 = vmatprep.subr.bf16.mxu1 %v15704_v55 }
  0x93   :  { %1509 = vmatpush1.bf16.msra.mxu0 %v11516_v57 }
  0x94   :  { %1510 = vmatprep.subr.bf16.mxu0 %v11527_v59 }
  0x95   :  { %8821 = vmatpush3.bf16.msra.mxu1 %v11522_v58 }
  0x96   :  { %8822 = vmatprep.subr.bf16.mxu1 %v15704_v55 }
  0x97   :  { %1511 = vmatpush1.bf16.msra.mxu0 %v11534_v60 }
  0x98   :  { %1512 = vmatprep.subr.bf16.mxu0 %v11544_v62 }
  0x99   :  { %8823 = vmatpush3.bf16.msra.mxu1 %v11539_v61 }
  0x9a   :  { %8824 = vmatprep.subr.bf16.mxu1 %v15704_v55 }
  0x9b   :  { %1513 = vmatpush1.bf16.msra.mxu0 %v11553_v63 }
  0x9c   :  { %1514 = vmatprep.subr.bf16.mxu0 %v11563_v1 }
  0x9d   :  { %8825 = vmatpush3.bf16.msra.mxu1 %v11558_v0 }
  0x9e   :  { %8826 = vmatprep.subr.bf16.mxu1 %v15704_v55 }
  0x9f   :  { %1515 = vmatpush1.bf16.msra.mxu0 %v11572_v3 }
  0xa0   :  { %1581 = vmatprep.subr.bf16.mxu0 %v11270_v20 }
  0xa1   :  { %8827 = vmatpush3.bf16.msra.mxu1 %v11577_v4 }
  0xa2   :  { %8832 = vmatprep.subr.bf16.mxu1 %v15704_v55 }
 0x102   :  { %v11607_v12 = vpop.f32.mrf.mxu0 }
 0x104   :  { %v780_v13 = vpop.f32.mrf.mxu0  ;;  %v11609_v14 = vpop.f32.mrf.mxu1 }
 0x105   :  { %v781_v17 = vadd.f32 %v780_v13, %v11605_v11 }
 0x106   :  { %v782_v20 = vpop.f32.mrf.mxu0  ;;  %v853_v21 = vpop.f32.mrf.mxu1 }
 0x107   :  { %v783_v50 = vadd.f32 %v782_v20, %v11612_v16  ;;  %v11616_v22 = vadd.f32 %v853_v21, %v781_v17 }
 0x108   :  { %v11618_v23 = vpop.f32.mrf.mxu0  ;;  %v855_v25 = vpop.f32.mrf.mxu1 }
 0x109   :  { %15870 = vst [vmem:[#allocation13_spill] sm:$0xff] %v11618_v23  ;;  %v11620_v2 = vadd.f32 %v855_v25, %v783_v50 }
 0x10a   :  { %v788_v9 = vpop.f32.mrf.mxu0  ;;  %v11622_v40 = vpop.f32.mrf.mxu1 }
 0x10b   :  { %15871 = vst [vmem:[#allocation14_spill] sm:$0xff] %v11620_v2  ;;  %15872 = vst [vmem:[#allocation15_spill] sm:$0xff] %v11622_v40  ;;  %v789_v55 = vadd.f32 %v788_v9, %v11612_v16 }
 0x10c   :  { %v790_v10 = vpop.f32.mrf.mxu0  ;;  %v861_v6 = vpop.f32.mrf.mxu1 }
 0x10d   :  { %v791_v13 = vadd.f32 %v790_v10, %v11605_v11  ;;  %v11626_v4 = vadd.f32 %v861_v6, %v789_v55 }
 0x10e   :  { %v792_v3 = vpop.f32.mrf.mxu0  ;;  %v863_v20 = vpop.f32.mrf.mxu1 }
 0x10f   :  { %15873 = vst [vmem:[#allocation16_spill] sm:$0xff] %v11626_v4  ;;  %v793_v17 = vadd.f32 %v792_v3, %v11612_v16  ;;  %v11629_v21 = vadd.f32 %v863_v20, %v791_v13 }
 0x110   :  { %v11631_v23 = vpop.f32.mrf.mxu0  ;;  %v865_v50 = vpop.f32.mrf.mxu1 }
 0x111   :  { %15874 = vst [vmem:[#allocation17_spill] sm:$0xff] %v11629_v21  ;;  %15875 = vst [vmem:[#allocation18_spill] sm:$0xff] %v11631_v23  ;;  %v11633_v25 = vadd.f32 %v865_v50, %v793_v17 }
 0x112   :  { %v798_v40 = vpop.f32.mrf.mxu0  ;;  %v11635_v2 = vpop.f32.mrf.mxu1 }
 0x113   :  { %15876 = vst [vmem:[#allocation19_spill] sm:$0xff] %v11633_v25  ;;  %15877 = vst [vmem:[#allocation20_spill] sm:$0xff] %v11635_v2  ;;  %v799_v9 = vadd.f32 %v798_v40, %v11612_v16 }
 0x114   :  { %v800_v1 = vpop.f32.mrf.mxu0  ;;  %v871_v10 = vpop.f32.mrf.mxu1 }
 0x115   :  { %v801_v55 = vadd.f32 %v800_v1, %v11605_v11  ;;  %v11639_v6 = vadd.f32 %v871_v10, %v799_v9  ;;  %v11652_v1 = vsub.s32 4, %v11579_v5 }
 0x116   :  { %v802_v4 = vpop.f32.mrf.mxu0  ;;  %v873_v3 = vpop.f32.mrf.mxu1 }
 0x117   :  { %15878 = vst [vmem:[#allocation21_spill] sm:$0xff] %v11639_v6  ;;  %v803_v13 = vadd.f32 %v802_v4, %v11612_v16  ;;  %v11642_v20 = vadd.f32 %v873_v3, %v801_v55  ;;  %15883 = vst [vmem:[#allocation26_spill] sm:$0xff] %v11652_v1 }
 0x118   :  { %v11644_v23 = vpop.f32.mrf.mxu0  ;;  %v875_v17 = vpop.f32.mrf.mxu1 }
 0x119   :  { %15879 = vst [vmem:[#allocation22_spill] sm:$0xff] %v11642_v20  ;;  %15880 = vst [vmem:[#allocation23_spill] sm:$0xff] %v11644_v23  ;;  %v11646_v50 = vadd.f32 %v875_v17, %v803_v13  ;;  %v216_v17 = vrot.slane %v11591_v7, %v11652_v1 }
 0x11a   :  { %v808_v2 = vpop.f32.mrf.mxu0  ;;  %v11648_v25 = vpop.f32.mrf.mxu1 }
 0x11b   :  { %15881 = vst [vmem:[#allocation24_spill] sm:$0xff] %v11646_v50  ;;  %15882 = vst [vmem:[#allocation25_spill] sm:$0xff] %v11648_v25  ;;  %v809_v40 = vadd.f32 %v808_v2, %v11612_v16 }
 0x11c   :  { %v810_v9 = vpop.f32.mrf.mxu0  ;;  %v881_v10 = vpop.f32.mrf.mxu1 }
 0x11d   :  { %v811_v6 = vadd.f32 %v810_v9, %v11605_v11  ;;  %v11655_v4 = vadd.f32 %v881_v10, %v809_v40  ;;  %v11669_v40 = vrot.slane %v216_v17, %v11597_v8 }
 0x11e   :  { %v812_v55 = vpop.f32.mrf.mxu0  ;;  %v883_v3 = vpop.f32.mrf.mxu1 }
 0x11f   :  { %15884 = vst [vmem:[#allocation27_spill] sm:$0xff] %v11655_v4  ;;  %v813_v23 = vadd.f32 %v812_v55, %v11612_v16  ;;  %v11658_v13 = vadd.f32 %v883_v3, %v811_v6 }
 0x120   :  { %v11662_v25 = vpop.f32.mrf.mxu0  ;;  %v885_v2 = vpop.f32.mrf.mxu1 }
 0x121   :  { %15885 = vst [vmem:[#allocation28_spill] sm:$0xff] %v11658_v13  ;;  %15886 = vst [vmem:[#allocation29_spill] sm:$0xff] %v11662_v25  ;;  %v11664_v50 = vadd.f32 %v885_v2, %v813_v23 }
 0x122   :  { %v11666_v20 = vpop.f32.mrf.mxu1  ;;  %v8215_v21 = vpop.f32.mrf.mxu0 }
 0x123   :  { %15887 = vst [vmem:[#allocation30_spill] sm:$0xff] %v11664_v50  ;;  %15888 = vst [vmem:[#allocation31_spill] sm:$0xff] %v11666_v20 }
 0x124   :  { %v8216_v9 = vpop.f32.mrf.mxu0  ;;  %v8255_v10 = vpop.f32.mrf.mxu1 }
 0x125   :  { %v8217_v4 = vadd.f32 %v8216_v9, %v8215_v21 }
 0x126   :  { %v8218_v55 = vpop.f32.mrf.mxu0  ;;  %v8256_v6 = vpop.f32.mrf.mxu1 }
 0x127   :  { %v925_v3 = vadd.f32 %v8217_v4, %v11669_v40  ;;  %v8257_v13 = vadd.f32 %v8256_v6, %v8255_v10 }
 0x128   :  { %v8219_v1 = vpop.f32.mrf.mxu0  ;;  %v8258_v11 = vpop.f32.mrf.mxu1 }
 0x129   :  { %v11672_v25 = vadd.f32 %v8257_v13, %v925_v3  ;;  %v8220_v23 = vadd.f32 %v8219_v1, %v8218_v55 }
 0x12a   :  { %v8221_v2 = vpop.f32.mrf.mxu0  ;;  %v8259_v50 = vpop.f32.mrf.mxu1 }
 0x12b   :  { %v928_v20 = vadd.f32 %v8220_v23, %v11669_v40  ;;  %v8260_v0 = vadd.f32 %v8259_v50, %v8258_v11 }
 0x12c   :  { %v8222_v17 = vpop.f32.mrf.mxu0  ;;  %v8261_v8 = vpop.f32.mrf.mxu1 }
 0x12d   :  { %v11675_v63 = vadd.f32 %v8260_v0, %v928_v20  ;;  %v8223_v21 = vadd.f32 %v8222_v17, %v8221_v2 }
 0x12e   :  { %v8224_v9 = vpop.f32.mrf.mxu0  ;;  %v8262_v62 = vpop.f32.mrf.mxu1 }
 0x12f   :  { %15889 = vst [vmem:[#allocation32_spill] sm:$0xff] %v11675_v63  ;;  %v933_v4 = vadd.f32 %v8223_v21, %v11669_v40  ;;  %v8263_v10 = vadd.f32 %v8262_v62, %v8261_v8  ;;  %v11684_v21 = vsub.s32 1, %v11579_v5 }
 0x130   :  { %v8225_v6 = vpop.f32.mrf.mxu0  ;;  %v8264_v61 = vpop.f32.mrf.mxu1 }
 0x131   :  { %v11678_v13 = vadd.f32 %v8263_v10, %v933_v4  ;;  %v8226_v1 = vadd.f32 %v8225_v6, %v8224_v9  ;;  %15892 = vst [vmem:[#allocation35_spill] sm:$0xff] %v11684_v21 }
 0x132   :  { %v8227_v55 = vpop.f32.mrf.mxu0  ;;  %v8265_v3 = vpop.f32.mrf.mxu1 }
 0x133   :  { %15890 = vst [vmem:[#allocation33_spill] sm:$0xff] %v11678_v13  ;;  %v936_v23 = vadd.f32 %v8226_v1, %v11669_v40  ;;  %v8266_v11 = vadd.f32 %v8265_v3, %v8264_v61  ;;  %v11690_v3 = vsub.s32 3, %v11579_v5 }
 0x134   :  { %v8228_v50 = vpop.f32.mrf.mxu0  ;;  %v8267_v60 = vpop.f32.mrf.mxu1 }
 0x135   :  { %v11681_v0 = vadd.f32 %v8266_v11, %v936_v23  ;;  %v8229_v20 = vadd.f32 %v8228_v50, %v8227_v55  ;;  %15894 = vst [vmem:[#allocation37_spill] sm:$0xff] %v11690_v3  ;;  %v1089_v11 = vrot.slane %v11591_v7, %v11684_v21 }
 0x136   :  { %v8230_v2 = vpop.f32.mrf.mxu0  ;;  %v8268_v17 = vpop.f32.mrf.mxu1 }
 0x137   :  { %15891 = vst [vmem:[#allocation34_spill] sm:$0xff] %v11681_v0  ;;  %v941_v62 = vadd.f32 %v8229_v20, %v11669_v40  ;;  %v8269_v8 = vadd.f32 %v8268_v17, %v8267_v60 }
 0x138   :  { %v8231_v4 = vpop.f32.mrf.mxu0  ;;  %v8270_v9 = vpop.f32.mrf.mxu1 }
 0x139   :  { %v11687_v10 = vadd.f32 %v8269_v8, %v941_v62  ;;  %v8232_v6 = vadd.f32 %v8231_v4, %v8230_v2  ;;  %v1093_v2 = vrot.slane %v11591_v7, %v11690_v3  ;;  %v779_v8 = vadd.f32 %v11607_v12, %v11612_v16 }
 0x13a   :  { %v8233_v1 = vpop.f32.mrf.mxu0  ;;  %v8271_v61 = vpop.f32.mrf.mxu1 }
 0x13b   :  { %15893 = vst [vmem:[#allocation36_spill] sm:$0xff] %v11687_v10  ;;  %v944_v55 = vadd.f32 %v8232_v6, %v11669_v40  ;;  %v8272_v23 = vadd.f32 %v8271_v61, %v8270_v9  ;;  %v11703_v9 = vrot.slane %v1089_v11, %v11684_v21  ;;  %v852_v3 = vadd.f32 %v11609_v14, %v779_v8 }
 0x13c   :  { %v8234_v50 = vpop.f32.mrf.mxu0  ;;  %v8273_v0 = vpop.f32.mrf.mxu1 }
 0x13d   :  { %v11695_v20 = vadd.f32 %v8272_v23, %v944_v55  ;;  %v8235_v60 = vadd.f32 %v8234_v50, %v8233_v1  ;;  %15896 = vst [vmem:[#allocation39_spill] sm:$0xff] %v11703_v9  ;;  %v11708_v50 = vrot.slane %v1093_v2, %v11684_v21 }
 0x13e   :  { %v8236_v17 = vpop.f32.mrf.mxu0  ;;  %v8274_v62 = vpop.f32.mrf.mxu1 }
 0x13f   :  { %15895 = vst [vmem:[#allocation38_spill] sm:$0xff] %v11695_v20  ;;  %v949_v4 = vadd.f32 %v8235_v60, %v11669_v40  ;;  %v8275_v6 = vadd.f32 %v8274_v62, %v8273_v0 }
 0x140   :  { %v8237_v61 = vpop.f32.mrf.mxu0  ;;  %v8276_v10 = vpop.f32.mrf.mxu1 }
 0x141   :  { %v11705_v13 = vadd.f32 %v8275_v6, %v949_v4  ;;  %v8238_v55 = vadd.f32 %v8237_v61, %v8236_v17 }
 0x142   :  { %v8277_v1 = vpop.f32.mrf.mxu1  ;;  %v1275_v23 = vpop.f32.mrf.mxu0 }
 0x143   :  { %15897 = vst [vmem:[#allocation40_spill] sm:$0xff] %v11705_v13  ;;  %v952_v12 = vadd.f32 %v8238_v55, %v11669_v40  ;;  %v8278_v16 = vadd.f32 %v8277_v1, %v8276_v10  ;;  %v1276_v0 = vadd.f32 %v1275_v23, %v11703_v9  ;;  %v11718_v55 = vsub.s32 5, %v11579_v5 }
 0x144   :  { %v1277_v60 = vpop.f32.mrf.mxu0  ;;  %v1316_v11 = vpop.f32.mrf.mxu1 }
 0x145   :  { %v11713_v62 = vadd.f32 %v8278_v16, %v952_v12  ;;  %v1322_v20 = vadd.f32 %v1276_v0, %v852_v3  ;;  %v1278_v61 = vadd.f32 %v1277_v60, %v11708_v50  ;;  %15899 = vst [vmem:[#allocation42_spill] sm:$0xff] %v11718_v55  ;;  %v1097_v3 = vrot.slane %v11591_v7, %v11718_v55 }
 0x146   :  { %v1279_v4 = vpop.f32.mrf.mxu0  ;;  %v8810_v6 = vpop.f32.mrf.mxu1 }
 0x147   :  { %15898 = vst [vmem:[#allocation41_spill] sm:$0xff] %v11713_v62  ;;  %v7820_v17 = vmul.f32 -1.442695, %v1322_v20  ;;  %v1329_v14 = vadd.f32 %v1278_v61, %v11616_v22  ;;  %v11723_v20 = vrot.slane %v1097_v3, %v11684_v21  ;;  %v15900_v61 = vmov 0.0   ;;  %v15914_v3 = vld [vmem:[#allocation12_spill] sm:$0xff] }
 0x148   :  { %v1280_v13 = vpop.f32.mrf.mxu0  ;;  %v1319_v2 = vpop.f32.mrf.mxu1 }
 0x149   :  { %10295 = vpow2.f32 %v7820_v17  ;;  %v7821_v40 = vmul.f32 -1.442695, %v1329_v14  ;;  %v11746_v17 = vld [vmem:[%s15696_s3 + $0x94] ss:$12 sps:$4 sm:$0xff]   ;;  %v15901_v2 = vmov 0  }
 0x14a   :  { %v8811_v63 = vpop.f32.mrf.mxu1  ;;  %v11756_v14 = vld [vmem:[%s15696_s3 + $0x90] ss:$12 sps:$4 sm:$0xff]  }
 0x14b   :  { %10297 = vpow2.f32 %v7821_v40  ;;  %v1317_v63 = vadd.f32 %v1316_v11, %v11723_v20  ;;  %v11734_v11 = vld [vmem:[%s15696_s3 + $0xa8] ss:$12 sps:$4 sm:$0xff]  }
 0x156   :  { %v10296_v10 = vpop.eup %10295 }
 0x157   :  { %v1326_v8 = vadd.f32 1.0, %v10296_v10 }
 0x158   :  { %v10298_v13 = vpop.eup %10297 }
 0x159   :  { %10299 = vrcp.f32 %v1326_v8  ;;  %v1333_v1 = vadd.f32 1.0, %v10298_v13  ;;  %v15915_v13 = vld [vmem:[#allocation13_spill] sm:$0xff] }
 0x15b   :  { %10301 = vrcp.f32 %v1333_v1  ;;  %v785_v1 = vadd.f32 %v15915_v13, %v15914_v3 }
 0x166   :  { %v10300_v23 = vpop.eup %10299 }
 0x167   :  { %v1336_v22 = vmul.f32 %v10300_v23, %v1317_v63  ;;  %v15916_v63 = vld [vmem:[#allocation14_spill] sm:$0xff] }
 0x168   :  { %v10302_v16 = vpop.eup %10301 }
 0x169   :  { %v1337_v12 = vadd.f32 %v1336_v22, %v11672_v25  ;;  %v1339_v5 = vsub.f32 1.0, %v10302_v16  ;;  %v1341_v4 = vmul.f32 0.0, %v10302_v16  ;;  %v11740_v25 = vld [vmem:[%s15696_s3 + $0xb0] ss:$12 sps:$4 sm:$0xff]  }
 0x16b   :  { %10303 = vtanh.f32 %v1337_v12 }
 0x178   :  { %v10304_v0 = vpop.eup %10303 }
 0x179   :  { %v1340_v60 = vmul.f32 %v10304_v0, %v1339_v5 }
 0x17b   :  { %v11727_v6 = vadd.f32 %v1341_v4, %v1340_v60  ;;  %v15917_v4 = vld [vmem:[#allocation15_spill] sm:$0xff] }
 0x17d   :  { %v1343_v7 = vpack.c.bf16 %v11727_v6, %v11727_v6 }
 0x17f   :  { %1533 = vmatmul.mubr.bf16.vlgmr.msra.gmra.mxu0 %v1343_v7  ;;  %8829 = vmatmul.mubr.bf16.vlgmr.msra.gmra.mxu1 %v1343_v7 }
 0x180   :  { %1582 = vmatpush1.bf16.msra.mxu0 %v11734_v11  ;;  %8833 = vmatpush3.bf16.msra.mxu1 %v11740_v25 }
 0x181   :  { %1583 = vmatprep.subr.bf16.mxu0 %v11746_v17  ;;  %8834 = vmatprep.subr.bf16.mxu1 %v15900_v61 }
 0x182   :  { %1613 = vmatprep.mubr.bf16.mxu0 %v15901_v2  ;;  %8848 = vmatprep.mubr.msk.bf16.mxu1 %vm10796_vm0, %v15900_v61 }
 0x184   :  { %1584 = vmatpush1.bf16.msra.mxu0 %v11756_v14  ;;  %8835 = vmatpush3.bf16.msra.mxu1 %v11302_v15  ;;  %v15903_v15 = vld [vmem:[#allocation3_spill] sm:$0xff] }
 0x185   :  { %1585 = vmatprep.subr.bf16.mxu0 %v11296_v26  ;;  %8836 = vmatprep.subr.bf16.mxu1 %v15900_v61  ;;  %v15902_v26 = vld [vmem:[#allocation2_spill] sm:$0xff] }
 0x188   :  { %1586 = vmatpush1.bf16.msra.mxu0 %v11307_v18  ;;  %8837 = vmatpush3.bf16.msra.mxu1 %v11319_v24  ;;  %v15904_v18 = vld [vmem:[#allocation4_spill] sm:$0xff]  ;;  %v15906_v24 = vld [vmem:[#allocation6_spill] sm:$0xff] }
 0x189   :  { %1587 = vmatprep.subr.bf16.mxu0 %v11313_v19  ;;  %8838 = vmatprep.subr.bf16.mxu1 %v15900_v61  ;;  %v15905_v19 = vld [vmem:[#allocation5_spill] sm:$0xff] }
 0x18c   :  { %1588 = vmatpush1.bf16.msra.mxu0 %v11324_v27  ;;  %8839 = vmatpush3.bf16.msra.mxu1 %v11339_v29  ;;  %v15907_v27 = vld [vmem:[#allocation7_spill] sm:$0xff]  ;;  %v15909_v29 = vld [vmem:[#allocation9_spill] sm:$0xff] }
 0x18d   :  { %1589 = vmatprep.subr.bf16.mxu0 %v11331_v28  ;;  %8840 = vmatprep.subr.bf16.mxu1 %v15900_v61  ;;  %v15908_v28 = vld [vmem:[#allocation8_spill] sm:$0xff] }
 0x190   :  { %1590 = vmatpush1.bf16.msra.mxu0 %v11347_v30  ;;  %8841 = vmatpush3.bf16.msra.mxu1 %v11360_v32  ;;  %v11822_v30 = vld [vmem:[%s15696_s3 + $0xac] ss:$12 sps:$4 sm:$0xff]  }
 0x191   :  { %1591 = vmatprep.subr.bf16.mxu0 %v11353_v31  ;;  %8842 = vmatprep.subr.bf16.mxu1 %v15900_v61  ;;  %15910 = vst [vmem:[#allocation2_spill] sm:$0xff] %v11822_v30 }
 0x194   :  { %1592 = vmatpush1.bf16.msra.mxu0 %v11366_v33  ;;  %8843 = vmatpush3.bf16.msra.mxu1 %v11381_v35 }
 0x195   :  { %1593 = vmatprep.subr.bf16.mxu0 %v11373_v34  ;;  %8844 = vmatprep.subr.bf16.mxu1 %v15900_v61 }
 0x198   :  { %1594 = vmatpush1.bf16.msra.mxu0 %v11389_v36  ;;  %8845 = vmatpush3.bf16.msra.mxu1 %v11402_v38 }
 0x199   :  { %1595 = vmatprep.subr.bf16.mxu0 %v11395_v37  ;;  %8846 = vmatprep.subr.bf16.mxu1 %v15900_v61 }
 0x19c   :  { %1596 = vmatpush1.bf16.msra.mxu0 %v11408_v39  ;;  %8847 = vmatpush3.bf16.msra.mxu1 %v11418_v41 }
 0x19d   :  { %1684 = vmatprep.subr.bf16.mxu0 %v11437_v42  ;;  %8852 = vmatprep.subr.bf16.mxu1 %v15900_v61 }
 0x19f   :  { %1614 = vmatmul.mubr.bf16.vlgmr.msra.gmra.mxu0 %v1343_v7  ;;  %8849 = vmatmul.mubr.bf16.vlgmr.msra.gmra.mxu1 %v1343_v7  ;;  %v858_v7 = vadd.f32 %v15917_v4, %v785_v1  ;;  %v11875_v4 = vld [vmem:[%s15696_s3 + $0x80] ss:$12 sps:$4 sm:$0xff]  }
 0x1a0   :  { %1685 = vmatpush1.bf16.msra.mxu0 %v11442_v43  ;;  %8853 = vmatpush3.bf16.msra.mxu1 %v11448_v44 }
 0x1a1   :  { %1686 = vmatprep.subr.bf16.mxu0 %v11455_v45  ;;  %8854 = vmatprep.subr.bf16.mxu1 %v15900_v61 }
 0x1a2   :  { %1716 = vmatprep.mubr.bf16.mxu0 %v15901_v2  ;;  %8868 = vmatprep.mubr.msk.bf16.mxu1 %vm10796_vm0, %v15900_v61 }
 0x1a4   :  { %1687 = vmatpush1.bf16.msra.mxu0 %v11461_v46  ;;  %8855 = vmatpush3.bf16.msra.mxu1 %v11466_v47 }
 0x1a5   :  { %1688 = vmatprep.subr.bf16.mxu0 %v11474_v48  ;;  %8856 = vmatprep.subr.bf16.mxu1 %v15900_v61 }
 0x1a8   :  { %1689 = vmatpush1.bf16.msra.mxu0 %v11480_v49  ;;  %8857 = vmatpush3.bf16.msra.mxu1 %v11485_v51 }
 0x1a9   :  { %1690 = vmatprep.subr.bf16.mxu0 %v11493_v52  ;;  %8858 = vmatprep.subr.bf16.mxu1 %v15900_v61 }
 0x1ac   :  { %1691 = vmatpush1.bf16.msra.mxu0 %v11499_v53  ;;  %8859 = vmatpush3.bf16.msra.mxu1 %v11504_v54 }
 0x1ad   :  { %1692 = vmatprep.subr.bf16.mxu0 %v11511_v56  ;;  %8860 = vmatprep.subr.bf16.mxu1 %v15900_v61 }
 0x1b0   :  { %1693 = vmatpush1.bf16.msra.mxu0 %v11516_v57  ;;  %8861 = vmatpush3.bf16.msra.mxu1 %v11522_v58 }
 0x1b1   :  { %1694 = vmatprep.subr.bf16.mxu0 %v11527_v59  ;;  %8862 = vmatprep.subr.bf16.mxu1 %v15900_v61 }
 0x1b4   :  { %1695 = vmatpush1.bf16.msra.mxu0 %v15902_v26  ;;  %8863 = vmatpush3.bf16.msra.mxu1 %v15903_v15 }
 0x1b5   :  { %1696 = vmatprep.subr.bf16.mxu0 %v15904_v18  ;;  %8864 = vmatprep.subr.bf16.mxu1 %v15900_v61 }
 0x1b8   :  { %1697 = vmatpush1.bf16.msra.mxu0 %v15905_v19  ;;  %8865 = vmatpush3.bf16.msra.mxu1 %v15906_v24 }
 0x1b9   :  { %1698 = vmatprep.subr.bf16.mxu0 %v15907_v27  ;;  %8866 = vmatprep.subr.bf16.mxu1 %v15900_v61 }
 0x1bc   :  { %1699 = vmatpush1.bf16.msra.mxu0 %v15908_v28  ;;  %8867 = vmatpush3.bf16.msra.mxu1 %v15909_v29 }
 0x1bd   :  { %1765 = vmatprep.subr.bf16.mxu0 %v11822_v30  ;;  %8872 = vmatprep.subr.bf16.mxu1 %v15900_v61 }
 0x23f   :  { %v11826_v31 = vpop.f32.mrf.mxu0  ;;  %v11828_v32 = vpop.f32.mrf.mxu1 }
 0x240   :  { %15911 = vst [vmem:[#allocation3_spill] sm:$0xff] %v11826_v31  ;;  %15912 = vst [vmem:[#allocation4_spill] sm:$0xff] %v11828_v32 }
 0x241   :  { %v11830_v33 = vpop.f32.mrf.mxu0  ;;  %v8830_v34 = vpop.f32.mrf.mxu1 }
 0x242   :  { %15913 = vst [vmem:[#allocation5_spill] sm:$0xff] %v11830_v33 }
 0x243   :  { %v1538_v35 = vpop.f32.mrf.mxu0  ;;  %v1578_v36 = vpop.f32.mrf.mxu1 }
 0x245   :  { %v1539_v37 = vpop.f32.mrf.mxu0  ;;  %v8831_v38 = vpop.f32.mrf.mxu1 }
 0x25f   :  { %v1615_v39 = vpop.f32.mrf.mxu0  ;;  %v1656_v41 = vpop.f32.mrf.mxu1 }
 0x260   :  { %v1616_v40 = vadd.f32 %v1615_v39, %v11703_v9 }
 0x261   :  { %v1617_v10 = vpop.f32.mrf.mxu0  ;;  %v8850_v8 = vpop.f32.mrf.mxu1 }
 0x262   :  { %v1662_v23 = vadd.f32 %v1616_v40, %v15916_v63  ;;  %v1618_v5 = vadd.f32 %v1617_v10, %v11708_v50  ;;  %v1657_v40 = vadd.f32 %v1656_v41, %v11723_v20  ;;  %v15918_v63 = vld [vmem:[#allocation32_spill] sm:$0xff]  ;;  %v11862_v41 = vld [vmem:[%s15696_s3 + $0x7c] ss:$12 sps:$4 sm:$0xff]  }
 0x263   :  { %v1619_v22 = vpop.f32.mrf.mxu0  ;;  %v1659_v12 = vpop.f32.mrf.mxu1 }
 0x264   :  { %v7846_v16 = vmul.f32 -1.442695, %v1662_v23  ;;  %v1669_v34 = vadd.f32 %v1618_v5, %v858_v7  ;;  %v11881_v7 = vld [vmem:[%s15696_s3 + $0x64] ss:$12 sps:$4 sm:$0xff]  }
 0x265   :  { %v1620_v0 = vpop.f32.mrf.mxu0  ;;  %v8851_v60 = vpop.f32.mrf.mxu1 }
 0x266   :  { %10305 = vpow2.f32 %v7846_v16  ;;  %v7847_v35 = vmul.f32 -1.442695, %v1669_v34  ;;  %v11869_v60 = vld [vmem:[%s15696_s3 + $0x78] ss:$12 sps:$4 sm:$0xff]   ;;  %v11888_v34 = vld [vmem:[%s15696_s3 + $0x60] ss:$12 sps:$4 sm:$0xff]  }
 0x268   :  { %10307 = vpow2.f32 %v7847_v35  ;;  %v11894_v35 = vld [vmem:[%s15696_s3 + $0x68] ss:$12 sps:$4 sm:$0xff]  }
 0x273   :  { %v10306_v36 = vpop.eup %10305 }
 0x274   :  { %v1666_v37 = vadd.f32 1.0, %v10306_v36  ;;  %v11900_v36 = vld [vmem:[%s15696_s3 + $0x4c] ss:$12 sps:$4 sm:$0xff]  }
 0x275   :  { %v10308_v38 = vpop.eup %10307 }
 0x276   :  { %10309 = vrcp.f32 %v1666_v37  ;;  %v1673_v39 = vadd.f32 1.0, %v10308_v38  ;;  %v11907_v37 = vld [vmem:[%s15696_s3 + $0x48] ss:$12 sps:$4 sm:$0xff]   ;;  %v11913_v38 = vld [vmem:[%s15696_s3 + $0x50] ss:$12 sps:$4 sm:$0xff]  }
 0x278   :  { %10311 = vrcp.f32 %v1673_v39  ;;  %v11919_v39 = vld [vmem:[%s15696_s3 + $0x34] ss:$12 sps:$4 sm:$0xff]  }
 0x283   :  { %v10310_v8 = vpop.eup %10309 }
 0x284   :  { %v1676_v13 = vmul.f32 %v10310_v8, %v1657_v40  ;;  %v11926_v40 = vld [vmem:[%s15696_s3 + $0x30] ss:$12 sps:$4 sm:$0xff]   ;;  %v11932_v8 = vld [vmem:[%s15696_s3 + $0x38] ss:$12 sps:$4 sm:$0xff]  }
 0x285   :  { %v10312_v23 = vpop.eup %10311 }
 0x286   :  { %v1677_v10 = vadd.f32 %v1676_v13, %v15918_v63  ;;  %v1679_v22 = vsub.f32 1.0, %v10312_v23  ;;  %v1681_v16 = vmul.f32 %v10312_v23, %v11727_v6  ;;  %v11856_v6 = vld [vmem:[%s15696_s3 + $0x98] ss:$12 sps:$4 sm:$0xff]   ;;  %v11938_v13 = vld [vmem:[%s15696_s3 + $0x1c] ss:$12 sps:$4 sm:$0xff]  }
 0x287   :  { %v11945_v63 = vld [vmem:[%s15696_s3 + $0x18] ss:$12 sps:$4 sm:$0xff]  }
 0x288   :  { %10313 = vtanh.f32 %v1677_v10  ;;  %v11951_v10 = vld [vmem:[%s15696_s3 + $0x20] ss:$12 sps:$4 sm:$0xff]   ;;  %v11957_v23 = vld [vmem:[%s15696_s3 + $0x4] ss:$12 sps:$4 sm:$0xff]  }
 0x295   :  { %v10314_v1 = vpop.eup %10313 }
 0x296   :  { %v1680_v12 = vmul.f32 %v10314_v1, %v1679_v22  ;;  %v11964_v22 = vld [vmem:[%s15696_s3] ss:$12 sps:$4 sm:$0xff]   ;;  %v11970_v1 = vld [vmem:[%s15696_s3 + $0x8] ss:$12 sps:$4 sm:$0xff]  }
 0x298   :  { %v11841_v5 = vadd.f32 %v1681_v16, %v1680_v12 }
 0x29a   :  { %v1683_v0 = vpack.c.bf16 %v11841_v5, %v11841_v5 }
 0x29c   :  { %1717 = vmatmul.mubr.bf16.vlgmr.msra.gmra.mxu0 %v1683_v0  ;;  %8869 = vmatmul.mubr.bf16.vlgmr.msra.gmra.mxu1 %v1683_v0 }
 0x29d   :  { %1766 = vmatpush1.bf16.msra.mxu0 %v11734_v11  ;;  %8873 = vmatpush3.bf16.msra.mxu1 %v11740_v25 }
 0x29e   :  { %1767 = vmatprep.subr.bf16.mxu0 %v11746_v17  ;;  %8874 = vmatprep.subr.bf16.mxu1 %v15900_v61 }
 0x29f   :  { %1797 = vmatprep.mubr.bf16.mxu0 %v15901_v2  ;;  %8888 = vmatprep.mubr.msk.bf16.mxu1 %vm10796_vm0, %v15900_v61 }
 0x2a1   :  { %1768 = vmatpush1.bf16.msra.mxu0 %v11756_v14  ;;  %8875 = vmatpush3.bf16.msra.mxu1 %v11856_v6 }
 0x2a2   :  { %1769 = vmatprep.subr.bf16.mxu0 %v11862_v41  ;;  %8876 = vmatprep.subr.bf16.mxu1 %v15900_v61 }
 0x2a5   :  { %1770 = vmatpush1.bf16.msra.mxu0 %v11869_v60  ;;  %8877 = vmatpush3.bf16.msra.mxu1 %v11875_v4 }
 0x2a6   :  { %1771 = vmatprep.subr.bf16.mxu0 %v11881_v7  ;;  %8878 = vmatprep.subr.bf16.mxu1 %v15900_v61 }
 0x2a9   :  { %1772 = vmatpush1.bf16.msra.mxu0 %v11888_v34  ;;  %8879 = vmatpush3.bf16.msra.mxu1 %v11894_v35 }
 0x2aa   :  { %1773 = vmatprep.subr.bf16.mxu0 %v11900_v36  ;;  %8880 = vmatprep.subr.bf16.mxu1 %v15900_v61 }
 0x2ad   :  { %1774 = vmatpush1.bf16.msra.mxu0 %v11907_v37  ;;  %8881 = vmatpush3.bf16.msra.mxu1 %v11913_v38 }
 0x2ae   :  { %1775 = vmatprep.subr.bf16.mxu0 %v11919_v39  ;;  %8882 = vmatprep.subr.bf16.mxu1 %v15900_v61 }
 0x2b1   :  { %1776 = vmatpush1.bf16.msra.mxu0 %v11926_v40  ;;  %8883 = vmatpush3.bf16.msra.mxu1 %v11932_v8 }
 0x2b2   :  { %1777 = vmatprep.subr.bf16.mxu0 %v11938_v13  ;;  %8884 = vmatprep.subr.bf16.mxu1 %v15900_v61 }
 0x2b5   :  { %1778 = vmatpush1.bf16.msra.mxu0 %v11945_v63  ;;  %8885 = vmatpush3.bf16.msra.mxu1 %v11951_v10 }
 0x2b6   :  { %1779 = vmatprep.subr.bf16.mxu0 %v11957_v23  ;;  %8886 = vmatprep.subr.bf16.mxu1 %v15900_v61 }
 0x2b9   :  { %1780 = vmatpush1.bf16.msra.mxu0 %v11964_v22  ;;  %8887 = vmatpush3.bf16.msra.mxu1 %v11970_v1 }
 0x2ba   :  { %1868 = vmatprep.subr.bf16.mxu0 %v11437_v42  ;;  %8892 = vmatprep.subr.bf16.mxu1 %v15900_v61 }
 0x2bc   :  { %1798 = vmatmul.mubr.bf16.vlgmr.msra.gmra.mxu0 %v1683_v0  ;;  %8889 = vmatmul.mubr.bf16.vlgmr.msra.gmra.mxu1 %v1683_v0 }
 0x2bd   :  { %1869 = vmatpush1.bf16.msra.mxu0 %v11442_v43  ;;  %8893 = vmatpush3.bf16.msra.mxu1 %v11448_v44 }
 0x2be   :  { %1870 = vmatprep.subr.bf16.mxu0 %v11455_v45  ;;  %8894 = vmatprep.subr.bf16.mxu1 %v15900_v61 }
 0x2bf   :  { %1900 = vmatprep.mubr.bf16.mxu0 %v15901_v2  ;;  %8908 = vmatprep.mubr.msk.bf16.mxu1 %vm10796_vm0, %v15900_v61 }
 0x2c1   :  { %1871 = vmatpush1.bf16.msra.mxu0 %v11461_v46  ;;  %8895 = vmatpush3.bf16.msra.mxu1 %v11466_v47 }
 0x2c2   :  { %1872 = vmatprep.subr.bf16.mxu0 %v11474_v48  ;;  %8896 = vmatprep.subr.bf16.mxu1 %v15900_v61 }
 0x2c5   :  { %1873 = vmatpush1.bf16.msra.mxu0 %v11480_v49  ;;  %8897 = vmatpush3.bf16.msra.mxu1 %v11485_v51 }
 0x2c6   :  { %1874 = vmatprep.subr.bf16.mxu0 %v11493_v52  ;;  %8898 = vmatprep.subr.bf16.mxu1 %v15900_v61 }
 0x2c9   :  { %1875 = vmatpush1.bf16.msra.mxu0 %v11499_v53  ;;  %8899 = vmatpush3.bf16.msra.mxu1 %v11504_v54 }
 0x2ca   :  { %1876 = vmatprep.subr.bf16.mxu0 %v11511_v56  ;;  %8900 = vmatprep.subr.bf16.mxu1 %v15900_v61 }
 0x2cd   :  { %1877 = vmatpush1.bf16.msra.mxu0 %v11516_v57  ;;  %8901 = vmatpush3.bf16.msra.mxu1 %v11522_v58  ;;  %v15922_v57 = vld [vmem:[#allocation16_spill] sm:$0xff] }
 0x2ce   :  { %1878 = vmatprep.subr.bf16.mxu0 %v11527_v59  ;;  %8902 = vmatprep.subr.bf16.mxu1 %v15900_v61 }
 0x2d1   :  { %1879 = vmatpush1.bf16.msra.mxu0 %v15902_v26  ;;  %8903 = vmatpush3.bf16.msra.mxu1 %v15903_v15 }
 0x2d2   :  { %1880 = vmatprep.subr.bf16.mxu0 %v15904_v18  ;;  %8904 = vmatprep.subr.bf16.mxu1 %v15900_v61 }
 0x2d5   :  { %1881 = vmatpush1.bf16.msra.mxu0 %v15905_v19  ;;  %8905 = vmatpush3.bf16.msra.mxu1 %v15906_v24 }
 0x2d6   :  { %1882 = vmatprep.subr.bf16.mxu0 %v15907_v27  ;;  %8906 = vmatprep.subr.bf16.mxu1 %v15900_v61  ;;  %v15923_v27 = vld [vmem:[#allocation17_spill] sm:$0xff] }
 0x2d9   :  { %1883 = vmatpush1.bf16.msra.mxu0 %v15908_v28  ;;  %8907 = vmatpush3.bf16.msra.mxu1 %v15909_v29 }
 0x2da   :  { %1949 = vmatprep.subr.bf16.mxu0 %v11822_v30  ;;  %8912 = vmatprep.subr.bf16.mxu1 %v15900_v61 }
 0x35c   :  { %v12010_v42 = vpop.f32.mrf.mxu0  ;;  %v12012_v43 = vpop.f32.mrf.mxu1 }
 0x35d   :  { %15919 = vst [vmem:[#allocation6_spill] sm:$0xff] %v12010_v42  ;;  %15920 = vst [vmem:[#allocation7_spill] sm:$0xff] %v12012_v43 }
 0x35e   :  { %v12014_v44 = vpop.f32.mrf.mxu0  ;;  %v8870_v45 = vpop.f32.mrf.mxu1 }
 0x35f   :  { %15921 = vst [vmem:[#allocation8_spill] sm:$0xff] %v12014_v44 }
 0x360   :  { %v1722_v46 = vpop.f32.mrf.mxu0  ;;  %v1762_v47 = vpop.f32.mrf.mxu1 }
 0x362   :  { %v1723_v48 = vpop.f32.mrf.mxu0  ;;  %v8871_v49 = vpop.f32.mrf.mxu1 }
 0x363   :  { %v15924_v49 = vld [vmem:[#allocation33_spill] sm:$0xff] }
 0x37c   :  { %v1799_v51 = vpop.f32.mrf.mxu0  ;;  %v1840_v52 = vpop.f32.mrf.mxu1 }
 0x37d   :  { %v1800_v53 = vadd.f32 %v1799_v51, %v11703_v9  ;;  %v1841_v46 = vadd.f32 %v1840_v52, %v11723_v20  ;;  %v12070_v52 = vld [vmem:[%s15697_s2 + $0xa8] ss:$12 sps:$4 sm:$0xff]  }
 0x37e   :  { %v1801_v54 = vpop.f32.mrf.mxu0  ;;  %v8890_v56 = vpop.f32.mrf.mxu1 }
 0x37f   :  { %v1846_v58 = vadd.f32 %v1800_v53, %v15922_v57  ;;  %v1802_v18 = vadd.f32 %v1801_v54, %v11708_v50 }
 0x380   :  { %v1803_v59 = vpop.f32.mrf.mxu0  ;;  %v1843_v26 = vpop.f32.mrf.mxu1 }
 0x381   :  { %v7848_v15 = vmul.f32 -1.442695, %v1846_v58  ;;  %v1853_v28 = vadd.f32 %v1802_v18, %v15923_v27  ;;  %v12082_v18 = vld [vmem:[%s15697_s2 + $0x94] ss:$12 sps:$4 sm:$0xff]   ;;  %v12104_v27 = vld [vmem:[%s15697_s2 + $0x7c] ss:$12 sps:$4 sm:$0xff]  }
 0x382   :  { %v1804_v19 = vpop.f32.mrf.mxu0  ;;  %v8891_v24 = vpop.f32.mrf.mxu1 }
 0x383   :  { %10315 = vpow2.f32 %v7848_v15  ;;  %v7849_v29 = vmul.f32 -1.442695, %v1853_v28  ;;  %v12076_v15 = vld [vmem:[%s15697_s2 + $0xb0] ss:$12 sps:$4 sm:$0xff]   ;;  %v12098_v24 = vld [vmem:[%s15697_s2 + $0x98] ss:$12 sps:$4 sm:$0xff]  }
 0x384   :  { %v12092_v19 = vld [vmem:[%s15697_s2 + $0x90] ss:$12 sps:$4 sm:$0xff]   ;;  %v12111_v28 = vld [vmem:[%s15697_s2 + $0x78] ss:$12 sps:$4 sm:$0xff]  }
 0x385   :  { %10317 = vpow2.f32 %v7849_v29  ;;  %v12117_v29 = vld [vmem:[%s15697_s2 + $0x80] ss:$12 sps:$4 sm:$0xff]  }
 0x390   :  { %v10316_v12 = vpop.eup %10315 }
 0x391   :  { %v1850_v16 = vadd.f32 1.0, %v10316_v12  ;;  %v12123_v12 = vld [vmem:[%s15697_s2 + $0x64] ss:$12 sps:$4 sm:$0xff]  }
 0x392   :  { %v10318_v0 = vpop.eup %10317 }
 0x393   :  { %10319 = vrcp.f32 %v1850_v16  ;;  %v1857_v45 = vadd.f32 1.0, %v10318_v0  ;;  %v12130_v16 = vld [vmem:[%s15697_s2 + $0x60] ss:$12 sps:$4 sm:$0xff]   ;;  %v12136_v0 = vld [vmem:[%s15697_s2 + $0x68] ss:$12 sps:$4 sm:$0xff]  }
 0x395   :  { %10321 = vrcp.f32 %v1857_v45  ;;  %v12142_v45 = vld [vmem:[%s15697_s2 + $0x4c] ss:$12 sps:$4 sm:$0xff]  }
 0x3a0   :  { %v10320_v47 = vpop.eup %10319 }
 0x3a1   :  { %v1860_v48 = vmul.f32 %v10320_v47, %v1841_v46  ;;  %v12149_v46 = vld [vmem:[%s15697_s2 + $0x48] ss:$12 sps:$4 sm:$0xff]   ;;  %v12155_v47 = vld [vmem:[%s15697_s2 + $0x50] ss:$12 sps:$4 sm:$0xff]  }
 0x3a2   :  { %v10322_v53 = vpop.eup %10321 }
 0x3a3   :  { %v1861_v51 = vadd.f32 %v1860_v48, %v15924_v49  ;;  %v1863_v54 = vsub.f32 1.0, %v10322_v53  ;;  %v1865_v58 = vmul.f32 %v10322_v53, %v11841_v5  ;;  %v12063_v5 = vld [vmem:[%s15697_s2 + $0xac] ss:$12 sps:$4 sm:$0xff]   ;;  %v12161_v48 = vld [vmem:[%s15697_s2 + $0x34] ss:$12 sps:$4 sm:$0xff]  }
 0x3a4   :  { %15925 = vst [vmem:[#allocation9_spill] sm:$0xff] %v12161_v48  ;;  %v12168_v49 = vld [vmem:[%s15697_s2 + $0x30] ss:$12 sps:$4 sm:$0xff]  }
 0x3a5   :  { %10323 = vtanh.f32 %v1861_v51  ;;  %15926 = vst [vmem:[#allocation13_spill] sm:$0xff] %v12168_v49  ;;  %v12174_v51 = vld [vmem:[%s15697_s2 + $0x38] ss:$12 sps:$4 sm:$0xff]   ;;  %v12180_v53 = vld [vmem:[%s15697_s2 + $0x1c] ss:$12 sps:$4 sm:$0xff]  }
 0x3a6   :  { %15927 = vst [vmem:[#allocation14_spill] sm:$0xff] %v12174_v51  ;;  %15928 = vst [vmem:[#allocation15_spill] sm:$0xff] %v12180_v53 }
 0x3b2   :  { %v10324_v56 = vpop.eup %10323 }
 0x3b3   :  { %v1864_v57 = vmul.f32 %v10324_v56, %v1863_v54  ;;  %v12187_v54 = vld [vmem:[%s15697_s2 + $0x18] ss:$12 sps:$4 sm:$0xff]   ;;  %v12193_v56 = vld [vmem:[%s15697_s2 + $0x20] ss:$12 sps:$4 sm:$0xff]  }
 0x3b4   :  { %15929 = vst [vmem:[#allocation32_spill] sm:$0xff] %v12187_v54  ;;  %15930 = vst [vmem:[#allocation16_spill] sm:$0xff] %v12193_v56 }
 0x3b5   :  { %v12023_v59 = vadd.f32 %v1865_v58, %v1864_v57  ;;  %v12199_v57 = vld [vmem:[%s15697_s2 + $0x4] ss:$12 sps:$4 sm:$0xff]   ;;  %v12206_v58 = vld [vmem:[%s15697_s2] ss:$12 sps:$4 sm:$0xff]  }
 0x3b6   :  { %15931 = vst [vmem:[#allocation17_spill] sm:$0xff] %v12199_v57  ;;  %15932 = vst [vmem:[#allocation33_spill] sm:$0xff] %v12206_v58 }
 0x3b7   :  { %v1867_v26 = vpack.c.bf16 %v12023_v59, %v12023_v59 }
 0x3b9   :  { %1901 = vmatmul.mubr.bf16.vlgmr.msra.gmra.mxu0 %v1867_v26  ;;  %8909 = vmatmul.mubr.bf16.vlgmr.msra.gmra.mxu1 %v1867_v26 }
 0x3ba   :  { %1950 = vmatpush1.bf16.msra.mxu0 %v11734_v11  ;;  %8913 = vmatpush3.bf16.msra.mxu1 %v11740_v25 }
 0x3bb   :  { %1951 = vmatprep.subr.bf16.mxu0 %v11746_v17  ;;  %8914 = vmatprep.subr.bf16.mxu1 %v15900_v61 }
 0x3bc   :  { %1981 = vmatprep.mubr.bf16.mxu0 %v15901_v2  ;;  %8928 = vmatprep.mubr.msk.bf16.mxu1 %vm10796_vm0, %v15900_v61 }
 0x3be   :  { %1952 = vmatpush1.bf16.msra.mxu0 %v11756_v14  ;;  %8915 = vmatpush3.bf16.msra.mxu1 %v11856_v6 }
 0x3bf   :  { %1953 = vmatprep.subr.bf16.mxu0 %v11862_v41  ;;  %8916 = vmatprep.subr.bf16.mxu1 %v15900_v61 }
 0x3c2   :  { %1954 = vmatpush1.bf16.msra.mxu0 %v11869_v60  ;;  %8917 = vmatpush3.bf16.msra.mxu1 %v11875_v4 }
 0x3c3   :  { %1955 = vmatprep.subr.bf16.mxu0 %v11881_v7  ;;  %8918 = vmatprep.subr.bf16.mxu1 %v15900_v61 }
 0x3c6   :  { %1956 = vmatpush1.bf16.msra.mxu0 %v11888_v34  ;;  %8919 = vmatpush3.bf16.msra.mxu1 %v11894_v35 }
 0x3c7   :  { %1957 = vmatprep.subr.bf16.mxu0 %v11900_v36  ;;  %8920 = vmatprep.subr.bf16.mxu1 %v15900_v61 }
 0x3ca   :  { %1958 = vmatpush1.bf16.msra.mxu0 %v11907_v37  ;;  %8921 = vmatpush3.bf16.msra.mxu1 %v11913_v38 }
 0x3cb   :  { %1959 = vmatprep.subr.bf16.mxu0 %v11919_v39  ;;  %8922 = vmatprep.subr.bf16.mxu1 %v15900_v61 }
 0x3ce   :  { %1960 = vmatpush1.bf16.msra.mxu0 %v11926_v40  ;;  %8923 = vmatpush3.bf16.msra.mxu1 %v11932_v8 }
 0x3cf   :  { %1961 = vmatprep.subr.bf16.mxu0 %v11938_v13  ;;  %8924 = vmatprep.subr.bf16.mxu1 %v15900_v61 }
 0x3d2   :  { %1962 = vmatpush1.bf16.msra.mxu0 %v11945_v63  ;;  %8925 = vmatpush3.bf16.msra.mxu1 %v11951_v10 }
 0x3d3   :  { %1963 = vmatprep.subr.bf16.mxu0 %v11957_v23  ;;  %8926 = vmatprep.subr.bf16.mxu1 %v15900_v61 }
 0x3d6   :  { %1964 = vmatpush1.bf16.msra.mxu0 %v11964_v22  ;;  %8927 = vmatpush3.bf16.msra.mxu1 %v11970_v1 }
 0x3d7   :  { %2052 = vmatprep.subr.bf16.mxu0 %v12063_v5  ;;  %8932 = vmatprep.subr.bf16.mxu1 %v15900_v61 }
 0x3d9   :  { %1982 = vmatmul.mubr.bf16.vlgmr.msra.gmra.mxu0 %v1867_v26  ;;  %8929 = vmatmul.mubr.bf16.vlgmr.msra.gmra.mxu1 %v1867_v26  ;;  %v12212_v26 = vld [vmem:[%s15697_s2 + $0x8] ss:$12 sps:$4 sm:$0xff]  }
 0x3da   :  { %2053 = vmatpush1.bf16.msra.mxu0 %v12070_v52  ;;  %8933 = vmatpush3.bf16.msra.mxu1 %v12076_v15  ;;  %15933 = vst [vmem:[#allocation43_spill] sm:$0xff] %v12212_v26 }
 0x3db   :  { %2054 = vmatprep.subr.bf16.mxu0 %v12082_v18  ;;  %8934 = vmatprep.subr.bf16.mxu1 %v15900_v61 }
 0x3dc   :  { %2084 = vmatprep.mubr.bf16.mxu0 %v15901_v2  ;;  %8948 = vmatprep.mubr.msk.bf16.mxu1 %vm10796_vm0, %v15900_v61 }
 0x3de   :  { %2055 = vmatpush1.bf16.msra.mxu0 %v12092_v19  ;;  %8935 = vmatpush3.bf16.msra.mxu1 %v12098_v24 }
 0x3df   :  { %2056 = vmatprep.subr.bf16.mxu0 %v12104_v27  ;;  %8936 = vmatprep.subr.bf16.mxu1 %v15900_v61 }
 0x3e2   :  { %2057 = vmatpush1.bf16.msra.mxu0 %v12111_v28  ;;  %8937 = vmatpush3.bf16.msra.mxu1 %v12117_v29 }
 0x3e3   :  { %2058 = vmatprep.subr.bf16.mxu0 %v12123_v12  ;;  %8938 = vmatprep.subr.bf16.mxu1 %v15900_v61 }
 0x3e6   :  { %2059 = vmatpush1.bf16.msra.mxu0 %v12130_v16  ;;  %8939 = vmatpush3.bf16.msra.mxu1 %v12136_v0 }
 0x3e7   :  { %2060 = vmatprep.subr.bf16.mxu0 %v12142_v45  ;;  %8940 = vmatprep.subr.bf16.mxu1 %v15900_v61 }
 0x3ea   :  { %2061 = vmatpush1.bf16.msra.mxu0 %v12149_v46  ;;  %8941 = vmatpush3.bf16.msra.mxu1 %v12155_v47 }
 0x3eb   :  { %2062 = vmatprep.subr.bf16.mxu0 %v12161_v48  ;;  %8942 = vmatprep.subr.bf16.mxu1 %v15900_v61 }
 0x3ee   :  { %2063 = vmatpush1.bf16.msra.mxu0 %v12168_v49  ;;  %8943 = vmatpush3.bf16.msra.mxu1 %v12174_v51 }
 0x3ef   :  { %2064 = vmatprep.subr.bf16.mxu0 %v12180_v53  ;;  %8944 = vmatprep.subr.bf16.mxu1 %v15900_v61  ;;  %v15938_v53 = vld [vmem:[#allocation19_spill] sm:$0xff] }
 0x3f2   :  { %2065 = vmatpush1.bf16.msra.mxu0 %v12187_v54  ;;  %8945 = vmatpush3.bf16.msra.mxu1 %v12193_v56 }
 0x3f3   :  { %2066 = vmatprep.subr.bf16.mxu0 %v12199_v57  ;;  %8946 = vmatprep.subr.bf16.mxu1 %v15900_v61 }
 0x3f6   :  { %2067 = vmatpush1.bf16.msra.mxu0 %v12206_v58  ;;  %8947 = vmatpush3.bf16.msra.mxu1 %v12212_v26 }
 0x3f7   :  { %2133 = vmatprep.subr.bf16.mxu0 %v11822_v30  ;;  %8952 = vmatprep.subr.bf16.mxu1 %v15900_v61  ;;  %v15937_v30 = vld [vmem:[#allocation18_spill] sm:$0xff] }
 0x3f8   :  { %v795_v54 = vadd.f32 %v15937_v30, %v15914_v3  ;;  %v15954_v3 = vld [vmem:[#allocation39_spill] sm:$0xff] }
 0x479   :  { %v12217_v43 = vpop.f32.mrf.mxu0  ;;  %v12219_v44 = vpop.f32.mrf.mxu1 }
 0x47a   :  { %15934 = vst [vmem:[#allocation44_spill] sm:$0xff] %v12217_v43  ;;  %15935 = vst [vmem:[#allocation45_spill] sm:$0xff] %v12219_v44 }
 0x47b   :  { %v12221_v42 = vpop.f32.mrf.mxu0  ;;  %v8910_v32 = vpop.f32.mrf.mxu1 }
 0x47c   :  { %15936 = vst [vmem:[#allocation46_spill] sm:$0xff] %v12221_v42 }
 0x47d   :  { %v1906_v55 = vpop.f32.mrf.mxu0  ;;  %v1946_v33 = vpop.f32.mrf.mxu1 }
 0x47f   :  { %v1907_v31 = vpop.f32.mrf.mxu0  ;;  %v8911_v21 = vpop.f32.mrf.mxu1 }
 0x480   :  { %v15939_v31 = vld [vmem:[#allocation20_spill] sm:$0xff] }
 0x481   :  { %v868_v21 = vadd.f32 %v15939_v31, %v795_v54  ;;  %v15945_v31 = vld [vmem:[#allocation32_spill] sm:$0xff] }
 0x499   :  { %v1983_v62 = vpop.f32.mrf.mxu0  ;;  %v2024_v58 = vpop.f32.mrf.mxu1 }
 0x49a   :  { %v1984_v57 = vadd.f32 %v1983_v62, %v11703_v9 }
 0x49b   :  { %v1985_v26 = vpop.f32.mrf.mxu0  ;;  %v8930_v56 = vpop.f32.mrf.mxu1 }
 0x49c   :  { %v2030_v43 = vadd.f32 %v1984_v57, %v15938_v53  ;;  %v1986_v32 = vadd.f32 %v1985_v26, %v11708_v50  ;;  %v2025_v53 = vadd.f32 %v2024_v58, %v11723_v20  ;;  %v15943_v58 = vld [vmem:[#allocation14_spill] sm:$0xff] }
 0x49d   :  { %v1987_v51 = vpop.f32.mrf.mxu0  ;;  %v2027_v44 = vpop.f32.mrf.mxu1 }
 0x49e   :  { %v7850_v49 = vmul.f32 -1.442695, %v2030_v43  ;;  %v2037_v42 = vadd.f32 %v1986_v32, %v868_v21  ;;  %v15940_v43 = vld [vmem:[#allocation34_spill] sm:$0xff]  ;;  %v15946_v21 = vld [vmem:[#allocation16_spill] sm:$0xff] }
 0x49f   :  { %v1988_v55 = vpop.f32.mrf.mxu0  ;;  %v8931_v33 = vpop.f32.mrf.mxu1 }
 0x4a0   :  { %10325 = vpow2.f32 %v7850_v49  ;;  %v7851_v48 = vmul.f32 -1.442695, %v2037_v42  ;;  %v15944_v33 = vld [vmem:[#allocation15_spill] sm:$0xff] }
 0x4a2   :  { %10327 = vpow2.f32 %v7851_v48 }
 0x4ad   :  { %v10326_v62 = vpop.eup %10325 }
 0x4ae   :  { %v2034_v56 = vadd.f32 1.0, %v10326_v62  ;;  %v15947_v62 = vld [vmem:[#allocation17_spill] sm:$0xff] }
 0x4af   :  { %v10328_v9 = vpop.eup %10327 }
 0x4b0   :  { %10329 = vrcp.f32 %v2034_v56  ;;  %v2041_v30 = vadd.f32 1.0, %v10328_v9  ;;  %v15941_v9 = vld [vmem:[#allocation9_spill] sm:$0xff] }
 0x4b1   :  { %v15948_v56 = vld [vmem:[#allocation33_spill] sm:$0xff] }
 0x4b2   :  { %10331 = vrcp.f32 %v2041_v30  ;;  %v15949_v30 = vld [vmem:[#allocation43_spill] sm:$0xff] }
 0x4bd   :  { %v10330_v51 = vpop.eup %10329 }
 0x4be   :  { %v2044_v44 = vmul.f32 %v10330_v51, %v2025_v53  ;;  %v15950_v53 = vld [vmem:[#allocation2_spill] sm:$0xff] }
 0x4bf   :  { %v10332_v26 = vpop.eup %10331 }
 0x4c0   :  { %v2045_v57 = vadd.f32 %v2044_v44, %v15940_v43  ;;  %v2047_v55 = vsub.f32 1.0, %v10332_v26  ;;  %v2049_v42 = vmul.f32 %v10332_v26, %v12023_v59  ;;  %v15942_v59 = vld [vmem:[#allocation13_spill] sm:$0xff] }
 0x4c2   :  { %10333 = vtanh.f32 %v2045_v57 }
 0x4cf   :  { %v10334_v54 = vpop.eup %10333 }
 0x4d0   :  { %v2048_v49 = vmul.f32 %v10334_v54, %v2047_v55 }
 0x4d2   :  { %v12232_v48 = vadd.f32 %v2049_v42, %v2048_v49 }
 0x4d4   :  { %v2051_v32 = vpack.c.bf16 %v12232_v48, %v12232_v48 }
 0x4d6   :  { %2085 = vmatmul.mubr.bf16.vlgmr.msra.gmra.mxu0 %v2051_v32  ;;  %8949 = vmatmul.mubr.bf16.vlgmr.msra.gmra.mxu1 %v2051_v32 }
 0x4d7   :  { %2134 = vmatpush1.bf16.msra.mxu0 %v11734_v11  ;;  %8953 = vmatpush3.bf16.msra.mxu1 %v11740_v25 }
 0x4d8   :  { %2135 = vmatprep.subr.bf16.mxu0 %v11746_v17  ;;  %8954 = vmatprep.subr.bf16.mxu1 %v15900_v61 }
 0x4d9   :  { %2165 = vmatprep.mubr.bf16.mxu0 %v15901_v2  ;;  %8968 = vmatprep.mubr.msk.bf16.mxu1 %vm10796_vm0, %v15900_v61 }
 0x4db   :  { %2136 = vmatpush1.bf16.msra.mxu0 %v11756_v14  ;;  %8955 = vmatpush3.bf16.msra.mxu1 %v11856_v6 }
 0x4dc   :  { %2137 = vmatprep.subr.bf16.mxu0 %v11862_v41  ;;  %8956 = vmatprep.subr.bf16.mxu1 %v15900_v61 }
 0x4df   :  { %2138 = vmatpush1.bf16.msra.mxu0 %v11869_v60  ;;  %8957 = vmatpush3.bf16.msra.mxu1 %v11875_v4 }
 0x4e0   :  { %2139 = vmatprep.subr.bf16.mxu0 %v11881_v7  ;;  %8958 = vmatprep.subr.bf16.mxu1 %v15900_v61 }
 0x4e3   :  { %2140 = vmatpush1.bf16.msra.mxu0 %v11888_v34  ;;  %8959 = vmatpush3.bf16.msra.mxu1 %v11894_v35 }
 0x4e4   :  { %2141 = vmatprep.subr.bf16.mxu0 %v11900_v36  ;;  %8960 = vmatprep.subr.bf16.mxu1 %v15900_v61 }
 0x4e7   :  { %2142 = vmatpush1.bf16.msra.mxu0 %v11907_v37  ;;  %8961 = vmatpush3.bf16.msra.mxu1 %v11913_v38 }
 0x4e8   :  { %2143 = vmatprep.subr.bf16.mxu0 %v11919_v39  ;;  %8962 = vmatprep.subr.bf16.mxu1 %v15900_v61 }
 0x4eb   :  { %2144 = vmatpush1.bf16.msra.mxu0 %v11926_v40  ;;  %8963 = vmatpush3.bf16.msra.mxu1 %v11932_v8 }
 0x4ec   :  { %2145 = vmatprep.subr.bf16.mxu0 %v11938_v13  ;;  %8964 = vmatprep.subr.bf16.mxu1 %v15900_v61 }
 0x4ef   :  { %2146 = vmatpush1.bf16.msra.mxu0 %v11945_v63  ;;  %8965 = vmatpush3.bf16.msra.mxu1 %v11951_v10 }
 0x4f0   :  { %2147 = vmatprep.subr.bf16.mxu0 %v11957_v23  ;;  %8966 = vmatprep.subr.bf16.mxu1 %v15900_v61 }
 0x4f3   :  { %2148 = vmatpush1.bf16.msra.mxu0 %v11964_v22  ;;  %8967 = vmatpush3.bf16.msra.mxu1 %v11970_v1 }
 0x4f4   :  { %2236 = vmatprep.subr.bf16.mxu0 %v12063_v5  ;;  %8972 = vmatprep.subr.bf16.mxu1 %v15900_v61 }
 0x4f6   :  { %2166 = vmatmul.mubr.bf16.vlgmr.msra.gmra.mxu0 %v2051_v32  ;;  %8969 = vmatmul.mubr.bf16.vlgmr.msra.gmra.mxu1 %v2051_v32 }
 0x4f7   :  { %2237 = vmatpush1.bf16.msra.mxu0 %v12070_v52  ;;  %8973 = vmatpush3.bf16.msra.mxu1 %v12076_v15 }
 0x4f8   :  { %2238 = vmatprep.subr.bf16.mxu0 %v12082_v18  ;;  %8974 = vmatprep.subr.bf16.mxu1 %v15900_v61 }
 0x4f9   :  { %2268 = vmatprep.mubr.bf16.mxu0 %v15901_v2  ;;  %8988 = vmatprep.mubr.msk.bf16.mxu1 %vm10796_vm0, %v15900_v61 }
 0x4fb   :  { %2239 = vmatpush1.bf16.msra.mxu0 %v12092_v19  ;;  %8975 = vmatpush3.bf16.msra.mxu1 %v12098_v24 }
 0x4fc   :  { %2240 = vmatprep.subr.bf16.mxu0 %v12104_v27  ;;  %8976 = vmatprep.subr.bf16.mxu1 %v15900_v61 }
 0x4ff   :  { %2241 = vmatpush1.bf16.msra.mxu0 %v12111_v28  ;;  %8977 = vmatpush3.bf16.msra.mxu1 %v12117_v29 }
 0x500   :  { %2242 = vmatprep.subr.bf16.mxu0 %v12123_v12  ;;  %8978 = vmatprep.subr.bf16.mxu1 %v15900_v61 }
 0x503   :  { %2243 = vmatpush1.bf16.msra.mxu0 %v12130_v16  ;;  %8979 = vmatpush3.bf16.msra.mxu1 %v12136_v0 }
 0x504   :  { %2244 = vmatprep.subr.bf16.mxu0 %v12142_v45  ;;  %8980 = vmatprep.subr.bf16.mxu1 %v15900_v61 }
 0x507   :  { %2245 = vmatpush1.bf16.msra.mxu0 %v12149_v46  ;;  %8981 = vmatpush3.bf16.msra.mxu1 %v12155_v47 }
 0x508   :  { %2246 = vmatprep.subr.bf16.mxu0 %v15941_v9  ;;  %8982 = vmatprep.subr.bf16.mxu1 %v15900_v61 }
 0x50b   :  { %2247 = vmatpush1.bf16.msra.mxu0 %v15942_v59  ;;  %8983 = vmatpush3.bf16.msra.mxu1 %v15943_v58 }
 0x50c   :  { %2248 = vmatprep.subr.bf16.mxu0 %v15944_v33  ;;  %8984 = vmatprep.subr.bf16.mxu1 %v15900_v61 }
 0x50f   :  { %2249 = vmatpush1.bf16.msra.mxu0 %v15945_v31  ;;  %8985 = vmatpush3.bf16.msra.mxu1 %v15946_v21 }
 0x510   :  { %2250 = vmatprep.subr.bf16.mxu0 %v15947_v62  ;;  %8986 = vmatprep.subr.bf16.mxu1 %v15900_v61 }
 0x513   :  { %2251 = vmatpush1.bf16.msra.mxu0 %v15948_v56  ;;  %8987 = vmatpush3.bf16.msra.mxu1 %v15949_v30 }
 0x514   :  { %2317 = vmatprep.subr.bf16.mxu0 %v15950_v53  ;;  %8992 = vmatprep.subr.bf16.mxu1 %v15900_v61  ;;  %v15955_v53 = vld [vmem:[#allocation21_spill] sm:$0xff] }
 0x596   :  { %v12306_v51 = vpop.f32.mrf.mxu0  ;;  %v12308_v44 = vpop.f32.mrf.mxu1 }
 0x597   :  { %15951 = vst [vmem:[#allocation18_spill] sm:$0xff] %v12306_v51  ;;  %15952 = vst [vmem:[#allocation19_spill] sm:$0xff] %v12308_v44 }
 0x598   :  { %v12310_v43 = vpop.f32.mrf.mxu0  ;;  %v8950_v57 = vpop.f32.mrf.mxu1 }
 0x599   :  { %15953 = vst [vmem:[#allocation20_spill] sm:$0xff] %v12310_v43  ;;  %v15956_v57 = vld [vmem:[#allocation22_spill] sm:$0xff] }
 0x59a   :  { %v2090_v26 = vpop.f32.mrf.mxu0  ;;  %v2130_v55 = vpop.f32.mrf.mxu1 }
 0x59c   :  { %v2091_v54 = vpop.f32.mrf.mxu0  ;;  %v8951_v49 = vpop.f32.mrf.mxu1 }
 0x5b6   :  { %v2167_v42 = vpop.f32.mrf.mxu0  ;;  %v2208_v32 = vpop.f32.mrf.mxu1 }
 0x5b7   :  { %v2168_v56 = vadd.f32 %v2167_v42, %v15954_v3 }
 0x5b8   :  { %v2169_v30 = vpop.f32.mrf.mxu0  ;;  %v8970_v62 = vpop.f32.mrf.mxu1 }
 0x5b9   :  { %v2214_v21 = vadd.f32 %v2168_v56, %v15955_v53  ;;  %v2170_v44 = vadd.f32 %v2169_v30, %v11708_v50  ;;  %v2209_v62 = vadd.f32 %v2208_v32, %v11723_v20  ;;  %v15964_v32 = vld [vmem:[#allocation43_spill] sm:$0xff] }
 0x5ba   :  { %v2171_v31 = vpop.f32.mrf.mxu0  ;;  %v2211_v33 = vpop.f32.mrf.mxu1 }
 0x5bb   :  { %v7852_v51 = vmul.f32 -1.442695, %v2214_v21  ;;  %v2221_v26 = vadd.f32 %v2170_v44, %v15956_v57  ;;  %v15957_v33 = vld [vmem:[#allocation36_spill] sm:$0xff] }
 0x5bc   :  { %v2172_v58 = vpop.f32.mrf.mxu0  ;;  %v8971_v43 = vpop.f32.mrf.mxu1 }
 0x5bd   :  { %10335 = vpow2.f32 %v7852_v51  ;;  %v7853_v55 = vmul.f32 -1.442695, %v2221_v26  ;;  %v15965_v26 = vld [vmem:[#allocation2_spill] sm:$0xff] }
 0x5bf   :  { %10337 = vpow2.f32 %v7853_v55 }
 0x5ca   :  { %v10336_v54 = vpop.eup %10335 }
 0x5cb   :  { %v2218_v49 = vadd.f32 1.0, %v10336_v54 }
 0x5cc   :  { %v10338_v42 = vpop.eup %10337 }
 0x5cd   :  { %10339 = vrcp.f32 %v2218_v49  ;;  %v2225_v3 = vadd.f32 1.0, %v10338_v42 }
 0x5cf   :  { %10341 = vrcp.f32 %v2225_v3  ;;  %v15962_v3 = vld [vmem:[#allocation17_spill] sm:$0xff] }
 0x5da   :  { %v10340_v56 = vpop.eup %10339 }
 0x5db   :  { %v2228_v31 = vmul.f32 %v10340_v56, %v2209_v62 }
 0x5dc   :  { %v10342_v58 = vpop.eup %10341 }
 0x5dd   :  { %v2229_v21 = vadd.f32 %v2228_v31, %v15957_v33  ;;  %v2231_v30 = vsub.f32 1.0, %v10342_v58  ;;  %v2233_v44 = vmul.f32 %v10342_v58, %v12232_v48  ;;  %v15963_v48 = vld [vmem:[#allocation33_spill] sm:$0xff] }
 0x5df   :  { %10343 = vtanh.f32 %v2229_v21 }
 0x5ec   :  { %v10344_v53 = vpop.eup %10343 }
 0x5ed   :  { %v2232_v51 = vmul.f32 %v10344_v53, %v2231_v30  ;;  %v15969_v30 = vld [vmem:[#allocation39_spill] sm:$0xff] }
 0x5ef   :  { %v12319_v43 = vadd.f32 %v2233_v44, %v2232_v51 }
 0x5f1   :  { %v2235_v57 = vpack.c.bf16 %v12319_v43, %v12319_v43 }
 0x5f3   :  { %2269 = vmatmul.mubr.bf16.vlgmr.msra.gmra.mxu0 %v2235_v57  ;;  %8989 = vmatmul.mubr.bf16.vlgmr.msra.gmra.mxu1 %v2235_v57 }
 0x5f4   :  { %2318 = vmatpush1.bf16.msra.mxu0 %v11734_v11  ;;  %8993 = vmatpush3.bf16.msra.mxu1 %v11740_v25  ;;  %v15958_v11 = vld [vmem:[#allocation14_spill] sm:$0xff]  ;;  %v15959_v25 = vld [vmem:[#allocation15_spill] sm:$0xff] }
 0x5f5   :  { %2319 = vmatprep.subr.bf16.mxu0 %v11746_v17  ;;  %8994 = vmatprep.subr.bf16.mxu1 %v15900_v61  ;;  %v15960_v17 = vld [vmem:[#allocation32_spill] sm:$0xff] }
 0x5f6   :  { %2349 = vmatprep.mubr.bf16.mxu0 %v15901_v2  ;;  %9008 = vmatprep.mubr.msk.bf16.mxu1 %vm10796_vm0, %v15900_v61 }
 0x5f8   :  { %2320 = vmatpush1.bf16.msra.mxu0 %v11756_v14  ;;  %8995 = vmatpush3.bf16.msra.mxu1 %v11856_v6  ;;  %v15961_v14 = vld [vmem:[#allocation16_spill] sm:$0xff] }
 0x5f9   :  { %2321 = vmatprep.subr.bf16.mxu0 %v11862_v41  ;;  %8996 = vmatprep.subr.bf16.mxu1 %v15900_v61 }
 0x5fc   :  { %2322 = vmatpush1.bf16.msra.mxu0 %v11869_v60  ;;  %8997 = vmatpush3.bf16.msra.mxu1 %v11875_v4 }
 0x5fd   :  { %2323 = vmatprep.subr.bf16.mxu0 %v11881_v7  ;;  %8998 = vmatprep.subr.bf16.mxu1 %v15900_v61 }
 0x600   :  { %2324 = vmatpush1.bf16.msra.mxu0 %v11888_v34  ;;  %8999 = vmatpush3.bf16.msra.mxu1 %v11894_v35 }
 0x601   :  { %2325 = vmatprep.subr.bf16.mxu0 %v11900_v36  ;;  %9000 = vmatprep.subr.bf16.mxu1 %v15900_v61 }
 0x604   :  { %2326 = vmatpush1.bf16.msra.mxu0 %v11907_v37  ;;  %9001 = vmatpush3.bf16.msra.mxu1 %v11913_v38 }
 0x605   :  { %2327 = vmatprep.subr.bf16.mxu0 %v11919_v39  ;;  %9002 = vmatprep.subr.bf16.mxu1 %v15900_v61 }
 0x608   :  { %2328 = vmatpush1.bf16.msra.mxu0 %v11926_v40  ;;  %9003 = vmatpush3.bf16.msra.mxu1 %v11932_v8 }
 0x609   :  { %2329 = vmatprep.subr.bf16.mxu0 %v11938_v13  ;;  %9004 = vmatprep.subr.bf16.mxu1 %v15900_v61 }
 0x60c   :  { %2330 = vmatpush1.bf16.msra.mxu0 %v11945_v63  ;;  %9005 = vmatpush3.bf16.msra.mxu1 %v11951_v10 }
 0x60d   :  { %2331 = vmatprep.subr.bf16.mxu0 %v11957_v23  ;;  %9006 = vmatprep.subr.bf16.mxu1 %v15900_v61 }
 0x610   :  { %2332 = vmatpush1.bf16.msra.mxu0 %v11964_v22  ;;  %9007 = vmatpush3.bf16.msra.mxu1 %v11970_v1 }
 0x611   :  { %2420 = vmatprep.subr.bf16.mxu0 %v12063_v5  ;;  %9012 = vmatprep.subr.bf16.mxu1 %v15900_v61 }
 0x613   :  { %2350 = vmatmul.mubr.bf16.vlgmr.msra.gmra.mxu0 %v2235_v57  ;;  %9009 = vmatmul.mubr.bf16.vlgmr.msra.gmra.mxu1 %v2235_v57  ;;  %v15970_v57 = vld [vmem:[#allocation12_spill] sm:$0xff] }
 0x614   :  { %2421 = vmatpush1.bf16.msra.mxu0 %v12070_v52  ;;  %9013 = vmatpush3.bf16.msra.mxu1 %v12076_v15 }
 0x615   :  { %2422 = vmatprep.subr.bf16.mxu0 %v12082_v18  ;;  %9014 = vmatprep.subr.bf16.mxu1 %v15900_v61 }
 0x616   :  { %2452 = vmatprep.mubr.bf16.mxu0 %v15901_v2  ;;  %9028 = vmatprep.mubr.msk.bf16.mxu1 %vm10796_vm0, %v15900_v61 }
 0x618   :  { %2423 = vmatpush1.bf16.msra.mxu0 %v12092_v19  ;;  %9015 = vmatpush3.bf16.msra.mxu1 %v12098_v24 }
 0x619   :  { %2424 = vmatprep.subr.bf16.mxu0 %v12104_v27  ;;  %9016 = vmatprep.subr.bf16.mxu1 %v15900_v61 }
 0x61c   :  { %2425 = vmatpush1.bf16.msra.mxu0 %v12111_v28  ;;  %9017 = vmatpush3.bf16.msra.mxu1 %v12117_v29 }
 0x61d   :  { %2426 = vmatprep.subr.bf16.mxu0 %v12123_v12  ;;  %9018 = vmatprep.subr.bf16.mxu1 %v15900_v61 }
 0x620   :  { %2427 = vmatpush1.bf16.msra.mxu0 %v12130_v16  ;;  %9019 = vmatpush3.bf16.msra.mxu1 %v12136_v0 }
 0x621   :  { %2428 = vmatprep.subr.bf16.mxu0 %v12142_v45  ;;  %9020 = vmatprep.subr.bf16.mxu1 %v15900_v61 }
 0x624   :  { %2429 = vmatpush1.bf16.msra.mxu0 %v12149_v46  ;;  %9021 = vmatpush3.bf16.msra.mxu1 %v12155_v47 }
 0x625   :  { %2430 = vmatprep.subr.bf16.mxu0 %v15941_v9  ;;  %9022 = vmatprep.subr.bf16.mxu1 %v15900_v61 }
 0x628   :  { %2431 = vmatpush1.bf16.msra.mxu0 %v15942_v59  ;;  %9023 = vmatpush3.bf16.msra.mxu1 %v15958_v11 }
 0x629   :  { %2432 = vmatprep.subr.bf16.mxu0 %v15959_v25  ;;  %9024 = vmatprep.subr.bf16.mxu1 %v15900_v61 }
 0x62c   :  { %2433 = vmatpush1.bf16.msra.mxu0 %v15960_v17  ;;  %9025 = vmatpush3.bf16.msra.mxu1 %v15961_v14 }
 0x62d   :  { %2434 = vmatprep.subr.bf16.mxu0 %v15962_v3  ;;  %9026 = vmatprep.subr.bf16.mxu1 %v15900_v61 }
 0x630   :  { %2435 = vmatpush1.bf16.msra.mxu0 %v15963_v48  ;;  %9027 = vmatpush3.bf16.msra.mxu1 %v15964_v32  ;;  %v15972_v48 = vld [vmem:[#allocation24_spill] sm:$0xff] }
 0x631   :  { %2501 = vmatprep.subr.bf16.mxu0 %v15965_v26  ;;  %9032 = vmatprep.subr.bf16.mxu1 %v15900_v61  ;;  %v15971_v26 = vld [vmem:[#allocation23_spill] sm:$0xff] }
 0x632   :  { %v805_v32 = vadd.f32 %v15971_v26, %v15970_v57 }
 0x6b3   :  { %v12393_v55 = vpop.f32.mrf.mxu0  ;;  %v12395_v54 = vpop.f32.mrf.mxu1 }
 0x6b4   :  { %15966 = vst [vmem:[#allocation34_spill] sm:$0xff] %v12393_v55  ;;  %15967 = vst [vmem:[#allocation9_spill] sm:$0xff] %v12395_v54 }
 0x6b5   :  { %v12397_v49 = vpop.f32.mrf.mxu0  ;;  %v8990_v42 = vpop.f32.mrf.mxu1 }
 0x6b6   :  { %15968 = vst [vmem:[#allocation13_spill] sm:$0xff] %v12397_v49 }
 0x6b7   :  { %v2274_v62 = vpop.f32.mrf.mxu0  ;;  %v2314_v56 = vpop.f32.mrf.mxu1 }
 0x6b9   :  { %v2275_v31 = vpop.f32.mrf.mxu0  ;;  %v8991_v33 = vpop.f32.mrf.mxu1 }
 0x6ba   :  { %v15973_v31 = vld [vmem:[#allocation25_spill] sm:$0xff] }
 0x6bb   :  { %v878_v33 = vadd.f32 %v15973_v31, %v805_v32 }
 0x6d3   :  { %v2351_v21 = vpop.f32.mrf.mxu0  ;;  %v2392_v58 = vpop.f32.mrf.mxu1 }
 0x6d4   :  { %v2352_v53 = vadd.f32 %v2351_v21, %v15969_v30 }
 0x6d5   :  { %v2353_v51 = vpop.f32.mrf.mxu0  ;;  %v9010_v44 = vpop.f32.mrf.mxu1 }
 0x6d6   :  { %v2398_v55 = vadd.f32 %v2352_v53, %v15972_v48  ;;  %v2354_v42 = vadd.f32 %v2353_v51, %v11708_v50  ;;  %v2393_v48 = vadd.f32 %v2392_v58, %v11723_v20  ;;  %v12415_v58 = vld [vmem:[%s15696_s3 + $0xa8] ss:$12 sps:$4 sm:$0xff]  }
 0x6d7   :  { %v2355_v3 = vpop.f32.mrf.mxu0  ;;  %v2395_v54 = vpop.f32.mrf.mxu1 }
 0x6d8   :  { %v7854_v14 = vmul.f32 -1.442695, %v2398_v55  ;;  %v2405_v49 = vadd.f32 %v2354_v42, %v878_v33  ;;  %v15974_v55 = vld [vmem:[#allocation38_spill] sm:$0xff]  ;;  %v15984_v33 = vld [vmem:[#allocation27_spill] sm:$0xff] }
 0x6d9   :  { %v2356_v62 = vpop.f32.mrf.mxu0  ;;  %v9011_v56 = vpop.f32.mrf.mxu1 }
 0x6da   :  { %10345 = vpow2.f32 %v7854_v14  ;;  %v7855_v17 = vmul.f32 -1.442695, %v2405_v49  ;;  %v12437_v56 = vld [vmem:[%s15696_s3 + $0x90] ss:$12 sps:$4 sm:$0xff]  }
 0x6dc   :  { %10347 = vpow2.f32 %v7855_v17 }
 0x6e7   :  { %v10346_v21 = vpop.eup %10345 }
 0x6e8   :  { %v2402_v44 = vadd.f32 1.0, %v10346_v21 }
 0x6e9   :  { %v10348_v30 = vpop.eup %10347 }
 0x6ea   :  { %10349 = vrcp.f32 %v2402_v44  ;;  %v2409_v26 = vadd.f32 1.0, %v10348_v30  ;;  %v12421_v30 = vld [vmem:[%s15696_s3 + $0xb0] ss:$12 sps:$4 sm:$0xff]  }
 0x6ec   :  { %10351 = vrcp.f32 %v2409_v26 }
 0x6f7   :  { %v10350_v3 = vpop.eup %10349 }
 0x6f8   :  { %v2412_v54 = vmul.f32 %v10350_v3, %v2393_v48 }
 0x6f9   :  { %v10352_v51 = vpop.eup %10351 }
 0x6fa   :  { %v2413_v53 = vadd.f32 %v2412_v54, %v15974_v55  ;;  %v2415_v62 = vsub.f32 1.0, %v10352_v51  ;;  %v2417_v49 = vmul.f32 %v10352_v51, %v12319_v43  ;;  %v12427_v43 = vld [vmem:[%s15696_s3 + $0x94] ss:$12 sps:$4 sm:$0xff]  }
 0x6fc   :  { %10353 = vtanh.f32 %v2413_v53  ;;  %v15985_v53 = vld [vmem:[#allocation28_spill] sm:$0xff] }
 0x709   :  { %v10354_v32 = vpop.eup %10353 }
 0x70a   :  { %v2416_v14 = vmul.f32 %v10354_v32, %v2415_v62 }
 0x70c   :  { %v12408_v17 = vadd.f32 %v2417_v49, %v2416_v14 }
 0x70e   :  { %v2419_v42 = vpack.c.bf16 %v12408_v17, %v12408_v17 }
 0x710   :  { %2453 = vmatmul.mubr.bf16.vlgmr.msra.gmra.mxu0 %v2419_v42  ;;  %9029 = vmatmul.mubr.bf16.vlgmr.msra.gmra.mxu1 %v2419_v42 }
 0x711   :  { %2502 = vmatpush1.bf16.msra.mxu0 %v12415_v58  ;;  %9033 = vmatpush3.bf16.msra.mxu1 %v12421_v30 }
 0x712   :  { %2503 = vmatprep.subr.bf16.mxu0 %v12427_v43  ;;  %9034 = vmatprep.subr.bf16.mxu1 %v15900_v61 }
 0x713   :  { %2533 = vmatprep.mubr.bf16.mxu0 %v15901_v2  ;;  %9048 = vmatprep.mubr.msk.bf16.mxu1 %vm10796_vm0, %v15900_v61 }
 0x715   :  { %2504 = vmatpush1.bf16.msra.mxu0 %v12437_v56  ;;  %9035 = vmatpush3.bf16.msra.mxu1 %v11856_v6  ;;  %v15975_v6 = vld [vmem:[#allocation32_spill] sm:$0xff] }
 0x716   :  { %2505 = vmatprep.subr.bf16.mxu0 %v11862_v41  ;;  %9036 = vmatprep.subr.bf16.mxu1 %v15900_v61  ;;  %v15976_v41 = vld [vmem:[#allocation16_spill] sm:$0xff] }
 0x719   :  { %2506 = vmatpush1.bf16.msra.mxu0 %v11869_v60  ;;  %9037 = vmatpush3.bf16.msra.mxu1 %v11875_v4  ;;  %v15977_v60 = vld [vmem:[#allocation17_spill] sm:$0xff] }
 0x71a   :  { %2507 = vmatprep.subr.bf16.mxu0 %v11881_v7  ;;  %9038 = vmatprep.subr.bf16.mxu1 %v15900_v61  ;;  %v15978_v4 = vld [vmem:[#allocation33_spill] sm:$0xff]  ;;  %v15979_v7 = vld [vmem:[#allocation43_spill] sm:$0xff] }
 0x71d   :  { %2508 = vmatpush1.bf16.msra.mxu0 %v11888_v34  ;;  %9039 = vmatpush3.bf16.msra.mxu1 %v11894_v35  ;;  %v10667_v34 = vld [vmem:[%s15696_s3 + $0xac] ss:$12 sps:$4 sm:$0xff]  }
 0x71e   :  { %2509 = vmatprep.subr.bf16.mxu0 %v11900_v36  ;;  %9040 = vmatprep.subr.bf16.mxu1 %v15900_v61 }
 0x721   :  { %2510 = vmatpush1.bf16.msra.mxu0 %v11907_v37  ;;  %9041 = vmatpush3.bf16.msra.mxu1 %v11913_v38 }
 0x722   :  { %2511 = vmatprep.subr.bf16.mxu0 %v11919_v39  ;;  %9042 = vmatprep.subr.bf16.mxu1 %v15900_v61 }
 0x725   :  { %2512 = vmatpush1.bf16.msra.mxu0 %v11926_v40  ;;  %9043 = vmatpush3.bf16.msra.mxu1 %v11932_v8 }
 0x726   :  { %2513 = vmatprep.subr.bf16.mxu0 %v11938_v13  ;;  %9044 = vmatprep.subr.bf16.mxu1 %v15900_v61 }
 0x729   :  { %2514 = vmatpush1.bf16.msra.mxu0 %v11945_v63  ;;  %9045 = vmatpush3.bf16.msra.mxu1 %v11951_v10 }
 0x72a   :  { %2515 = vmatprep.subr.bf16.mxu0 %v11957_v23  ;;  %9046 = vmatprep.subr.bf16.mxu1 %v15900_v61  ;;  %v15983_v23 = vld [vmem:[#allocation39_spill] sm:$0xff] }
 0x72d   :  { %2516 = vmatpush1.bf16.msra.mxu0 %v11964_v22  ;;  %9047 = vmatpush3.bf16.msra.mxu1 %v11970_v1 }
 0x72e   :  { %2604 = vmatprep.subr.bf16.mxu0 %v12063_v5  ;;  %9052 = vmatprep.subr.bf16.mxu1 %v15900_v61 }
 0x730   :  { %2534 = vmatmul.mubr.bf16.vlgmr.msra.gmra.mxu0 %v2419_v42  ;;  %9049 = vmatmul.mubr.bf16.vlgmr.msra.gmra.mxu1 %v2419_v42 }
 0x731   :  { %2605 = vmatpush1.bf16.msra.mxu0 %v12070_v52  ;;  %9053 = vmatpush3.bf16.msra.mxu1 %v12076_v15 }
 0x732   :  { %2606 = vmatprep.subr.bf16.mxu0 %v12082_v18  ;;  %9054 = vmatprep.subr.bf16.mxu1 %v15900_v61 }
 0x733   :  { %2636 = vmatprep.mubr.bf16.mxu0 %v15901_v2  ;;  %9068 = vmatprep.mubr.msk.bf16.mxu1 %vm10796_vm0, %v15900_v61 }
 0x735   :  { %2607 = vmatpush1.bf16.msra.mxu0 %v12092_v19  ;;  %9055 = vmatpush3.bf16.msra.mxu1 %v12098_v24 }
 0x736   :  { %2608 = vmatprep.subr.bf16.mxu0 %v12104_v27  ;;  %9056 = vmatprep.subr.bf16.mxu1 %v15900_v61 }
 0x739   :  { %2609 = vmatpush1.bf16.msra.mxu0 %v12111_v28  ;;  %9057 = vmatpush3.bf16.msra.mxu1 %v12117_v29 }
 0x73a   :  { %2610 = vmatprep.subr.bf16.mxu0 %v12123_v12  ;;  %9058 = vmatprep.subr.bf16.mxu1 %v15900_v61 }
 0x73d   :  { %2611 = vmatpush1.bf16.msra.mxu0 %v12130_v16  ;;  %9059 = vmatpush3.bf16.msra.mxu1 %v12136_v0 }
 0x73e   :  { %2612 = vmatprep.subr.bf16.mxu0 %v12142_v45  ;;  %9060 = vmatprep.subr.bf16.mxu1 %v15900_v61 }
 0x741   :  { %2613 = vmatpush1.bf16.msra.mxu0 %v12149_v46  ;;  %9061 = vmatpush3.bf16.msra.mxu1 %v12155_v47 }
 0x742   :  { %2614 = vmatprep.subr.bf16.mxu0 %v15941_v9  ;;  %9062 = vmatprep.subr.bf16.mxu1 %v15900_v61 }
 0x745   :  { %2615 = vmatpush1.bf16.msra.mxu0 %v15942_v59  ;;  %9063 = vmatpush3.bf16.msra.mxu1 %v15958_v11 }
 0x746   :  { %2616 = vmatprep.subr.bf16.mxu0 %v15959_v25  ;;  %9064 = vmatprep.subr.bf16.mxu1 %v15900_v61 }
 0x749   :  { %2617 = vmatpush1.bf16.msra.mxu0 %v15975_v6  ;;  %9065 = vmatpush3.bf16.msra.mxu1 %v15976_v41 }
 0x74a   :  { %2618 = vmatprep.subr.bf16.mxu0 %v15977_v60  ;;  %9066 = vmatprep.subr.bf16.mxu1 %v15900_v61 }
 0x74d   :  { %2619 = vmatpush1.bf16.msra.mxu0 %v15978_v4  ;;  %9067 = vmatpush3.bf16.msra.mxu1 %v15979_v7 }
 0x74e   :  { %2685 = vmatprep.subr.bf16.mxu0 %v10667_v34  ;;  %9072 = vmatprep.subr.bf16.mxu1 %v15900_v61 }
 0x7d0   :  { %v12504_v35 = vpop.f32.mrf.mxu0  ;;  %v12506_v36 = vpop.f32.mrf.mxu1 }
 0x7d1   :  { %15980 = vst [vmem:[#allocation21_spill] sm:$0xff] %v12504_v35  ;;  %15981 = vst [vmem:[#allocation22_spill] sm:$0xff] %v12506_v36  ;;  %v16009_v36 = vld [vmem:[#allocation35_spill] sm:$0xff] }
 0x7d2   :  { %v12508_v37 = vpop.f32.mrf.mxu0  ;;  %v9030_v38 = vpop.f32.mrf.mxu1 }
 0x7d3   :  { %15982 = vst [vmem:[#allocation36_spill] sm:$0xff] %v12508_v37 }
 0x7d4   :  { %v2458_v39 = vpop.f32.mrf.mxu0  ;;  %v2498_v40 = vpop.f32.mrf.mxu1 }
 0x7d5   :  { %v15986_v40 = vld [vmem:[#allocation40_spill] sm:$0xff] }
 0x7d6   :  { %v2459_v8 = vpop.f32.mrf.mxu0  ;;  %v9031_v13 = vpop.f32.mrf.mxu1 }
 0x7f0   :  { %v2535_v63 = vpop.f32.mrf.mxu0  ;;  %v2576_v10 = vpop.f32.mrf.mxu1 }
 0x7f1   :  { %v2536_v22 = vadd.f32 %v2535_v63, %v15983_v23  ;;  %v2577_v34 = vadd.f32 %v2576_v10, %v11723_v20  ;;  %v10673_v10 = vld [vmem:[%s15696_s3 + $0x60] ss:$12 sps:$4 sm:$0xff]  }
 0x7f2   :  { %v2537_v1 = vpop.f32.mrf.mxu0  ;;  %v9050_v31 = vpop.f32.mrf.mxu1 }
 0x7f3   :  { %v2582_v21 = vadd.f32 %v2536_v22, %v15984_v33  ;;  %v2538_v3 = vadd.f32 %v2537_v1, %v11708_v50 }
 0x7f4   :  { %v2539_v44 = vpop.f32.mrf.mxu0  ;;  %v2579_v26 = vpop.f32.mrf.mxu1 }
 0x7f5   :  { %v7856_v48 = vmul.f32 -1.442695, %v2582_v21  ;;  %v2589_v51 = vadd.f32 %v2538_v3, %v15985_v53  ;;  %v10674_v44 = vld [vmem:[%s15696_s3 + $0x68] ss:$12 sps:$4 sm:$0xff]   ;;  %v10675_v26 = vld [vmem:[%s15696_s3 + $0x4c] ss:$12 sps:$4 sm:$0xff]  }
 0x7f6   :  { %v2540_v54 = vpop.f32.mrf.mxu0  ;;  %v9051_v55 = vpop.f32.mrf.mxu1  ;;  %v10677_v3 = vld [vmem:[%s15696_s3 + $0x50] ss:$12 sps:$4 sm:$0xff]   ;;  %v10680_v53 = vld [vmem:[%s15696_s3 + $0x38] ss:$12 sps:$4 sm:$0xff]  }
 0x7f7   :  { %10355 = vpow2.f32 %v7856_v48  ;;  %v7857_v62 = vmul.f32 -1.442695, %v2589_v51  ;;  %v10676_v48 = vld [vmem:[%s15696_s3 + $0x48] ss:$12 sps:$4 sm:$0xff]   ;;  %v10679_v55 = vld [vmem:[%s15696_s3 + $0x30] ss:$12 sps:$4 sm:$0xff]  }
 0x7f8   :  { %v10678_v54 = vld [vmem:[%s15696_s3 + $0x34] ss:$12 sps:$4 sm:$0xff]   ;;  %v10681_v51 = vld [vmem:[%s15696_s3 + $0x1c] ss:$12 sps:$4 sm:$0xff]  }
 0x7f9   :  { %10357 = vpow2.f32 %v7857_v62  ;;  %v10682_v62 = vld [vmem:[%s15696_s3 + $0x18] ss:$12 sps:$4 sm:$0xff]  }
 0x804   :  { %v10356_v32 = vpop.eup %10355 }
 0x805   :  { %v2586_v14 = vadd.f32 1.0, %v10356_v32  ;;  %v10683_v32 = vld [vmem:[%s15696_s3 + $0x20] ss:$12 sps:$4 sm:$0xff]  }
 0x806   :  { %v10358_v49 = vpop.eup %10357 }
 0x807   :  { %10359 = vrcp.f32 %v2586_v14  ;;  %v2593_v42 = vadd.f32 1.0, %v10358_v49  ;;  %v10684_v14 = vld [vmem:[%s15696_s3 + $0x4] ss:$12 sps:$4 sm:$0xff]   ;;  %v10685_v49 = vld [vmem:[%s15696_s3] ss:$12 sps:$4 sm:$0xff]  }
 0x809   :  { %10361 = vrcp.f32 %v2593_v42  ;;  %v10686_v42 = vld [vmem:[%s15696_s3 + $0x8] ss:$12 sps:$4 sm:$0xff]  }
 0x814   :  { %v10360_v38 = vpop.eup %10359 }
 0x815   :  { %v2596_v39 = vmul.f32 %v10360_v38, %v2577_v34  ;;  %v15993_v34 = vld [vmem:[#allocation31_spill] sm:$0xff] }
 0x816   :  { %v10362_v13 = vpop.eup %10361 }
 0x817   :  { %v2597_v8 = vadd.f32 %v2596_v39, %v15986_v40  ;;  %v2599_v63 = vsub.f32 1.0, %v10362_v13  ;;  %v2601_v31 = vmul.f32 %v10362_v13, %v12408_v17  ;;  %v10668_v17 = vld [vmem:[%s15696_s3 + $0x98] ss:$12 sps:$4 sm:$0xff]  }
 0x819   :  { %10363 = vtanh.f32 %v2597_v8 }
 0x826   :  { %v10364_v22 = vpop.eup %10363 }
 0x827   :  { %v2600_v1 = vmul.f32 %v10364_v22, %v2599_v63 }
 0x829   :  { %v12517_v33 = vadd.f32 %v2601_v31, %v2600_v1  ;;  %v15994_v31 = vld [vmem:[#allocation41_spill] sm:$0xff] }
 0x82b   :  { %v2603_v21 = vpack.c.bf16 %v12517_v33, %v12517_v33 }
 0x82d   :  { %2637 = vmatmul.mubr.bf16.vlgmr.msra.gmra.mxu0 %v2603_v21  ;;  %9069 = vmatmul.mubr.bf16.vlgmr.msra.gmra.mxu1 %v2603_v21 }
 0x82e   :  { %2686 = vmatpush1.bf16.msra.mxu0 %v12415_v58  ;;  %9073 = vmatpush3.bf16.msra.mxu1 %v12421_v30  ;;  %v10669_v58 = vld [vmem:[%s15696_s3 + $0x7c] ss:$12 sps:$4 sm:$0xff]   ;;  %v10670_v30 = vld [vmem:[%s15696_s3 + $0x78] ss:$12 sps:$4 sm:$0xff]  }
 0x82f   :  { %2687 = vmatprep.subr.bf16.mxu0 %v12427_v43  ;;  %9074 = vmatprep.subr.bf16.mxu1 %v15900_v61  ;;  %v10671_v43 = vld [vmem:[%s15696_s3 + $0x80] ss:$12 sps:$4 sm:$0xff]  }
 0x830   :  { %2717 = vmatprep.mubr.bf16.mxu0 %v15901_v2  ;;  %9088 = vmatprep.mubr.msk.bf16.mxu1 %vm10796_vm0, %v15900_v61 }
 0x832   :  { %2688 = vmatpush1.bf16.msra.mxu0 %v12437_v56  ;;  %9075 = vmatpush3.bf16.msra.mxu1 %v10668_v17  ;;  %v10672_v56 = vld [vmem:[%s15696_s3 + $0x64] ss:$12 sps:$4 sm:$0xff]  }
 0x833   :  { %2689 = vmatprep.subr.bf16.mxu0 %v10669_v58  ;;  %9076 = vmatprep.subr.bf16.mxu1 %v15900_v61 }
 0x836   :  { %2690 = vmatpush1.bf16.msra.mxu0 %v10670_v30  ;;  %9077 = vmatpush3.bf16.msra.mxu1 %v10671_v43 }
 0x837   :  { %2691 = vmatprep.subr.bf16.mxu0 %v10672_v56  ;;  %9078 = vmatprep.subr.bf16.mxu1 %v15900_v61 }
 0x83a   :  { %2692 = vmatpush1.bf16.msra.mxu0 %v10673_v10  ;;  %9079 = vmatpush3.bf16.msra.mxu1 %v10674_v44  ;;  %v12652_v10 = vld [vmem:[%s15696_s3 + $0x168] ss:$12 sps:$4 sm:$0xff]  }
 0x83b   :  { %2693 = vmatprep.subr.bf16.mxu0 %v10675_v26  ;;  %9080 = vmatprep.subr.bf16.mxu1 %v15900_v61  ;;  %v12662_v26 = vld [vmem:[%s15696_s3 + $0x154] ss:$12 sps:$4 sm:$0xff]  }
 0x83e   :  { %2694 = vmatpush1.bf16.msra.mxu0 %v10676_v48  ;;  %9081 = vmatpush3.bf16.msra.mxu1 %v10677_v3  ;;  %v12674_v48 = vld [vmem:[%s15696_s3 + $0x158] ss:$12 sps:$4 sm:$0xff]   ;;  %v12680_v3 = vld [vmem:[%s15696_s3 + $0x13c] ss:$12 sps:$4 sm:$0xff]  }
 0x83f   :  { %2695 = vmatprep.subr.bf16.mxu0 %v10678_v54  ;;  %9082 = vmatprep.subr.bf16.mxu1 %v15900_v61  ;;  %v12690_v54 = vld [vmem:[%s15696_s3 + $0x138] ss:$12 sps:$4 sm:$0xff]  }
 0x842   :  { %2696 = vmatpush1.bf16.msra.mxu0 %v10679_v55  ;;  %9083 = vmatpush3.bf16.msra.mxu1 %v10680_v53  ;;  %v12696_v55 = vld [vmem:[%s15696_s3 + $0x140] ss:$12 sps:$4 sm:$0xff]   ;;  %v12702_v53 = vld [vmem:[%s15696_s3 + $0x124] ss:$12 sps:$4 sm:$0xff]  }
 0x843   :  { %2697 = vmatprep.subr.bf16.mxu0 %v10681_v51  ;;  %9084 = vmatprep.subr.bf16.mxu1 %v15900_v61  ;;  %v12709_v51 = vld [vmem:[%s15696_s3 + $0x120] ss:$12 sps:$4 sm:$0xff]  }
 0x846   :  { %2698 = vmatpush1.bf16.msra.mxu0 %v10682_v62  ;;  %9085 = vmatpush3.bf16.msra.mxu1 %v10683_v32  ;;  %v12715_v62 = vld [vmem:[%s15696_s3 + $0x128] ss:$12 sps:$4 sm:$0xff]   ;;  %v12721_v32 = vld [vmem:[%s15696_s3 + $0x10c] ss:$12 sps:$4 sm:$0xff]  }
 0x847   :  { %2699 = vmatprep.subr.bf16.mxu0 %v10684_v14  ;;  %9086 = vmatprep.subr.bf16.mxu1 %v15900_v61  ;;  %v12728_v14 = vld [vmem:[%s15696_s3 + $0x108] ss:$12 sps:$4 sm:$0xff]  }
 0x84a   :  { %2700 = vmatpush1.bf16.msra.mxu0 %v10685_v49  ;;  %9087 = vmatpush3.bf16.msra.mxu1 %v10686_v42  ;;  %v12734_v49 = vld [vmem:[%s15696_s3 + $0x110] ss:$12 sps:$4 sm:$0xff]   ;;  %v12740_v42 = vld [vmem:[%s15696_s3 + $0xf4] ss:$12 sps:$4 sm:$0xff]  }
 0x84b   :  { %2788 = vmatprep.subr.bf16.mxu0 %v12063_v5  ;;  %9092 = vmatprep.subr.bf16.mxu1 %v15900_v61  ;;  %v12631_v5 = vld [vmem:[%s15696_s3 + $0x16c] ss:$12 sps:$4 sm:$0xff]  }
 0x84c   :  { %15987 = vst [vmem:[#allocation14_spill] sm:$0xff] %v12631_v5 }
 0x84d   :  { %2718 = vmatmul.mubr.bf16.vlgmr.msra.gmra.mxu0 %v2603_v21  ;;  %9089 = vmatmul.mubr.bf16.vlgmr.msra.gmra.mxu1 %v2603_v21 }
 0x84e   :  { %2789 = vmatpush1.bf16.msra.mxu0 %v12070_v52  ;;  %9093 = vmatpush3.bf16.msra.mxu1 %v12076_v15 }
 0x84f   :  { %2790 = vmatprep.subr.bf16.mxu0 %v12082_v18  ;;  %9094 = vmatprep.subr.bf16.mxu1 %v15900_v61 }
 0x850   :  { %2820 = vmatprep.mubr.bf16.mxu0 %v15901_v2  ;;  %9108 = vmatprep.mubr.msk.bf16.mxu1 %vm10796_vm0, %v15900_v61 }
 0x852   :  { %2791 = vmatpush1.bf16.msra.mxu0 %v12092_v19  ;;  %9095 = vmatpush3.bf16.msra.mxu1 %v12098_v24 }
 0x853   :  { %2792 = vmatprep.subr.bf16.mxu0 %v12104_v27  ;;  %9096 = vmatprep.subr.bf16.mxu1 %v15900_v61 }
 0x856   :  { %2793 = vmatpush1.bf16.msra.mxu0 %v12111_v28  ;;  %9097 = vmatpush3.bf16.msra.mxu1 %v12117_v29 }
 0x857   :  { %2794 = vmatprep.subr.bf16.mxu0 %v12123_v12  ;;  %9098 = vmatprep.subr.bf16.mxu1 %v15900_v61 }
 0x85a   :  { %2795 = vmatpush1.bf16.msra.mxu0 %v12130_v16  ;;  %9099 = vmatpush3.bf16.msra.mxu1 %v12136_v0 }
 0x85b   :  { %2796 = vmatprep.subr.bf16.mxu0 %v12142_v45  ;;  %9100 = vmatprep.subr.bf16.mxu1 %v15900_v61 }
 0x85e   :  { %2797 = vmatpush1.bf16.msra.mxu0 %v12149_v46  ;;  %9101 = vmatpush3.bf16.msra.mxu1 %v12155_v47  ;;  %v15991_v47 = vld [vmem:[#allocation29_spill] sm:$0xff] }
 0x85f   :  { %2798 = vmatprep.subr.bf16.mxu0 %v15941_v9  ;;  %9102 = vmatprep.subr.bf16.mxu1 %v15900_v61  ;;  %v815_v9 = vadd.f32 %v15991_v47, %v15970_v57  ;;  %v12817_v47 = vld [vmem:[%s15697_s2 + $0x170] ss:$12 sps:$4 sm:$0xff]  }
 0x861   :  { %v888_v38 = vadd.f32 %v15993_v34, %v815_v9  ;;  %v12824_v9 = vld [vmem:[%s15697_s2 + $0x154] ss:$12 sps:$4 sm:$0xff]   ;;  %v12881_v34 = vld [vmem:[%s15697_s2 + $0x10c] ss:$12 sps:$4 sm:$0xff]  }
 0x862   :  { %2799 = vmatpush1.bf16.msra.mxu0 %v15942_v59  ;;  %9103 = vmatpush3.bf16.msra.mxu1 %v15958_v11  ;;  %v15992_v59 = vld [vmem:[#allocation30_spill] sm:$0xff] }
 0x863   :  { %2800 = vmatprep.subr.bf16.mxu0 %v15959_v25  ;;  %9104 = vmatprep.subr.bf16.mxu1 %v15900_v61 }
 0x866   :  { %2801 = vmatpush1.bf16.msra.mxu0 %v15975_v6  ;;  %9105 = vmatpush3.bf16.msra.mxu1 %v15976_v41 }
 0x867   :  { %2802 = vmatprep.subr.bf16.mxu0 %v15977_v60  ;;  %9106 = vmatprep.subr.bf16.mxu1 %v15900_v61 }
 0x86a   :  { %2803 = vmatpush1.bf16.msra.mxu0 %v15978_v4  ;;  %9107 = vmatpush3.bf16.msra.mxu1 %v15979_v7 }
 0x86b   :  { %9112 = vmatprep.subr.bf16.mxu1 %v15900_v61  ;;  %3092 = vmatprep.subr.bf16.mxu0 %v12631_v5 }
 0x8ed   :  { %v12634_v52 = vpop.f32.mrf.mxu0  ;;  %v12636_v15 = vpop.f32.mrf.mxu1 }
 0x8ee   :  { %15988 = vst [vmem:[#allocation15_spill] sm:$0xff] %v12634_v52  ;;  %15989 = vst [vmem:[#allocation2_spill] sm:$0xff] %v12636_v15  ;;  %v7795_v15 = vld [vmem:[%s15698_s4 + $0x6] sm:$0x3f] }
 0x8ef   :  { %v12638_v18 = vpop.f32.mrf.mxu0  ;;  %v9070_v19 = vpop.f32.mrf.mxu1  ;;  %v2940_v37 = vrot.slane %v7795_v15, %v16009_v36 }
 0x8f0   :  { %15990 = vst [vmem:[#allocation12_spill] sm:$0xff] %v12638_v18  ;;  %v12747_v19 = vld [vmem:[%s15696_s3 + $0xf0] ss:$12 sps:$4 sm:$0xff]   ;;  %v16008_v18 = vld [vmem:[#allocation11_spill] sm:$0xff] }
 0x8f1   :  { %v2642_v24 = vpop.f32.mrf.mxu0  ;;  %v2682_v27 = vpop.f32.mrf.mxu1  ;;  %v1348_v52 = vrot.slane %v7795_v15, %v16008_v18 }
 0x8f2   :  { %v12753_v24 = vld [vmem:[%s15696_s3 + $0xf8] ss:$12 sps:$4 sm:$0xff]   ;;  %v12759_v27 = vld [vmem:[%s15696_s3 + $0xdc] ss:$12 sps:$4 sm:$0xff]  }
 0x8f3   :  { %v2643_v28 = vpop.f32.mrf.mxu0  ;;  %v9071_v29 = vpop.f32.mrf.mxu1  ;;  %v12968_v35 = vrot.slane %v1348_v52, %v16008_v18 }
 0x8f4   :  { %v12766_v28 = vld [vmem:[%s15696_s3 + $0xd8] ss:$12 sps:$4 sm:$0xff]   ;;  %v12772_v29 = vld [vmem:[%s15696_s3 + $0xe0] ss:$12 sps:$4 sm:$0xff]  }
 0x8f5   :  { %16010 = vst [vmem:[#allocation29_spill] sm:$0xff] %v12968_v35 }
 0x90d   :  { %v2719_v12 = vpop.f32.mrf.mxu0  ;;  %v2760_v16 = vpop.f32.mrf.mxu1 }
 0x90e   :  { %v2720_v0 = vadd.f32 %v2719_v12, %v15983_v23  ;;  %v2761_v63 = vadd.f32 %v2760_v16, %v11723_v20  ;;  %v12657_v20 = vld [vmem:[%s15696_s3 + $0x170] ss:$12 sps:$4 sm:$0xff]   ;;  %v12785_v16 = vld [vmem:[%s15696_s3 + $0xc0] ss:$12 sps:$4 sm:$0xff]  }
 0x90f   :  { %v2721_v45 = vpop.f32.mrf.mxu0  ;;  %v9090_v46 = vpop.f32.mrf.mxu1  ;;  %v12778_v12 = vld [vmem:[%s15696_s3 + $0xc4] ss:$12 sps:$4 sm:$0xff]  }
 0x910   :  { %v2766_v11 = vadd.f32 %v2720_v0, %v15992_v59  ;;  %v2722_v60 = vadd.f32 %v2721_v45, %v11708_v50  ;;  %v12791_v0 = vld [vmem:[%s15696_s3 + $0xc8] ss:$12 sps:$4 sm:$0xff]   ;;  %v12806_v45 = vld [vmem:[%s15697_s2 + $0x16c] ss:$12 sps:$4 sm:$0xff]   ;;  %v12830_v59 = vld [vmem:[%s15697_s2 + $0x150] ss:$12 sps:$4 sm:$0xff]  }
 0x911   :  { %v2723_v25 = vpop.f32.mrf.mxu0  ;;  %v2763_v6 = vpop.f32.mrf.mxu1  ;;  %v12812_v46 = vld [vmem:[%s15697_s2 + $0x168] ss:$12 sps:$4 sm:$0xff]  }
 0x912   :  { %v7858_v41 = vmul.f32 -1.442695, %v2766_v11  ;;  %v2773_v39 = vadd.f32 %v2722_v60, %v888_v38  ;;  %v12835_v11 = vld [vmem:[%s15697_s2 + $0x158] ss:$12 sps:$4 sm:$0xff]   ;;  %v12843_v25 = vld [vmem:[%s15697_s2 + $0x13c] ss:$12 sps:$4 sm:$0xff]  }
 0x913   :  { %v2724_v4 = vpop.f32.mrf.mxu0  ;;  %v9091_v7 = vpop.f32.mrf.mxu1  ;;  %v12849_v6 = vld [vmem:[%s15697_s2 + $0x138] ss:$12 sps:$4 sm:$0xff]   ;;  %v12886_v38 = vld [vmem:[%s15697_s2 + $0x108] ss:$12 sps:$4 sm:$0xff]  }
 0x914   :  { %10365 = vpow2.f32 %v7858_v41  ;;  %v7859_v40 = vmul.f32 -1.442695, %v2773_v39  ;;  %v12854_v41 = vld [vmem:[%s15697_s2 + $0x140] ss:$12 sps:$4 sm:$0xff]   ;;  %v12862_v60 = vld [vmem:[%s15697_s2 + $0x124] ss:$12 sps:$4 sm:$0xff]  }
 0x915   :  { %v12868_v4 = vld [vmem:[%s15697_s2 + $0x120] ss:$12 sps:$4 sm:$0xff]   ;;  %v12873_v7 = vld [vmem:[%s15697_s2 + $0x128] ss:$12 sps:$4 sm:$0xff]   ;;  %v12891_v39 = vld [vmem:[%s15697_s2 + $0x110] ss:$12 sps:$4 sm:$0xff]  }
 0x916   :  { %10367 = vpow2.f32 %v7859_v40  ;;  %15995 = vst [vmem:[#allocation23_spill] sm:$0xff] %v12891_v39  ;;  %v12897_v40 = vld [vmem:[%s15697_s2 + $0xf4] ss:$12 sps:$4 sm:$0xff]  }
 0x917   :  { %15996 = vst [vmem:[#allocation24_spill] sm:$0xff] %v12897_v40 }
 0x921   :  { %v10366_v23 = vpop.eup %10365 }
 0x922   :  { %v2770_v8 = vadd.f32 1.0, %v10366_v23  ;;  %v12905_v23 = vld [vmem:[%s15697_s2 + $0xf0] ss:$12 sps:$4 sm:$0xff]  }
 0x923   :  { %v10368_v13 = vpop.eup %10367  ;;  %15997 = vst [vmem:[#allocation25_spill] sm:$0xff] %v12905_v23 }
 0x924   :  { %10369 = vrcp.f32 %v2770_v8  ;;  %v2777_v57 = vadd.f32 1.0, %v10368_v13  ;;  %v12910_v8 = vld [vmem:[%s15697_s2 + $0xf8] ss:$12 sps:$4 sm:$0xff]   ;;  %v12917_v13 = vld [vmem:[%s15697_s2 + $0xdc] ss:$12 sps:$4 sm:$0xff]  }
 0x925   :  { %15998 = vst [vmem:[#allocation38_spill] sm:$0xff] %v12910_v8  ;;  %15999 = vst [vmem:[#allocation32_spill] sm:$0xff] %v12917_v13 }
 0x926   :  { %10371 = vrcp.f32 %v2777_v57  ;;  %v12924_v57 = vld [vmem:[%s15697_s2 + $0xd8] ss:$12 sps:$4 sm:$0xff]  }
 0x927   :  { %16000 = vst [vmem:[#allocation16_spill] sm:$0xff] %v12924_v57 }
 0x931   :  { %v10370_v22 = vpop.eup %10369 }
 0x932   :  { %v2780_v1 = vmul.f32 %v10370_v22, %v2761_v63  ;;  %v12929_v63 = vld [vmem:[%s15697_s2 + $0xe0] ss:$12 sps:$4 sm:$0xff]   ;;  %v12936_v22 = vld [vmem:[%s15697_s2 + $0xc4] ss:$12 sps:$4 sm:$0xff]  }
 0x933   :  { %v10372_v21 = vpop.eup %10371  ;;  %16001 = vst [vmem:[#allocation17_spill] sm:$0xff] %v12929_v63  ;;  %16002 = vst [vmem:[#allocation33_spill] sm:$0xff] %v12936_v22 }
 0x934   :  { %v2781_v50 = vadd.f32 %v2780_v1, %v15994_v31  ;;  %v2783_v17 = vsub.f32 1.0, %v10372_v21  ;;  %v2785_v43 = vmul.f32 %v10372_v21, %v12517_v33  ;;  %v12668_v33 = vld [vmem:[%s15696_s3 + $0x150] ss:$12 sps:$4 sm:$0xff]   ;;  %v12943_v1 = vld [vmem:[%s15697_s2 + $0xc0] ss:$12 sps:$4 sm:$0xff]  }
 0x935   :  { %16003 = vst [vmem:[#allocation43_spill] sm:$0xff] %v12943_v1  ;;  %v12948_v31 = vld [vmem:[%s15697_s2 + $0xc8] ss:$12 sps:$4 sm:$0xff]  }
 0x936   :  { %10373 = vtanh.f32 %v2781_v50  ;;  %16004 = vst [vmem:[#allocation39_spill] sm:$0xff] %v12948_v31 }
 0x943   :  { %v10374_v58 = vpop.eup %10373 }
 0x944   :  { %v2784_v30 = vmul.f32 %v10374_v58, %v2783_v17 }
 0x946   :  { %v2786_v56 = vadd.f32 %v2785_v43, %v2784_v30 }
 0x948   :  { %v2787_v44 = vpack.c.bf16 %v2786_v56, %v2786_v56 }
 0x94a   :  { %2821 = vmatmul.mubr.bf16.vlgmr.msra.gmra.mxu0 %v2787_v44  ;;  %9109 = vmatmul.mubr.bf16.vlgmr.msra.gmra.mxu1 %v2787_v44 }
 0x94b   :  { %3093 = vmatpush1.bf16.msra.mxu0 %v12652_v10  ;;  %9113 = vmatpush3.bf16.msra.mxu1 %v12657_v20 }
 0x94c   :  { %3094 = vmatprep.subr.bf16.mxu0 %v12662_v26  ;;  %3124 = vmatprep.mubr.bf16.mxu0 %v15901_v2 }
 0x94d   :  { %9114 = vmatprep.subr.bf16.mxu1 %v15900_v61  ;;  %9128 = vmatprep.mubr.msk.bf16.mxu1 %vm10796_vm0, %v15900_v61 }
 0x94f   :  { %3095 = vmatpush1.bf16.msra.mxu0 %v12668_v33  ;;  %9115 = vmatpush3.bf16.msra.mxu1 %v12674_v48 }
 0x950   :  { %3096 = vmatprep.subr.bf16.mxu0 %v12680_v3  ;;  %9116 = vmatprep.subr.bf16.mxu1 %v15900_v61 }
 0x953   :  { %3097 = vmatpush1.bf16.msra.mxu0 %v12690_v54  ;;  %9117 = vmatpush3.bf16.msra.mxu1 %v12696_v55 }
 0x954   :  { %3098 = vmatprep.subr.bf16.mxu0 %v12702_v53  ;;  %9118 = vmatprep.subr.bf16.mxu1 %v15900_v61 }
 0x957   :  { %3099 = vmatpush1.bf16.msra.mxu0 %v12709_v51  ;;  %9119 = vmatpush3.bf16.msra.mxu1 %v12715_v62 }
 0x958   :  { %3100 = vmatprep.subr.bf16.mxu0 %v12721_v32  ;;  %9120 = vmatprep.subr.bf16.mxu1 %v15900_v61 }
 0x95b   :  { %3101 = vmatpush1.bf16.msra.mxu0 %v12728_v14  ;;  %9121 = vmatpush3.bf16.msra.mxu1 %v12734_v49 }
 0x95c   :  { %3102 = vmatprep.subr.bf16.mxu0 %v12740_v42  ;;  %9122 = vmatprep.subr.bf16.mxu1 %v15900_v61 }
 0x95f   :  { %3103 = vmatpush1.bf16.msra.mxu0 %v12747_v19  ;;  %9123 = vmatpush3.bf16.msra.mxu1 %v12753_v24 }
 0x960   :  { %3104 = vmatprep.subr.bf16.mxu0 %v12759_v27  ;;  %9124 = vmatprep.subr.bf16.mxu1 %v15900_v61 }
 0x963   :  { %3105 = vmatpush1.bf16.msra.mxu0 %v12766_v28  ;;  %9125 = vmatpush3.bf16.msra.mxu1 %v12772_v29 }
 0x964   :  { %3106 = vmatprep.subr.bf16.mxu0 %v12778_v12  ;;  %9126 = vmatprep.subr.bf16.mxu1 %v15900_v61 }
 0x967   :  { %3107 = vmatpush1.bf16.msra.mxu0 %v12785_v16  ;;  %9127 = vmatpush3.bf16.msra.mxu1 %v12791_v0 }
 0x968   :  { %9132 = vmatprep.subr.bf16.mxu1 %v15900_v61  ;;  %3351 = vmatprep.subr.bf16.mxu0 %v12806_v45 }
 0x96a   :  { %3125 = vmatmul.mubr.bf16.vlgmr.msra.gmra.mxu0 %v15901_v2  ;;  %9129 = vmatmul.mubr.bf16.vlgmr.msra.gmra.mxu1 %v15901_v2 }
 0x96b   :  { %3383 = vmatprep.mubr.bf16.mxu0 %v15901_v2  ;;  %9148 = vmatprep.mubr.msk.bf16.mxu1 %vm10796_vm0, %v15900_v61 }
 0x96c   :  { %3352 = vmatpush1.bf16.msra.mxu0 %v12812_v46  ;;  %9133 = vmatpush3.bf16.msra.mxu1 %v12817_v47 }
 0x96d   :  { %9134 = vmatprep.subr.bf16.mxu1 %v15900_v61  ;;  %3353 = vmatprep.subr.bf16.mxu0 %v12824_v9 }
 0x970   :  { %3354 = vmatpush1.bf16.msra.mxu0 %v12830_v59  ;;  %9135 = vmatpush3.bf16.msra.mxu1 %v12835_v11 }
 0x971   :  { %9136 = vmatprep.subr.bf16.mxu1 %v15900_v61  ;;  %3355 = vmatprep.subr.bf16.mxu0 %v12843_v25 }
 0x974   :  { %3356 = vmatpush1.bf16.msra.mxu0 %v12849_v6  ;;  %9137 = vmatpush3.bf16.msra.mxu1 %v12854_v41 }
 0x975   :  { %9138 = vmatprep.subr.bf16.mxu1 %v15900_v61  ;;  %3357 = vmatprep.subr.bf16.mxu0 %v12862_v60 }
 0x978   :  { %3358 = vmatpush1.bf16.msra.mxu0 %v12868_v4  ;;  %9139 = vmatpush3.bf16.msra.mxu1 %v12873_v7 }
 0x979   :  { %9140 = vmatprep.subr.bf16.mxu1 %v15900_v61  ;;  %3359 = vmatprep.subr.bf16.mxu0 %v12881_v34 }
 0x97c   :  { %3360 = vmatpush1.bf16.msra.mxu0 %v12886_v38  ;;  %9141 = vmatpush3.bf16.msra.mxu1 %v12891_v39 }
 0x97d   :  { %3361 = vmatprep.subr.bf16.mxu0 %v12897_v40  ;;  %9142 = vmatprep.subr.bf16.mxu1 %v15900_v61 }
 0x980   :  { %3362 = vmatpush1.bf16.msra.mxu0 %v12905_v23  ;;  %9143 = vmatpush3.bf16.msra.mxu1 %v12910_v8 }
 0x981   :  { %3363 = vmatprep.subr.bf16.mxu0 %v12917_v13  ;;  %9144 = vmatprep.subr.bf16.mxu1 %v15900_v61 }
 0x984   :  { %3364 = vmatpush1.bf16.msra.mxu0 %v12924_v57  ;;  %9145 = vmatpush3.bf16.msra.mxu1 %v12929_v63 }
 0x985   :  { %3365 = vmatprep.subr.bf16.mxu0 %v12936_v22  ;;  %9146 = vmatprep.subr.bf16.mxu1 %v15900_v61 }
 0x988   :  { %3366 = vmatpush1.bf16.msra.mxu0 %v12943_v1  ;;  %9147 = vmatpush3.bf16.msra.mxu1 %v12948_v31 }
 0x989   :  { %3432 = vmatprep.subr.bf16.mxu0 %v12631_v5  ;;  %9152 = vmatprep.subr.bf16.mxu1 %v15900_v61 }
 0xa0a   :  { %v12956_v50 = vpop.f32.mrf.mxu0  ;;  %v12958_v21 = vpop.f32.mrf.mxu1 }
 0xa0b   :  { %16005 = vst [vmem:[#allocation27_spill] sm:$0xff] %v12956_v50  ;;  %16006 = vst [vmem:[#allocation28_spill] sm:$0xff] %v12958_v21  ;;  %v12971_v21 = vrot.slane %v2940_v37, %v16009_v36  ;;  %v16014_v50 = vld [vmem:[#allocation3_spill] sm:$0xff] }
 0xa0c   :  { %v12960_v17 = vpop.f32.mrf.mxu0  ;;  %v9110_v58 = vpop.f32.mrf.mxu1  ;;  %v1535_v5 = vadd.f32 %v16014_v50, %v12968_v35  ;;  %v16015_v50 = vld [vmem:[#allocation5_spill] sm:$0xff] }
 0xa0d   :  { %16007 = vst [vmem:[#allocation40_spill] sm:$0xff] %v12960_v17  ;;  %16011 = vst [vmem:[#allocation30_spill] sm:$0xff] %v12971_v21  ;;  %v16012_v17 = vld [vmem:[#allocation37_spill] sm:$0xff] }
 0xa0e   :  { %v2826_v30 = vpop.f32.mrf.mxu0  ;;  %v2866_v43 = vpop.f32.mrf.mxu1  ;;  %v2944_v58 = vrot.slane %v7795_v15, %v16012_v17 }
 0xa0f   :  { %v16013_v30 = vld [vmem:[#allocation10_spill] sm:$0xff] }
 0xa10   :  { %v2827_v56 = vpop.f32.mrf.mxu0  ;;  %v9111_v44 = vpop.f32.mrf.mxu1  ;;  %v1352_v43 = vrot.slane %v7795_v15, %v16013_v30  ;;  %v12979_v1 = vrot.slane %v2944_v58, %v16009_v36 }
 0xa12   :  { %v12982_v63 = vrot.slane %v1352_v43, %v16008_v18  ;;  %v16016_v43 = vld [vmem:[#allocation42_spill] sm:$0xff] }
 0xa13   :  { %v2948_v40 = vrot.slane %v7795_v15, %v16016_v43 }
 0xa14   :  { %v1537_v35 = vadd.f32 %v16015_v50, %v12982_v63 }
 0xa2a   :  { %v3126_v56 = vpop.f32.mrf.mxu0  ;;  %v3167_v44 = vpop.f32.mrf.mxu1 }
 0xa2b   :  { %v3127_v31 = vadd.f32 %v3126_v56, %v12971_v21 }
 0xa2c   :  { %v3128_v22 = vpop.f32.mrf.mxu0  ;;  %v9130_v52 = vpop.f32.mrf.mxu1 }
 0xa2d   :  { %v3173_v37 = vadd.f32 %v3127_v31, %v1535_v5  ;;  %v3129_v30 = vadd.f32 %v3128_v22, %v12979_v1  ;;  %v16017_v5 = vld [vmem:[#allocation26_spill] sm:$0xff]  ;;  %v12990_v31 = vrot.slane %v2948_v40, %v16009_v36 }
 0xa2e   :  { %v3130_v57 = vpop.f32.mrf.mxu0  ;;  %v3170_v17 = vpop.f32.mrf.mxu1 }
 0xa2f   :  { %v7949_v13 = vmul.f32 -1.442695, %v3173_v37  ;;  %v3180_v56 = vadd.f32 %v3129_v30, %v1537_v35  ;;  %v1356_v57 = vrot.slane %v7795_v15, %v16017_v5  ;;  %v16018_v17 = vld [vmem:[#allocation4_spill] sm:$0xff] }
 0xa30   :  { %v3131_v8 = vpop.f32.mrf.mxu0  ;;  %v9131_v23 = vpop.f32.mrf.mxu1 }
 0xa31   :  { %10375 = vpow2.f32 %v7949_v13  ;;  %v7950_v58 = vmul.f32 -1.442695, %v3180_v56  ;;  %v12993_v23 = vrot.slane %v1356_v57, %v16008_v18  ;;  %v3168_v13 = vadd.f32 %v3167_v44, %v12990_v31  ;;  %v16019_v44 = vld [vmem:[#allocation24_spill] sm:$0xff] }
 0xa33   :  { %10377 = vpow2.f32 %v7950_v58  ;;  %v1576_v30 = vadd.f32 %v16018_v17, %v12993_v23  ;;  %v16024_v17 = vld [vmem:[#allocation17_spill] sm:$0xff] }
 0xa3e   :  { %v10376_v21 = vpop.eup %10375 }
 0xa3f   :  { %v3177_v52 = vadd.f32 1.0, %v10376_v21 }
 0xa40   :  { %v10378_v22 = vpop.eup %10377 }
 0xa41   :  { %10379 = vrcp.f32 %v3177_v52  ;;  %v3184_v8 = vadd.f32 1.0, %v10378_v22  ;;  %v16020_v22 = vld [vmem:[#allocation25_spill] sm:$0xff] }
 0xa43   :  { %10381 = vrcp.f32 %v3184_v8  ;;  %v16021_v8 = vld [vmem:[#allocation38_spill] sm:$0xff] }
 0xa4e   :  { %v10380_v35 = vpop.eup %10379 }
 0xa4f   :  { %v3187_v21 = vmul.f32 %v10380_v35, %v3168_v13  ;;  %v16022_v13 = vld [vmem:[#allocation32_spill] sm:$0xff] }
 0xa50   :  { %v10382_v50 = vpop.eup %10381  ;;  %v16023_v35 = vld [vmem:[#allocation16_spill] sm:$0xff] }
 0xa51   :  { %v3188_v37 = vadd.f32 %v3187_v21, %v1576_v30  ;;  %v3190_v15 = vsub.f32 1.0, %v10382_v50  ;;  %v3192_v58 = vmul.f32 0.0, %v10382_v50  ;;  %v16025_v30 = vld [vmem:[#allocation33_spill] sm:$0xff]  ;;  %v16026_v21 = vld [vmem:[#allocation43_spill] sm:$0xff]  ;;  %v16028_v50 = vld [vmem:[#allocation14_spill] sm:$0xff] }
 0xa53   :  { %10383 = vtanh.f32 %v3188_v37  ;;  %v16027_v37 = vld [vmem:[#allocation39_spill] sm:$0xff] }
 0xa60   :  { %v10384_v56 = vpop.eup %10383 }
 0xa61   :  { %v3191_v40 = vmul.f32 %v10384_v56, %v3190_v15 }
 0xa63   :  { %v12998_v52 = vadd.f32 %v3192_v58, %v3191_v40 }
 0xa65   :  { %v3194_v57 = vpack.c.bf16 %v12998_v52, %v12998_v52 }
 0xa67   :  { %3384 = vmatmul.mubr.bf16.vlgmr.msra.gmra.mxu0 %v3194_v57  ;;  %9149 = vmatmul.mubr.bf16.vlgmr.msra.gmra.mxu1 %v3194_v57 }
 0xa68   :  { %3433 = vmatpush1.bf16.msra.mxu0 %v12652_v10  ;;  %9153 = vmatpush3.bf16.msra.mxu1 %v12657_v20 }
 0xa69   :  { %3434 = vmatprep.subr.bf16.mxu0 %v12662_v26  ;;  %9154 = vmatprep.subr.bf16.mxu1 %v15900_v61 }
 0xa6a   :  { %3464 = vmatprep.mubr.bf16.mxu0 %v15901_v2  ;;  %9168 = vmatprep.mubr.msk.bf16.mxu1 %vm10796_vm0, %v15900_v61 }
 0xa6c   :  { %3435 = vmatpush1.bf16.msra.mxu0 %v12668_v33  ;;  %9155 = vmatpush3.bf16.msra.mxu1 %v12674_v48 }
 0xa6d   :  { %3436 = vmatprep.subr.bf16.mxu0 %v12680_v3  ;;  %9156 = vmatprep.subr.bf16.mxu1 %v15900_v61 }
 0xa70   :  { %3437 = vmatpush1.bf16.msra.mxu0 %v12690_v54  ;;  %9157 = vmatpush3.bf16.msra.mxu1 %v12696_v55 }
 0xa71   :  { %3438 = vmatprep.subr.bf16.mxu0 %v12702_v53  ;;  %9158 = vmatprep.subr.bf16.mxu1 %v15900_v61 }
 0xa74   :  { %3439 = vmatpush1.bf16.msra.mxu0 %v12709_v51  ;;  %9159 = vmatpush3.bf16.msra.mxu1 %v12715_v62 }
 0xa75   :  { %3440 = vmatprep.subr.bf16.mxu0 %v12721_v32  ;;  %9160 = vmatprep.subr.bf16.mxu1 %v15900_v61 }
 0xa78   :  { %3441 = vmatpush1.bf16.msra.mxu0 %v12728_v14  ;;  %9161 = vmatpush3.bf16.msra.mxu1 %v12734_v49 }
 0xa79   :  { %3442 = vmatprep.subr.bf16.mxu0 %v12740_v42  ;;  %9162 = vmatprep.subr.bf16.mxu1 %v15900_v61 }
 0xa7c   :  { %3443 = vmatpush1.bf16.msra.mxu0 %v12747_v19  ;;  %9163 = vmatpush3.bf16.msra.mxu1 %v12753_v24 }
 0xa7d   :  { %3444 = vmatprep.subr.bf16.mxu0 %v12759_v27  ;;  %9164 = vmatprep.subr.bf16.mxu1 %v15900_v61 }
 0xa80   :  { %3445 = vmatpush1.bf16.msra.mxu0 %v12766_v28  ;;  %9165 = vmatpush3.bf16.msra.mxu1 %v12772_v29 }
 0xa81   :  { %3446 = vmatprep.subr.bf16.mxu0 %v12778_v12  ;;  %9166 = vmatprep.subr.bf16.mxu1 %v15900_v61 }
 0xa84   :  { %3447 = vmatpush1.bf16.msra.mxu0 %v12785_v16  ;;  %9167 = vmatpush3.bf16.msra.mxu1 %v12791_v0 }
 0xa85   :  { %3535 = vmatprep.subr.bf16.mxu0 %v12806_v45  ;;  %9172 = vmatprep.subr.bf16.mxu1 %v15900_v61 }
 0xa87   :  { %3465 = vmatmul.mubr.bf16.vlgmr.msra.gmra.mxu0 %v3194_v57  ;;  %9169 = vmatmul.mubr.bf16.vlgmr.msra.gmra.mxu1 %v3194_v57 }
 0xa88   :  { %3536 = vmatpush1.bf16.msra.mxu0 %v12812_v46  ;;  %9173 = vmatpush3.bf16.msra.mxu1 %v12817_v47 }
 0xa89   :  { %3537 = vmatprep.subr.bf16.mxu0 %v12824_v9  ;;  %9174 = vmatprep.subr.bf16.mxu1 %v15900_v61 }
 0xa8a   :  { %3567 = vmatprep.mubr.bf16.mxu0 %v15901_v2  ;;  %9188 = vmatprep.mubr.msk.bf16.mxu1 %vm10796_vm0, %v15900_v61 }
 0xa8c   :  { %3538 = vmatpush1.bf16.msra.mxu0 %v12830_v59  ;;  %9175 = vmatpush3.bf16.msra.mxu1 %v12835_v11 }
 0xa8d   :  { %3539 = vmatprep.subr.bf16.mxu0 %v12843_v25  ;;  %9176 = vmatprep.subr.bf16.mxu1 %v15900_v61 }
 0xa90   :  { %3540 = vmatpush1.bf16.msra.mxu0 %v12849_v6  ;;  %9177 = vmatpush3.bf16.msra.mxu1 %v12854_v41 }
 0xa91   :  { %3541 = vmatprep.subr.bf16.mxu0 %v12862_v60  ;;  %9178 = vmatprep.subr.bf16.mxu1 %v15900_v61 }
 0xa94   :  { %3542 = vmatpush1.bf16.msra.mxu0 %v12868_v4  ;;  %9179 = vmatpush3.bf16.msra.mxu1 %v12873_v7 }
 0xa95   :  { %3543 = vmatprep.subr.bf16.mxu0 %v12881_v34  ;;  %9180 = vmatprep.subr.bf16.mxu1 %v15900_v61 }
 0xa98   :  { %3544 = vmatpush1.bf16.msra.mxu0 %v12886_v38  ;;  %9181 = vmatpush3.bf16.msra.mxu1 %v12891_v39 }
 0xa99   :  { %3545 = vmatprep.subr.bf16.mxu0 %v16019_v44  ;;  %9182 = vmatprep.subr.bf16.mxu1 %v15900_v61 }
 0xa9c   :  { %3546 = vmatpush1.bf16.msra.mxu0 %v16020_v22  ;;  %9183 = vmatpush3.bf16.msra.mxu1 %v16021_v8 }
 0xa9d   :  { %3547 = vmatprep.subr.bf16.mxu0 %v16022_v13  ;;  %9184 = vmatprep.subr.bf16.mxu1 %v15900_v61 }
 0xaa0   :  { %3548 = vmatpush1.bf16.msra.mxu0 %v16023_v35  ;;  %9185 = vmatpush3.bf16.msra.mxu1 %v16024_v17  ;;  %v16033_v17 = vld [vmem:[#allocation6_spill] sm:$0xff] }
 0xaa1   :  { %3549 = vmatprep.subr.bf16.mxu0 %v16025_v30  ;;  %9186 = vmatprep.subr.bf16.mxu1 %v15900_v61  ;;  %v16034_v35 = vld [vmem:[#allocation30_spill] sm:$0xff] }
 0xaa4   :  { %3550 = vmatpush1.bf16.msra.mxu0 %v16026_v21  ;;  %9187 = vmatpush3.bf16.msra.mxu1 %v16027_v37  ;;  %v16032_v21 = vld [vmem:[#allocation29_spill] sm:$0xff] }
 0xaa5   :  { %3616 = vmatprep.subr.bf16.mxu0 %v16028_v50  ;;  %9192 = vmatprep.subr.bf16.mxu1 %v15900_v61  ;;  %v1719_v37 = vadd.f32 %v16033_v17, %v16032_v21 }
 0xb27   :  { %v13072_v15 = vpop.f32.mrf.mxu0  ;;  %v13074_v56 = vpop.f32.mrf.mxu1 }
 0xb28   :  { %16029 = vst [vmem:[#allocation31_spill] sm:$0xff] %v13072_v15  ;;  %16030 = vst [vmem:[#allocation41_spill] sm:$0xff] %v13074_v56 }
 0xb29   :  { %v13076_v40 = vpop.f32.mrf.mxu0  ;;  %v9150_v58 = vpop.f32.mrf.mxu1 }
 0xb2a   :  { %16031 = vst [vmem:[#allocation3_spill] sm:$0xff] %v13076_v40 }
 0xb2b   :  { %v3389_v57 = vpop.f32.mrf.mxu0  ;;  %v3429_v5 = vpop.f32.mrf.mxu1 }
 0xb2d   :  { %v3390_v43 = vpop.f32.mrf.mxu0  ;;  %v9151_v36 = vpop.f32.mrf.mxu1 }
 0xb2e   :  { %v16035_v43 = vld [vmem:[#allocation8_spill] sm:$0xff] }
 0xb2f   :  { %v1721_v36 = vadd.f32 %v16035_v43, %v12982_v63 }
 0xb47   :  { %v3466_v18 = vpop.f32.mrf.mxu0  ;;  %v3507_v30 = vpop.f32.mrf.mxu1 }
 0xb48   :  { %v3467_v50 = vadd.f32 %v3466_v18, %v16034_v35 }
 0xb49   :  { %v3468_v13 = vpop.f32.mrf.mxu0  ;;  %v9170_v8 = vpop.f32.mrf.mxu1 }
 0xb4a   :  { %v3513_v22 = vadd.f32 %v3467_v50, %v1719_v37  ;;  %v3469_v40 = vadd.f32 %v3468_v13, %v12979_v1  ;;  %v3508_v37 = vadd.f32 %v3507_v30, %v12990_v31  ;;  %v16038_v30 = vld [vmem:[#allocation24_spill] sm:$0xff] }
 0xb4b   :  { %v3470_v15 = vpop.f32.mrf.mxu0  ;;  %v3510_v44 = vpop.f32.mrf.mxu1 }
 0xb4c   :  { %v7975_v56 = vmul.f32 -1.442695, %v3513_v22  ;;  %v3520_v5 = vadd.f32 %v3469_v40, %v1721_v36  ;;  %v16036_v22 = vld [vmem:[#allocation7_spill] sm:$0xff]  ;;  %v16039_v36 = vld [vmem:[#allocation25_spill] sm:$0xff] }
 0xb4d   :  { %v3471_v58 = vpop.f32.mrf.mxu0  ;;  %v9171_v57 = vpop.f32.mrf.mxu1  ;;  %v1760_v13 = vadd.f32 %v16036_v22, %v12993_v23  ;;  %v16046_v22 = vld [vmem:[#allocation39_spill] sm:$0xff] }
 0xb4e   :  { %10385 = vpow2.f32 %v7975_v56  ;;  %v7976_v39 = vmul.f32 -1.442695, %v3520_v5  ;;  %v16040_v5 = vld [vmem:[#allocation38_spill] sm:$0xff] }
 0xb50   :  { %10387 = vpow2.f32 %v7976_v39 }
 0xb5b   :  { %v10386_v17 = vpop.eup %10385 }
 0xb5c   :  { %v3517_v21 = vadd.f32 1.0, %v10386_v17  ;;  %v16041_v17 = vld [vmem:[#allocation32_spill] sm:$0xff] }
 0xb5d   :  { %v10388_v18 = vpop.eup %10387 }
 0xb5e   :  { %10389 = vrcp.f32 %v3517_v21  ;;  %v3524_v8 = vadd.f32 1.0, %v10388_v18  ;;  %v16042_v18 = vld [vmem:[#allocation16_spill] sm:$0xff] }
 0xb60   :  { %10391 = vrcp.f32 %v3524_v8  ;;  %v16043_v8 = vld [vmem:[#allocation17_spill] sm:$0xff] }
 0xb6b   :  { %v10390_v44 = vpop.eup %10389 }
 0xb6c   :  { %v3527_v50 = vmul.f32 %v10390_v44, %v3508_v37  ;;  %v16044_v37 = vld [vmem:[#allocation33_spill] sm:$0xff]  ;;  %v16045_v44 = vld [vmem:[#allocation43_spill] sm:$0xff] }
 0xb6d   :  { %v10392_v58 = vpop.eup %10391 }
 0xb6e   :  { %v3528_v15 = vadd.f32 %v3527_v50, %v1760_v13  ;;  %v3530_v56 = vsub.f32 1.0, %v10392_v58  ;;  %v3532_v39 = vmul.f32 %v10392_v58, %v12998_v52  ;;  %v16037_v52 = vld [vmem:[#allocation23_spill] sm:$0xff]  ;;  %v16047_v13 = vld [vmem:[#allocation14_spill] sm:$0xff] }
 0xb70   :  { %10393 = vtanh.f32 %v3528_v15 }
 0xb7d   :  { %v10394_v40 = vpop.eup %10393 }
 0xb7e   :  { %v3531_v57 = vmul.f32 %v10394_v40, %v3530_v56 }
 0xb80   :  { %v13088_v43 = vadd.f32 %v3532_v39, %v3531_v57 }
 0xb82   :  { %v3534_v21 = vpack.c.bf16 %v13088_v43, %v13088_v43 }
 0xb84   :  { %3568 = vmatmul.mubr.bf16.vlgmr.msra.gmra.mxu0 %v3534_v21  ;;  %9189 = vmatmul.mubr.bf16.vlgmr.msra.gmra.mxu1 %v3534_v21 }
 0xb85   :  { %3617 = vmatpush1.bf16.msra.mxu0 %v12652_v10  ;;  %9193 = vmatpush3.bf16.msra.mxu1 %v12657_v20 }
 0xb86   :  { %3618 = vmatprep.subr.bf16.mxu0 %v12662_v26  ;;  %9194 = vmatprep.subr.bf16.mxu1 %v15900_v61 }
 0xb87   :  { %3648 = vmatprep.mubr.bf16.mxu0 %v15901_v2  ;;  %9208 = vmatprep.mubr.msk.bf16.mxu1 %vm10796_vm0, %v15900_v61 }
 0xb89   :  { %3619 = vmatpush1.bf16.msra.mxu0 %v12668_v33  ;;  %9195 = vmatpush3.bf16.msra.mxu1 %v12674_v48 }
 0xb8a   :  { %3620 = vmatprep.subr.bf16.mxu0 %v12680_v3  ;;  %9196 = vmatprep.subr.bf16.mxu1 %v15900_v61 }
 0xb8d   :  { %3621 = vmatpush1.bf16.msra.mxu0 %v12690_v54  ;;  %9197 = vmatpush3.bf16.msra.mxu1 %v12696_v55 }
 0xb8e   :  { %3622 = vmatprep.subr.bf16.mxu0 %v12702_v53  ;;  %9198 = vmatprep.subr.bf16.mxu1 %v15900_v61 }
 0xb91   :  { %3623 = vmatpush1.bf16.msra.mxu0 %v12709_v51  ;;  %9199 = vmatpush3.bf16.msra.mxu1 %v12715_v62 }
 0xb92   :  { %3624 = vmatprep.subr.bf16.mxu0 %v12721_v32  ;;  %9200 = vmatprep.subr.bf16.mxu1 %v15900_v61 }
 0xb95   :  { %3625 = vmatpush1.bf16.msra.mxu0 %v12728_v14  ;;  %9201 = vmatpush3.bf16.msra.mxu1 %v12734_v49 }
 0xb96   :  { %3626 = vmatprep.subr.bf16.mxu0 %v12740_v42  ;;  %9202 = vmatprep.subr.bf16.mxu1 %v15900_v61 }
 0xb99   :  { %3627 = vmatpush1.bf16.msra.mxu0 %v12747_v19  ;;  %9203 = vmatpush3.bf16.msra.mxu1 %v12753_v24 }
 0xb9a   :  { %3628 = vmatprep.subr.bf16.mxu0 %v12759_v27  ;;  %9204 = vmatprep.subr.bf16.mxu1 %v15900_v61 }
 0xb9d   :  { %3629 = vmatpush1.bf16.msra.mxu0 %v12766_v28  ;;  %9205 = vmatpush3.bf16.msra.mxu1 %v12772_v29 }
 0xb9e   :  { %3630 = vmatprep.subr.bf16.mxu0 %v12778_v12  ;;  %9206 = vmatprep.subr.bf16.mxu1 %v15900_v61 }
 0xba1   :  { %3631 = vmatpush1.bf16.msra.mxu0 %v12785_v16  ;;  %9207 = vmatpush3.bf16.msra.mxu1 %v12791_v0 }
 0xba2   :  { %3719 = vmatprep.subr.bf16.mxu0 %v12806_v45  ;;  %9212 = vmatprep.subr.bf16.mxu1 %v15900_v61 }
 0xba4   :  { %3649 = vmatmul.mubr.bf16.vlgmr.msra.gmra.mxu0 %v3534_v21  ;;  %9209 = vmatmul.mubr.bf16.vlgmr.msra.gmra.mxu1 %v3534_v21 }
 0xba5   :  { %3720 = vmatpush1.bf16.msra.mxu0 %v12812_v46  ;;  %9213 = vmatpush3.bf16.msra.mxu1 %v12817_v47 }
 0xba6   :  { %3721 = vmatprep.subr.bf16.mxu0 %v12824_v9  ;;  %9214 = vmatprep.subr.bf16.mxu1 %v15900_v61 }
 0xba7   :  { %3751 = vmatprep.mubr.bf16.mxu0 %v15901_v2  ;;  %9228 = vmatprep.mubr.msk.bf16.mxu1 %vm10796_vm0, %v15900_v61 }
 0xba9   :  { %3722 = vmatpush1.bf16.msra.mxu0 %v12830_v59  ;;  %9215 = vmatpush3.bf16.msra.mxu1 %v12835_v11 }
 0xbaa   :  { %3723 = vmatprep.subr.bf16.mxu0 %v12843_v25  ;;  %9216 = vmatprep.subr.bf16.mxu1 %v15900_v61 }
 0xbad   :  { %3724 = vmatpush1.bf16.msra.mxu0 %v12849_v6  ;;  %9217 = vmatpush3.bf16.msra.mxu1 %v12854_v41 }
 0xbae   :  { %3725 = vmatprep.subr.bf16.mxu0 %v12862_v60  ;;  %9218 = vmatprep.subr.bf16.mxu1 %v15900_v61 }
 0xbb1   :  { %3726 = vmatpush1.bf16.msra.mxu0 %v12868_v4  ;;  %9219 = vmatpush3.bf16.msra.mxu1 %v12873_v7 }
 0xbb2   :  { %3727 = vmatprep.subr.bf16.mxu0 %v12881_v34  ;;  %9220 = vmatprep.subr.bf16.mxu1 %v15900_v61 }
 0xbb5   :  { %3728 = vmatpush1.bf16.msra.mxu0 %v12886_v38  ;;  %9221 = vmatpush3.bf16.msra.mxu1 %v16037_v52 }
 0xbb6   :  { %3729 = vmatprep.subr.bf16.mxu0 %v16038_v30  ;;  %9222 = vmatprep.subr.bf16.mxu1 %v15900_v61 }
 0xbb9   :  { %3730 = vmatpush1.bf16.msra.mxu0 %v16039_v36  ;;  %9223 = vmatpush3.bf16.msra.mxu1 %v16040_v5 }
 0xbba   :  { %3731 = vmatprep.subr.bf16.mxu0 %v16041_v17  ;;  %9224 = vmatprep.subr.bf16.mxu1 %v15900_v61 }
 0xbbd   :  { %3732 = vmatpush1.bf16.msra.mxu0 %v16042_v18  ;;  %9225 = vmatpush3.bf16.msra.mxu1 %v16043_v8  ;;  %v16052_v18 = vld [vmem:[#allocation44_spill] sm:$0xff] }
 0xbbe   :  { %3733 = vmatprep.subr.bf16.mxu0 %v16044_v37  ;;  %9226 = vmatprep.subr.bf16.mxu1 %v15900_v61 }
 0xbc1   :  { %3734 = vmatpush1.bf16.msra.mxu0 %v16045_v44  ;;  %9227 = vmatpush3.bf16.msra.mxu1 %v16046_v22  ;;  %v16051_v44 = vld [vmem:[#allocation29_spill] sm:$0xff] }
 0xbc2   :  { %3800 = vmatprep.subr.bf16.mxu0 %v16047_v13  ;;  %9232 = vmatprep.subr.bf16.mxu1 %v15900_v61  ;;  %v1903_v22 = vadd.f32 %v16052_v18, %v16051_v44 }
 0xc44   :  { %v13162_v50 = vpop.f32.mrf.mxu0  ;;  %v13164_v15 = vpop.f32.mrf.mxu1 }
 0xc45   :  { %16048 = vst [vmem:[#allocation5_spill] sm:$0xff] %v13162_v50  ;;  %16049 = vst [vmem:[#allocation4_spill] sm:$0xff] %v13164_v15 }
 0xc46   :  { %v13166_v58 = vpop.f32.mrf.mxu0  ;;  %v9190_v56 = vpop.f32.mrf.mxu1 }
 0xc47   :  { %16050 = vst [vmem:[#allocation6_spill] sm:$0xff] %v13166_v58 }
 0xc48   :  { %v3573_v40 = vpop.f32.mrf.mxu0  ;;  %v3613_v57 = vpop.f32.mrf.mxu1 }
 0xc49   :  { %v16053_v57 = vld [vmem:[#allocation46_spill] sm:$0xff] }
 0xc4a   :  { %v3574_v39 = vpop.f32.mrf.mxu0  ;;  %v9191_v21 = vpop.f32.mrf.mxu1 }
 0xc4b   :  { %v1905_v39 = vadd.f32 %v16053_v57, %v12982_v63 }
 0xc64   :  { %v3650_v37 = vpop.f32.mrf.mxu0  ;;  %v3691_v8 = vpop.f32.mrf.mxu1 }
 0xc65   :  { %v3651_v13 = vadd.f32 %v3650_v37, %v16034_v35 }
 0xc66   :  { %v3652_v17 = vpop.f32.mrf.mxu0  ;;  %v9210_v5 = vpop.f32.mrf.mxu1 }
 0xc67   :  { %v3697_v36 = vadd.f32 %v3651_v13, %v1903_v22  ;;  %v3653_v58 = vadd.f32 %v3652_v17, %v12979_v1  ;;  %v3692_v22 = vadd.f32 %v3691_v8, %v12990_v31  ;;  %v16069_v8 = vld [vmem:[#allocation29_spill] sm:$0xff] }
 0xc68   :  { %v3654_v50 = vpop.f32.mrf.mxu0  ;;  %v3694_v30 = vpop.f32.mrf.mxu1 }
 0xc69   :  { %v7977_v15 = vmul.f32 -1.442695, %v3697_v36  ;;  %v3704_v21 = vadd.f32 %v3653_v58, %v1905_v39  ;;  %v16054_v36 = vld [vmem:[#allocation45_spill] sm:$0xff]  ;;  %v16070_v39 = vld [vmem:[#allocation18_spill] sm:$0xff] }
 0xc6a   :  { %v3655_v56 = vpop.f32.mrf.mxu0  ;;  %v9211_v40 = vpop.f32.mrf.mxu1  ;;  %v1944_v17 = vadd.f32 %v16054_v36, %v12993_v23 }
 0xc6b   :  { %10395 = vpow2.f32 %v7977_v15  ;;  %v7978_v52 = vmul.f32 -1.442695, %v3704_v21  ;;  %v2087_v21 = vadd.f32 %v16070_v39, %v16069_v8 }
 0xc6d   :  { %10397 = vpow2.f32 %v7978_v52 }
 0xc78   :  { %v10396_v18 = vpop.eup %10395 }
 0xc79   :  { %v3701_v44 = vadd.f32 1.0, %v10396_v18 }
 0xc7a   :  { %v10398_v37 = vpop.eup %10397 }
 0xc7b   :  { %10399 = vrcp.f32 %v3701_v44  ;;  %v3708_v5 = vadd.f32 1.0, %v10398_v37 }
 0xc7d   :  { %10401 = vrcp.f32 %v3708_v5 }
 0xc88   :  { %v10400_v30 = vpop.eup %10399 }
 0xc89   :  { %v3711_v50 = vmul.f32 %v10400_v30, %v3692_v22 }
 0xc8a   :  { %v10402_v56 = vpop.eup %10401 }
 0xc8b   :  { %v3712_v13 = vadd.f32 %v3711_v50, %v1944_v17  ;;  %v3714_v15 = vsub.f32 1.0, %v10402_v56  ;;  %v3716_v52 = vmul.f32 %v10402_v56, %v13088_v43 }
 0xc8d   :  { %10403 = vtanh.f32 %v3712_v13 }
 0xc9a   :  { %v10404_v58 = vpop.eup %10403 }
 0xc9b   :  { %v3715_v40 = vmul.f32 %v10404_v58, %v3714_v15  ;;  %v16071_v15 = vld [vmem:[#allocation20_spill] sm:$0xff] }
 0xc9c   :  { %v2089_v58 = vadd.f32 %v16071_v15, %v12982_v63  ;;  %v13308_v15 = vld [vmem:[%s15696_s3 + $0x158] ss:$12 sps:$4 sm:$0xff]  }
 0xc9d   :  { %v13178_v57 = vadd.f32 %v3716_v52, %v3715_v40 }
 0xc9f   :  { %v3718_v44 = vpack.c.bf16 %v13178_v57, %v13178_v57 }
 0xca1   :  { %3752 = vmatmul.mubr.bf16.vlgmr.msra.gmra.mxu0 %v3718_v44  ;;  %9229 = vmatmul.mubr.bf16.vlgmr.msra.gmra.mxu1 %v3718_v44 }
 0xca2   :  { %3801 = vmatpush1.bf16.msra.mxu0 %v12652_v10  ;;  %9233 = vmatpush3.bf16.msra.mxu1 %v12657_v20  ;;  %v16055_v10 = vld [vmem:[#allocation23_spill] sm:$0xff]  ;;  %v16056_v20 = vld [vmem:[#allocation24_spill] sm:$0xff] }
 0xca3   :  { %3802 = vmatprep.subr.bf16.mxu0 %v12662_v26  ;;  %9234 = vmatprep.subr.bf16.mxu1 %v15900_v61  ;;  %v16057_v26 = vld [vmem:[#allocation25_spill] sm:$0xff] }
 0xca4   :  { %3832 = vmatprep.mubr.bf16.mxu0 %v15901_v2  ;;  %9248 = vmatprep.mubr.msk.bf16.mxu1 %vm10796_vm0, %v15900_v61 }
 0xca6   :  { %3803 = vmatpush1.bf16.msra.mxu0 %v12668_v33  ;;  %9235 = vmatpush3.bf16.msra.mxu1 %v12674_v48  ;;  %v16058_v33 = vld [vmem:[#allocation38_spill] sm:$0xff]  ;;  %v16059_v48 = vld [vmem:[#allocation32_spill] sm:$0xff] }
 0xca7   :  { %3804 = vmatprep.subr.bf16.mxu0 %v12680_v3  ;;  %9236 = vmatprep.subr.bf16.mxu1 %v15900_v61  ;;  %v16060_v3 = vld [vmem:[#allocation16_spill] sm:$0xff] }
 0xcaa   :  { %3805 = vmatpush1.bf16.msra.mxu0 %v12690_v54  ;;  %9237 = vmatpush3.bf16.msra.mxu1 %v12696_v55  ;;  %v16061_v54 = vld [vmem:[#allocation17_spill] sm:$0xff] }
 0xcab   :  { %3806 = vmatprep.subr.bf16.mxu0 %v12702_v53  ;;  %9238 = vmatprep.subr.bf16.mxu1 %v15900_v61  ;;  %v16062_v55 = vld [vmem:[#allocation33_spill] sm:$0xff]  ;;  %v16063_v53 = vld [vmem:[#allocation43_spill] sm:$0xff] }
 0xcae   :  { %3807 = vmatpush1.bf16.msra.mxu0 %v12709_v51  ;;  %9239 = vmatpush3.bf16.msra.mxu1 %v12715_v62  ;;  %v16064_v51 = vld [vmem:[#allocation39_spill] sm:$0xff] }
 0xcaf   :  { %3808 = vmatprep.subr.bf16.mxu0 %v12721_v32  ;;  %9240 = vmatprep.subr.bf16.mxu1 %v15900_v61  ;;  %v13253_v62 = vld [vmem:[%s15696_s3 + $0x16c] ss:$12 sps:$4 sm:$0xff]  }
 0xcb0   :  { %16065 = vst [vmem:[#allocation30_spill] sm:$0xff] %v13253_v62 }
 0xcb2   :  { %3809 = vmatpush1.bf16.msra.mxu0 %v12728_v14  ;;  %9241 = vmatpush3.bf16.msra.mxu1 %v12734_v49 }
 0xcb3   :  { %3810 = vmatprep.subr.bf16.mxu0 %v12740_v42  ;;  %9242 = vmatprep.subr.bf16.mxu1 %v15900_v61 }
 0xcb6   :  { %3811 = vmatpush1.bf16.msra.mxu0 %v12747_v19  ;;  %9243 = vmatpush3.bf16.msra.mxu1 %v12753_v24 }
 0xcb7   :  { %3812 = vmatprep.subr.bf16.mxu0 %v12759_v27  ;;  %9244 = vmatprep.subr.bf16.mxu1 %v15900_v61 }
 0xcba   :  { %3813 = vmatpush1.bf16.msra.mxu0 %v12766_v28  ;;  %9245 = vmatpush3.bf16.msra.mxu1 %v12772_v29 }
 0xcbb   :  { %3814 = vmatprep.subr.bf16.mxu0 %v12778_v12  ;;  %9246 = vmatprep.subr.bf16.mxu1 %v15900_v61 }
 0xcbe   :  { %3815 = vmatpush1.bf16.msra.mxu0 %v12785_v16  ;;  %9247 = vmatpush3.bf16.msra.mxu1 %v12791_v0 }
 0xcbf   :  { %3903 = vmatprep.subr.bf16.mxu0 %v12806_v45  ;;  %9252 = vmatprep.subr.bf16.mxu1 %v15900_v61 }
 0xcc1   :  { %3833 = vmatmul.mubr.bf16.vlgmr.msra.gmra.mxu0 %v3718_v44  ;;  %9249 = vmatmul.mubr.bf16.vlgmr.msra.gmra.mxu1 %v3718_v44 }
 0xcc2   :  { %3904 = vmatpush1.bf16.msra.mxu0 %v12812_v46  ;;  %9253 = vmatpush3.bf16.msra.mxu1 %v12817_v47 }
 0xcc3   :  { %3905 = vmatprep.subr.bf16.mxu0 %v12824_v9  ;;  %9254 = vmatprep.subr.bf16.mxu1 %v15900_v61 }
 0xcc4   :  { %3935 = vmatprep.mubr.bf16.mxu0 %v15901_v2  ;;  %9268 = vmatprep.mubr.msk.bf16.mxu1 %vm10796_vm0, %v15900_v61 }
 0xcc6   :  { %3906 = vmatpush1.bf16.msra.mxu0 %v12830_v59  ;;  %9255 = vmatpush3.bf16.msra.mxu1 %v12835_v11 }
 0xcc7   :  { %3907 = vmatprep.subr.bf16.mxu0 %v12843_v25  ;;  %9256 = vmatprep.subr.bf16.mxu1 %v15900_v61 }
 0xcca   :  { %3908 = vmatpush1.bf16.msra.mxu0 %v12849_v6  ;;  %9257 = vmatpush3.bf16.msra.mxu1 %v12854_v41 }
 0xccb   :  { %3909 = vmatprep.subr.bf16.mxu0 %v12862_v60  ;;  %9258 = vmatprep.subr.bf16.mxu1 %v15900_v61 }
 0xcce   :  { %3910 = vmatpush1.bf16.msra.mxu0 %v12868_v4  ;;  %9259 = vmatpush3.bf16.msra.mxu1 %v12873_v7 }
 0xccf   :  { %3911 = vmatprep.subr.bf16.mxu0 %v12881_v34  ;;  %9260 = vmatprep.subr.bf16.mxu1 %v15900_v61 }
 0xcd2   :  { %3912 = vmatpush1.bf16.msra.mxu0 %v12886_v38  ;;  %9261 = vmatpush3.bf16.msra.mxu1 %v16055_v10 }
 0xcd3   :  { %3913 = vmatprep.subr.bf16.mxu0 %v16056_v20  ;;  %9262 = vmatprep.subr.bf16.mxu1 %v15900_v61 }
 0xcd6   :  { %3914 = vmatpush1.bf16.msra.mxu0 %v16057_v26  ;;  %9263 = vmatpush3.bf16.msra.mxu1 %v16058_v33 }
 0xcd7   :  { %3915 = vmatprep.subr.bf16.mxu0 %v16059_v48  ;;  %9264 = vmatprep.subr.bf16.mxu1 %v15900_v61 }
 0xcda   :  { %3916 = vmatpush1.bf16.msra.mxu0 %v16060_v3  ;;  %9265 = vmatpush3.bf16.msra.mxu1 %v16061_v54 }
 0xcdb   :  { %3917 = vmatprep.subr.bf16.mxu0 %v16062_v55  ;;  %9266 = vmatprep.subr.bf16.mxu1 %v15900_v61 }
 0xcde   :  { %3918 = vmatpush1.bf16.msra.mxu0 %v16063_v53  ;;  %9267 = vmatpush3.bf16.msra.mxu1 %v16064_v51 }
 0xcdf   :  { %3984 = vmatprep.subr.bf16.mxu0 %v13253_v62  ;;  %9272 = vmatprep.subr.bf16.mxu1 %v15900_v61 }
 0xd61   :  { %v13257_v32 = vpop.f32.mrf.mxu0  ;;  %v13259_v14 = vpop.f32.mrf.mxu1 }
 0xd62   :  { %16066 = vst [vmem:[#allocation8_spill] sm:$0xff] %v13257_v32  ;;  %16067 = vst [vmem:[#allocation7_spill] sm:$0xff] %v13259_v14 }
 0xd63   :  { %v13261_v49 = vpop.f32.mrf.mxu0  ;;  %v9230_v42 = vpop.f32.mrf.mxu1 }
 0xd64   :  { %16068 = vst [vmem:[#allocation14_spill] sm:$0xff] %v13261_v49 }
 0xd65   :  { %v3757_v19 = vpop.f32.mrf.mxu0  ;;  %v3797_v24 = vpop.f32.mrf.mxu1 }
 0xd67   :  { %v3758_v27 = vpop.f32.mrf.mxu0  ;;  %v9231_v28 = vpop.f32.mrf.mxu1 }
 0xd81   :  { %v3834_v29 = vpop.f32.mrf.mxu0  ;;  %v3875_v43 = vpop.f32.mrf.mxu1 }
 0xd82   :  { %v3835_v18 = vadd.f32 %v3834_v29, %v16034_v35  ;;  %v3876_v27 = vadd.f32 %v3875_v43, %v12990_v31  ;;  %v16072_v29 = vld [vmem:[#allocation19_spill] sm:$0xff] }
 0xd83   :  { %v3836_v37 = vpop.f32.mrf.mxu0  ;;  %v9250_v5 = vpop.f32.mrf.mxu1  ;;  %v2128_v39 = vadd.f32 %v16072_v29, %v12993_v23  ;;  %v13280_v43 = vld [vmem:[%s15696_s3 + $0x168] ss:$12 sps:$4 sm:$0xff]  }
 0xd84   :  { %v3881_v22 = vadd.f32 %v3835_v18, %v2087_v21  ;;  %v3837_v50 = vadd.f32 %v3836_v37, %v12979_v1  ;;  %v13371_v29 = vld [vmem:[%s15696_s3 + $0xf4] ss:$12 sps:$4 sm:$0xff]  }
 0xd85   :  { %v3838_v30 = vpop.f32.mrf.mxu0  ;;  %v3878_v36 = vpop.f32.mrf.mxu1 }
 0xd86   :  { %v7979_v17 = vmul.f32 -1.442695, %v3881_v22  ;;  %v3888_v40 = vadd.f32 %v3837_v50, %v2089_v58  ;;  %v13314_v58 = vld [vmem:[%s15696_s3 + $0x13c] ss:$12 sps:$4 sm:$0xff]  }
 0xd87   :  { %v3839_v13 = vpop.f32.mrf.mxu0  ;;  %v9251_v56 = vpop.f32.mrf.mxu1 }
 0xd88   :  { %10405 = vpow2.f32 %v7979_v17  ;;  %v7980_v52 = vmul.f32 -1.442695, %v3888_v40  ;;  %v13286_v13 = vld [vmem:[%s15696_s3 + $0x170] ss:$12 sps:$4 sm:$0xff]   ;;  %v13321_v40 = vld [vmem:[%s15696_s3 + $0x138] ss:$12 sps:$4 sm:$0xff]  }
 0xd89   :  { %v13302_v56 = vld [vmem:[%s15696_s3 + $0x150] ss:$12 sps:$4 sm:$0xff]  }
 0xd8a   :  { %10407 = vpow2.f32 %v7980_v52  ;;  %v13327_v52 = vld [vmem:[%s15696_s3 + $0x140] ss:$12 sps:$4 sm:$0xff]  }
 0xd95   :  { %v10406_v44 = vpop.eup %10405 }
 0xd96   :  { %v3885_v42 = vadd.f32 1.0, %v10406_v44  ;;  %v13333_v44 = vld [vmem:[%s15696_s3 + $0x124] ss:$12 sps:$4 sm:$0xff]  }
 0xd97   :  { %v10408_v19 = vpop.eup %10407 }
 0xd98   :  { %10409 = vrcp.f32 %v3885_v42  ;;  %v3892_v24 = vadd.f32 1.0, %v10408_v19  ;;  %v13340_v42 = vld [vmem:[%s15696_s3 + $0x120] ss:$12 sps:$4 sm:$0xff]   ;;  %v13346_v19 = vld [vmem:[%s15696_s3 + $0x128] ss:$12 sps:$4 sm:$0xff]  }
 0xd9a   :  { %10411 = vrcp.f32 %v3892_v24  ;;  %v13352_v24 = vld [vmem:[%s15696_s3 + $0x10c] ss:$12 sps:$4 sm:$0xff]  }
 0xda5   :  { %v10410_v28 = vpop.eup %10409 }
 0xda6   :  { %v3895_v21 = vmul.f32 %v10410_v28, %v3876_v27  ;;  %v13359_v27 = vld [vmem:[%s15696_s3 + $0x108] ss:$12 sps:$4 sm:$0xff]   ;;  %v13365_v28 = vld [vmem:[%s15696_s3 + $0x110] ss:$12 sps:$4 sm:$0xff]  }
 0xda7   :  { %v10412_v37 = vpop.eup %10411 }
 0xda8   :  { %v3896_v18 = vadd.f32 %v3895_v21, %v2128_v39  ;;  %v3898_v5 = vsub.f32 1.0, %v10412_v37  ;;  %v3900_v36 = vmul.f32 %v10412_v37, %v13178_v57  ;;  %v13292_v57 = vld [vmem:[%s15696_s3 + $0x154] ss:$12 sps:$4 sm:$0xff]   ;;  %v13378_v39 = vld [vmem:[%s15696_s3 + $0xf0] ss:$12 sps:$4 sm:$0xff]  }
 0xda9   :  { %v13384_v21 = vld [vmem:[%s15696_s3 + $0xf8] ss:$12 sps:$4 sm:$0xff]  }
 0xdaa   :  { %10413 = vtanh.f32 %v3896_v18  ;;  %v13390_v18 = vld [vmem:[%s15696_s3 + $0xdc] ss:$12 sps:$4 sm:$0xff]   ;;  %v13397_v37 = vld [vmem:[%s15696_s3 + $0xd8] ss:$12 sps:$4 sm:$0xff]  }
 0xdb7   :  { %v10414_v22 = vpop.eup %10413 }
 0xdb8   :  { %v3899_v30 = vmul.f32 %v10414_v22, %v3898_v5  ;;  %v13403_v5 = vld [vmem:[%s15696_s3 + $0xe0] ss:$12 sps:$4 sm:$0xff]  }
 0xdba   :  { %v13273_v17 = vadd.f32 %v3900_v36, %v3899_v30 }
 0xdbc   :  { %v3902_v50 = vpack.c.bf16 %v13273_v17, %v13273_v17 }
 0xdbe   :  { %3936 = vmatmul.mubr.bf16.vlgmr.msra.gmra.mxu0 %v3902_v50  ;;  %9269 = vmatmul.mubr.bf16.vlgmr.msra.gmra.mxu1 %v3902_v50 }
 0xdbf   :  { %3985 = vmatpush1.bf16.msra.mxu0 %v13280_v43  ;;  %9273 = vmatpush3.bf16.msra.mxu1 %v13286_v13 }
 0xdc0   :  { %3986 = vmatprep.subr.bf16.mxu0 %v13292_v57  ;;  %9274 = vmatprep.subr.bf16.mxu1 %v15900_v61 }
 0xdc1   :  { %4016 = vmatprep.mubr.bf16.mxu0 %v15901_v2  ;;  %9288 = vmatprep.mubr.msk.bf16.mxu1 %vm10796_vm0, %v15900_v61 }
 0xdc3   :  { %3987 = vmatpush1.bf16.msra.mxu0 %v13302_v56  ;;  %9275 = vmatpush3.bf16.msra.mxu1 %v13308_v15 }
 0xdc4   :  { %3988 = vmatprep.subr.bf16.mxu0 %v13314_v58  ;;  %9276 = vmatprep.subr.bf16.mxu1 %v15900_v61 }
 0xdc7   :  { %3989 = vmatpush1.bf16.msra.mxu0 %v13321_v40  ;;  %9277 = vmatpush3.bf16.msra.mxu1 %v13327_v52 }
 0xdc8   :  { %3990 = vmatprep.subr.bf16.mxu0 %v13333_v44  ;;  %9278 = vmatprep.subr.bf16.mxu1 %v15900_v61 }
 0xdcb   :  { %3991 = vmatpush1.bf16.msra.mxu0 %v13340_v42  ;;  %9279 = vmatpush3.bf16.msra.mxu1 %v13346_v19 }
 0xdcc   :  { %3992 = vmatprep.subr.bf16.mxu0 %v13352_v24  ;;  %9280 = vmatprep.subr.bf16.mxu1 %v15900_v61 }
 0xdcf   :  { %3993 = vmatpush1.bf16.msra.mxu0 %v13359_v27  ;;  %9281 = vmatpush3.bf16.msra.mxu1 %v13365_v28 }
 0xdd0   :  { %3994 = vmatprep.subr.bf16.mxu0 %v13371_v29  ;;  %9282 = vmatprep.subr.bf16.mxu1 %v15900_v61 }
 0xdd3   :  { %3995 = vmatpush1.bf16.msra.mxu0 %v13378_v39  ;;  %9283 = vmatpush3.bf16.msra.mxu1 %v13384_v21 }
 0xdd4   :  { %3996 = vmatprep.subr.bf16.mxu0 %v13390_v18  ;;  %9284 = vmatprep.subr.bf16.mxu1 %v15900_v61 }
 0xdd7   :  { %3997 = vmatpush1.bf16.msra.mxu0 %v13397_v37  ;;  %9285 = vmatpush3.bf16.msra.mxu1 %v13403_v5 }
 0xdd8   :  { %3998 = vmatprep.subr.bf16.mxu0 %v12778_v12  ;;  %9286 = vmatprep.subr.bf16.mxu1 %v15900_v61 }
 0xddb   :  { %3999 = vmatpush1.bf16.msra.mxu0 %v12785_v16  ;;  %9287 = vmatpush3.bf16.msra.mxu1 %v12791_v0 }
 0xddc   :  { %4087 = vmatprep.subr.bf16.mxu0 %v12806_v45  ;;  %9292 = vmatprep.subr.bf16.mxu1 %v15900_v61 }
 0xdde   :  { %4017 = vmatmul.mubr.bf16.vlgmr.msra.gmra.mxu0 %v3902_v50  ;;  %9289 = vmatmul.mubr.bf16.vlgmr.msra.gmra.mxu1 %v3902_v50 }
 0xddf   :  { %4088 = vmatpush1.bf16.msra.mxu0 %v12812_v46  ;;  %9293 = vmatpush3.bf16.msra.mxu1 %v12817_v47 }
 0xde0   :  { %4089 = vmatprep.subr.bf16.mxu0 %v12824_v9  ;;  %9294 = vmatprep.subr.bf16.mxu1 %v15900_v61 }
 0xde1   :  { %4119 = vmatprep.mubr.bf16.mxu0 %v15901_v2  ;;  %9308 = vmatprep.mubr.msk.bf16.mxu1 %vm10796_vm0, %v15900_v61 }
 0xde3   :  { %4090 = vmatpush1.bf16.msra.mxu0 %v12830_v59  ;;  %9295 = vmatpush3.bf16.msra.mxu1 %v12835_v11 }
 0xde4   :  { %4091 = vmatprep.subr.bf16.mxu0 %v12843_v25  ;;  %9296 = vmatprep.subr.bf16.mxu1 %v15900_v61 }
 0xde7   :  { %4092 = vmatpush1.bf16.msra.mxu0 %v12849_v6  ;;  %9297 = vmatpush3.bf16.msra.mxu1 %v12854_v41  ;;  %v16076_v6 = vld [vmem:[#allocation34_spill] sm:$0xff] }
 0xde8   :  { %4093 = vmatprep.subr.bf16.mxu0 %v12862_v60  ;;  %9298 = vmatprep.subr.bf16.mxu1 %v15900_v61  ;;  %v2271_v41 = vadd.f32 %v16076_v6, %v16069_v8 }
 0xdeb   :  { %4094 = vmatpush1.bf16.msra.mxu0 %v12868_v4  ;;  %9299 = vmatpush3.bf16.msra.mxu1 %v12873_v7 }
 0xdec   :  { %4095 = vmatprep.subr.bf16.mxu0 %v12881_v34  ;;  %9300 = vmatprep.subr.bf16.mxu1 %v15900_v61 }
 0xdef   :  { %4096 = vmatpush1.bf16.msra.mxu0 %v12886_v38  ;;  %9301 = vmatpush3.bf16.msra.mxu1 %v16055_v10 }
 0xdf0   :  { %4097 = vmatprep.subr.bf16.mxu0 %v16056_v20  ;;  %9302 = vmatprep.subr.bf16.mxu1 %v15900_v61 }
 0xdf3   :  { %4098 = vmatpush1.bf16.msra.mxu0 %v16057_v26  ;;  %9303 = vmatpush3.bf16.msra.mxu1 %v16058_v33 }
 0xdf4   :  { %4099 = vmatprep.subr.bf16.mxu0 %v16059_v48  ;;  %9304 = vmatprep.subr.bf16.mxu1 %v15900_v61 }
 0xdf7   :  { %4100 = vmatpush1.bf16.msra.mxu0 %v16060_v3  ;;  %9305 = vmatpush3.bf16.msra.mxu1 %v16061_v54  ;;  %v16077_v3 = vld [vmem:[#allocation13_spill] sm:$0xff] }
 0xdf8   :  { %4101 = vmatprep.subr.bf16.mxu0 %v16062_v55  ;;  %9306 = vmatprep.subr.bf16.mxu1 %v15900_v61  ;;  %v2273_v54 = vadd.f32 %v16077_v3, %v12982_v63  ;;  %v13553_v3 = vld [vmem:[%s15697_s2 + $0x158] ss:$12 sps:$4 sm:$0xff]  }
 0xdfb   :  { %4102 = vmatpush1.bf16.msra.mxu0 %v16063_v53  ;;  %9307 = vmatpush3.bf16.msra.mxu1 %v16064_v51 }
 0xdfc   :  { %4168 = vmatprep.subr.bf16.mxu0 %v13253_v62  ;;  %9312 = vmatprep.subr.bf16.mxu1 %v15900_v61 }
 0xe7e   :  { %v13447_v12 = vpop.f32.mrf.mxu0  ;;  %v13449_v16 = vpop.f32.mrf.mxu1 }
 0xe7f   :  { %16073 = vst [vmem:[#allocation44_spill] sm:$0xff] %v13447_v12  ;;  %16074 = vst [vmem:[#allocation46_spill] sm:$0xff] %v13449_v16 }
 0xe80   :  { %v13451_v0 = vpop.f32.mrf.mxu0  ;;  %v9270_v45 = vpop.f32.mrf.mxu1 }
 0xe81   :  { %16075 = vst [vmem:[#allocation45_spill] sm:$0xff] %v13451_v0 }
 0xe82   :  { %v3941_v46 = vpop.f32.mrf.mxu0  ;;  %v3981_v47 = vpop.f32.mrf.mxu1 }
 0xe83   :  { %v16078_v46 = vld [vmem:[#allocation9_spill] sm:$0xff] }
 0xe84   :  { %v3942_v9 = vpop.f32.mrf.mxu0  ;;  %v9271_v59 = vpop.f32.mrf.mxu1  ;;  %v2312_v47 = vadd.f32 %v16078_v46, %v12993_v23  ;;  %v13616_v46 = vld [vmem:[%s15697_s2 + $0xf4] ss:$12 sps:$4 sm:$0xff]  }
 0xe85   :  { %16080 = vst [vmem:[#allocation24_spill] sm:$0xff] %v13616_v46 }
 0xe9e   :  { %v4018_v11 = vpop.f32.mrf.mxu0  ;;  %v4059_v25 = vpop.f32.mrf.mxu1 }
 0xe9f   :  { %v4019_v60 = vadd.f32 %v4018_v11, %v16034_v35  ;;  %v4060_v50 = vadd.f32 %v4059_v25, %v12990_v31  ;;  %v13506_v25 = vld [vmem:[%s15696_s3 + $0xc0] ss:$12 sps:$4 sm:$0xff]  }
 0xea0   :  { %v4020_v4 = vpop.f32.mrf.mxu0  ;;  %v9290_v7 = vpop.f32.mrf.mxu1 }
 0xea1   :  { %v4065_v34 = vadd.f32 %v4019_v60, %v2271_v41  ;;  %v4021_v26 = vadd.f32 %v4020_v4, %v12979_v1 }
 0xea2   :  { %v4022_v38 = vpop.f32.mrf.mxu0  ;;  %v4062_v10 = vpop.f32.mrf.mxu1 }
 0xea3   :  { %v7981_v20 = vmul.f32 -1.442695, %v4065_v34  ;;  %v4072_v55 = vadd.f32 %v4021_v26, %v2273_v54  ;;  %v13512_v38 = vld [vmem:[%s15696_s3 + $0xc8] ss:$12 sps:$4 sm:$0xff]   ;;  %v13518_v10 = vld [vmem:[%s15697_s2 + $0x16c] ss:$12 sps:$4 sm:$0xff]  }
 0xea4   :  { %v4023_v33 = vpop.f32.mrf.mxu0  ;;  %v9291_v48 = vpop.f32.mrf.mxu1  ;;  %v13531_v26 = vld [vmem:[%s15697_s2 + $0x170] ss:$12 sps:$4 sm:$0xff]  }
 0xea5   :  { %10415 = vpow2.f32 %v7981_v20  ;;  %v7982_v53 = vmul.f32 -1.442695, %v4072_v55  ;;  %v13525_v20 = vld [vmem:[%s15697_s2 + $0x168] ss:$12 sps:$4 sm:$0xff]   ;;  %v13547_v48 = vld [vmem:[%s15697_s2 + $0x150] ss:$12 sps:$4 sm:$0xff]  }
 0xea6   :  { %v13537_v33 = vld [vmem:[%s15697_s2 + $0x154] ss:$12 sps:$4 sm:$0xff]   ;;  %v13559_v54 = vld [vmem:[%s15697_s2 + $0x13c] ss:$12 sps:$4 sm:$0xff]   ;;  %v13566_v55 = vld [vmem:[%s15697_s2 + $0x138] ss:$12 sps:$4 sm:$0xff]  }
 0xea7   :  { %10417 = vpow2.f32 %v7982_v53  ;;  %v13572_v53 = vld [vmem:[%s15697_s2 + $0x140] ss:$12 sps:$4 sm:$0xff]  }
 0xeb2   :  { %v10416_v51 = vpop.eup %10415 }
 0xeb3   :  { %v4069_v22 = vadd.f32 1.0, %v10416_v51  ;;  %v13578_v51 = vld [vmem:[%s15697_s2 + $0x124] ss:$12 sps:$4 sm:$0xff]  }
 0xeb4   :  { %v10418_v30 = vpop.eup %10417 }
 0xeb5   :  { %10419 = vrcp.f32 %v4069_v22  ;;  %v4076_v36 = vadd.f32 1.0, %v10418_v30  ;;  %v13585_v22 = vld [vmem:[%s15697_s2 + $0x120] ss:$12 sps:$4 sm:$0xff]   ;;  %v13591_v30 = vld [vmem:[%s15697_s2 + $0x128] ss:$12 sps:$4 sm:$0xff]  }
 0xeb7   :  { %10421 = vrcp.f32 %v4076_v36  ;;  %v13597_v36 = vld [vmem:[%s15697_s2 + $0x10c] ss:$12 sps:$4 sm:$0xff]  }
 0xec2   :  { %v10420_v45 = vpop.eup %10419 }
 0xec3   :  { %v4079_v9 = vmul.f32 %v10420_v45, %v4060_v50  ;;  %v13604_v50 = vld [vmem:[%s15697_s2 + $0x108] ss:$12 sps:$4 sm:$0xff]   ;;  %v13610_v45 = vld [vmem:[%s15697_s2 + $0x110] ss:$12 sps:$4 sm:$0xff]  }
 0xec4   :  { %v10422_v11 = vpop.eup %10421  ;;  %16079 = vst [vmem:[#allocation23_spill] sm:$0xff] %v13610_v45 }
 0xec5   :  { %v4080_v59 = vadd.f32 %v4079_v9, %v2312_v47  ;;  %v4082_v6 = vsub.f32 1.0, %v10422_v11  ;;  %v4084_v4 = vmul.f32 %v10422_v11, %v13273_v17  ;;  %v13499_v17 = vld [vmem:[%s15696_s3 + $0xc4] ss:$12 sps:$4 sm:$0xff]  }
 0xec6   :  { %v13623_v47 = vld [vmem:[%s15697_s2 + $0xf0] ss:$12 sps:$4 sm:$0xff]   ;;  %v13629_v9 = vld [vmem:[%s15697_s2 + $0xf8] ss:$12 sps:$4 sm:$0xff]  }
 0xec7   :  { %10423 = vtanh.f32 %v4080_v59  ;;  %16081 = vst [vmem:[#allocation25_spill] sm:$0xff] %v13623_v47  ;;  %16082 = vst [vmem:[#allocation38_spill] sm:$0xff] %v13629_v9  ;;  %v13635_v59 = vld [vmem:[%s15697_s2 + $0xdc] ss:$12 sps:$4 sm:$0xff]   ;;  %v13642_v11 = vld [vmem:[%s15697_s2 + $0xd8] ss:$12 sps:$4 sm:$0xff]  }
 0xec8   :  { %16083 = vst [vmem:[#allocation32_spill] sm:$0xff] %v13635_v59  ;;  %16084 = vst [vmem:[#allocation16_spill] sm:$0xff] %v13642_v11 }
 0xed4   :  { %v10424_v41 = vpop.eup %10423 }
 0xed5   :  { %v4083_v60 = vmul.f32 %v10424_v41, %v4082_v6  ;;  %v13648_v6 = vld [vmem:[%s15697_s2 + $0xe0] ss:$12 sps:$4 sm:$0xff]   ;;  %v13654_v41 = vld [vmem:[%s15697_s2 + $0xc4] ss:$12 sps:$4 sm:$0xff]  }
 0xed6   :  { %16085 = vst [vmem:[#allocation17_spill] sm:$0xff] %v13648_v6  ;;  %16086 = vst [vmem:[#allocation33_spill] sm:$0xff] %v13654_v41 }
 0xed7   :  { %v13463_v7 = vadd.f32 %v4084_v4, %v4083_v60  ;;  %v13661_v60 = vld [vmem:[%s15697_s2 + $0xc0] ss:$12 sps:$4 sm:$0xff]   ;;  %v13667_v4 = vld [vmem:[%s15697_s2 + $0xc8] ss:$12 sps:$4 sm:$0xff]  }
 0xed8   :  { %16087 = vst [vmem:[#allocation43_spill] sm:$0xff] %v13661_v60  ;;  %16088 = vst [vmem:[#allocation39_spill] sm:$0xff] %v13667_v4 }
 0xed9   :  { %v4086_v34 = vpack.c.bf16 %v13463_v7, %v13463_v7 }
 0xedb   :  { %4120 = vmatmul.mubr.bf16.vlgmr.msra.gmra.mxu0 %v4086_v34  ;;  %9309 = vmatmul.mubr.bf16.vlgmr.msra.gmra.mxu1 %v4086_v34 }
 0xedc   :  { %4169 = vmatpush1.bf16.msra.mxu0 %v13280_v43  ;;  %9313 = vmatpush3.bf16.msra.mxu1 %v13286_v13 }
 0xedd   :  { %4170 = vmatprep.subr.bf16.mxu0 %v13292_v57  ;;  %9314 = vmatprep.subr.bf16.mxu1 %v15900_v61 }
 0xede   :  { %4200 = vmatprep.mubr.bf16.mxu0 %v15901_v2  ;;  %9328 = vmatprep.mubr.msk.bf16.mxu1 %vm10796_vm0, %v15900_v61 }
 0xee0   :  { %4171 = vmatpush1.bf16.msra.mxu0 %v13302_v56  ;;  %9315 = vmatpush3.bf16.msra.mxu1 %v13308_v15 }
 0xee1   :  { %4172 = vmatprep.subr.bf16.mxu0 %v13314_v58  ;;  %9316 = vmatprep.subr.bf16.mxu1 %v15900_v61 }
 0xee4   :  { %4173 = vmatpush1.bf16.msra.mxu0 %v13321_v40  ;;  %9317 = vmatpush3.bf16.msra.mxu1 %v13327_v52 }
 0xee5   :  { %4174 = vmatprep.subr.bf16.mxu0 %v13333_v44  ;;  %9318 = vmatprep.subr.bf16.mxu1 %v15900_v61 }
 0xee8   :  { %4175 = vmatpush1.bf16.msra.mxu0 %v13340_v42  ;;  %9319 = vmatpush3.bf16.msra.mxu1 %v13346_v19 }
 0xee9   :  { %4176 = vmatprep.subr.bf16.mxu0 %v13352_v24  ;;  %9320 = vmatprep.subr.bf16.mxu1 %v15900_v61 }
 0xeec   :  { %4177 = vmatpush1.bf16.msra.mxu0 %v13359_v27  ;;  %9321 = vmatpush3.bf16.msra.mxu1 %v13365_v28 }
 0xeed   :  { %4178 = vmatprep.subr.bf16.mxu0 %v13371_v29  ;;  %9322 = vmatprep.subr.bf16.mxu1 %v15900_v61 }
 0xef0   :  { %4179 = vmatpush1.bf16.msra.mxu0 %v13378_v39  ;;  %9323 = vmatpush3.bf16.msra.mxu1 %v13384_v21 }
 0xef1   :  { %4180 = vmatprep.subr.bf16.mxu0 %v13390_v18  ;;  %9324 = vmatprep.subr.bf16.mxu1 %v15900_v61 }
 0xef4   :  { %4181 = vmatpush1.bf16.msra.mxu0 %v13397_v37  ;;  %9325 = vmatpush3.bf16.msra.mxu1 %v13403_v5 }
 0xef5   :  { %4182 = vmatprep.subr.bf16.mxu0 %v13499_v17  ;;  %9326 = vmatprep.subr.bf16.mxu1 %v15900_v61 }
 0xef8   :  { %4183 = vmatpush1.bf16.msra.mxu0 %v13506_v25  ;;  %9327 = vmatpush3.bf16.msra.mxu1 %v13512_v38 }
 0xef9   :  { %4271 = vmatprep.subr.bf16.mxu0 %v13518_v10  ;;  %9332 = vmatprep.subr.bf16.mxu1 %v15900_v61 }
 0xefb   :  { %4201 = vmatmul.mubr.bf16.vlgmr.msra.gmra.mxu0 %v4086_v34  ;;  %9329 = vmatmul.mubr.bf16.vlgmr.msra.gmra.mxu1 %v4086_v34 }
 0xefc   :  { %4272 = vmatpush1.bf16.msra.mxu0 %v13525_v20  ;;  %9333 = vmatpush3.bf16.msra.mxu1 %v13531_v26 }
 0xefd   :  { %4273 = vmatprep.subr.bf16.mxu0 %v13537_v33  ;;  %9334 = vmatprep.subr.bf16.mxu1 %v15900_v61 }
 0xefe   :  { %4303 = vmatprep.mubr.bf16.mxu0 %v15901_v2  ;;  %9348 = vmatprep.mubr.msk.bf16.mxu1 %vm10796_vm0, %v15900_v61 }
 0xf00   :  { %4274 = vmatpush1.bf16.msra.mxu0 %v13547_v48  ;;  %9335 = vmatpush3.bf16.msra.mxu1 %v13553_v3 }
 0xf01   :  { %4275 = vmatprep.subr.bf16.mxu0 %v13559_v54  ;;  %9336 = vmatprep.subr.bf16.mxu1 %v15900_v61 }
 0xf04   :  { %4276 = vmatpush1.bf16.msra.mxu0 %v13566_v55  ;;  %9337 = vmatpush3.bf16.msra.mxu1 %v13572_v53 }
 0xf05   :  { %4277 = vmatprep.subr.bf16.mxu0 %v13578_v51  ;;  %9338 = vmatprep.subr.bf16.mxu1 %v15900_v61 }
 0xf08   :  { %4278 = vmatpush1.bf16.msra.mxu0 %v13585_v22  ;;  %9339 = vmatpush3.bf16.msra.mxu1 %v13591_v30 }
 0xf09   :  { %4279 = vmatprep.subr.bf16.mxu0 %v13597_v36  ;;  %9340 = vmatprep.subr.bf16.mxu1 %v15900_v61 }
 0xf0c   :  { %4280 = vmatpush1.bf16.msra.mxu0 %v13604_v50  ;;  %9341 = vmatpush3.bf16.msra.mxu1 %v13610_v45 }
 0xf0d   :  { %4281 = vmatprep.subr.bf16.mxu0 %v13616_v46  ;;  %9342 = vmatprep.subr.bf16.mxu1 %v15900_v61 }
 0xf10   :  { %4282 = vmatpush1.bf16.msra.mxu0 %v13623_v47  ;;  %9343 = vmatpush3.bf16.msra.mxu1 %v13629_v9 }
 0xf11   :  { %4283 = vmatprep.subr.bf16.mxu0 %v13635_v59  ;;  %9344 = vmatprep.subr.bf16.mxu1 %v15900_v61 }
 0xf14   :  { %4284 = vmatpush1.bf16.msra.mxu0 %v13642_v11  ;;  %9345 = vmatpush3.bf16.msra.mxu1 %v13648_v6  ;;  %v16092_v11 = vld [vmem:[#allocation21_spill] sm:$0xff] }
 0xf15   :  { %4285 = vmatprep.subr.bf16.mxu0 %v13654_v41  ;;  %9346 = vmatprep.subr.bf16.mxu1 %v15900_v61 }
 0xf18   :  { %4286 = vmatpush1.bf16.msra.mxu0 %v13661_v60  ;;  %9347 = vmatpush3.bf16.msra.mxu1 %v13667_v4  ;;  %v2455_v4 = vadd.f32 %v16092_v11, %v16069_v8 }
 0xf19   :  { %4352 = vmatprep.subr.bf16.mxu0 %v13253_v62  ;;  %9352 = vmatprep.subr.bf16.mxu1 %v15900_v61 }
 0xf9b   :  { %v13672_v34 = vpop.f32.mrf.mxu0  ;;  %v13674_v16 = vpop.f32.mrf.mxu1 }
 0xf9c   :  { %16089 = vst [vmem:[#allocation18_spill] sm:$0xff] %v13672_v34  ;;  %16090 = vst [vmem:[#allocation20_spill] sm:$0xff] %v13674_v16 }
 0xf9d   :  { %v13676_v0 = vpop.f32.mrf.mxu0  ;;  %v9310_v12 = vpop.f32.mrf.mxu1 }
 0xf9e   :  { %16091 = vst [vmem:[#allocation19_spill] sm:$0xff] %v13676_v0 }
 0xf9f   :  { %v4125_v14 = vpop.f32.mrf.mxu0  ;;  %v4165_v49 = vpop.f32.mrf.mxu1 }
 0xfa1   :  { %v4126_v32 = vpop.f32.mrf.mxu0  ;;  %v9311_v60 = vpop.f32.mrf.mxu1 }
 0xfa2   :  { %v16093_v32 = vld [vmem:[#allocation36_spill] sm:$0xff] }
 0xfa3   :  { %v2457_v49 = vadd.f32 %v16093_v32, %v12982_v63 }
 0xfbb   :  { %v4202_v41 = vpop.f32.mrf.mxu0  ;;  %v4243_v6 = vpop.f32.mrf.mxu1 }
 0xfbc   :  { %v4203_v62 = vadd.f32 %v4202_v41, %v16034_v35 }
 0xfbd   :  { %v4204_v59 = vpop.f32.mrf.mxu0  ;;  %v9330_v9 = vpop.f32.mrf.mxu1 }
 0xfbe   :  { %v4249_v47 = vadd.f32 %v4203_v62, %v2455_v4  ;;  %v4205_v0 = vadd.f32 %v4204_v59, %v12979_v1  ;;  %v4244_v62 = vadd.f32 %v4243_v6, %v12990_v31  ;;  %v16096_v6 = vld [vmem:[#allocation24_spill] sm:$0xff] }
 0xfbf   :  { %v4206_v34 = vpop.f32.mrf.mxu0  ;;  %v4246_v46 = vpop.f32.mrf.mxu1 }
 0xfc0   :  { %v7983_v16 = vmul.f32 -1.442695, %v4249_v47  ;;  %v4256_v60 = vadd.f32 %v4205_v0, %v2457_v49  ;;  %v16094_v47 = vld [vmem:[#allocation22_spill] sm:$0xff]  ;;  %v16097_v49 = vld [vmem:[#allocation25_spill] sm:$0xff] }
 0xfc1   :  { %v4207_v12 = vpop.f32.mrf.mxu0  ;;  %v9331_v14 = vpop.f32.mrf.mxu1  ;;  %v2496_v59 = vadd.f32 %v16094_v47, %v12993_v23  ;;  %v16104_v47 = vld [vmem:[#allocation39_spill] sm:$0xff] }
 0xfc2   :  { %10425 = vpow2.f32 %v7983_v16  ;;  %v7984_v45 = vmul.f32 -1.442695, %v4256_v60  ;;  %v16098_v60 = vld [vmem:[#allocation38_spill] sm:$0xff] }
 0xfc4   :  { %10427 = vpow2.f32 %v7984_v45 }
 0xfcf   :  { %v10426_v11 = vpop.eup %10425 }
 0xfd0   :  { %v4253_v8 = vadd.f32 1.0, %v10426_v11  ;;  %v16099_v11 = vld [vmem:[#allocation32_spill] sm:$0xff] }
 0xfd1   :  { %v10428_v41 = vpop.eup %10427 }
 0xfd2   :  { %10429 = vrcp.f32 %v4253_v8  ;;  %v4260_v9 = vadd.f32 1.0, %v10428_v41  ;;  %v16100_v41 = vld [vmem:[#allocation16_spill] sm:$0xff] }
 0xfd4   :  { %10431 = vrcp.f32 %v4260_v9  ;;  %v16101_v9 = vld [vmem:[#allocation17_spill] sm:$0xff] }
 0xfdf   :  { %v10430_v46 = vpop.eup %10429 }
 0xfe0   :  { %v4263_v4 = vmul.f32 %v10430_v46, %v4244_v62  ;;  %v16102_v62 = vld [vmem:[#allocation33_spill] sm:$0xff]  ;;  %v16103_v46 = vld [vmem:[#allocation43_spill] sm:$0xff] }
 0xfe1   :  { %v10432_v12 = vpop.eup %10431 }
 0xfe2   :  { %v4264_v34 = vadd.f32 %v4263_v4, %v2496_v59  ;;  %v4266_v16 = vsub.f32 1.0, %v10432_v12  ;;  %v4268_v45 = vmul.f32 %v10432_v12, %v13463_v7  ;;  %v16095_v7 = vld [vmem:[#allocation23_spill] sm:$0xff]  ;;  %v16105_v59 = vld [vmem:[#allocation30_spill] sm:$0xff] }
 0xfe4   :  { %10433 = vtanh.f32 %v4264_v34 }
 0xff1   :  { %v10434_v0 = vpop.eup %10433 }
 0xff2   :  { %v4267_v14 = vmul.f32 %v10434_v0, %v4266_v16 }
 0xff4   :  { %v13688_v32 = vadd.f32 %v4268_v45, %v4267_v14 }
 0xff6   :  { %v4270_v8 = vpack.c.bf16 %v13688_v32, %v13688_v32 }
 0xff8   :  { %4304 = vmatmul.mubr.bf16.vlgmr.msra.gmra.mxu0 %v4270_v8  ;;  %9349 = vmatmul.mubr.bf16.vlgmr.msra.gmra.mxu1 %v4270_v8 }
 0xff9   :  { %4353 = vmatpush1.bf16.msra.mxu0 %v13280_v43  ;;  %9353 = vmatpush3.bf16.msra.mxu1 %v13286_v13 }
 0xffa   :  { %4354 = vmatprep.subr.bf16.mxu0 %v13292_v57  ;;  %9354 = vmatprep.subr.bf16.mxu1 %v15900_v61 }
 0xffb   :  { %4384 = vmatprep.mubr.bf16.mxu0 %v15901_v2  ;;  %9368 = vmatprep.mubr.msk.bf16.mxu1 %vm10796_vm0, %v15900_v61 }
 0xffd   :  { %4355 = vmatpush1.bf16.msra.mxu0 %v13302_v56  ;;  %9355 = vmatpush3.bf16.msra.mxu1 %v13308_v15 }
 0xffe   :  { %4356 = vmatprep.subr.bf16.mxu0 %v13314_v58  ;;  %9356 = vmatprep.subr.bf16.mxu1 %v15900_v61 }
0x1001   :  { %4357 = vmatpush1.bf16.msra.mxu0 %v13321_v40  ;;  %9357 = vmatpush3.bf16.msra.mxu1 %v13327_v52 }
0x1002   :  { %4358 = vmatprep.subr.bf16.mxu0 %v13333_v44  ;;  %9358 = vmatprep.subr.bf16.mxu1 %v15900_v61 }
0x1005   :  { %4359 = vmatpush1.bf16.msra.mxu0 %v13340_v42  ;;  %9359 = vmatpush3.bf16.msra.mxu1 %v13346_v19 }
0x1006   :  { %4360 = vmatprep.subr.bf16.mxu0 %v13352_v24  ;;  %9360 = vmatprep.subr.bf16.mxu1 %v15900_v61 }
0x1009   :  { %4361 = vmatpush1.bf16.msra.mxu0 %v13359_v27  ;;  %9361 = vmatpush3.bf16.msra.mxu1 %v13365_v28 }
0x100a   :  { %4362 = vmatprep.subr.bf16.mxu0 %v13371_v29  ;;  %9362 = vmatprep.subr.bf16.mxu1 %v15900_v61 }
0x100d   :  { %4363 = vmatpush1.bf16.msra.mxu0 %v13378_v39  ;;  %9363 = vmatpush3.bf16.msra.mxu1 %v13384_v21 }
0x100e   :  { %4364 = vmatprep.subr.bf16.mxu0 %v13390_v18  ;;  %9364 = vmatprep.subr.bf16.mxu1 %v15900_v61 }
0x1011   :  { %4365 = vmatpush1.bf16.msra.mxu0 %v13397_v37  ;;  %9365 = vmatpush3.bf16.msra.mxu1 %v13403_v5 }
0x1012   :  { %4366 = vmatprep.subr.bf16.mxu0 %v13499_v17  ;;  %9366 = vmatprep.subr.bf16.mxu1 %v15900_v61 }
0x1015   :  { %4367 = vmatpush1.bf16.msra.mxu0 %v13506_v25  ;;  %9367 = vmatpush3.bf16.msra.mxu1 %v13512_v38 }
0x1016   :  { %4455 = vmatprep.subr.bf16.mxu0 %v13518_v10  ;;  %9372 = vmatprep.subr.bf16.mxu1 %v15900_v61 }
0x1018   :  { %4385 = vmatmul.mubr.bf16.vlgmr.msra.gmra.mxu0 %v4270_v8  ;;  %9369 = vmatmul.mubr.bf16.vlgmr.msra.gmra.mxu1 %v4270_v8 }
0x1019   :  { %4456 = vmatpush1.bf16.msra.mxu0 %v13525_v20  ;;  %9373 = vmatpush3.bf16.msra.mxu1 %v13531_v26 }
0x101a   :  { %4457 = vmatprep.subr.bf16.mxu0 %v13537_v33  ;;  %9374 = vmatprep.subr.bf16.mxu1 %v15900_v61 }
0x101b   :  { %4487 = vmatprep.mubr.bf16.mxu0 %v15901_v2  ;;  %9388 = vmatprep.mubr.msk.bf16.mxu1 %vm10796_vm0, %v15900_v61 }
0x101d   :  { %4458 = vmatpush1.bf16.msra.mxu0 %v13547_v48  ;;  %9375 = vmatpush3.bf16.msra.mxu1 %v13553_v3 }
0x101e   :  { %4459 = vmatprep.subr.bf16.mxu0 %v13559_v54  ;;  %9376 = vmatprep.subr.bf16.mxu1 %v15900_v61 }
0x1021   :  { %4460 = vmatpush1.bf16.msra.mxu0 %v13566_v55  ;;  %9377 = vmatpush3.bf16.msra.mxu1 %v13572_v53 }
0x1022   :  { %4461 = vmatprep.subr.bf16.mxu0 %v13578_v51  ;;  %9378 = vmatprep.subr.bf16.mxu1 %v15900_v61 }
0x1025   :  { %4462 = vmatpush1.bf16.msra.mxu0 %v13585_v22  ;;  %9379 = vmatpush3.bf16.msra.mxu1 %v13591_v30 }
0x1026   :  { %4463 = vmatprep.subr.bf16.mxu0 %v13597_v36  ;;  %9380 = vmatprep.subr.bf16.mxu1 %v15900_v61 }
0x1029   :  { %4464 = vmatpush1.bf16.msra.mxu0 %v13604_v50  ;;  %9381 = vmatpush3.bf16.msra.mxu1 %v16095_v7 }
0x102a   :  { %4465 = vmatprep.subr.bf16.mxu0 %v16096_v6  ;;  %9382 = vmatprep.subr.bf16.mxu1 %v15900_v61 }
0x102d   :  { %4466 = vmatpush1.bf16.msra.mxu0 %v16097_v49  ;;  %9383 = vmatpush3.bf16.msra.mxu1 %v16098_v60 }
0x102e   :  { %4467 = vmatprep.subr.bf16.mxu0 %v16099_v11  ;;  %9384 = vmatprep.subr.bf16.mxu1 %v15900_v61 }
0x1031   :  { %4468 = vmatpush1.bf16.msra.mxu0 %v16100_v41  ;;  %9385 = vmatpush3.bf16.msra.mxu1 %v16101_v9  ;;  %v16110_v41 = vld [vmem:[#allocation15_spill] sm:$0xff] }
0x1032   :  { %4469 = vmatprep.subr.bf16.mxu0 %v16102_v62  ;;  %9386 = vmatprep.subr.bf16.mxu1 %v15900_v61 }
0x1035   :  { %4470 = vmatpush1.bf16.msra.mxu0 %v16103_v46  ;;  %9387 = vmatpush3.bf16.msra.mxu1 %v16104_v47  ;;  %v16109_v46 = vld [vmem:[#allocation29_spill] sm:$0xff] }
0x1036   :  { %4536 = vmatprep.subr.bf16.mxu0 %v16105_v59  ;;  %9392 = vmatprep.subr.bf16.mxu1 %v15900_v61  ;;  %v2639_v47 = vadd.f32 %v16110_v41, %v16109_v46 }
0x10b8   :  { %v13762_v4 = vpop.f32.mrf.mxu0  ;;  %v13764_v34 = vpop.f32.mrf.mxu1 }
0x10b9   :  { %16106 = vst [vmem:[#allocation34_spill] sm:$0xff] %v13762_v4  ;;  %16107 = vst [vmem:[#allocation13_spill] sm:$0xff] %v13764_v34 }
0x10ba   :  { %v13766_v12 = vpop.f32.mrf.mxu0  ;;  %v9350_v16 = vpop.f32.mrf.mxu1 }
0x10bb   :  { %16108 = vst [vmem:[#allocation9_spill] sm:$0xff] %v13766_v12 }
0x10bc   :  { %v4309_v0 = vpop.f32.mrf.mxu0  ;;  %v4349_v14 = vpop.f32.mrf.mxu1 }
0x10bd   :  { %v16111_v14 = vld [vmem:[#allocation12_spill] sm:$0xff] }
0x10be   :  { %v4310_v45 = vpop.f32.mrf.mxu0  ;;  %v9351_v8 = vpop.f32.mrf.mxu1 }
0x10bf   :  { %v2641_v45 = vadd.f32 %v16111_v14, %v12982_v63 }
0x10d8   :  { %v4386_v62 = vpop.f32.mrf.mxu0  ;;  %v4427_v9 = vpop.f32.mrf.mxu1 }
0x10d9   :  { %v4387_v59 = vadd.f32 %v4386_v62, %v16034_v35 }
0x10da   :  { %v4388_v11 = vpop.f32.mrf.mxu0  ;;  %v9370_v60 = vpop.f32.mrf.mxu1 }
0x10db   :  { %v4433_v49 = vadd.f32 %v4387_v59, %v2639_v47  ;;  %v4389_v12 = vadd.f32 %v4388_v11, %v12979_v1  ;;  %v4428_v47 = vadd.f32 %v4427_v9, %v12990_v31 }
0x10dc   :  { %v4390_v4 = vpop.f32.mrf.mxu0  ;;  %v4430_v6 = vpop.f32.mrf.mxu1 }
0x10dd   :  { %v7985_v34 = vmul.f32 -1.442695, %v4433_v49  ;;  %v4440_v8 = vadd.f32 %v4389_v12, %v2641_v45  ;;  %v16112_v49 = vld [vmem:[#allocation2_spill] sm:$0xff] }
0x10de   :  { %v4391_v16 = vpop.f32.mrf.mxu0  ;;  %v9371_v0 = vpop.f32.mrf.mxu1  ;;  %v2680_v11 = vadd.f32 %v16112_v49, %v12993_v23 }
0x10df   :  { %10435 = vpow2.f32 %v7985_v34  ;;  %v7986_v7 = vmul.f32 -1.442695, %v4440_v8 }
0x10e1   :  { %10437 = vpow2.f32 %v7986_v7 }
0x10ec   :  { %v10436_v41 = vpop.eup %10435 }
0x10ed   :  { %v4437_v46 = vadd.f32 1.0, %v10436_v41 }
0x10ee   :  { %v10438_v62 = vpop.eup %10437 }
0x10ef   :  { %10439 = vrcp.f32 %v4437_v46  ;;  %v4444_v60 = vadd.f32 1.0, %v10438_v62 }
0x10f1   :  { %10441 = vrcp.f32 %v4444_v60  ;;  %v16130_v60 = vld [vmem:[#allocation28_spill] sm:$0xff] }
0x10fc   :  { %v10440_v6 = vpop.eup %10439 }
0x10fd   :  { %v4447_v4 = vmul.f32 %v10440_v6, %v4428_v47 }
0x10fe   :  { %v10442_v16 = vpop.eup %10441 }
0x10ff   :  { %v4448_v59 = vadd.f32 %v4447_v4, %v2680_v11  ;;  %v4450_v34 = vsub.f32 1.0, %v10442_v16  ;;  %v4452_v7 = vmul.f32 %v10442_v16, %v13688_v32 }
0x1101   :  { %10443 = vtanh.f32 %v4448_v59 }
0x110e   :  { %v10444_v12 = vpop.eup %10443 }
0x110f   :  { %v4451_v0 = vmul.f32 %v10444_v12, %v4450_v34  ;;  %v13876_v34 = vld [vmem:[%s15696_s3 + $0x228] ss:$12 sps:$4 sm:$0xff]  }
0x1110   :  { %v13886_v12 = vld [vmem:[%s15696_s3 + $0x214] ss:$12 sps:$4 sm:$0xff]  }
0x1111   :  { %v13778_v14 = vadd.f32 %v4452_v7, %v4451_v0  ;;  %v13892_v0 = vld [vmem:[%s15696_s3 + $0x210] ss:$12 sps:$4 sm:$0xff]   ;;  %v13898_v7 = vld [vmem:[%s15696_s3 + $0x218] ss:$12 sps:$4 sm:$0xff]  }
0x1113   :  { %v4454_v46 = vpack.c.bf16 %v13778_v14, %v13778_v14 }
0x1115   :  { %4488 = vmatmul.mubr.bf16.vlgmr.msra.gmra.mxu0 %v4454_v46  ;;  %9389 = vmatmul.mubr.bf16.vlgmr.msra.gmra.mxu1 %v4454_v46 }
0x1116   :  { %4537 = vmatpush1.bf16.msra.mxu0 %v13280_v43  ;;  %9393 = vmatpush3.bf16.msra.mxu1 %v13286_v13  ;;  %v16113_v43 = vld [vmem:[#allocation23_spill] sm:$0xff]  ;;  %v16114_v13 = vld [vmem:[#allocation24_spill] sm:$0xff] }
0x1117   :  { %4538 = vmatprep.subr.bf16.mxu0 %v13292_v57  ;;  %9394 = vmatprep.subr.bf16.mxu1 %v15900_v61  ;;  %v16115_v57 = vld [vmem:[#allocation25_spill] sm:$0xff] }
0x1118   :  { %4568 = vmatprep.mubr.bf16.mxu0 %v15901_v2  ;;  %9408 = vmatprep.mubr.msk.bf16.mxu1 %vm10796_vm0, %v15900_v61 }
0x111a   :  { %4539 = vmatpush1.bf16.msra.mxu0 %v13302_v56  ;;  %9395 = vmatpush3.bf16.msra.mxu1 %v13308_v15  ;;  %v16116_v56 = vld [vmem:[#allocation38_spill] sm:$0xff]  ;;  %v16117_v15 = vld [vmem:[#allocation32_spill] sm:$0xff] }
0x111b   :  { %4540 = vmatprep.subr.bf16.mxu0 %v13314_v58  ;;  %9396 = vmatprep.subr.bf16.mxu1 %v15900_v61  ;;  %v16118_v58 = vld [vmem:[#allocation16_spill] sm:$0xff] }
0x111e   :  { %4541 = vmatpush1.bf16.msra.mxu0 %v13321_v40  ;;  %9397 = vmatpush3.bf16.msra.mxu1 %v13327_v52  ;;  %v16119_v40 = vld [vmem:[#allocation17_spill] sm:$0xff] }
0x111f   :  { %4542 = vmatprep.subr.bf16.mxu0 %v13333_v44  ;;  %9398 = vmatprep.subr.bf16.mxu1 %v15900_v61  ;;  %v16120_v52 = vld [vmem:[#allocation33_spill] sm:$0xff]  ;;  %v16121_v44 = vld [vmem:[#allocation43_spill] sm:$0xff] }
0x1122   :  { %4543 = vmatpush1.bf16.msra.mxu0 %v13340_v42  ;;  %9399 = vmatpush3.bf16.msra.mxu1 %v13346_v19  ;;  %v16122_v42 = vld [vmem:[#allocation39_spill] sm:$0xff] }
0x1123   :  { %4544 = vmatprep.subr.bf16.mxu0 %v13352_v24  ;;  %9400 = vmatprep.subr.bf16.mxu1 %v15900_v61  ;;  %v13854_v19 = vld [vmem:[%s15696_s3 + $0x22c] ss:$12 sps:$4 sm:$0xff]  }
0x1124   :  { %16123 = vst [vmem:[#allocation21_spill] sm:$0xff] %v13854_v19 }
0x1126   :  { %4545 = vmatpush1.bf16.msra.mxu0 %v13359_v27  ;;  %9401 = vmatpush3.bf16.msra.mxu1 %v13365_v28 }
0x1127   :  { %4546 = vmatprep.subr.bf16.mxu0 %v13371_v29  ;;  %9402 = vmatprep.subr.bf16.mxu1 %v15900_v61 }
0x112a   :  { %4547 = vmatpush1.bf16.msra.mxu0 %v13378_v39  ;;  %9403 = vmatpush3.bf16.msra.mxu1 %v13384_v21 }
0x112b   :  { %4548 = vmatprep.subr.bf16.mxu0 %v13390_v18  ;;  %9404 = vmatprep.subr.bf16.mxu1 %v15900_v61 }
0x112e   :  { %4549 = vmatpush1.bf16.msra.mxu0 %v13397_v37  ;;  %9405 = vmatpush3.bf16.msra.mxu1 %v13403_v5 }
0x112f   :  { %4550 = vmatprep.subr.bf16.mxu0 %v13499_v17  ;;  %9406 = vmatprep.subr.bf16.mxu1 %v15900_v61 }
0x1132   :  { %4551 = vmatpush1.bf16.msra.mxu0 %v13506_v25  ;;  %9407 = vmatpush3.bf16.msra.mxu1 %v13512_v38  ;;  %v16127_v25 = vld [vmem:[#allocation29_spill] sm:$0xff]  ;;  %v16128_v38 = vld [vmem:[#allocation27_spill] sm:$0xff] }
0x1133   :  { %4639 = vmatprep.subr.bf16.mxu0 %v13518_v10  ;;  %9412 = vmatprep.subr.bf16.mxu1 %v15900_v61  ;;  %v2823_v10 = vadd.f32 %v16128_v38, %v16127_v25  ;;  %v14036_v25 = vld [vmem:[%s15697_s2 + $0x228] ss:$12 sps:$4 sm:$0xff]   ;;  %v14041_v38 = vld [vmem:[%s15697_s2 + $0x230] ss:$12 sps:$4 sm:$0xff]  }
0x1135   :  { %4569 = vmatmul.mubr.bf16.vlgmr.msra.gmra.mxu0 %v4454_v46  ;;  %9409 = vmatmul.mubr.bf16.vlgmr.msra.gmra.mxu1 %v4454_v46  ;;  %v13914_v46 = vld [vmem:[%s15696_s3 + $0x1f8] ss:$12 sps:$4 sm:$0xff]  }
0x1136   :  { %4640 = vmatpush1.bf16.msra.mxu0 %v13525_v20  ;;  %9413 = vmatpush3.bf16.msra.mxu1 %v13531_v26 }
0x1137   :  { %4641 = vmatprep.subr.bf16.mxu0 %v13537_v33  ;;  %9414 = vmatprep.subr.bf16.mxu1 %v15900_v61 }
0x1138   :  { %4671 = vmatprep.mubr.bf16.mxu0 %v15901_v2  ;;  %9428 = vmatprep.mubr.msk.bf16.mxu1 %vm10796_vm0, %v15900_v61 }
0x113a   :  { %4642 = vmatpush1.bf16.msra.mxu0 %v13547_v48  ;;  %9415 = vmatpush3.bf16.msra.mxu1 %v13553_v3 }
0x113b   :  { %4643 = vmatprep.subr.bf16.mxu0 %v13559_v54  ;;  %9416 = vmatprep.subr.bf16.mxu1 %v15900_v61 }
0x113e   :  { %4644 = vmatpush1.bf16.msra.mxu0 %v13566_v55  ;;  %9417 = vmatpush3.bf16.msra.mxu1 %v13572_v53 }
0x113f   :  { %4645 = vmatprep.subr.bf16.mxu0 %v13578_v51  ;;  %9418 = vmatprep.subr.bf16.mxu1 %v15900_v61 }
0x1142   :  { %4646 = vmatpush1.bf16.msra.mxu0 %v13585_v22  ;;  %9419 = vmatpush3.bf16.msra.mxu1 %v13591_v30  ;;  %v16129_v30 = vld [vmem:[#allocation40_spill] sm:$0xff] }
0x1143   :  { %4647 = vmatprep.subr.bf16.mxu0 %v13597_v36  ;;  %9420 = vmatprep.subr.bf16.mxu1 %v15900_v61  ;;  %v2825_v36 = vadd.f32 %v16129_v30, %v12982_v63  ;;  %v14115_v30 = vld [vmem:[%s15697_s2 + $0x1d0] ss:$12 sps:$4 sm:$0xff]  }
0x1144   :  { %16131 = vst [vmem:[#allocation15_spill] sm:$0xff] %v14115_v30 }
0x1146   :  { %4648 = vmatpush1.bf16.msra.mxu0 %v13604_v50  ;;  %9421 = vmatpush3.bf16.msra.mxu1 %v16113_v43  ;;  %v13920_v43 = vld [vmem:[%s15696_s3 + $0x200] ss:$12 sps:$4 sm:$0xff]  }
0x1147   :  { %4649 = vmatprep.subr.bf16.mxu0 %v16114_v13  ;;  %9422 = vmatprep.subr.bf16.mxu1 %v15900_v61  ;;  %v13926_v13 = vld [vmem:[%s15696_s3 + $0x1e4] ss:$12 sps:$4 sm:$0xff]  }
0x114a   :  { %4650 = vmatpush1.bf16.msra.mxu0 %v16115_v57  ;;  %9423 = vmatpush3.bf16.msra.mxu1 %v16116_v56  ;;  %v13933_v57 = vld [vmem:[%s15696_s3 + $0x1e0] ss:$12 sps:$4 sm:$0xff]   ;;  %v13939_v56 = vld [vmem:[%s15696_s3 + $0x1e8] ss:$12 sps:$4 sm:$0xff]  }
0x114b   :  { %4651 = vmatprep.subr.bf16.mxu0 %v16117_v15  ;;  %9424 = vmatprep.subr.bf16.mxu1 %v15900_v61  ;;  %v13945_v15 = vld [vmem:[%s15696_s3 + $0x1cc] ss:$12 sps:$4 sm:$0xff]  }
0x114e   :  { %4652 = vmatpush1.bf16.msra.mxu0 %v16118_v58  ;;  %9425 = vmatpush3.bf16.msra.mxu1 %v16119_v40  ;;  %v13952_v58 = vld [vmem:[%s15696_s3 + $0x1c8] ss:$12 sps:$4 sm:$0xff]   ;;  %v13958_v40 = vld [vmem:[%s15696_s3 + $0x1d0] ss:$12 sps:$4 sm:$0xff]  }
0x114f   :  { %4653 = vmatprep.subr.bf16.mxu0 %v16120_v52  ;;  %9426 = vmatprep.subr.bf16.mxu1 %v15900_v61  ;;  %v13964_v52 = vld [vmem:[%s15696_s3 + $0x1b4] ss:$12 sps:$4 sm:$0xff]  }
0x1152   :  { %4654 = vmatpush1.bf16.msra.mxu0 %v16121_v44  ;;  %9427 = vmatpush3.bf16.msra.mxu1 %v16122_v42  ;;  %v13971_v44 = vld [vmem:[%s15696_s3 + $0x1b0] ss:$12 sps:$4 sm:$0xff]   ;;  %v13977_v42 = vld [vmem:[%s15696_s3 + $0x1b8] ss:$12 sps:$4 sm:$0xff]  }
0x1153   :  { %9432 = vmatprep.subr.bf16.mxu1 %v15900_v61  ;;  %4943 = vmatprep.subr.bf16.mxu0 %v13854_v19 }
0x11d5   :  { %v13857_v24 = vpop.f32.mrf.mxu0  ;;  %v13859_v27 = vpop.f32.mrf.mxu1 }
0x11d6   :  { %16124 = vst [vmem:[#allocation36_spill] sm:$0xff] %v13857_v24  ;;  %16125 = vst [vmem:[#allocation22_spill] sm:$0xff] %v13859_v27  ;;  %v16145_v27 = vld [vmem:[#allocation35_spill] sm:$0xff] }
0x11d7   :  { %v13861_v28 = vpop.f32.mrf.mxu0  ;;  %v9390_v29 = vpop.f32.mrf.mxu1 }
0x11d8   :  { %16126 = vst [vmem:[#allocation30_spill] sm:$0xff] %v13861_v28  ;;  %v13983_v29 = vld [vmem:[%s15696_s3 + $0x19c] ss:$12 sps:$4 sm:$0xff]  }
0x11d9   :  { %v4493_v39 = vpop.f32.mrf.mxu0  ;;  %v4533_v21 = vpop.f32.mrf.mxu1 }
0x11da   :  { %v13990_v39 = vld [vmem:[%s15696_s3 + $0x198] ss:$12 sps:$4 sm:$0xff]   ;;  %v13996_v21 = vld [vmem:[%s15696_s3 + $0x1a0] ss:$12 sps:$4 sm:$0xff]  }
0x11db   :  { %v4494_v18 = vpop.f32.mrf.mxu0  ;;  %v9391_v37 = vpop.f32.mrf.mxu1 }
0x11dc   :  { %v14002_v18 = vld [vmem:[%s15696_s3 + $0x184] ss:$12 sps:$4 sm:$0xff]   ;;  %v14009_v37 = vld [vmem:[%s15696_s3 + $0x180] ss:$12 sps:$4 sm:$0xff]  }
0x11f5   :  { %v4570_v5 = vpop.f32.mrf.mxu0  ;;  %v4611_v17 = vpop.f32.mrf.mxu1 }
0x11f6   :  { %v4571_v20 = vadd.f32 %v4570_v5, %v16034_v35  ;;  %v4612_v41 = vadd.f32 %v4611_v17, %v12990_v31  ;;  %v13881_v31 = vld [vmem:[%s15696_s3 + $0x230] ss:$12 sps:$4 sm:$0xff]   ;;  %v14015_v5 = vld [vmem:[%s15696_s3 + $0x188] ss:$12 sps:$4 sm:$0xff]   ;;  %v14030_v17 = vld [vmem:[%s15697_s2 + $0x22c] ss:$12 sps:$4 sm:$0xff]  }
0x11f7   :  { %v4572_v26 = vpop.f32.mrf.mxu0  ;;  %v9410_v33 = vpop.f32.mrf.mxu1 }
0x11f8   :  { %v4617_v48 = vadd.f32 %v4571_v20, %v2823_v10  ;;  %v4573_v53 = vadd.f32 %v4572_v26, %v12979_v1  ;;  %v2864_v1 = vadd.f32 %v16130_v60, %v12993_v23  ;;  %v14048_v10 = vld [vmem:[%s15697_s2 + $0x214] ss:$12 sps:$4 sm:$0xff]   ;;  %v14054_v20 = vld [vmem:[%s15697_s2 + $0x210] ss:$12 sps:$4 sm:$0xff]   ;;  %v14059_v26 = vld [vmem:[%s15697_s2 + $0x218] ss:$12 sps:$4 sm:$0xff]  }
0x11f9   :  { %v4574_v3 = vpop.f32.mrf.mxu0  ;;  %v4614_v54 = vpop.f32.mrf.mxu1  ;;  %v14067_v33 = vld [vmem:[%s15697_s2 + $0x1fc] ss:$12 sps:$4 sm:$0xff]  }
0x11fa   :  { %v7987_v55 = vmul.f32 -1.442695, %v4617_v48  ;;  %v4624_v50 = vadd.f32 %v4573_v53, %v2825_v36  ;;  %v14073_v48 = vld [vmem:[%s15697_s2 + $0x1f8] ss:$12 sps:$4 sm:$0xff]   ;;  %v14078_v3 = vld [vmem:[%s15697_s2 + $0x200] ss:$12 sps:$4 sm:$0xff]  }
0x11fb   :  { %v4575_v51 = vpop.f32.mrf.mxu0  ;;  %v9411_v22 = vpop.f32.mrf.mxu1  ;;  %v14086_v54 = vld [vmem:[%s15697_s2 + $0x1e4] ss:$12 sps:$4 sm:$0xff]   ;;  %v14097_v53 = vld [vmem:[%s15697_s2 + $0x1e8] ss:$12 sps:$4 sm:$0xff]  }
0x11fc   :  { %10445 = vpow2.f32 %v7987_v55  ;;  %v7988_v32 = vmul.f32 -1.442695, %v4624_v50  ;;  %v14092_v55 = vld [vmem:[%s15697_s2 + $0x1e0] ss:$12 sps:$4 sm:$0xff]   ;;  %v14110_v22 = vld [vmem:[%s15697_s2 + $0x1c8] ss:$12 sps:$4 sm:$0xff]  }
0x11fd   :  { %v14105_v51 = vld [vmem:[%s15697_s2 + $0x1cc] ss:$12 sps:$4 sm:$0xff]   ;;  %v14121_v36 = vld [vmem:[%s15697_s2 + $0x1b4] ss:$12 sps:$4 sm:$0xff]   ;;  %v14129_v50 = vld [vmem:[%s15697_s2 + $0x1b0] ss:$12 sps:$4 sm:$0xff]  }
0x11fe   :  { %10447 = vpow2.f32 %v7988_v32  ;;  %16132 = vst [vmem:[#allocation12_spill] sm:$0xff] %v14121_v36  ;;  %16133 = vst [vmem:[#allocation2_spill] sm:$0xff] %v14129_v50  ;;  %v14134_v32 = vld [vmem:[%s15697_s2 + $0x1b8] ss:$12 sps:$4 sm:$0xff]  }
0x11ff   :  { %16134 = vst [vmem:[#allocation23_spill] sm:$0xff] %v14134_v32 }
0x1209   :  { %v10446_v9 = vpop.eup %10445 }
0x120a   :  { %v4621_v45 = vadd.f32 1.0, %v10446_v9  ;;  %v14141_v9 = vld [vmem:[%s15697_s2 + $0x19c] ss:$12 sps:$4 sm:$0xff]  }
0x120b   :  { %v10448_v35 = vpop.eup %10447  ;;  %16135 = vst [vmem:[#allocation24_spill] sm:$0xff] %v14141_v9 }
0x120c   :  { %10449 = vrcp.f32 %v4621_v45  ;;  %v4628_v8 = vadd.f32 1.0, %v10448_v35  ;;  %v14148_v45 = vld [vmem:[%s15697_s2 + $0x198] ss:$12 sps:$4 sm:$0xff]   ;;  %v14153_v35 = vld [vmem:[%s15697_s2 + $0x1a0] ss:$12 sps:$4 sm:$0xff]  }
0x120d   :  { %16136 = vst [vmem:[#allocation25_spill] sm:$0xff] %v14148_v45  ;;  %16137 = vst [vmem:[#allocation38_spill] sm:$0xff] %v14153_v35 }
0x120e   :  { %10451 = vrcp.f32 %v4628_v8  ;;  %v14160_v8 = vld [vmem:[%s15697_s2 + $0x184] ss:$12 sps:$4 sm:$0xff]  }
0x120f   :  { %16138 = vst [vmem:[#allocation32_spill] sm:$0xff] %v14160_v8 }
0x1219   :  { %v10450_v62 = vpop.eup %10449 }
0x121a   :  { %v4631_v47 = vmul.f32 %v10450_v62, %v4612_v41  ;;  %v14167_v41 = vld [vmem:[%s15697_s2 + $0x180] ss:$12 sps:$4 sm:$0xff]   ;;  %v14172_v62 = vld [vmem:[%s15697_s2 + $0x188] ss:$12 sps:$4 sm:$0xff]  }
0x121b   :  { %v10452_v63 = vpop.eup %10451  ;;  %16139 = vst [vmem:[#allocation16_spill] sm:$0xff] %v14167_v41  ;;  %16140 = vst [vmem:[#allocation17_spill] sm:$0xff] %v14172_v62 }
0x121c   :  { %v4632_v6 = vadd.f32 %v4631_v47, %v2864_v1  ;;  %v4634_v49 = vsub.f32 1.0, %v10452_v63  ;;  %v4636_v59 = vmul.f32 %v10452_v63, %v13778_v14  ;;  %v13904_v14 = vld [vmem:[%s15696_s3 + $0x1fc] ss:$12 sps:$4 sm:$0xff]  }
0x121e   :  { %10453 = vtanh.f32 %v4632_v6 }
0x122b   :  { %v10454_v11 = vpop.eup %10453 }
0x122c   :  { %v4635_v4 = vmul.f32 %v10454_v11, %v4634_v49 }
0x122e   :  { %v4637_v16 = vadd.f32 %v4636_v59, %v4635_v4  ;;  %v7924_v59 = vld [vmem:[%s15698_s4 + $0xc] sm:$0x3f] }
0x122f   :  { %v4791_v28 = vrot.slane %v7924_v59, %v16145_v27 }
0x1230   :  { %v4638_v23 = vpack.c.bf16 %v4637_v16, %v4637_v16  ;;  %v16144_v16 = vld [vmem:[#allocation11_spill] sm:$0xff] }
0x1232   :  { %4672 = vmatmul.mubr.bf16.vlgmr.msra.gmra.mxu0 %v4638_v23  ;;  %9429 = vmatmul.mubr.bf16.vlgmr.msra.gmra.mxu1 %v4638_v23  ;;  %v3199_v23 = vrot.slane %v7924_v59, %v16144_v16 }
0x1233   :  { %4944 = vmatpush1.bf16.msra.mxu0 %v13876_v34  ;;  %9433 = vmatpush3.bf16.msra.mxu1 %v13881_v31 }
0x1234   :  { %4945 = vmatprep.subr.bf16.mxu0 %v13886_v12  ;;  %4975 = vmatprep.mubr.bf16.mxu0 %v15901_v2  ;;  %v14192_v24 = vrot.slane %v3199_v23, %v16144_v16 }
0x1235   :  { %9434 = vmatprep.subr.bf16.mxu1 %v15900_v61  ;;  %9448 = vmatprep.mubr.msk.bf16.mxu1 %vm10796_vm0, %v15900_v61 }
0x1236   :  { %16146 = vst [vmem:[#allocation29_spill] sm:$0xff] %v14192_v24 }
0x1237   :  { %4946 = vmatpush1.bf16.msra.mxu0 %v13892_v0  ;;  %9435 = vmatpush3.bf16.msra.mxu1 %v13898_v7 }
0x1238   :  { %4947 = vmatprep.subr.bf16.mxu0 %v13904_v14  ;;  %9436 = vmatprep.subr.bf16.mxu1 %v15900_v61 }
0x123b   :  { %4948 = vmatpush1.bf16.msra.mxu0 %v13914_v46  ;;  %9437 = vmatpush3.bf16.msra.mxu1 %v13920_v43 }
0x123c   :  { %4949 = vmatprep.subr.bf16.mxu0 %v13926_v13  ;;  %9438 = vmatprep.subr.bf16.mxu1 %v15900_v61 }
0x123f   :  { %4950 = vmatpush1.bf16.msra.mxu0 %v13933_v57  ;;  %9439 = vmatpush3.bf16.msra.mxu1 %v13939_v56 }
0x1240   :  { %4951 = vmatprep.subr.bf16.mxu0 %v13945_v15  ;;  %9440 = vmatprep.subr.bf16.mxu1 %v15900_v61 }
0x1243   :  { %4952 = vmatpush1.bf16.msra.mxu0 %v13952_v58  ;;  %9441 = vmatpush3.bf16.msra.mxu1 %v13958_v40 }
0x1244   :  { %4953 = vmatprep.subr.bf16.mxu0 %v13964_v52  ;;  %9442 = vmatprep.subr.bf16.mxu1 %v15900_v61 }
0x1247   :  { %4954 = vmatpush1.bf16.msra.mxu0 %v13971_v44  ;;  %9443 = vmatpush3.bf16.msra.mxu1 %v13977_v42 }
0x1248   :  { %4955 = vmatprep.subr.bf16.mxu0 %v13983_v29  ;;  %9444 = vmatprep.subr.bf16.mxu1 %v15900_v61 }
0x124b   :  { %4956 = vmatpush1.bf16.msra.mxu0 %v13990_v39  ;;  %9445 = vmatpush3.bf16.msra.mxu1 %v13996_v21 }
0x124c   :  { %4957 = vmatprep.subr.bf16.mxu0 %v14002_v18  ;;  %9446 = vmatprep.subr.bf16.mxu1 %v15900_v61 }
0x124f   :  { %4958 = vmatpush1.bf16.msra.mxu0 %v14009_v37  ;;  %9447 = vmatpush3.bf16.msra.mxu1 %v14015_v5 }
0x1250   :  { %9452 = vmatprep.subr.bf16.mxu1 %v15900_v61  ;;  %5202 = vmatprep.subr.bf16.mxu0 %v14030_v17 }
0x1252   :  { %4976 = vmatmul.mubr.bf16.vlgmr.msra.gmra.mxu0 %v15901_v2  ;;  %9449 = vmatmul.mubr.bf16.vlgmr.msra.gmra.mxu1 %v15901_v2 }
0x1253   :  { %5234 = vmatprep.mubr.bf16.mxu0 %v15901_v2  ;;  %9468 = vmatprep.mubr.msk.bf16.mxu1 %vm10796_vm0, %v15900_v61 }
0x1254   :  { %5203 = vmatpush1.bf16.msra.mxu0 %v14036_v25  ;;  %9453 = vmatpush3.bf16.msra.mxu1 %v14041_v38 }
0x1255   :  { %9454 = vmatprep.subr.bf16.mxu1 %v15900_v61  ;;  %5204 = vmatprep.subr.bf16.mxu0 %v14048_v10 }
0x1258   :  { %5205 = vmatpush1.bf16.msra.mxu0 %v14054_v20  ;;  %9455 = vmatpush3.bf16.msra.mxu1 %v14059_v26 }
0x1259   :  { %9456 = vmatprep.subr.bf16.mxu1 %v15900_v61  ;;  %5206 = vmatprep.subr.bf16.mxu0 %v14067_v33 }
0x125c   :  { %5207 = vmatpush1.bf16.msra.mxu0 %v14073_v48  ;;  %9457 = vmatpush3.bf16.msra.mxu1 %v14078_v3 }
0x125d   :  { %9458 = vmatprep.subr.bf16.mxu1 %v15900_v61  ;;  %5208 = vmatprep.subr.bf16.mxu0 %v14086_v54 }
0x1260   :  { %5209 = vmatpush1.bf16.msra.mxu0 %v14092_v55  ;;  %9459 = vmatpush3.bf16.msra.mxu1 %v14097_v53 }
0x1261   :  { %9460 = vmatprep.subr.bf16.mxu1 %v15900_v61  ;;  %5210 = vmatprep.subr.bf16.mxu0 %v14105_v51 }
0x1264   :  { %5211 = vmatpush1.bf16.msra.mxu0 %v14110_v22  ;;  %9461 = vmatpush3.bf16.msra.mxu1 %v14115_v30 }
0x1265   :  { %5212 = vmatprep.subr.bf16.mxu0 %v14121_v36  ;;  %9462 = vmatprep.subr.bf16.mxu1 %v15900_v61 }
0x1268   :  { %5213 = vmatpush1.bf16.msra.mxu0 %v14129_v50  ;;  %9463 = vmatpush3.bf16.msra.mxu1 %v14134_v32 }
0x1269   :  { %5214 = vmatprep.subr.bf16.mxu0 %v14141_v9  ;;  %9464 = vmatprep.subr.bf16.mxu1 %v15900_v61 }
0x126c   :  { %5215 = vmatpush1.bf16.msra.mxu0 %v14148_v45  ;;  %9465 = vmatpush3.bf16.msra.mxu1 %v14153_v35 }
0x126d   :  { %5216 = vmatprep.subr.bf16.mxu0 %v14160_v8  ;;  %9466 = vmatprep.subr.bf16.mxu1 %v15900_v61 }
0x1270   :  { %5217 = vmatpush1.bf16.msra.mxu0 %v14167_v41  ;;  %9467 = vmatpush3.bf16.msra.mxu1 %v14172_v62 }
0x1271   :  { %5283 = vmatprep.subr.bf16.mxu0 %v13854_v19  ;;  %9472 = vmatprep.subr.bf16.mxu1 %v15900_v61 }
0x12f2   :  { %v14180_v60 = vpop.f32.mrf.mxu0  ;;  %v14182_v1 = vpop.f32.mrf.mxu1 }
0x12f3   :  { %16141 = vst [vmem:[#allocation33_spill] sm:$0xff] %v14180_v60  ;;  %16142 = vst [vmem:[#allocation43_spill] sm:$0xff] %v14182_v1  ;;  %v14195_v1 = vrot.slane %v4791_v28, %v16145_v27  ;;  %v16150_v60 = vld [vmem:[#allocation31_spill] sm:$0xff] }
0x12f4   :  { %v14184_v47 = vpop.f32.mrf.mxu0  ;;  %v9430_v6 = vpop.f32.mrf.mxu1  ;;  %v3386_v19 = vadd.f32 %v16150_v60, %v14192_v24  ;;  %v16151_v60 = vld [vmem:[#allocation3_spill] sm:$0xff] }
0x12f5   :  { %16143 = vst [vmem:[#allocation39_spill] sm:$0xff] %v14184_v47  ;;  %16147 = vst [vmem:[#allocation27_spill] sm:$0xff] %v14195_v1  ;;  %v16148_v47 = vld [vmem:[#allocation37_spill] sm:$0xff] }
0x12f6   :  { %v4677_v63 = vpop.f32.mrf.mxu0  ;;  %v4717_v49 = vpop.f32.mrf.mxu1  ;;  %v4795_v6 = vrot.slane %v7924_v59, %v16148_v47 }
0x12f7   :  { %v16149_v63 = vld [vmem:[#allocation10_spill] sm:$0xff] }
0x12f8   :  { %v4678_v11 = vpop.f32.mrf.mxu0  ;;  %v9431_v4 = vpop.f32.mrf.mxu1  ;;  %v3203_v49 = vrot.slane %v7924_v59, %v16149_v63  ;;  %v14203_v41 = vrot.slane %v4795_v6, %v16145_v27 }
0x12fa   :  { %v14206_v35 = vrot.slane %v3203_v49, %v16144_v16  ;;  %v16152_v49 = vld [vmem:[#allocation42_spill] sm:$0xff] }
0x12fb   :  { %v4799_v36 = vrot.slane %v7924_v59, %v16152_v49 }
0x12fc   :  { %v3388_v24 = vadd.f32 %v16151_v60, %v14206_v35 }
0x1312   :  { %v4977_v11 = vpop.f32.mrf.mxu0  ;;  %v5018_v4 = vpop.f32.mrf.mxu1 }
0x1313   :  { %v4978_v62 = vadd.f32 %v4977_v11, %v14195_v1 }
0x1314   :  { %v4979_v8 = vpop.f32.mrf.mxu0  ;;  %v9450_v23 = vpop.f32.mrf.mxu1 }
0x1315   :  { %v5024_v28 = vadd.f32 %v4978_v62, %v3386_v19  ;;  %v4980_v63 = vadd.f32 %v4979_v8, %v14203_v41  ;;  %v16153_v19 = vld [vmem:[#allocation26_spill] sm:$0xff]  ;;  %v14214_v62 = vrot.slane %v4799_v36, %v16145_v27 }
0x1316   :  { %v4981_v45 = vpop.f32.mrf.mxu0  ;;  %v5021_v47 = vpop.f32.mrf.mxu1 }
0x1317   :  { %v8078_v9 = vmul.f32 -1.442695, %v5024_v28  ;;  %v5031_v11 = vadd.f32 %v4980_v63, %v3388_v24  ;;  %v3207_v45 = vrot.slane %v7924_v59, %v16153_v19  ;;  %v16154_v47 = vld [vmem:[#allocation41_spill] sm:$0xff] }
0x1318   :  { %v4982_v32 = vpop.f32.mrf.mxu0  ;;  %v9451_v50 = vpop.f32.mrf.mxu1 }
0x1319   :  { %10455 = vpow2.f32 %v8078_v9  ;;  %v8079_v6 = vmul.f32 -1.442695, %v5031_v11  ;;  %v14217_v50 = vrot.slane %v3207_v45, %v16144_v16  ;;  %v5019_v9 = vadd.f32 %v5018_v4, %v14214_v62  ;;  %v16155_v4 = vld [vmem:[#allocation12_spill] sm:$0xff] }
0x131b   :  { %10457 = vpow2.f32 %v8079_v6  ;;  %v3427_v63 = vadd.f32 %v16154_v47, %v14217_v50  ;;  %v16160_v47 = vld [vmem:[#allocation38_spill] sm:$0xff] }
0x1326   :  { %v10456_v1 = vpop.eup %10455 }
0x1327   :  { %v5028_v23 = vadd.f32 1.0, %v10456_v1 }
0x1328   :  { %v10458_v8 = vpop.eup %10457 }
0x1329   :  { %10459 = vrcp.f32 %v5028_v23  ;;  %v5035_v32 = vadd.f32 1.0, %v10458_v8  ;;  %v16156_v8 = vld [vmem:[#allocation2_spill] sm:$0xff] }
0x132b   :  { %10461 = vrcp.f32 %v5035_v32  ;;  %v16157_v32 = vld [vmem:[#allocation23_spill] sm:$0xff] }
0x1336   :  { %v10460_v24 = vpop.eup %10459 }
0x1337   :  { %v5038_v1 = vmul.f32 %v10460_v24, %v5019_v9  ;;  %v16158_v9 = vld [vmem:[#allocation24_spill] sm:$0xff]  ;;  %v16159_v24 = vld [vmem:[#allocation25_spill] sm:$0xff] }
0x1338   :  { %v10462_v60 = vpop.eup %10461 }
0x1339   :  { %v5039_v28 = vadd.f32 %v5038_v1, %v3427_v63  ;;  %v5041_v59 = vsub.f32 1.0, %v10462_v60  ;;  %v5043_v6 = vmul.f32 0.0, %v10462_v60  ;;  %v16161_v63 = vld [vmem:[#allocation32_spill] sm:$0xff]  ;;  %v16164_v60 = vld [vmem:[#allocation21_spill] sm:$0xff] }
0x133a   :  { %v16162_v1 = vld [vmem:[#allocation16_spill] sm:$0xff] }
0x133b   :  { %10463 = vtanh.f32 %v5039_v28  ;;  %v16163_v28 = vld [vmem:[#allocation17_spill] sm:$0xff] }
0x1348   :  { %v10464_v11 = vpop.eup %10463 }
0x1349   :  { %v5042_v36 = vmul.f32 %v10464_v11, %v5041_v59 }
0x134b   :  { %v14222_v23 = vadd.f32 %v5043_v6, %v5042_v36 }
0x134d   :  { %v5045_v45 = vpack.c.bf16 %v14222_v23, %v14222_v23 }
0x134f   :  { %5235 = vmatmul.mubr.bf16.vlgmr.msra.gmra.mxu0 %v5045_v45  ;;  %9469 = vmatmul.mubr.bf16.vlgmr.msra.gmra.mxu1 %v5045_v45 }
0x1350   :  { %5284 = vmatpush1.bf16.msra.mxu0 %v13876_v34  ;;  %9473 = vmatpush3.bf16.msra.mxu1 %v13881_v31 }
0x1351   :  { %5285 = vmatprep.subr.bf16.mxu0 %v13886_v12  ;;  %9474 = vmatprep.subr.bf16.mxu1 %v15900_v61 }
0x1352   :  { %5315 = vmatprep.mubr.bf16.mxu0 %v15901_v2  ;;  %9488 = vmatprep.mubr.msk.bf16.mxu1 %vm10796_vm0, %v15900_v61 }
0x1354   :  { %5286 = vmatpush1.bf16.msra.mxu0 %v13892_v0  ;;  %9475 = vmatpush3.bf16.msra.mxu1 %v13898_v7 }
0x1355   :  { %5287 = vmatprep.subr.bf16.mxu0 %v13904_v14  ;;  %9476 = vmatprep.subr.bf16.mxu1 %v15900_v61 }
0x1358   :  { %5288 = vmatpush1.bf16.msra.mxu0 %v13914_v46  ;;  %9477 = vmatpush3.bf16.msra.mxu1 %v13920_v43 }
0x1359   :  { %5289 = vmatprep.subr.bf16.mxu0 %v13926_v13  ;;  %9478 = vmatprep.subr.bf16.mxu1 %v15900_v61 }
0x135c   :  { %5290 = vmatpush1.bf16.msra.mxu0 %v13933_v57  ;;  %9479 = vmatpush3.bf16.msra.mxu1 %v13939_v56 }
0x135d   :  { %5291 = vmatprep.subr.bf16.mxu0 %v13945_v15  ;;  %9480 = vmatprep.subr.bf16.mxu1 %v15900_v61 }
0x1360   :  { %5292 = vmatpush1.bf16.msra.mxu0 %v13952_v58  ;;  %9481 = vmatpush3.bf16.msra.mxu1 %v13958_v40 }
0x1361   :  { %5293 = vmatprep.subr.bf16.mxu0 %v13964_v52  ;;  %9482 = vmatprep.subr.bf16.mxu1 %v15900_v61 }
0x1364   :  { %5294 = vmatpush1.bf16.msra.mxu0 %v13971_v44  ;;  %9483 = vmatpush3.bf16.msra.mxu1 %v13977_v42 }
0x1365   :  { %5295 = vmatprep.subr.bf16.mxu0 %v13983_v29  ;;  %9484 = vmatprep.subr.bf16.mxu1 %v15900_v61 }
0x1368   :  { %5296 = vmatpush1.bf16.msra.mxu0 %v13990_v39  ;;  %9485 = vmatpush3.bf16.msra.mxu1 %v13996_v21 }
0x1369   :  { %5297 = vmatprep.subr.bf16.mxu0 %v14002_v18  ;;  %9486 = vmatprep.subr.bf16.mxu1 %v15900_v61 }
0x136c   :  { %5298 = vmatpush1.bf16.msra.mxu0 %v14009_v37  ;;  %9487 = vmatpush3.bf16.msra.mxu1 %v14015_v5 }
0x136d   :  { %5386 = vmatprep.subr.bf16.mxu0 %v14030_v17  ;;  %9492 = vmatprep.subr.bf16.mxu1 %v15900_v61 }
0x136f   :  { %5316 = vmatmul.mubr.bf16.vlgmr.msra.gmra.mxu0 %v5045_v45  ;;  %9489 = vmatmul.mubr.bf16.vlgmr.msra.gmra.mxu1 %v5045_v45 }
0x1370   :  { %5387 = vmatpush1.bf16.msra.mxu0 %v14036_v25  ;;  %9493 = vmatpush3.bf16.msra.mxu1 %v14041_v38 }
0x1371   :  { %5388 = vmatprep.subr.bf16.mxu0 %v14048_v10  ;;  %9494 = vmatprep.subr.bf16.mxu1 %v15900_v61 }
0x1372   :  { %5418 = vmatprep.mubr.bf16.mxu0 %v15901_v2  ;;  %9508 = vmatprep.mubr.msk.bf16.mxu1 %vm10796_vm0, %v15900_v61 }
0x1374   :  { %5389 = vmatpush1.bf16.msra.mxu0 %v14054_v20  ;;  %9495 = vmatpush3.bf16.msra.mxu1 %v14059_v26 }
0x1375   :  { %5390 = vmatprep.subr.bf16.mxu0 %v14067_v33  ;;  %9496 = vmatprep.subr.bf16.mxu1 %v15900_v61 }
0x1378   :  { %5391 = vmatpush1.bf16.msra.mxu0 %v14073_v48  ;;  %9497 = vmatpush3.bf16.msra.mxu1 %v14078_v3 }
0x1379   :  { %5392 = vmatprep.subr.bf16.mxu0 %v14086_v54  ;;  %9498 = vmatprep.subr.bf16.mxu1 %v15900_v61 }
0x137c   :  { %5393 = vmatpush1.bf16.msra.mxu0 %v14092_v55  ;;  %9499 = vmatpush3.bf16.msra.mxu1 %v14097_v53 }
0x137d   :  { %5394 = vmatprep.subr.bf16.mxu0 %v14105_v51  ;;  %9500 = vmatprep.subr.bf16.mxu1 %v15900_v61 }
0x1380   :  { %5395 = vmatpush1.bf16.msra.mxu0 %v14110_v22  ;;  %9501 = vmatpush3.bf16.msra.mxu1 %v14115_v30 }
0x1381   :  { %5396 = vmatprep.subr.bf16.mxu0 %v16155_v4  ;;  %9502 = vmatprep.subr.bf16.mxu1 %v15900_v61 }
0x1384   :  { %5397 = vmatpush1.bf16.msra.mxu0 %v16156_v8  ;;  %9503 = vmatpush3.bf16.msra.mxu1 %v16157_v32 }
0x1385   :  { %5398 = vmatprep.subr.bf16.mxu0 %v16158_v9  ;;  %9504 = vmatprep.subr.bf16.mxu1 %v15900_v61 }
0x1388   :  { %5399 = vmatpush1.bf16.msra.mxu0 %v16159_v24  ;;  %9505 = vmatpush3.bf16.msra.mxu1 %v16160_v47  ;;  %v16169_v47 = vld [vmem:[#allocation5_spill] sm:$0xff]  ;;  %v16170_v24 = vld [vmem:[#allocation27_spill] sm:$0xff] }
0x1389   :  { %5400 = vmatprep.subr.bf16.mxu0 %v16161_v63  ;;  %9506 = vmatprep.subr.bf16.mxu1 %v15900_v61 }
0x138c   :  { %5401 = vmatpush1.bf16.msra.mxu0 %v16162_v1  ;;  %9507 = vmatpush3.bf16.msra.mxu1 %v16163_v28  ;;  %v16168_v1 = vld [vmem:[#allocation29_spill] sm:$0xff] }
0x138d   :  { %5467 = vmatprep.subr.bf16.mxu0 %v16164_v60  ;;  %9512 = vmatprep.subr.bf16.mxu1 %v15900_v61  ;;  %v3570_v28 = vadd.f32 %v16169_v47, %v16168_v1 }
0x140f   :  { %v14296_v59 = vpop.f32.mrf.mxu0  ;;  %v14298_v11 = vpop.f32.mrf.mxu1 }
0x1410   :  { %16165 = vst [vmem:[#allocation40_spill] sm:$0xff] %v14296_v59  ;;  %16166 = vst [vmem:[#allocation28_spill] sm:$0xff] %v14298_v11 }
0x1411   :  { %v14300_v36 = vpop.f32.mrf.mxu0  ;;  %v9470_v6 = vpop.f32.mrf.mxu1 }
0x1412   :  { %16167 = vst [vmem:[#allocation31_spill] sm:$0xff] %v14300_v36 }
0x1413   :  { %v5240_v45 = vpop.f32.mrf.mxu0  ;;  %v5280_v19 = vpop.f32.mrf.mxu1 }
0x1415   :  { %v5241_v49 = vpop.f32.mrf.mxu0  ;;  %v9471_v27 = vpop.f32.mrf.mxu1 }
0x1416   :  { %v16171_v49 = vld [vmem:[#allocation6_spill] sm:$0xff] }
0x1417   :  { %v3572_v27 = vadd.f32 %v16171_v49, %v14206_v35 }
0x142f   :  { %v5317_v16 = vpop.f32.mrf.mxu0  ;;  %v5358_v63 = vpop.f32.mrf.mxu1 }
0x1430   :  { %v5318_v60 = vadd.f32 %v5317_v16, %v16170_v24 }
0x1431   :  { %v5319_v9 = vpop.f32.mrf.mxu0  ;;  %v9490_v32 = vpop.f32.mrf.mxu1 }
0x1432   :  { %v5364_v8 = vadd.f32 %v5318_v60, %v3570_v28  ;;  %v5320_v36 = vadd.f32 %v5319_v9, %v14203_v41  ;;  %v5359_v28 = vadd.f32 %v5358_v63, %v14214_v62  ;;  %v16174_v63 = vld [vmem:[#allocation12_spill] sm:$0xff] }
0x1433   :  { %v5321_v59 = vpop.f32.mrf.mxu0  ;;  %v5361_v4 = vpop.f32.mrf.mxu1 }
0x1434   :  { %v8104_v11 = vmul.f32 -1.442695, %v5364_v8  ;;  %v5371_v19 = vadd.f32 %v5320_v36, %v3572_v27  ;;  %v16172_v8 = vld [vmem:[#allocation4_spill] sm:$0xff]  ;;  %v16175_v27 = vld [vmem:[#allocation2_spill] sm:$0xff] }
0x1435   :  { %v5322_v6 = vpop.f32.mrf.mxu0  ;;  %v9491_v45 = vpop.f32.mrf.mxu1  ;;  %v3611_v9 = vadd.f32 %v16172_v8, %v14217_v50  ;;  %v16182_v8 = vld [vmem:[#allocation17_spill] sm:$0xff] }
0x1436   :  { %10465 = vpow2.f32 %v8104_v11  ;;  %v8105_v30 = vmul.f32 -1.442695, %v5371_v19  ;;  %v16176_v19 = vld [vmem:[#allocation23_spill] sm:$0xff] }
0x1438   :  { %10467 = vpow2.f32 %v8105_v30 }
0x1443   :  { %v10466_v47 = vpop.eup %10465 }
0x1444   :  { %v5368_v1 = vadd.f32 1.0, %v10466_v47  ;;  %v16177_v47 = vld [vmem:[#allocation24_spill] sm:$0xff] }
0x1445   :  { %v10468_v16 = vpop.eup %10467 }
0x1446   :  { %10469 = vrcp.f32 %v5368_v1  ;;  %v5375_v32 = vadd.f32 1.0, %v10468_v16  ;;  %v16178_v16 = vld [vmem:[#allocation25_spill] sm:$0xff] }
0x1448   :  { %10471 = vrcp.f32 %v5375_v32  ;;  %v16179_v32 = vld [vmem:[#allocation38_spill] sm:$0xff] }
0x1453   :  { %v10470_v4 = vpop.eup %10469 }
0x1454   :  { %v5378_v60 = vmul.f32 %v10470_v4, %v5359_v28  ;;  %v16180_v28 = vld [vmem:[#allocation32_spill] sm:$0xff] }
0x1455   :  { %v10472_v6 = vpop.eup %10471  ;;  %v16181_v4 = vld [vmem:[#allocation16_spill] sm:$0xff] }
0x1456   :  { %v5379_v59 = vadd.f32 %v5378_v60, %v3611_v9  ;;  %v5381_v11 = vsub.f32 1.0, %v10472_v6  ;;  %v5383_v30 = vmul.f32 %v10472_v6, %v14222_v23  ;;  %v16173_v23 = vld [vmem:[#allocation15_spill] sm:$0xff]  ;;  %v16183_v9 = vld [vmem:[#allocation21_spill] sm:$0xff] }
0x1458   :  { %10473 = vtanh.f32 %v5379_v59 }
0x1465   :  { %v10474_v36 = vpop.eup %10473 }
0x1466   :  { %v5382_v45 = vmul.f32 %v10474_v36, %v5381_v11 }
0x1468   :  { %v14312_v49 = vadd.f32 %v5383_v30, %v5382_v45 }
0x146a   :  { %v5385_v1 = vpack.c.bf16 %v14312_v49, %v14312_v49 }
0x146c   :  { %5419 = vmatmul.mubr.bf16.vlgmr.msra.gmra.mxu0 %v5385_v1  ;;  %9509 = vmatmul.mubr.bf16.vlgmr.msra.gmra.mxu1 %v5385_v1 }
0x146d   :  { %5468 = vmatpush1.bf16.msra.mxu0 %v13876_v34  ;;  %9513 = vmatpush3.bf16.msra.mxu1 %v13881_v31 }
0x146e   :  { %5469 = vmatprep.subr.bf16.mxu0 %v13886_v12  ;;  %9514 = vmatprep.subr.bf16.mxu1 %v15900_v61 }
0x146f   :  { %5499 = vmatprep.mubr.bf16.mxu0 %v15901_v2  ;;  %9528 = vmatprep.mubr.msk.bf16.mxu1 %vm10796_vm0, %v15900_v61 }
0x1471   :  { %5470 = vmatpush1.bf16.msra.mxu0 %v13892_v0  ;;  %9515 = vmatpush3.bf16.msra.mxu1 %v13898_v7 }
0x1472   :  { %5471 = vmatprep.subr.bf16.mxu0 %v13904_v14  ;;  %9516 = vmatprep.subr.bf16.mxu1 %v15900_v61 }
0x1475   :  { %5472 = vmatpush1.bf16.msra.mxu0 %v13914_v46  ;;  %9517 = vmatpush3.bf16.msra.mxu1 %v13920_v43 }
0x1476   :  { %5473 = vmatprep.subr.bf16.mxu0 %v13926_v13  ;;  %9518 = vmatprep.subr.bf16.mxu1 %v15900_v61 }
0x1479   :  { %5474 = vmatpush1.bf16.msra.mxu0 %v13933_v57  ;;  %9519 = vmatpush3.bf16.msra.mxu1 %v13939_v56 }
0x147a   :  { %5475 = vmatprep.subr.bf16.mxu0 %v13945_v15  ;;  %9520 = vmatprep.subr.bf16.mxu1 %v15900_v61 }
0x147d   :  { %5476 = vmatpush1.bf16.msra.mxu0 %v13952_v58  ;;  %9521 = vmatpush3.bf16.msra.mxu1 %v13958_v40 }
0x147e   :  { %5477 = vmatprep.subr.bf16.mxu0 %v13964_v52  ;;  %9522 = vmatprep.subr.bf16.mxu1 %v15900_v61 }
0x1481   :  { %5478 = vmatpush1.bf16.msra.mxu0 %v13971_v44  ;;  %9523 = vmatpush3.bf16.msra.mxu1 %v13977_v42 }
0x1482   :  { %5479 = vmatprep.subr.bf16.mxu0 %v13983_v29  ;;  %9524 = vmatprep.subr.bf16.mxu1 %v15900_v61 }
0x1485   :  { %5480 = vmatpush1.bf16.msra.mxu0 %v13990_v39  ;;  %9525 = vmatpush3.bf16.msra.mxu1 %v13996_v21 }
0x1486   :  { %5481 = vmatprep.subr.bf16.mxu0 %v14002_v18  ;;  %9526 = vmatprep.subr.bf16.mxu1 %v15900_v61 }
0x1489   :  { %5482 = vmatpush1.bf16.msra.mxu0 %v14009_v37  ;;  %9527 = vmatpush3.bf16.msra.mxu1 %v14015_v5 }
0x148a   :  { %5570 = vmatprep.subr.bf16.mxu0 %v14030_v17  ;;  %9532 = vmatprep.subr.bf16.mxu1 %v15900_v61 }
0x148c   :  { %5500 = vmatmul.mubr.bf16.vlgmr.msra.gmra.mxu0 %v5385_v1  ;;  %9529 = vmatmul.mubr.bf16.vlgmr.msra.gmra.mxu1 %v5385_v1 }
0x148d   :  { %5571 = vmatpush1.bf16.msra.mxu0 %v14036_v25  ;;  %9533 = vmatpush3.bf16.msra.mxu1 %v14041_v38 }
0x148e   :  { %5572 = vmatprep.subr.bf16.mxu0 %v14048_v10  ;;  %9534 = vmatprep.subr.bf16.mxu1 %v15900_v61 }
0x148f   :  { %5602 = vmatprep.mubr.bf16.mxu0 %v15901_v2  ;;  %9548 = vmatprep.mubr.msk.bf16.mxu1 %vm10796_vm0, %v15900_v61 }
0x1491   :  { %5573 = vmatpush1.bf16.msra.mxu0 %v14054_v20  ;;  %9535 = vmatpush3.bf16.msra.mxu1 %v14059_v26 }
0x1492   :  { %5574 = vmatprep.subr.bf16.mxu0 %v14067_v33  ;;  %9536 = vmatprep.subr.bf16.mxu1 %v15900_v61 }
0x1495   :  { %5575 = vmatpush1.bf16.msra.mxu0 %v14073_v48  ;;  %9537 = vmatpush3.bf16.msra.mxu1 %v14078_v3 }
0x1496   :  { %5576 = vmatprep.subr.bf16.mxu0 %v14086_v54  ;;  %9538 = vmatprep.subr.bf16.mxu1 %v15900_v61 }
0x1499   :  { %5577 = vmatpush1.bf16.msra.mxu0 %v14092_v55  ;;  %9539 = vmatpush3.bf16.msra.mxu1 %v14097_v53 }
0x149a   :  { %5578 = vmatprep.subr.bf16.mxu0 %v14105_v51  ;;  %9540 = vmatprep.subr.bf16.mxu1 %v15900_v61 }
0x149d   :  { %5579 = vmatpush1.bf16.msra.mxu0 %v14110_v22  ;;  %9541 = vmatpush3.bf16.msra.mxu1 %v16173_v23 }
0x149e   :  { %5580 = vmatprep.subr.bf16.mxu0 %v16174_v63  ;;  %9542 = vmatprep.subr.bf16.mxu1 %v15900_v61 }
0x14a1   :  { %5581 = vmatpush1.bf16.msra.mxu0 %v16175_v27  ;;  %9543 = vmatpush3.bf16.msra.mxu1 %v16176_v19 }
0x14a2   :  { %5582 = vmatprep.subr.bf16.mxu0 %v16177_v47  ;;  %9544 = vmatprep.subr.bf16.mxu1 %v15900_v61 }
0x14a5   :  { %5583 = vmatpush1.bf16.msra.mxu0 %v16178_v16  ;;  %9545 = vmatpush3.bf16.msra.mxu1 %v16179_v32  ;;  %v16188_v16 = vld [vmem:[#allocation8_spill] sm:$0xff] }
0x14a6   :  { %5584 = vmatprep.subr.bf16.mxu0 %v16180_v28  ;;  %9546 = vmatprep.subr.bf16.mxu1 %v15900_v61 }
0x14a9   :  { %5585 = vmatpush1.bf16.msra.mxu0 %v16181_v4  ;;  %9547 = vmatpush3.bf16.msra.mxu1 %v16182_v8  ;;  %v16187_v4 = vld [vmem:[#allocation29_spill] sm:$0xff] }
0x14aa   :  { %5651 = vmatprep.subr.bf16.mxu0 %v16183_v9  ;;  %9552 = vmatprep.subr.bf16.mxu1 %v15900_v61  ;;  %v3754_v8 = vadd.f32 %v16188_v16, %v16187_v4 }
0x152c   :  { %v14386_v60 = vpop.f32.mrf.mxu0  ;;  %v14388_v59 = vpop.f32.mrf.mxu1 }
0x152d   :  { %16184 = vst [vmem:[#allocation3_spill] sm:$0xff] %v14386_v60  ;;  %16185 = vst [vmem:[#allocation41_spill] sm:$0xff] %v14388_v59 }
0x152e   :  { %v14390_v6 = vpop.f32.mrf.mxu0  ;;  %v9510_v11 = vpop.f32.mrf.mxu1 }
0x152f   :  { %16186 = vst [vmem:[#allocation5_spill] sm:$0xff] %v14390_v6 }
0x1530   :  { %v5424_v36 = vpop.f32.mrf.mxu0  ;;  %v5464_v45 = vpop.f32.mrf.mxu1 }
0x1531   :  { %v16189_v45 = vld [vmem:[#allocation14_spill] sm:$0xff] }
0x1532   :  { %v5425_v30 = vpop.f32.mrf.mxu0  ;;  %v9511_v1 = vpop.f32.mrf.mxu1 }
0x1533   :  { %v3756_v30 = vadd.f32 %v16189_v45, %v14206_v35 }
0x154c   :  { %v5501_v28 = vpop.f32.mrf.mxu0  ;;  %v5542_v32 = vpop.f32.mrf.mxu1 }
0x154d   :  { %v5502_v9 = vadd.f32 %v5501_v28, %v16170_v24 }
0x154e   :  { %v5503_v47 = vpop.f32.mrf.mxu0  ;;  %v9530_v19 = vpop.f32.mrf.mxu1 }
0x154f   :  { %v5548_v27 = vadd.f32 %v5502_v9, %v3754_v8  ;;  %v5504_v6 = vadd.f32 %v5503_v47, %v14203_v41  ;;  %v5543_v8 = vadd.f32 %v5542_v32, %v14214_v62  ;;  %v16205_v32 = vld [vmem:[#allocation29_spill] sm:$0xff] }
0x1550   :  { %v5505_v60 = vpop.f32.mrf.mxu0  ;;  %v5545_v63 = vpop.f32.mrf.mxu1 }
0x1551   :  { %v8106_v59 = vmul.f32 -1.442695, %v5548_v27  ;;  %v5555_v1 = vadd.f32 %v5504_v6, %v3756_v30  ;;  %v16190_v27 = vld [vmem:[#allocation7_spill] sm:$0xff]  ;;  %v16206_v30 = vld [vmem:[#allocation44_spill] sm:$0xff] }
0x1552   :  { %v5506_v11 = vpop.f32.mrf.mxu0  ;;  %v9531_v36 = vpop.f32.mrf.mxu1  ;;  %v3795_v47 = vadd.f32 %v16190_v27, %v14217_v50 }
0x1553   :  { %10475 = vpow2.f32 %v8106_v59  ;;  %v8107_v23 = vmul.f32 -1.442695, %v5555_v1  ;;  %v3938_v1 = vadd.f32 %v16206_v30, %v16205_v32 }
0x1555   :  { %10477 = vpow2.f32 %v8107_v23 }
0x1560   :  { %v10476_v16 = vpop.eup %10475 }
0x1561   :  { %v5552_v4 = vadd.f32 1.0, %v10476_v16 }
0x1562   :  { %v10478_v28 = vpop.eup %10477 }
0x1563   :  { %10479 = vrcp.f32 %v5552_v4  ;;  %v5559_v19 = vadd.f32 1.0, %v10478_v28 }
0x1565   :  { %10481 = vrcp.f32 %v5559_v19 }
0x1570   :  { %v10480_v63 = vpop.eup %10479 }
0x1571   :  { %v5562_v60 = vmul.f32 %v10480_v63, %v5543_v8 }
0x1572   :  { %v10482_v11 = vpop.eup %10481 }
0x1573   :  { %v5563_v9 = vadd.f32 %v5562_v60, %v3795_v47  ;;  %v5565_v59 = vsub.f32 1.0, %v10482_v11  ;;  %v5567_v23 = vmul.f32 %v10482_v11, %v14312_v49 }
0x1575   :  { %10483 = vtanh.f32 %v5563_v9 }
0x1582   :  { %v10484_v6 = vpop.eup %10483 }
0x1583   :  { %v5566_v36 = vmul.f32 %v10484_v6, %v5565_v59  ;;  %v16207_v59 = vld [vmem:[#allocation45_spill] sm:$0xff] }
0x1584   :  { %v3940_v6 = vadd.f32 %v16207_v59, %v14206_v35  ;;  %v14532_v59 = vld [vmem:[%s15696_s3 + $0x218] ss:$12 sps:$4 sm:$0xff]  }
0x1585   :  { %v14402_v45 = vadd.f32 %v5567_v23, %v5566_v36 }
0x1587   :  { %v5569_v4 = vpack.c.bf16 %v14402_v45, %v14402_v45 }
0x1589   :  { %5603 = vmatmul.mubr.bf16.vlgmr.msra.gmra.mxu0 %v5569_v4  ;;  %9549 = vmatmul.mubr.bf16.vlgmr.msra.gmra.mxu1 %v5569_v4 }
0x158a   :  { %5652 = vmatpush1.bf16.msra.mxu0 %v13876_v34  ;;  %9553 = vmatpush3.bf16.msra.mxu1 %v13881_v31  ;;  %v16191_v34 = vld [vmem:[#allocation15_spill] sm:$0xff]  ;;  %v16192_v31 = vld [vmem:[#allocation12_spill] sm:$0xff] }
0x158b   :  { %5653 = vmatprep.subr.bf16.mxu0 %v13886_v12  ;;  %9554 = vmatprep.subr.bf16.mxu1 %v15900_v61  ;;  %v16193_v12 = vld [vmem:[#allocation2_spill] sm:$0xff] }
0x158c   :  { %5683 = vmatprep.mubr.bf16.mxu0 %v15901_v2  ;;  %9568 = vmatprep.mubr.msk.bf16.mxu1 %vm10796_vm0, %v15900_v61 }
0x158e   :  { %5654 = vmatpush1.bf16.msra.mxu0 %v13892_v0  ;;  %9555 = vmatpush3.bf16.msra.mxu1 %v13898_v7  ;;  %v16194_v0 = vld [vmem:[#allocation23_spill] sm:$0xff]  ;;  %v16195_v7 = vld [vmem:[#allocation24_spill] sm:$0xff] }
0x158f   :  { %5655 = vmatprep.subr.bf16.mxu0 %v13904_v14  ;;  %9556 = vmatprep.subr.bf16.mxu1 %v15900_v61  ;;  %v16196_v14 = vld [vmem:[#allocation25_spill] sm:$0xff] }
0x1592   :  { %5656 = vmatpush1.bf16.msra.mxu0 %v13914_v46  ;;  %9557 = vmatpush3.bf16.msra.mxu1 %v13920_v43  ;;  %v16197_v46 = vld [vmem:[#allocation38_spill] sm:$0xff]  ;;  %v16198_v43 = vld [vmem:[#allocation32_spill] sm:$0xff] }
0x1593   :  { %5657 = vmatprep.subr.bf16.mxu0 %v13926_v13  ;;  %9558 = vmatprep.subr.bf16.mxu1 %v15900_v61  ;;  %v16199_v13 = vld [vmem:[#allocation16_spill] sm:$0xff] }
0x1596   :  { %5658 = vmatpush1.bf16.msra.mxu0 %v13933_v57  ;;  %9559 = vmatpush3.bf16.msra.mxu1 %v13939_v56  ;;  %v16200_v57 = vld [vmem:[#allocation17_spill] sm:$0xff] }
0x1597   :  { %5659 = vmatprep.subr.bf16.mxu0 %v13945_v15  ;;  %9560 = vmatprep.subr.bf16.mxu1 %v15900_v61  ;;  %v14477_v56 = vld [vmem:[%s15696_s3 + $0x22c] ss:$12 sps:$4 sm:$0xff]  }
0x1598   :  { %16201 = vst [vmem:[#allocation27_spill] sm:$0xff] %v14477_v56 }
0x159a   :  { %5660 = vmatpush1.bf16.msra.mxu0 %v13952_v58  ;;  %9561 = vmatpush3.bf16.msra.mxu1 %v13958_v40 }
0x159b   :  { %5661 = vmatprep.subr.bf16.mxu0 %v13964_v52  ;;  %9562 = vmatprep.subr.bf16.mxu1 %v15900_v61 }
0x159e   :  { %5662 = vmatpush1.bf16.msra.mxu0 %v13971_v44  ;;  %9563 = vmatpush3.bf16.msra.mxu1 %v13977_v42 }
0x159f   :  { %5663 = vmatprep.subr.bf16.mxu0 %v13983_v29  ;;  %9564 = vmatprep.subr.bf16.mxu1 %v15900_v61 }
0x15a2   :  { %5664 = vmatpush1.bf16.msra.mxu0 %v13990_v39  ;;  %9565 = vmatpush3.bf16.msra.mxu1 %v13996_v21 }
0x15a3   :  { %5665 = vmatprep.subr.bf16.mxu0 %v14002_v18  ;;  %9566 = vmatprep.subr.bf16.mxu1 %v15900_v61 }
0x15a6   :  { %5666 = vmatpush1.bf16.msra.mxu0 %v14009_v37  ;;  %9567 = vmatpush3.bf16.msra.mxu1 %v14015_v5 }
0x15a7   :  { %5754 = vmatprep.subr.bf16.mxu0 %v14030_v17  ;;  %9572 = vmatprep.subr.bf16.mxu1 %v15900_v61 }
0x15a9   :  { %5684 = vmatmul.mubr.bf16.vlgmr.msra.gmra.mxu0 %v5569_v4  ;;  %9569 = vmatmul.mubr.bf16.vlgmr.msra.gmra.mxu1 %v5569_v4 }
0x15aa   :  { %5755 = vmatpush1.bf16.msra.mxu0 %v14036_v25  ;;  %9573 = vmatpush3.bf16.msra.mxu1 %v14041_v38 }
0x15ab   :  { %5756 = vmatprep.subr.bf16.mxu0 %v14048_v10  ;;  %9574 = vmatprep.subr.bf16.mxu1 %v15900_v61 }
0x15ac   :  { %5786 = vmatprep.mubr.bf16.mxu0 %v15901_v2  ;;  %9588 = vmatprep.mubr.msk.bf16.mxu1 %vm10796_vm0, %v15900_v61 }
0x15ae   :  { %5757 = vmatpush1.bf16.msra.mxu0 %v14054_v20  ;;  %9575 = vmatpush3.bf16.msra.mxu1 %v14059_v26 }
0x15af   :  { %5758 = vmatprep.subr.bf16.mxu0 %v14067_v33  ;;  %9576 = vmatprep.subr.bf16.mxu1 %v15900_v61 }
0x15b2   :  { %5759 = vmatpush1.bf16.msra.mxu0 %v14073_v48  ;;  %9577 = vmatpush3.bf16.msra.mxu1 %v14078_v3 }
0x15b3   :  { %5760 = vmatprep.subr.bf16.mxu0 %v14086_v54  ;;  %9578 = vmatprep.subr.bf16.mxu1 %v15900_v61 }
0x15b6   :  { %5761 = vmatpush1.bf16.msra.mxu0 %v14092_v55  ;;  %9579 = vmatpush3.bf16.msra.mxu1 %v14097_v53 }
0x15b7   :  { %5762 = vmatprep.subr.bf16.mxu0 %v14105_v51  ;;  %9580 = vmatprep.subr.bf16.mxu1 %v15900_v61 }
0x15ba   :  { %5763 = vmatpush1.bf16.msra.mxu0 %v14110_v22  ;;  %9581 = vmatpush3.bf16.msra.mxu1 %v16191_v34 }
0x15bb   :  { %5764 = vmatprep.subr.bf16.mxu0 %v16192_v31  ;;  %9582 = vmatprep.subr.bf16.mxu1 %v15900_v61 }
0x15be   :  { %5765 = vmatpush1.bf16.msra.mxu0 %v16193_v12  ;;  %9583 = vmatpush3.bf16.msra.mxu1 %v16194_v0 }
0x15bf   :  { %5766 = vmatprep.subr.bf16.mxu0 %v16195_v7  ;;  %9584 = vmatprep.subr.bf16.mxu1 %v15900_v61 }
0x15c2   :  { %5767 = vmatpush1.bf16.msra.mxu0 %v16196_v14  ;;  %9585 = vmatpush3.bf16.msra.mxu1 %v16197_v46 }
0x15c3   :  { %5768 = vmatprep.subr.bf16.mxu0 %v16198_v43  ;;  %9586 = vmatprep.subr.bf16.mxu1 %v15900_v61 }
0x15c6   :  { %5769 = vmatpush1.bf16.msra.mxu0 %v16199_v13  ;;  %9587 = vmatpush3.bf16.msra.mxu1 %v16200_v57 }
0x15c7   :  { %5835 = vmatprep.subr.bf16.mxu0 %v14477_v56  ;;  %9592 = vmatprep.subr.bf16.mxu1 %v15900_v61 }
0x1649   :  { %v14481_v15 = vpop.f32.mrf.mxu0  ;;  %v14483_v58 = vpop.f32.mrf.mxu1 }
0x164a   :  { %16202 = vst [vmem:[#allocation6_spill] sm:$0xff] %v14481_v15  ;;  %16203 = vst [vmem:[#allocation4_spill] sm:$0xff] %v14483_v58 }
0x164b   :  { %v14485_v40 = vpop.f32.mrf.mxu0  ;;  %v9550_v52 = vpop.f32.mrf.mxu1 }
0x164c   :  { %16204 = vst [vmem:[#allocation21_spill] sm:$0xff] %v14485_v40 }
0x164d   :  { %v5608_v44 = vpop.f32.mrf.mxu0  ;;  %v5648_v42 = vpop.f32.mrf.mxu1 }
0x164f   :  { %v5609_v29 = vpop.f32.mrf.mxu0  ;;  %v9551_v39 = vpop.f32.mrf.mxu1 }
0x1669   :  { %v5685_v21 = vpop.f32.mrf.mxu0  ;;  %v5726_v49 = vpop.f32.mrf.mxu1 }
0x166a   :  { %v5686_v16 = vadd.f32 %v5685_v21, %v16170_v24  ;;  %v5727_v29 = vadd.f32 %v5726_v49, %v14214_v62  ;;  %v16208_v21 = vld [vmem:[#allocation46_spill] sm:$0xff]  ;;  %v14504_v49 = vld [vmem:[%s15696_s3 + $0x228] ss:$12 sps:$4 sm:$0xff]  }
0x166b   :  { %v5687_v28 = vpop.f32.mrf.mxu0  ;;  %v9570_v19 = vpop.f32.mrf.mxu1  ;;  %v3979_v30 = vadd.f32 %v16208_v21, %v14217_v50  ;;  %v14595_v21 = vld [vmem:[%s15696_s3 + $0x1b4] ss:$12 sps:$4 sm:$0xff]  }
0x166c   :  { %v5732_v8 = vadd.f32 %v5686_v16, %v3938_v1  ;;  %v5688_v60 = vadd.f32 %v5687_v28, %v14203_v41 }
0x166d   :  { %v5689_v63 = vpop.f32.mrf.mxu0  ;;  %v5729_v27 = vpop.f32.mrf.mxu1 }
0x166e   :  { %v8108_v47 = vmul.f32 -1.442695, %v5732_v8  ;;  %v5739_v36 = vadd.f32 %v5688_v60, %v3940_v6  ;;  %v14538_v6 = vld [vmem:[%s15696_s3 + $0x1fc] ss:$12 sps:$4 sm:$0xff]  }
0x166f   :  { %v5690_v9 = vpop.f32.mrf.mxu0  ;;  %v9571_v11 = vpop.f32.mrf.mxu1 }
0x1670   :  { %10485 = vpow2.f32 %v8108_v47  ;;  %v8109_v23 = vmul.f32 -1.442695, %v5739_v36  ;;  %v14510_v9 = vld [vmem:[%s15696_s3 + $0x230] ss:$12 sps:$4 sm:$0xff]   ;;  %v14545_v36 = vld [vmem:[%s15696_s3 + $0x1f8] ss:$12 sps:$4 sm:$0xff]  }
0x1671   :  { %v14526_v11 = vld [vmem:[%s15696_s3 + $0x210] ss:$12 sps:$4 sm:$0xff]  }
0x1672   :  { %10487 = vpow2.f32 %v8109_v23  ;;  %v14551_v23 = vld [vmem:[%s15696_s3 + $0x200] ss:$12 sps:$4 sm:$0xff]  }
0x167d   :  { %v10486_v4 = vpop.eup %10485 }
0x167e   :  { %v5736_v52 = vadd.f32 1.0, %v10486_v4  ;;  %v14557_v4 = vld [vmem:[%s15696_s3 + $0x1e4] ss:$12 sps:$4 sm:$0xff]  }
0x167f   :  { %v10488_v44 = vpop.eup %10487 }
0x1680   :  { %10489 = vrcp.f32 %v5736_v52  ;;  %v5743_v42 = vadd.f32 1.0, %v10488_v44  ;;  %v14564_v52 = vld [vmem:[%s15696_s3 + $0x1e0] ss:$12 sps:$4 sm:$0xff]   ;;  %v14570_v44 = vld [vmem:[%s15696_s3 + $0x1e8] ss:$12 sps:$4 sm:$0xff]  }
0x1682   :  { %10491 = vrcp.f32 %v5743_v42  ;;  %v14576_v42 = vld [vmem:[%s15696_s3 + $0x1cc] ss:$12 sps:$4 sm:$0xff]  }
0x168d   :  { %v10490_v39 = vpop.eup %10489 }
0x168e   :  { %v5746_v1 = vmul.f32 %v10490_v39, %v5727_v29  ;;  %v14583_v29 = vld [vmem:[%s15696_s3 + $0x1c8] ss:$12 sps:$4 sm:$0xff]   ;;  %v14589_v39 = vld [vmem:[%s15696_s3 + $0x1d0] ss:$12 sps:$4 sm:$0xff]  }
0x168f   :  { %v10492_v28 = vpop.eup %10491 }
0x1690   :  { %v5747_v16 = vadd.f32 %v5746_v1, %v3979_v30  ;;  %v5749_v19 = vsub.f32 1.0, %v10492_v28  ;;  %v5751_v27 = vmul.f32 %v10492_v28, %v14402_v45  ;;  %v14516_v45 = vld [vmem:[%s15696_s3 + $0x214] ss:$12 sps:$4 sm:$0xff]   ;;  %v14602_v30 = vld [vmem:[%s15696_s3 + $0x1b0] ss:$12 sps:$4 sm:$0xff]  }
0x1691   :  { %v14608_v1 = vld [vmem:[%s15696_s3 + $0x1b8] ss:$12 sps:$4 sm:$0xff]  }
0x1692   :  { %10493 = vtanh.f32 %v5747_v16  ;;  %v14614_v16 = vld [vmem:[%s15696_s3 + $0x19c] ss:$12 sps:$4 sm:$0xff]   ;;  %v14621_v28 = vld [vmem:[%s15696_s3 + $0x198] ss:$12 sps:$4 sm:$0xff]  }
0x169f   :  { %v10494_v8 = vpop.eup %10493 }
0x16a0   :  { %v5750_v63 = vmul.f32 %v10494_v8, %v5749_v19  ;;  %v14627_v19 = vld [vmem:[%s15696_s3 + $0x1a0] ss:$12 sps:$4 sm:$0xff]  }
0x16a2   :  { %v14497_v47 = vadd.f32 %v5751_v27, %v5750_v63 }
0x16a4   :  { %v5753_v60 = vpack.c.bf16 %v14497_v47, %v14497_v47 }
0x16a6   :  { %5787 = vmatmul.mubr.bf16.vlgmr.msra.gmra.mxu0 %v5753_v60  ;;  %9589 = vmatmul.mubr.bf16.vlgmr.msra.gmra.mxu1 %v5753_v60 }
0x16a7   :  { %5836 = vmatpush1.bf16.msra.mxu0 %v14504_v49  ;;  %9593 = vmatpush3.bf16.msra.mxu1 %v14510_v9 }
0x16a8   :  { %5837 = vmatprep.subr.bf16.mxu0 %v14516_v45  ;;  %9594 = vmatprep.subr.bf16.mxu1 %v15900_v61 }
0x16a9   :  { %5867 = vmatprep.mubr.bf16.mxu0 %v15901_v2  ;;  %9608 = vmatprep.mubr.msk.bf16.mxu1 %vm10796_vm0, %v15900_v61 }
0x16ab   :  { %5838 = vmatpush1.bf16.msra.mxu0 %v14526_v11  ;;  %9595 = vmatpush3.bf16.msra.mxu1 %v14532_v59 }
0x16ac   :  { %5839 = vmatprep.subr.bf16.mxu0 %v14538_v6  ;;  %9596 = vmatprep.subr.bf16.mxu1 %v15900_v61 }
0x16af   :  { %5840 = vmatpush1.bf16.msra.mxu0 %v14545_v36  ;;  %9597 = vmatpush3.bf16.msra.mxu1 %v14551_v23 }
0x16b0   :  { %5841 = vmatprep.subr.bf16.mxu0 %v14557_v4  ;;  %9598 = vmatprep.subr.bf16.mxu1 %v15900_v61 }
0x16b3   :  { %5842 = vmatpush1.bf16.msra.mxu0 %v14564_v52  ;;  %9599 = vmatpush3.bf16.msra.mxu1 %v14570_v44 }
0x16b4   :  { %5843 = vmatprep.subr.bf16.mxu0 %v14576_v42  ;;  %9600 = vmatprep.subr.bf16.mxu1 %v15900_v61 }
0x16b7   :  { %5844 = vmatpush1.bf16.msra.mxu0 %v14583_v29  ;;  %9601 = vmatpush3.bf16.msra.mxu1 %v14589_v39 }
0x16b8   :  { %5845 = vmatprep.subr.bf16.mxu0 %v14595_v21  ;;  %9602 = vmatprep.subr.bf16.mxu1 %v15900_v61 }
0x16bb   :  { %5846 = vmatpush1.bf16.msra.mxu0 %v14602_v30  ;;  %9603 = vmatpush3.bf16.msra.mxu1 %v14608_v1 }
0x16bc   :  { %5847 = vmatprep.subr.bf16.mxu0 %v14614_v16  ;;  %9604 = vmatprep.subr.bf16.mxu1 %v15900_v61 }
0x16bf   :  { %5848 = vmatpush1.bf16.msra.mxu0 %v14621_v28  ;;  %9605 = vmatpush3.bf16.msra.mxu1 %v14627_v19 }
0x16c0   :  { %5849 = vmatprep.subr.bf16.mxu0 %v14002_v18  ;;  %9606 = vmatprep.subr.bf16.mxu1 %v15900_v61 }
0x16c3   :  { %5850 = vmatpush1.bf16.msra.mxu0 %v14009_v37  ;;  %9607 = vmatpush3.bf16.msra.mxu1 %v14015_v5 }
0x16c4   :  { %5938 = vmatprep.subr.bf16.mxu0 %v14030_v17  ;;  %9612 = vmatprep.subr.bf16.mxu1 %v15900_v61 }
0x16c6   :  { %5868 = vmatmul.mubr.bf16.vlgmr.msra.gmra.mxu0 %v5753_v60  ;;  %9609 = vmatmul.mubr.bf16.vlgmr.msra.gmra.mxu1 %v5753_v60 }
0x16c7   :  { %5939 = vmatpush1.bf16.msra.mxu0 %v14036_v25  ;;  %9613 = vmatpush3.bf16.msra.mxu1 %v14041_v38 }
0x16c8   :  { %5940 = vmatprep.subr.bf16.mxu0 %v14048_v10  ;;  %9614 = vmatprep.subr.bf16.mxu1 %v15900_v61 }
0x16c9   :  { %5970 = vmatprep.mubr.bf16.mxu0 %v15901_v2  ;;  %9628 = vmatprep.mubr.msk.bf16.mxu1 %vm10796_vm0, %v15900_v61 }
0x16cb   :  { %5941 = vmatpush1.bf16.msra.mxu0 %v14054_v20  ;;  %9615 = vmatpush3.bf16.msra.mxu1 %v14059_v26 }
0x16cc   :  { %5942 = vmatprep.subr.bf16.mxu0 %v14067_v33  ;;  %9616 = vmatprep.subr.bf16.mxu1 %v15900_v61 }
0x16cf   :  { %5943 = vmatpush1.bf16.msra.mxu0 %v14073_v48  ;;  %9617 = vmatpush3.bf16.msra.mxu1 %v14078_v3  ;;  %v16212_v48 = vld [vmem:[#allocation18_spill] sm:$0xff] }
0x16d0   :  { %5944 = vmatprep.subr.bf16.mxu0 %v14086_v54  ;;  %9618 = vmatprep.subr.bf16.mxu1 %v15900_v61  ;;  %v4122_v3 = vadd.f32 %v16212_v48, %v16205_v32 }
0x16d3   :  { %5945 = vmatpush1.bf16.msra.mxu0 %v14092_v55  ;;  %9619 = vmatpush3.bf16.msra.mxu1 %v14097_v53 }
0x16d4   :  { %5946 = vmatprep.subr.bf16.mxu0 %v14105_v51  ;;  %9620 = vmatprep.subr.bf16.mxu1 %v15900_v61 }
0x16d7   :  { %5947 = vmatpush1.bf16.msra.mxu0 %v14110_v22  ;;  %9621 = vmatpush3.bf16.msra.mxu1 %v16191_v34 }
0x16d8   :  { %5948 = vmatprep.subr.bf16.mxu0 %v16192_v31  ;;  %9622 = vmatprep.subr.bf16.mxu1 %v15900_v61 }
0x16db   :  { %5949 = vmatpush1.bf16.msra.mxu0 %v16193_v12  ;;  %9623 = vmatpush3.bf16.msra.mxu1 %v16194_v0 }
0x16dc   :  { %5950 = vmatprep.subr.bf16.mxu0 %v16195_v7  ;;  %9624 = vmatprep.subr.bf16.mxu1 %v15900_v61 }
0x16df   :  { %5951 = vmatpush1.bf16.msra.mxu0 %v16196_v14  ;;  %9625 = vmatpush3.bf16.msra.mxu1 %v16197_v46  ;;  %v16213_v14 = vld [vmem:[#allocation19_spill] sm:$0xff] }
0x16e0   :  { %5952 = vmatprep.subr.bf16.mxu0 %v16198_v43  ;;  %9626 = vmatprep.subr.bf16.mxu1 %v15900_v61  ;;  %v4124_v46 = vadd.f32 %v16213_v14, %v14206_v35  ;;  %v14777_v14 = vld [vmem:[%s15697_s2 + $0x218] ss:$12 sps:$4 sm:$0xff]  }
0x16e3   :  { %5953 = vmatpush1.bf16.msra.mxu0 %v16199_v13  ;;  %9627 = vmatpush3.bf16.msra.mxu1 %v16200_v57 }
0x16e4   :  { %6019 = vmatprep.subr.bf16.mxu0 %v14477_v56  ;;  %9632 = vmatprep.subr.bf16.mxu1 %v15900_v61 }
0x1766   :  { %v14671_v18 = vpop.f32.mrf.mxu0  ;;  %v14673_v37 = vpop.f32.mrf.mxu1 }
0x1767   :  { %16209 = vst [vmem:[#allocation8_spill] sm:$0xff] %v14671_v18  ;;  %16210 = vst [vmem:[#allocation14_spill] sm:$0xff] %v14673_v37 }
0x1768   :  { %v14675_v5 = vpop.f32.mrf.mxu0  ;;  %v9590_v17 = vpop.f32.mrf.mxu1 }
0x1769   :  { %16211 = vst [vmem:[#allocation7_spill] sm:$0xff] %v14675_v5 }
0x176a   :  { %v5792_v25 = vpop.f32.mrf.mxu0  ;;  %v5832_v38 = vpop.f32.mrf.mxu1 }
0x176b   :  { %v16214_v25 = vld [vmem:[#allocation20_spill] sm:$0xff] }
0x176c   :  { %v5793_v10 = vpop.f32.mrf.mxu0  ;;  %v9591_v20 = vpop.f32.mrf.mxu1  ;;  %v4163_v38 = vadd.f32 %v16214_v25, %v14217_v50  ;;  %v14840_v25 = vld [vmem:[%s15697_s2 + $0x1b4] ss:$12 sps:$4 sm:$0xff]  }
0x176d   :  { %16216 = vst [vmem:[#allocation12_spill] sm:$0xff] %v14840_v25 }
0x1786   :  { %v5869_v26 = vpop.f32.mrf.mxu0  ;;  %v5910_v33 = vpop.f32.mrf.mxu1 }
0x1787   :  { %v5870_v54 = vadd.f32 %v5869_v26, %v16170_v24  ;;  %v5911_v60 = vadd.f32 %v5910_v33, %v14214_v62  ;;  %v14730_v33 = vld [vmem:[%s15696_s3 + $0x180] ss:$12 sps:$4 sm:$0xff]  }
0x1788   :  { %v5871_v55 = vpop.f32.mrf.mxu0  ;;  %v9610_v53 = vpop.f32.mrf.mxu1 }
0x1789   :  { %v5916_v51 = vadd.f32 %v5870_v54, %v4122_v3  ;;  %v5872_v12 = vadd.f32 %v5871_v55, %v14203_v41 }
0x178a   :  { %v5873_v22 = vpop.f32.mrf.mxu0  ;;  %v5913_v34 = vpop.f32.mrf.mxu1 }
0x178b   :  { %v8110_v31 = vmul.f32 -1.442695, %v5916_v51  ;;  %v5923_v43 = vadd.f32 %v5872_v12, %v4124_v46  ;;  %v14736_v22 = vld [vmem:[%s15696_s3 + $0x188] ss:$12 sps:$4 sm:$0xff]   ;;  %v14742_v34 = vld [vmem:[%s15697_s2 + $0x22c] ss:$12 sps:$4 sm:$0xff]  }
0x178c   :  { %v5874_v0 = vpop.f32.mrf.mxu0  ;;  %v9611_v7 = vpop.f32.mrf.mxu1  ;;  %v14755_v12 = vld [vmem:[%s15697_s2 + $0x230] ss:$12 sps:$4 sm:$0xff]  }
0x178d   :  { %10495 = vpow2.f32 %v8110_v31  ;;  %v8111_v13 = vmul.f32 -1.442695, %v5923_v43  ;;  %v14749_v31 = vld [vmem:[%s15697_s2 + $0x228] ss:$12 sps:$4 sm:$0xff]   ;;  %v14771_v7 = vld [vmem:[%s15697_s2 + $0x210] ss:$12 sps:$4 sm:$0xff]  }
0x178e   :  { %v14761_v0 = vld [vmem:[%s15697_s2 + $0x214] ss:$12 sps:$4 sm:$0xff]   ;;  %v14783_v46 = vld [vmem:[%s15697_s2 + $0x1fc] ss:$12 sps:$4 sm:$0xff]   ;;  %v14790_v43 = vld [vmem:[%s15697_s2 + $0x1f8] ss:$12 sps:$4 sm:$0xff]  }
0x178f   :  { %10497 = vpow2.f32 %v8111_v13  ;;  %v14796_v13 = vld [vmem:[%s15697_s2 + $0x200] ss:$12 sps:$4 sm:$0xff]  }
0x179a   :  { %v10496_v57 = vpop.eup %10495 }
0x179b   :  { %v5920_v8 = vadd.f32 1.0, %v10496_v57  ;;  %v14802_v57 = vld [vmem:[%s15697_s2 + $0x1e4] ss:$12 sps:$4 sm:$0xff]  }
0x179c   :  { %v10498_v63 = vpop.eup %10497 }
0x179d   :  { %10499 = vrcp.f32 %v5920_v8  ;;  %v5927_v27 = vadd.f32 1.0, %v10498_v63  ;;  %v14809_v8 = vld [vmem:[%s15697_s2 + $0x1e0] ss:$12 sps:$4 sm:$0xff]   ;;  %v14815_v63 = vld [vmem:[%s15697_s2 + $0x1e8] ss:$12 sps:$4 sm:$0xff]  }
0x179f   :  { %10501 = vrcp.f32 %v5927_v27  ;;  %v14821_v27 = vld [vmem:[%s15697_s2 + $0x1cc] ss:$12 sps:$4 sm:$0xff]  }
0x17aa   :  { %v10500_v17 = vpop.eup %10499 }
0x17ab   :  { %v5930_v10 = vmul.f32 %v10500_v17, %v5911_v60  ;;  %v14828_v60 = vld [vmem:[%s15697_s2 + $0x1c8] ss:$12 sps:$4 sm:$0xff]   ;;  %v14834_v17 = vld [vmem:[%s15697_s2 + $0x1d0] ss:$12 sps:$4 sm:$0xff]  }
0x17ac   :  { %v10502_v26 = vpop.eup %10501  ;;  %16215 = vst [vmem:[#allocation15_spill] sm:$0xff] %v14834_v17 }
0x17ad   :  { %v5931_v20 = vadd.f32 %v5930_v10, %v4163_v38  ;;  %v5933_v48 = vsub.f32 1.0, %v10502_v26  ;;  %v5935_v55 = vmul.f32 %v10502_v26, %v14497_v47  ;;  %v14723_v47 = vld [vmem:[%s15696_s3 + $0x184] ss:$12 sps:$4 sm:$0xff]  }
0x17ae   :  { %v14847_v38 = vld [vmem:[%s15697_s2 + $0x1b0] ss:$12 sps:$4 sm:$0xff]   ;;  %v14853_v10 = vld [vmem:[%s15697_s2 + $0x1b8] ss:$12 sps:$4 sm:$0xff]  }
0x17af   :  { %10503 = vtanh.f32 %v5931_v20  ;;  %16217 = vst [vmem:[#allocation2_spill] sm:$0xff] %v14847_v38  ;;  %16218 = vst [vmem:[#allocation23_spill] sm:$0xff] %v14853_v10  ;;  %v14859_v20 = vld [vmem:[%s15697_s2 + $0x19c] ss:$12 sps:$4 sm:$0xff]   ;;  %v14866_v26 = vld [vmem:[%s15697_s2 + $0x198] ss:$12 sps:$4 sm:$0xff]  }
0x17b0   :  { %16219 = vst [vmem:[#allocation24_spill] sm:$0xff] %v14859_v20  ;;  %16220 = vst [vmem:[#allocation25_spill] sm:$0xff] %v14866_v26 }
0x17bc   :  { %v10504_v3 = vpop.eup %10503 }
0x17bd   :  { %v5934_v54 = vmul.f32 %v10504_v3, %v5933_v48  ;;  %v14872_v48 = vld [vmem:[%s15697_s2 + $0x1a0] ss:$12 sps:$4 sm:$0xff]   ;;  %v14878_v3 = vld [vmem:[%s15697_s2 + $0x184] ss:$12 sps:$4 sm:$0xff]  }
0x17be   :  { %16221 = vst [vmem:[#allocation38_spill] sm:$0xff] %v14872_v48  ;;  %16222 = vst [vmem:[#allocation32_spill] sm:$0xff] %v14878_v3 }
0x17bf   :  { %v14687_v53 = vadd.f32 %v5935_v55, %v5934_v54  ;;  %v14885_v54 = vld [vmem:[%s15697_s2 + $0x180] ss:$12 sps:$4 sm:$0xff]   ;;  %v14891_v55 = vld [vmem:[%s15697_s2 + $0x188] ss:$12 sps:$4 sm:$0xff]  }
0x17c0   :  { %16223 = vst [vmem:[#allocation16_spill] sm:$0xff] %v14885_v54  ;;  %16224 = vst [vmem:[#allocation17_spill] sm:$0xff] %v14891_v55 }
0x17c1   :  { %v5937_v51 = vpack.c.bf16 %v14687_v53, %v14687_v53 }
0x17c3   :  { %5971 = vmatmul.mubr.bf16.vlgmr.msra.gmra.mxu0 %v5937_v51  ;;  %9629 = vmatmul.mubr.bf16.vlgmr.msra.gmra.mxu1 %v5937_v51 }
0x17c4   :  { %6020 = vmatpush1.bf16.msra.mxu0 %v14504_v49  ;;  %9633 = vmatpush3.bf16.msra.mxu1 %v14510_v9 }
0x17c5   :  { %6021 = vmatprep.subr.bf16.mxu0 %v14516_v45  ;;  %9634 = vmatprep.subr.bf16.mxu1 %v15900_v61 }
0x17c6   :  { %6051 = vmatprep.mubr.bf16.mxu0 %v15901_v2  ;;  %9648 = vmatprep.mubr.msk.bf16.mxu1 %vm10796_vm0, %v15900_v61 }
0x17c8   :  { %6022 = vmatpush1.bf16.msra.mxu0 %v14526_v11  ;;  %9635 = vmatpush3.bf16.msra.mxu1 %v14532_v59 }
0x17c9   :  { %6023 = vmatprep.subr.bf16.mxu0 %v14538_v6  ;;  %9636 = vmatprep.subr.bf16.mxu1 %v15900_v61 }
0x17cc   :  { %6024 = vmatpush1.bf16.msra.mxu0 %v14545_v36  ;;  %9637 = vmatpush3.bf16.msra.mxu1 %v14551_v23 }
0x17cd   :  { %6025 = vmatprep.subr.bf16.mxu0 %v14557_v4  ;;  %9638 = vmatprep.subr.bf16.mxu1 %v15900_v61 }
0x17d0   :  { %6026 = vmatpush1.bf16.msra.mxu0 %v14564_v52  ;;  %9639 = vmatpush3.bf16.msra.mxu1 %v14570_v44 }
0x17d1   :  { %6027 = vmatprep.subr.bf16.mxu0 %v14576_v42  ;;  %9640 = vmatprep.subr.bf16.mxu1 %v15900_v61 }
0x17d4   :  { %6028 = vmatpush1.bf16.msra.mxu0 %v14583_v29  ;;  %9641 = vmatpush3.bf16.msra.mxu1 %v14589_v39 }
0x17d5   :  { %6029 = vmatprep.subr.bf16.mxu0 %v14595_v21  ;;  %9642 = vmatprep.subr.bf16.mxu1 %v15900_v61 }
0x17d8   :  { %6030 = vmatpush1.bf16.msra.mxu0 %v14602_v30  ;;  %9643 = vmatpush3.bf16.msra.mxu1 %v14608_v1 }
0x17d9   :  { %6031 = vmatprep.subr.bf16.mxu0 %v14614_v16  ;;  %9644 = vmatprep.subr.bf16.mxu1 %v15900_v61 }
0x17dc   :  { %6032 = vmatpush1.bf16.msra.mxu0 %v14621_v28  ;;  %9645 = vmatpush3.bf16.msra.mxu1 %v14627_v19 }
0x17dd   :  { %6033 = vmatprep.subr.bf16.mxu0 %v14723_v47  ;;  %9646 = vmatprep.subr.bf16.mxu1 %v15900_v61 }
0x17e0   :  { %6034 = vmatpush1.bf16.msra.mxu0 %v14730_v33  ;;  %9647 = vmatpush3.bf16.msra.mxu1 %v14736_v22 }
0x17e1   :  { %6122 = vmatprep.subr.bf16.mxu0 %v14742_v34  ;;  %9652 = vmatprep.subr.bf16.mxu1 %v15900_v61 }
0x17e3   :  { %6052 = vmatmul.mubr.bf16.vlgmr.msra.gmra.mxu0 %v5937_v51  ;;  %9649 = vmatmul.mubr.bf16.vlgmr.msra.gmra.mxu1 %v5937_v51 }
0x17e4   :  { %6123 = vmatpush1.bf16.msra.mxu0 %v14749_v31  ;;  %9653 = vmatpush3.bf16.msra.mxu1 %v14755_v12 }
0x17e5   :  { %6124 = vmatprep.subr.bf16.mxu0 %v14761_v0  ;;  %9654 = vmatprep.subr.bf16.mxu1 %v15900_v61 }
0x17e6   :  { %6154 = vmatprep.mubr.bf16.mxu0 %v15901_v2  ;;  %9668 = vmatprep.mubr.msk.bf16.mxu1 %vm10796_vm0, %v15900_v61 }
0x17e8   :  { %6125 = vmatpush1.bf16.msra.mxu0 %v14771_v7  ;;  %9655 = vmatpush3.bf16.msra.mxu1 %v14777_v14 }
0x17e9   :  { %6126 = vmatprep.subr.bf16.mxu0 %v14783_v46  ;;  %9656 = vmatprep.subr.bf16.mxu1 %v15900_v61 }
0x17ec   :  { %6127 = vmatpush1.bf16.msra.mxu0 %v14790_v43  ;;  %9657 = vmatpush3.bf16.msra.mxu1 %v14796_v13 }
0x17ed   :  { %6128 = vmatprep.subr.bf16.mxu0 %v14802_v57  ;;  %9658 = vmatprep.subr.bf16.mxu1 %v15900_v61 }
0x17f0   :  { %6129 = vmatpush1.bf16.msra.mxu0 %v14809_v8  ;;  %9659 = vmatpush3.bf16.msra.mxu1 %v14815_v63 }
0x17f1   :  { %6130 = vmatprep.subr.bf16.mxu0 %v14821_v27  ;;  %9660 = vmatprep.subr.bf16.mxu1 %v15900_v61 }
0x17f4   :  { %6131 = vmatpush1.bf16.msra.mxu0 %v14828_v60  ;;  %9661 = vmatpush3.bf16.msra.mxu1 %v14834_v17 }
0x17f5   :  { %6132 = vmatprep.subr.bf16.mxu0 %v14840_v25  ;;  %9662 = vmatprep.subr.bf16.mxu1 %v15900_v61 }
0x17f8   :  { %6133 = vmatpush1.bf16.msra.mxu0 %v14847_v38  ;;  %9663 = vmatpush3.bf16.msra.mxu1 %v14853_v10 }
0x17f9   :  { %6134 = vmatprep.subr.bf16.mxu0 %v14859_v20  ;;  %9664 = vmatprep.subr.bf16.mxu1 %v15900_v61 }
0x17fc   :  { %6135 = vmatpush1.bf16.msra.mxu0 %v14866_v26  ;;  %9665 = vmatpush3.bf16.msra.mxu1 %v14872_v48  ;;  %v16228_v26 = vld [vmem:[#allocation34_spill] sm:$0xff] }
0x17fd   :  { %6136 = vmatprep.subr.bf16.mxu0 %v14878_v3  ;;  %9666 = vmatprep.subr.bf16.mxu1 %v15900_v61 }
0x1800   :  { %6137 = vmatpush1.bf16.msra.mxu0 %v14885_v54  ;;  %9667 = vmatpush3.bf16.msra.mxu1 %v14891_v55  ;;  %v4306_v55 = vadd.f32 %v16228_v26, %v16205_v32 }
0x1801   :  { %6203 = vmatprep.subr.bf16.mxu0 %v14477_v56  ;;  %9672 = vmatprep.subr.bf16.mxu1 %v15900_v61 }
0x1883   :  { %v14896_v51 = vpop.f32.mrf.mxu0  ;;  %v14898_v37 = vpop.f32.mrf.mxu1 }
0x1884   :  { %16225 = vst [vmem:[#allocation44_spill] sm:$0xff] %v14896_v51  ;;  %16226 = vst [vmem:[#allocation45_spill] sm:$0xff] %v14898_v37 }
0x1885   :  { %v14900_v5 = vpop.f32.mrf.mxu0  ;;  %v9630_v18 = vpop.f32.mrf.mxu1 }
0x1886   :  { %16227 = vst [vmem:[#allocation46_spill] sm:$0xff] %v14900_v5 }
0x1887   :  { %v5976_v58 = vpop.f32.mrf.mxu0  ;;  %v6016_v40 = vpop.f32.mrf.mxu1 }
0x1889   :  { %v5977_v15 = vpop.f32.mrf.mxu0  ;;  %v9631_v54 = vpop.f32.mrf.mxu1 }
0x188a   :  { %v16229_v15 = vld [vmem:[#allocation9_spill] sm:$0xff] }
0x188b   :  { %v4308_v40 = vadd.f32 %v16229_v15, %v14206_v35 }
0x18a3   :  { %v6053_v3 = vpop.f32.mrf.mxu0  ;;  %v6094_v48 = vpop.f32.mrf.mxu1 }
0x18a4   :  { %v6054_v56 = vadd.f32 %v6053_v3, %v16170_v24 }
0x18a5   :  { %v6055_v20 = vpop.f32.mrf.mxu0  ;;  %v9650_v10 = vpop.f32.mrf.mxu1 }
0x18a6   :  { %v6100_v38 = vadd.f32 %v6054_v56, %v4306_v55  ;;  %v6056_v5 = vadd.f32 %v6055_v20, %v14203_v41  ;;  %v6095_v56 = vadd.f32 %v6094_v48, %v14214_v62  ;;  %v16232_v48 = vld [vmem:[#allocation12_spill] sm:$0xff] }
0x18a7   :  { %v6057_v51 = vpop.f32.mrf.mxu0  ;;  %v6097_v25 = vpop.f32.mrf.mxu1 }
0x18a8   :  { %v8112_v37 = vmul.f32 -1.442695, %v6100_v38  ;;  %v6107_v54 = vadd.f32 %v6056_v5, %v4308_v40  ;;  %v16230_v38 = vld [vmem:[#allocation13_spill] sm:$0xff]  ;;  %v16233_v40 = vld [vmem:[#allocation2_spill] sm:$0xff] }
0x18a9   :  { %v6058_v18 = vpop.f32.mrf.mxu0  ;;  %v9651_v58 = vpop.f32.mrf.mxu1  ;;  %v4347_v20 = vadd.f32 %v16230_v38, %v14217_v50  ;;  %v16240_v38 = vld [vmem:[#allocation17_spill] sm:$0xff] }
0x18aa   :  { %10505 = vpow2.f32 %v8112_v37  ;;  %v8113_v17 = vmul.f32 -1.442695, %v6107_v54  ;;  %v16234_v54 = vld [vmem:[#allocation23_spill] sm:$0xff] }
0x18ac   :  { %10507 = vpow2.f32 %v8113_v17 }
0x18b7   :  { %v10506_v26 = vpop.eup %10505 }
0x18b8   :  { %v6104_v32 = vadd.f32 1.0, %v10506_v26  ;;  %v16235_v26 = vld [vmem:[#allocation24_spill] sm:$0xff] }
0x18b9   :  { %v10508_v3 = vpop.eup %10507 }
0x18ba   :  { %10509 = vrcp.f32 %v6104_v32  ;;  %v6111_v10 = vadd.f32 1.0, %v10508_v3  ;;  %v16236_v3 = vld [vmem:[#allocation25_spill] sm:$0xff] }
0x18bc   :  { %10511 = vrcp.f32 %v6111_v10  ;;  %v16237_v10 = vld [vmem:[#allocation38_spill] sm:$0xff] }
0x18c7   :  { %v10510_v25 = vpop.eup %10509 }
0x18c8   :  { %v6114_v55 = vmul.f32 %v10510_v25, %v6095_v56  ;;  %v16238_v56 = vld [vmem:[#allocation32_spill] sm:$0xff] }
0x18c9   :  { %v10512_v18 = vpop.eup %10511  ;;  %v16239_v25 = vld [vmem:[#allocation16_spill] sm:$0xff] }
0x18ca   :  { %v6115_v51 = vadd.f32 %v6114_v55, %v4347_v20  ;;  %v6117_v37 = vsub.f32 1.0, %v10512_v18  ;;  %v6119_v17 = vmul.f32 %v10512_v18, %v14687_v53  ;;  %v16231_v53 = vld [vmem:[#allocation15_spill] sm:$0xff] }
0x18cb   :  { %v16241_v20 = vld [vmem:[#allocation27_spill] sm:$0xff] }
0x18cc   :  { %10513 = vtanh.f32 %v6115_v51 }
0x18d9   :  { %v10514_v5 = vpop.eup %10513 }
0x18da   :  { %v6118_v58 = vmul.f32 %v10514_v5, %v6117_v37 }
0x18dc   :  { %v14912_v15 = vadd.f32 %v6119_v17, %v6118_v58 }
0x18de   :  { %v6121_v32 = vpack.c.bf16 %v14912_v15, %v14912_v15 }
0x18e0   :  { %6155 = vmatmul.mubr.bf16.vlgmr.msra.gmra.mxu0 %v6121_v32  ;;  %9669 = vmatmul.mubr.bf16.vlgmr.msra.gmra.mxu1 %v6121_v32 }
0x18e1   :  { %6204 = vmatpush1.bf16.msra.mxu0 %v14504_v49  ;;  %9673 = vmatpush3.bf16.msra.mxu1 %v14510_v9 }
0x18e2   :  { %6205 = vmatprep.subr.bf16.mxu0 %v14516_v45  ;;  %9674 = vmatprep.subr.bf16.mxu1 %v15900_v61 }
0x18e3   :  { %6235 = vmatprep.mubr.bf16.mxu0 %v15901_v2  ;;  %9688 = vmatprep.mubr.msk.bf16.mxu1 %vm10796_vm0, %v15900_v61 }
0x18e5   :  { %6206 = vmatpush1.bf16.msra.mxu0 %v14526_v11  ;;  %9675 = vmatpush3.bf16.msra.mxu1 %v14532_v59 }
0x18e6   :  { %6207 = vmatprep.subr.bf16.mxu0 %v14538_v6  ;;  %9676 = vmatprep.subr.bf16.mxu1 %v15900_v61 }
0x18e9   :  { %6208 = vmatpush1.bf16.msra.mxu0 %v14545_v36  ;;  %9677 = vmatpush3.bf16.msra.mxu1 %v14551_v23 }
0x18ea   :  { %6209 = vmatprep.subr.bf16.mxu0 %v14557_v4  ;;  %9678 = vmatprep.subr.bf16.mxu1 %v15900_v61 }
0x18ed   :  { %6210 = vmatpush1.bf16.msra.mxu0 %v14564_v52  ;;  %9679 = vmatpush3.bf16.msra.mxu1 %v14570_v44 }
0x18ee   :  { %6211 = vmatprep.subr.bf16.mxu0 %v14576_v42  ;;  %9680 = vmatprep.subr.bf16.mxu1 %v15900_v61 }
0x18f1   :  { %6212 = vmatpush1.bf16.msra.mxu0 %v14583_v29  ;;  %9681 = vmatpush3.bf16.msra.mxu1 %v14589_v39 }
0x18f2   :  { %6213 = vmatprep.subr.bf16.mxu0 %v14595_v21  ;;  %9682 = vmatprep.subr.bf16.mxu1 %v15900_v61 }
0x18f5   :  { %6214 = vmatpush1.bf16.msra.mxu0 %v14602_v30  ;;  %9683 = vmatpush3.bf16.msra.mxu1 %v14608_v1 }
0x18f6   :  { %6215 = vmatprep.subr.bf16.mxu0 %v14614_v16  ;;  %9684 = vmatprep.subr.bf16.mxu1 %v15900_v61 }
0x18f9   :  { %6216 = vmatpush1.bf16.msra.mxu0 %v14621_v28  ;;  %9685 = vmatpush3.bf16.msra.mxu1 %v14627_v19 }
0x18fa   :  { %6217 = vmatprep.subr.bf16.mxu0 %v14723_v47  ;;  %9686 = vmatprep.subr.bf16.mxu1 %v15900_v61 }
0x18fd   :  { %6218 = vmatpush1.bf16.msra.mxu0 %v14730_v33  ;;  %9687 = vmatpush3.bf16.msra.mxu1 %v14736_v22 }
0x18fe   :  { %6306 = vmatprep.subr.bf16.mxu0 %v14742_v34  ;;  %9692 = vmatprep.subr.bf16.mxu1 %v15900_v61 }
0x1900   :  { %6236 = vmatmul.mubr.bf16.vlgmr.msra.gmra.mxu0 %v6121_v32  ;;  %9689 = vmatmul.mubr.bf16.vlgmr.msra.gmra.mxu1 %v6121_v32 }
0x1901   :  { %6307 = vmatpush1.bf16.msra.mxu0 %v14749_v31  ;;  %9693 = vmatpush3.bf16.msra.mxu1 %v14755_v12 }
0x1902   :  { %6308 = vmatprep.subr.bf16.mxu0 %v14761_v0  ;;  %9694 = vmatprep.subr.bf16.mxu1 %v15900_v61 }
0x1903   :  { %6338 = vmatprep.mubr.bf16.mxu0 %v15901_v2  ;;  %9708 = vmatprep.mubr.msk.bf16.mxu1 %vm10796_vm0, %v15900_v61 }
0x1905   :  { %6309 = vmatpush1.bf16.msra.mxu0 %v14771_v7  ;;  %9695 = vmatpush3.bf16.msra.mxu1 %v14777_v14 }
0x1906   :  { %6310 = vmatprep.subr.bf16.mxu0 %v14783_v46  ;;  %9696 = vmatprep.subr.bf16.mxu1 %v15900_v61 }
0x1909   :  { %6311 = vmatpush1.bf16.msra.mxu0 %v14790_v43  ;;  %9697 = vmatpush3.bf16.msra.mxu1 %v14796_v13 }
0x190a   :  { %6312 = vmatprep.subr.bf16.mxu0 %v14802_v57  ;;  %9698 = vmatprep.subr.bf16.mxu1 %v15900_v61 }
0x190d   :  { %6313 = vmatpush1.bf16.msra.mxu0 %v14809_v8  ;;  %9699 = vmatpush3.bf16.msra.mxu1 %v14815_v63 }
0x190e   :  { %6314 = vmatprep.subr.bf16.mxu0 %v14821_v27  ;;  %9700 = vmatprep.subr.bf16.mxu1 %v15900_v61 }
0x1911   :  { %6315 = vmatpush1.bf16.msra.mxu0 %v14828_v60  ;;  %9701 = vmatpush3.bf16.msra.mxu1 %v16231_v53 }
0x1912   :  { %6316 = vmatprep.subr.bf16.mxu0 %v16232_v48  ;;  %9702 = vmatprep.subr.bf16.mxu1 %v15900_v61 }
0x1915   :  { %6317 = vmatpush1.bf16.msra.mxu0 %v16233_v40  ;;  %9703 = vmatpush3.bf16.msra.mxu1 %v16234_v54 }
0x1916   :  { %6318 = vmatprep.subr.bf16.mxu0 %v16235_v26  ;;  %9704 = vmatprep.subr.bf16.mxu1 %v15900_v61 }
0x1919   :  { %6319 = vmatpush1.bf16.msra.mxu0 %v16236_v3  ;;  %9705 = vmatpush3.bf16.msra.mxu1 %v16237_v10  ;;  %v16246_v3 = vld [vmem:[#allocation36_spill] sm:$0xff] }
0x191a   :  { %6320 = vmatprep.subr.bf16.mxu0 %v16238_v56  ;;  %9706 = vmatprep.subr.bf16.mxu1 %v15900_v61 }
0x191d   :  { %6321 = vmatpush1.bf16.msra.mxu0 %v16239_v25  ;;  %9707 = vmatpush3.bf16.msra.mxu1 %v16240_v38  ;;  %v16245_v25 = vld [vmem:[#allocation29_spill] sm:$0xff] }
0x191e   :  { %6387 = vmatprep.subr.bf16.mxu0 %v16241_v20  ;;  %9712 = vmatprep.subr.bf16.mxu1 %v15900_v61  ;;  %v4490_v38 = vadd.f32 %v16246_v3, %v16245_v25 }
0x19a0   :  { %v14986_v55 = vpop.f32.mrf.mxu0  ;;  %v14988_v51 = vpop.f32.mrf.mxu1 }
0x19a1   :  { %16242 = vst [vmem:[#allocation18_spill] sm:$0xff] %v14986_v55  ;;  %16243 = vst [vmem:[#allocation19_spill] sm:$0xff] %v14988_v51 }
0x19a2   :  { %v14990_v18 = vpop.f32.mrf.mxu0  ;;  %v9670_v37 = vpop.f32.mrf.mxu1 }
0x19a3   :  { %16244 = vst [vmem:[#allocation20_spill] sm:$0xff] %v14990_v18 }
0x19a4   :  { %v6160_v5 = vpop.f32.mrf.mxu0  ;;  %v6200_v58 = vpop.f32.mrf.mxu1 }
0x19a5   :  { %v16247_v58 = vld [vmem:[#allocation30_spill] sm:$0xff] }
0x19a6   :  { %v6161_v17 = vpop.f32.mrf.mxu0  ;;  %v9671_v32 = vpop.f32.mrf.mxu1 }
0x19a7   :  { %v4492_v17 = vadd.f32 %v16247_v58, %v14206_v35 }
0x19c0   :  { %v6237_v56 = vpop.f32.mrf.mxu0  ;;  %v6278_v10 = vpop.f32.mrf.mxu1 }
0x19c1   :  { %v6238_v20 = vadd.f32 %v6237_v56, %v16170_v24 }
0x19c2   :  { %v6239_v26 = vpop.f32.mrf.mxu0  ;;  %v9690_v54 = vpop.f32.mrf.mxu1 }
0x19c3   :  { %v6284_v40 = vadd.f32 %v6238_v20, %v4490_v38  ;;  %v6240_v18 = vadd.f32 %v6239_v26, %v14203_v41  ;;  %v6279_v38 = vadd.f32 %v6278_v10, %v14214_v62 }
0x19c4   :  { %v6241_v55 = vpop.f32.mrf.mxu0  ;;  %v6281_v48 = vpop.f32.mrf.mxu1 }
0x19c5   :  { %v8114_v51 = vmul.f32 -1.442695, %v6284_v40  ;;  %v6291_v32 = vadd.f32 %v6240_v18, %v4492_v17  ;;  %v16248_v40 = vld [vmem:[#allocation22_spill] sm:$0xff] }
0x19c6   :  { %v6242_v37 = vpop.f32.mrf.mxu0  ;;  %v9691_v5 = vpop.f32.mrf.mxu1  ;;  %v4531_v26 = vadd.f32 %v16248_v40, %v14217_v50 }
0x19c7   :  { %10515 = vpow2.f32 %v8114_v51  ;;  %v8115_v53 = vmul.f32 -1.442695, %v6291_v32 }
0x19c9   :  { %10517 = vpow2.f32 %v8115_v53 }
0x19d4   :  { %v10516_v3 = vpop.eup %10515 }
0x19d5   :  { %v6288_v25 = vadd.f32 1.0, %v10516_v3 }
0x19d6   :  { %v10518_v56 = vpop.eup %10517 }
0x19d7   :  { %10519 = vrcp.f32 %v6288_v25  ;;  %v6295_v54 = vadd.f32 1.0, %v10518_v56 }
0x19d9   :  { %10521 = vrcp.f32 %v6295_v54  ;;  %v16262_v54 = vld [vmem:[#allocation43_spill] sm:$0xff] }
0x19e4   :  { %v10520_v48 = vpop.eup %10519 }
0x19e5   :  { %v6298_v55 = vmul.f32 %v10520_v48, %v6279_v38 }
0x19e6   :  { %v10522_v37 = vpop.eup %10521 }
0x19e7   :  { %v6299_v20 = vadd.f32 %v6298_v55, %v4531_v26  ;;  %v6301_v51 = vsub.f32 1.0, %v10522_v37  ;;  %v6303_v53 = vmul.f32 %v10522_v37, %v14912_v15 }
0x19e9   :  { %10523 = vtanh.f32 %v6299_v20 }
0x19f6   :  { %v10524_v18 = vpop.eup %10523 }
0x19f7   :  { %v6302_v5 = vmul.f32 %v10524_v18, %v6301_v51  ;;  %v15100_v51 = vld [vmem:[%s15696_s3 + $0x2e8] ss:$12 sps:$4 sm:$0xff]  }
0x19f8   :  { %v15110_v18 = vld [vmem:[%s15696_s3 + $0x2d4] ss:$12 sps:$4 sm:$0xff]  }
0x19f9   :  { %v15002_v58 = vadd.f32 %v6303_v53, %v6302_v5  ;;  %v15116_v5 = vld [vmem:[%s15696_s3 + $0x2d0] ss:$12 sps:$4 sm:$0xff]   ;;  %v15122_v53 = vld [vmem:[%s15696_s3 + $0x2d8] ss:$12 sps:$4 sm:$0xff]  }
0x19fb   :  { %v6305_v25 = vpack.c.bf16 %v15002_v58, %v15002_v58 }
0x19fd   :  { %6339 = vmatmul.mubr.bf16.vlgmr.msra.gmra.mxu0 %v6305_v25  ;;  %9709 = vmatmul.mubr.bf16.vlgmr.msra.gmra.mxu1 %v6305_v25 }
0x19fe   :  { %6388 = vmatpush1.bf16.msra.mxu0 %v14504_v49  ;;  %9713 = vmatpush3.bf16.msra.mxu1 %v14510_v9  ;;  %v16249_v49 = vld [vmem:[#allocation15_spill] sm:$0xff]  ;;  %v16250_v9 = vld [vmem:[#allocation12_spill] sm:$0xff] }
0x19ff   :  { %6389 = vmatprep.subr.bf16.mxu0 %v14516_v45  ;;  %9714 = vmatprep.subr.bf16.mxu1 %v15900_v61  ;;  %v16251_v45 = vld [vmem:[#allocation2_spill] sm:$0xff] }
0x1a00   :  { %6419 = vmatprep.mubr.bf16.mxu0 %v15901_v2  ;;  %9728 = vmatprep.mubr.msk.bf16.mxu1 %vm10796_vm0, %v15900_v61 }
0x1a02   :  { %6390 = vmatpush1.bf16.msra.mxu0 %v14526_v11  ;;  %9715 = vmatpush3.bf16.msra.mxu1 %v14532_v59  ;;  %v16252_v11 = vld [vmem:[#allocation23_spill] sm:$0xff]  ;;  %v16253_v59 = vld [vmem:[#allocation24_spill] sm:$0xff] }
0x1a03   :  { %6391 = vmatprep.subr.bf16.mxu0 %v14538_v6  ;;  %9716 = vmatprep.subr.bf16.mxu1 %v15900_v61  ;;  %v16254_v6 = vld [vmem:[#allocation25_spill] sm:$0xff] }
0x1a06   :  { %6392 = vmatpush1.bf16.msra.mxu0 %v14545_v36  ;;  %9717 = vmatpush3.bf16.msra.mxu1 %v14551_v23  ;;  %v16255_v36 = vld [vmem:[#allocation38_spill] sm:$0xff]  ;;  %v16256_v23 = vld [vmem:[#allocation32_spill] sm:$0xff] }
0x1a07   :  { %6393 = vmatprep.subr.bf16.mxu0 %v14557_v4  ;;  %9718 = vmatprep.subr.bf16.mxu1 %v15900_v61  ;;  %v16257_v4 = vld [vmem:[#allocation16_spill] sm:$0xff] }
0x1a0a   :  { %6394 = vmatpush1.bf16.msra.mxu0 %v14564_v52  ;;  %9719 = vmatpush3.bf16.msra.mxu1 %v14570_v44  ;;  %v16258_v52 = vld [vmem:[#allocation17_spill] sm:$0xff] }
0x1a0b   :  { %6395 = vmatprep.subr.bf16.mxu0 %v14576_v42  ;;  %9720 = vmatprep.subr.bf16.mxu1 %v15900_v61  ;;  %v15078_v44 = vld [vmem:[%s15696_s3 + $0x2ec] ss:$12 sps:$4 sm:$0xff]  }
0x1a0e   :  { %6396 = vmatpush1.bf16.msra.mxu0 %v14583_v29  ;;  %9721 = vmatpush3.bf16.msra.mxu1 %v14589_v39 }
0x1a0f   :  { %6397 = vmatprep.subr.bf16.mxu0 %v14595_v21  ;;  %9722 = vmatprep.subr.bf16.mxu1 %v15900_v61 }
0x1a12   :  { %6398 = vmatpush1.bf16.msra.mxu0 %v14602_v30  ;;  %9723 = vmatpush3.bf16.msra.mxu1 %v14608_v1 }
0x1a13   :  { %6399 = vmatprep.subr.bf16.mxu0 %v14614_v16  ;;  %9724 = vmatprep.subr.bf16.mxu1 %v15900_v61 }
0x1a16   :  { %6400 = vmatpush1.bf16.msra.mxu0 %v14621_v28  ;;  %9725 = vmatpush3.bf16.msra.mxu1 %v14627_v19 }
0x1a17   :  { %6401 = vmatprep.subr.bf16.mxu0 %v14723_v47  ;;  %9726 = vmatprep.subr.bf16.mxu1 %v15900_v61 }
0x1a1a   :  { %6402 = vmatpush1.bf16.msra.mxu0 %v14730_v33  ;;  %9727 = vmatpush3.bf16.msra.mxu1 %v14736_v22  ;;  %v16259_v33 = vld [vmem:[#allocation29_spill] sm:$0xff] }
0x1a1b   :  { %6490 = vmatprep.subr.bf16.mxu0 %v14742_v34  ;;  %9732 = vmatprep.subr.bf16.mxu1 %v15900_v61  ;;  %v16260_v22 = vld [vmem:[#allocation33_spill] sm:$0xff] }
0x1a1c   :  { %v4674_v34 = vadd.f32 %v16260_v22, %v16259_v33 }
0x1a1d   :  { %6420 = vmatmul.mubr.bf16.vlgmr.msra.gmra.mxu0 %v6305_v25  ;;  %9729 = vmatmul.mubr.bf16.vlgmr.msra.gmra.mxu1 %v6305_v25  ;;  %v15138_v25 = vld [vmem:[%s15696_s3 + $0x2b8] ss:$12 sps:$4 sm:$0xff]  }
0x1a1e   :  { %6491 = vmatpush1.bf16.msra.mxu0 %v14749_v31  ;;  %9733 = vmatpush3.bf16.msra.mxu1 %v14755_v12 }
0x1a1f   :  { %6492 = vmatprep.subr.bf16.mxu0 %v14761_v0  ;;  %9734 = vmatprep.subr.bf16.mxu1 %v15900_v61 }
0x1a20   :  { %6522 = vmatprep.mubr.bf16.mxu0 %v15901_v2  ;;  %9748 = vmatprep.mubr.msk.bf16.mxu1 %vm10796_vm0, %v15900_v61 }
0x1a22   :  { %6493 = vmatpush1.bf16.msra.mxu0 %v14771_v7  ;;  %9735 = vmatpush3.bf16.msra.mxu1 %v14777_v14 }
0x1a23   :  { %6494 = vmatprep.subr.bf16.mxu0 %v14783_v46  ;;  %9736 = vmatprep.subr.bf16.mxu1 %v15900_v61 }
0x1a26   :  { %6495 = vmatpush1.bf16.msra.mxu0 %v14790_v43  ;;  %9737 = vmatpush3.bf16.msra.mxu1 %v14796_v13 }
0x1a27   :  { %6496 = vmatprep.subr.bf16.mxu0 %v14802_v57  ;;  %9738 = vmatprep.subr.bf16.mxu1 %v15900_v61 }
0x1a2a   :  { %6497 = vmatpush1.bf16.msra.mxu0 %v14809_v8  ;;  %9739 = vmatpush3.bf16.msra.mxu1 %v14815_v63  ;;  %v16261_v63 = vld [vmem:[#allocation39_spill] sm:$0xff] }
0x1a2b   :  { %6498 = vmatprep.subr.bf16.mxu0 %v14821_v27  ;;  %9740 = vmatprep.subr.bf16.mxu1 %v15900_v61  ;;  %v4676_v27 = vadd.f32 %v16261_v63, %v14206_v35 }
0x1a2e   :  { %6499 = vmatpush1.bf16.msra.mxu0 %v14828_v60  ;;  %9741 = vmatpush3.bf16.msra.mxu1 %v16249_v49  ;;  %v15144_v49 = vld [vmem:[%s15696_s3 + $0x2c0] ss:$12 sps:$4 sm:$0xff]  }
0x1a2f   :  { %6500 = vmatprep.subr.bf16.mxu0 %v16250_v9  ;;  %9742 = vmatprep.subr.bf16.mxu1 %v15900_v61  ;;  %v15150_v9 = vld [vmem:[%s15696_s3 + $0x2a4] ss:$12 sps:$4 sm:$0xff]  }
0x1a32   :  { %6501 = vmatpush1.bf16.msra.mxu0 %v16251_v45  ;;  %9743 = vmatpush3.bf16.msra.mxu1 %v16252_v11  ;;  %v15157_v45 = vld [vmem:[%s15696_s3 + $0x2a0] ss:$12 sps:$4 sm:$0xff]   ;;  %v15163_v11 = vld [vmem:[%s15696_s3 + $0x2a8] ss:$12 sps:$4 sm:$0xff]  }
0x1a33   :  { %6502 = vmatprep.subr.bf16.mxu0 %v16253_v59  ;;  %9744 = vmatprep.subr.bf16.mxu1 %v15900_v61  ;;  %v15169_v59 = vld [vmem:[%s15696_s3 + $0x28c] ss:$12 sps:$4 sm:$0xff]  }
0x1a36   :  { %6503 = vmatpush1.bf16.msra.mxu0 %v16254_v6  ;;  %9745 = vmatpush3.bf16.msra.mxu1 %v16255_v36  ;;  %v15176_v6 = vld [vmem:[%s15696_s3 + $0x288] ss:$12 sps:$4 sm:$0xff]   ;;  %v15182_v36 = vld [vmem:[%s15696_s3 + $0x290] ss:$12 sps:$4 sm:$0xff]  }
0x1a37   :  { %6504 = vmatprep.subr.bf16.mxu0 %v16256_v23  ;;  %9746 = vmatprep.subr.bf16.mxu1 %v15900_v61  ;;  %v15188_v23 = vld [vmem:[%s15696_s3 + $0x274] ss:$12 sps:$4 sm:$0xff]  }
0x1a3a   :  { %6505 = vmatpush1.bf16.msra.mxu0 %v16257_v4  ;;  %9747 = vmatpush3.bf16.msra.mxu1 %v16258_v52  ;;  %v15195_v4 = vld [vmem:[%s15696_s3 + $0x270] ss:$12 sps:$4 sm:$0xff]   ;;  %v15201_v52 = vld [vmem:[%s15696_s3 + $0x278] ss:$12 sps:$4 sm:$0xff]  }
0x1a3b   :  { %9752 = vmatprep.subr.bf16.mxu1 %v15900_v61  ;;  %6759 = vmatprep.subr.bf16.mxu0 %v15078_v44 }
0x1abd   :  { %v15081_v42 = vpop.f32.mrf.mxu0  ;;  %v15083_v29 = vpop.f32.mrf.mxu1 }
0x1abf   :  { %v15085_v39 = vpop.f32.mrf.mxu0  ;;  %v9710_v21 = vpop.f32.mrf.mxu1 }
0x1ac0   :  { %v15207_v21 = vld [vmem:[%s15696_s3 + $0x25c] ss:$12 sps:$4 sm:$0xff]  }
0x1ac1   :  { %v6344_v30 = vpop.f32.mrf.mxu0  ;;  %v6384_v1 = vpop.f32.mrf.mxu1 }
0x1ac2   :  { %v15214_v30 = vld [vmem:[%s15696_s3 + $0x258] ss:$12 sps:$4 sm:$0xff]   ;;  %v15220_v1 = vld [vmem:[%s15696_s3 + $0x260] ss:$12 sps:$4 sm:$0xff]  }
0x1ac3   :  { %v6345_v16 = vpop.f32.mrf.mxu0  ;;  %v9711_v28 = vpop.f32.mrf.mxu1 }
0x1ac4   :  { %v15226_v16 = vld [vmem:[%s15696_s3 + $0x244] ss:$12 sps:$4 sm:$0xff]   ;;  %v15233_v28 = vld [vmem:[%s15696_s3 + $0x240] ss:$12 sps:$4 sm:$0xff]  }
0x1add   :  { %v6421_v19 = vpop.f32.mrf.mxu0  ;;  %v6462_v47 = vpop.f32.mrf.mxu1 }
0x1ade   :  { %v6422_v31 = vadd.f32 %v6421_v19, %v16170_v24  ;;  %v6463_v3 = vadd.f32 %v6462_v47, %v14214_v62  ;;  %v15105_v62 = vld [vmem:[%s15696_s3 + $0x2f0] ss:$12 sps:$4 sm:$0xff]   ;;  %v15239_v19 = vld [vmem:[%s15696_s3 + $0x248] ss:$12 sps:$4 sm:$0xff]  }
0x1adf   :  { %v6423_v12 = vpop.f32.mrf.mxu0  ;;  %v9730_v0 = vpop.f32.mrf.mxu1 }
0x1ae0   :  { %v6468_v7 = vadd.f32 %v6422_v31, %v4674_v34  ;;  %v6424_v13 = vadd.f32 %v6423_v12, %v14203_v41  ;;  %v4715_v41 = vadd.f32 %v16262_v54, %v14217_v50 }
0x1ae1   :  { %v6425_v14 = vpop.f32.mrf.mxu0  ;;  %v6465_v46 = vpop.f32.mrf.mxu1 }
0x1ae2   :  { %v8116_v43 = vmul.f32 -1.442695, %v6468_v7  ;;  %v6475_v60 = vadd.f32 %v6424_v13, %v4676_v27  ;;  %v8053_v14 = vld [vmem:[%s15698_s4 + $0x12] sm:$0x3f]  ;;  %v16263_v46 = vld [vmem:[#allocation11_spill] sm:$0xff]  ;;  %v16265_v27 = vld [vmem:[#allocation37_spill] sm:$0xff] }
0x1ae3   :  { %v6426_v57 = vpop.f32.mrf.mxu0  ;;  %v9731_v8 = vpop.f32.mrf.mxu1  ;;  %v16264_v13 = vld [vmem:[#allocation35_spill] sm:$0xff] }
0x1ae4   :  { %10525 = vpow2.f32 %v8116_v43  ;;  %v8117_v15 = vmul.f32 -1.442695, %v6475_v60  ;;  %v5050_v43 = vrot.slane %v8053_v14, %v16263_v46  ;;  %v6607_v57 = vrot.slane %v8053_v14, %v16264_v13 }
0x1ae5   :  { %v6611_v60 = vrot.slane %v8053_v14, %v16265_v27 }
0x1ae6   :  { %10527 = vpow2.f32 %v8117_v15  ;;  %v15296_v8 = vrot.slane %v5050_v43, %v16263_v46  ;;  %v15299_v63 = vrot.slane %v6607_v57, %v16264_v13  ;;  %v16266_v15 = vld [vmem:[#allocation10_spill] sm:$0xff] }
0x1ae7   :  { %v15307_v54 = vrot.slane %v6611_v60, %v16264_v13  ;;  %v16269_v57 = vld [vmem:[#allocation42_spill] sm:$0xff] }
0x1ae8   :  { %v6615_v27 = vrot.slane %v8053_v14, %v16269_v57  ;;  %v16270_v60 = vld [vmem:[#allocation26_spill] sm:$0xff] }
0x1af1   :  { %v10526_v10 = vpop.eup %10525 }
0x1af2   :  { %v6472_v17 = vadd.f32 1.0, %v10526_v10  ;;  %v5054_v10 = vrot.slane %v8053_v14, %v16266_v15  ;;  %v5058_v15 = vrot.slane %v8053_v14, %v16270_v60 }
0x1af3   :  { %v10528_v24 = vpop.eup %10527 }
0x1af4   :  { %10529 = vrcp.f32 %v6472_v17  ;;  %v6479_v32 = vadd.f32 1.0, %v10528_v24 }
0x1af6   :  { %10531 = vrcp.f32 %v6479_v32  ;;  %v16267_v32 = vld [vmem:[#allocation40_spill] sm:$0xff] }
0x1b01   :  { %v10530_v56 = vpop.eup %10529 }
0x1b02   :  { %v6482_v38 = vmul.f32 %v10530_v56, %v6463_v3  ;;  %v5237_v3 = vadd.f32 %v16267_v32, %v15296_v8  ;;  %v15321_v32 = vrot.slane %v5058_v15, %v16263_v46 }
0x1b03   :  { %v10532_v35 = vpop.eup %10531 }
0x1b04   :  { %v6483_v48 = vadd.f32 %v6482_v38, %v4715_v41  ;;  %v6485_v40 = vsub.f32 1.0, %v10532_v35  ;;  %v6487_v20 = vmul.f32 %v10532_v35, %v15002_v58  ;;  %v15128_v58 = vld [vmem:[%s15696_s3 + $0x2bc] ss:$12 sps:$4 sm:$0xff]  }
0x1b06   :  { %10533 = vtanh.f32 %v6483_v48  ;;  %v15310_v48 = vrot.slane %v5054_v10, %v16263_v46  ;;  %v15318_v10 = vrot.slane %v6615_v27, %v16264_v13 }
0x1b13   :  { %v10534_v26 = vpop.eup %10533 }
0x1b14   :  { %v6486_v55 = vmul.f32 %v10534_v26, %v6485_v40 }
0x1b16   :  { %v6488_v37 = vadd.f32 %v6487_v20, %v6486_v55 }
0x1b18   :  { %v6489_v50 = vpack.c.bf16 %v6488_v37, %v6488_v37 }
0x1b1a   :  { %6523 = vmatmul.mubr.bf16.vlgmr.msra.gmra.mxu0 %v6489_v50  ;;  %9749 = vmatmul.mubr.bf16.vlgmr.msra.gmra.mxu1 %v6489_v50 }
0x1b1b   :  { %6760 = vmatpush1.bf16.msra.mxu0 %v15100_v51  ;;  %9753 = vmatpush3.bf16.msra.mxu1 %v15105_v62 }
0x1b1c   :  { %6761 = vmatprep.subr.bf16.mxu0 %v15110_v18  ;;  %6791 = vmatprep.mubr.bf16.mxu0 %v15901_v2 }
0x1b1d   :  { %9754 = vmatprep.subr.bf16.mxu1 %v15900_v61  ;;  %9768 = vmatprep.mubr.msk.bf16.mxu1 %vm10796_vm0, %v15900_v61 }
0x1b1f   :  { %6762 = vmatpush1.bf16.msra.mxu0 %v15116_v5  ;;  %9755 = vmatpush3.bf16.msra.mxu1 %v15122_v53 }
0x1b20   :  { %6763 = vmatprep.subr.bf16.mxu0 %v15128_v58  ;;  %9756 = vmatprep.subr.bf16.mxu1 %v15900_v61 }
0x1b23   :  { %6764 = vmatpush1.bf16.msra.mxu0 %v15138_v25  ;;  %9757 = vmatpush3.bf16.msra.mxu1 %v15144_v49 }
0x1b24   :  { %6765 = vmatprep.subr.bf16.mxu0 %v15150_v9  ;;  %9758 = vmatprep.subr.bf16.mxu1 %v15900_v61 }
0x1b27   :  { %6766 = vmatpush1.bf16.msra.mxu0 %v15157_v45  ;;  %9759 = vmatpush3.bf16.msra.mxu1 %v15163_v11 }
0x1b28   :  { %6767 = vmatprep.subr.bf16.mxu0 %v15169_v59  ;;  %9760 = vmatprep.subr.bf16.mxu1 %v15900_v61 }
0x1b2b   :  { %6768 = vmatpush1.bf16.msra.mxu0 %v15176_v6  ;;  %9761 = vmatpush3.bf16.msra.mxu1 %v15182_v36 }
0x1b2c   :  { %6769 = vmatprep.subr.bf16.mxu0 %v15188_v23  ;;  %9762 = vmatprep.subr.bf16.mxu1 %v15900_v61 }
0x1b2f   :  { %6770 = vmatpush1.bf16.msra.mxu0 %v15195_v4  ;;  %9763 = vmatpush3.bf16.msra.mxu1 %v15201_v52 }
0x1b30   :  { %6771 = vmatprep.subr.bf16.mxu0 %v15207_v21  ;;  %9764 = vmatprep.subr.bf16.mxu1 %v15900_v61 }
0x1b33   :  { %6772 = vmatpush1.bf16.msra.mxu0 %v15214_v30  ;;  %9765 = vmatpush3.bf16.msra.mxu1 %v15220_v1 }
0x1b34   :  { %6773 = vmatprep.subr.bf16.mxu0 %v15226_v16  ;;  %9766 = vmatprep.subr.bf16.mxu1 %v15900_v61 }
0x1b37   :  { %6774 = vmatpush1.bf16.msra.mxu0 %v15233_v28  ;;  %9767 = vmatpush3.bf16.msra.mxu1 %v15239_v19 }
0x1b38   :  { %6862 = vmatprep.subr.bf16.mxu0 %v15078_v44  ;;  %9772 = vmatprep.subr.bf16.mxu1 %v15900_v61 }
0x1b3a   :  { %6792 = vmatmul.mubr.bf16.vlgmr.msra.gmra.mxu0 %v15901_v2  ;;  %9769 = vmatmul.mubr.bf16.vlgmr.msra.gmra.mxu1 %v15901_v2 }
0x1b3b   :  { %6863 = vmatpush1.bf16.msra.mxu0 %v15100_v51  ;;  %9773 = vmatpush3.bf16.msra.mxu1 %v15105_v62 }
0x1b3c   :  { %6864 = vmatprep.subr.bf16.mxu0 %v15110_v18  ;;  %9774 = vmatprep.subr.bf16.mxu1 %v15900_v61 }
0x1b3d   :  { %6894 = vmatprep.mubr.bf16.mxu0 %v15901_v2  ;;  %9788 = vmatprep.mubr.msk.bf16.mxu1 %vm10796_vm0, %v15900_v61 }
0x1b3f   :  { %6865 = vmatpush1.bf16.msra.mxu0 %v15116_v5  ;;  %9775 = vmatpush3.bf16.msra.mxu1 %v15122_v53 }
0x1b40   :  { %6866 = vmatprep.subr.bf16.mxu0 %v15128_v58  ;;  %9776 = vmatprep.subr.bf16.mxu1 %v15900_v61 }
0x1b43   :  { %6867 = vmatpush1.bf16.msra.mxu0 %v15138_v25  ;;  %9777 = vmatpush3.bf16.msra.mxu1 %v15144_v49 }
0x1b44   :  { %6868 = vmatprep.subr.bf16.mxu0 %v15150_v9  ;;  %9778 = vmatprep.subr.bf16.mxu1 %v15900_v61 }
0x1b47   :  { %6869 = vmatpush1.bf16.msra.mxu0 %v15157_v45  ;;  %9779 = vmatpush3.bf16.msra.mxu1 %v15163_v11 }
0x1b48   :  { %6870 = vmatprep.subr.bf16.mxu0 %v15169_v59  ;;  %9780 = vmatprep.subr.bf16.mxu1 %v15900_v61 }
0x1b4b   :  { %6871 = vmatpush1.bf16.msra.mxu0 %v15176_v6  ;;  %9781 = vmatpush3.bf16.msra.mxu1 %v15182_v36 }
0x1b4c   :  { %6872 = vmatprep.subr.bf16.mxu0 %v15188_v23  ;;  %9782 = vmatprep.subr.bf16.mxu1 %v15900_v61 }
0x1b4f   :  { %6873 = vmatpush1.bf16.msra.mxu0 %v15195_v4  ;;  %9783 = vmatpush3.bf16.msra.mxu1 %v15201_v52 }
0x1b50   :  { %6874 = vmatprep.subr.bf16.mxu0 %v15207_v21  ;;  %9784 = vmatprep.subr.bf16.mxu1 %v15900_v61 }
0x1b53   :  { %6875 = vmatpush1.bf16.msra.mxu0 %v15214_v30  ;;  %9785 = vmatpush3.bf16.msra.mxu1 %v15220_v1 }
0x1b54   :  { %6876 = vmatprep.subr.bf16.mxu0 %v15226_v16  ;;  %9786 = vmatprep.subr.bf16.mxu1 %v15900_v61 }
0x1b57   :  { %6877 = vmatpush1.bf16.msra.mxu0 %v15233_v28  ;;  %9787 = vmatpush3.bf16.msra.mxu1 %v15239_v19 }
0x1b58   :  { %6965 = vmatprep.subr.bf16.mxu0 %v15078_v44  ;;  %9792 = vmatprep.subr.bf16.mxu1 %v15900_v61 }
0x1bda   :  { %v15284_v47 = vpop.f32.mrf.mxu0  ;;  %v15286_v33 = vpop.f32.mrf.mxu1 }
0x1bdc   :  { %v15288_v22 = vpop.f32.mrf.mxu0  ;;  %v9750_v34 = vpop.f32.mrf.mxu1 }
0x1bdd   :  { %v16268_v34 = vld [vmem:[#allocation31_spill] sm:$0xff] }
0x1bde   :  { %v6528_v31 = vpop.f32.mrf.mxu0  ;;  %v6568_v12 = vpop.f32.mrf.mxu1 }
0x1bdf   :  { %v5239_v31 = vadd.f32 %v16268_v34, %v15310_v48 }
0x1be0   :  { %v6529_v0 = vpop.f32.mrf.mxu0  ;;  %v9751_v7 = vpop.f32.mrf.mxu1 }
0x1bfa   :  { %v6793_v17 = vpop.f32.mrf.mxu0  ;;  %v6834_v24 = vpop.f32.mrf.mxu1 }
0x1bfb   :  { %v6794_v56 = vadd.f32 %v6793_v17, %v15299_v63 }
0x1bfc   :  { %v6795_v41 = vpop.f32.mrf.mxu0  ;;  %v9770_v38 = vpop.f32.mrf.mxu1 }
0x1bfd   :  { %v6840_v35 = vadd.f32 %v6794_v56, %v5237_v3  ;;  %v6796_v20 = vadd.f32 %v6795_v41, %v15307_v54  ;;  %v6835_v56 = vadd.f32 %v6834_v24, %v15318_v10  ;;  %v16271_v38 = vld [vmem:[#allocation28_spill] sm:$0xff] }
0x1bfe   :  { %v6797_v40 = vpop.f32.mrf.mxu0  ;;  %v6837_v26 = vpop.f32.mrf.mxu1 }
0x1bff   :  { %v8174_v55 = vmul.f32 -1.442695, %v6840_v35  ;;  %v6847_v12 = vadd.f32 %v6796_v20, %v5239_v31  ;;  %v5278_v35 = vadd.f32 %v16271_v38, %v15321_v32  ;;  %v16272_v31 = vld [vmem:[#allocation3_spill] sm:$0xff] }
0x1c00   :  { %v6798_v37 = vpop.f32.mrf.mxu0  ;;  %v9771_v50 = vpop.f32.mrf.mxu1 }
0x1c01   :  { %10535 = vpow2.f32 %v8174_v55  ;;  %v8175_v0 = vmul.f32 -1.442695, %v6847_v12  ;;  %v5421_v12 = vadd.f32 %v16272_v31, %v15296_v8 }
0x1c03   :  { %10537 = vpow2.f32 %v8175_v0 }
0x1c0e   :  { %v10536_v7 = vpop.eup %10535 }
0x1c0f   :  { %v6844_v43 = vadd.f32 1.0, %v10536_v7 }
0x1c10   :  { %v10538_v17 = vpop.eup %10537 }
0x1c11   :  { %10539 = vrcp.f32 %v6844_v43  ;;  %v6851_v3 = vadd.f32 1.0, %v10538_v17 }
0x1c13   :  { %10541 = vrcp.f32 %v6851_v3 }
0x1c1e   :  { %v10540_v41 = vpop.eup %10539 }
0x1c1f   :  { %v6854_v40 = vmul.f32 %v10540_v41, %v6835_v56  ;;  %v16273_v41 = vld [vmem:[#allocation5_spill] sm:$0xff] }
0x1c20   :  { %v10542_v55 = vpop.eup %10541  ;;  %v5423_v38 = vadd.f32 %v16273_v41, %v15310_v48 }
0x1c21   :  { %v6855_v26 = vadd.f32 %v6854_v40, %v5278_v35  ;;  %v6857_v14 = vsub.f32 1.0, %v10542_v55  ;;  %v6859_v37 = vmul.f32 0.0, %v10542_v55 }
0x1c23   :  { %10543 = vtanh.f32 %v6855_v26 }
0x1c30   :  { %v10544_v20 = vpop.eup %10543 }
0x1c31   :  { %v6858_v13 = vmul.f32 %v10544_v20, %v6857_v14 }
0x1c33   :  { %v15326_v50 = vadd.f32 %v6859_v37, %v6858_v13 }
0x1c35   :  { %v6861_v46 = vpack.c.bf16 %v15326_v50, %v15326_v50 }
0x1c37   :  { %6895 = vmatmul.mubr.bf16.vlgmr.msra.gmra.mxu0 %v6861_v46  ;;  %9789 = vmatmul.mubr.bf16.vlgmr.msra.gmra.mxu1 %v6861_v46  ;;  %v16274_v46 = vld [vmem:[#allocation41_spill] sm:$0xff] }
0x1c38   :  { %6966 = vmatpush1.bf16.msra.mxu0 %v15100_v51  ;;  %9793 = vmatpush3.bf16.msra.mxu1 %v15105_v62 }
0x1c39   :  { %6967 = vmatprep.subr.bf16.mxu0 %v15110_v18  ;;  %9794 = vmatprep.subr.bf16.mxu1 %v15900_v61 }
0x1c3a   :  { %6997 = vmatprep.mubr.bf16.mxu0 %v15901_v2  ;;  %9808 = vmatprep.mubr.msk.bf16.mxu1 %vm10796_vm0, %v15900_v61 }
0x1c3c   :  { %6968 = vmatpush1.bf16.msra.mxu0 %v15116_v5  ;;  %9795 = vmatpush3.bf16.msra.mxu1 %v15122_v53 }
0x1c3d   :  { %6969 = vmatprep.subr.bf16.mxu0 %v15128_v58  ;;  %9796 = vmatprep.subr.bf16.mxu1 %v15900_v61 }
0x1c40   :  { %6970 = vmatpush1.bf16.msra.mxu0 %v15138_v25  ;;  %9797 = vmatpush3.bf16.msra.mxu1 %v15144_v49 }
0x1c41   :  { %6971 = vmatprep.subr.bf16.mxu0 %v15150_v9  ;;  %9798 = vmatprep.subr.bf16.mxu1 %v15900_v61 }
0x1c44   :  { %6972 = vmatpush1.bf16.msra.mxu0 %v15157_v45  ;;  %9799 = vmatpush3.bf16.msra.mxu1 %v15163_v11 }
0x1c45   :  { %6973 = vmatprep.subr.bf16.mxu0 %v15169_v59  ;;  %9800 = vmatprep.subr.bf16.mxu1 %v15900_v61 }
0x1c48   :  { %6974 = vmatpush1.bf16.msra.mxu0 %v15176_v6  ;;  %9801 = vmatpush3.bf16.msra.mxu1 %v15182_v36 }
0x1c49   :  { %6975 = vmatprep.subr.bf16.mxu0 %v15188_v23  ;;  %9802 = vmatprep.subr.bf16.mxu1 %v15900_v61 }
0x1c4c   :  { %6976 = vmatpush1.bf16.msra.mxu0 %v15195_v4  ;;  %9803 = vmatpush3.bf16.msra.mxu1 %v15201_v52 }
0x1c4d   :  { %6977 = vmatprep.subr.bf16.mxu0 %v15207_v21  ;;  %9804 = vmatprep.subr.bf16.mxu1 %v15900_v61 }
0x1c50   :  { %6978 = vmatpush1.bf16.msra.mxu0 %v15214_v30  ;;  %9805 = vmatpush3.bf16.msra.mxu1 %v15220_v1 }
0x1c51   :  { %6979 = vmatprep.subr.bf16.mxu0 %v15226_v16  ;;  %9806 = vmatprep.subr.bf16.mxu1 %v15900_v61 }
0x1c54   :  { %6980 = vmatpush1.bf16.msra.mxu0 %v15233_v28  ;;  %9807 = vmatpush3.bf16.msra.mxu1 %v15239_v19 }
0x1c55   :  { %7068 = vmatprep.subr.bf16.mxu0 %v15078_v44  ;;  %9812 = vmatprep.subr.bf16.mxu1 %v15900_v61 }
0x1cf7   :  { %v6896_v24 = vpop.f32.mrf.mxu0  ;;  %v6937_v34 = vpop.f32.mrf.mxu1 }
0x1cf8   :  { %v6897_v0 = vadd.f32 %v6896_v24, %v15299_v63  ;;  %v6938_v13 = vadd.f32 %v6937_v34, %v15318_v10  ;;  %v5462_v24 = vadd.f32 %v16274_v46, %v15321_v32 }
0x1cf9   :  { %v6898_v7 = vpop.f32.mrf.mxu0  ;;  %v9790_v43 = vpop.f32.mrf.mxu1 }
0x1cfa   :  { %v6943_v57 = vadd.f32 %v6897_v0, %v5421_v12  ;;  %v6899_v17 = vadd.f32 %v6898_v7, %v15307_v54 }
0x1cfb   :  { %v6900_v27 = vpop.f32.mrf.mxu0  ;;  %v6940_v60 = vpop.f32.mrf.mxu1 }
0x1cfc   :  { %v8176_v15 = vmul.f32 -1.442695, %v6943_v57  ;;  %v6950_v35 = vadd.f32 %v6899_v17, %v5423_v38  ;;  %v16275_v17 = vld [vmem:[#allocation6_spill] sm:$0xff] }
0x1cfd   :  { %v6901_v3 = vpop.f32.mrf.mxu0  ;;  %v9791_v56 = vpop.f32.mrf.mxu1 }
0x1cfe   :  { %10545 = vpow2.f32 %v8176_v15  ;;  %v8177_v40 = vmul.f32 -1.442695, %v6950_v35  ;;  %v5605_v3 = vadd.f32 %v16275_v17, %v15296_v8 }
0x1d00   :  { %10547 = vpow2.f32 %v8177_v40 }
0x1d0b   :  { %v10546_v26 = vpop.eup %10545 }
0x1d0c   :  { %v6947_v55 = vadd.f32 1.0, %v10546_v26 }
0x1d0d   :  { %v10548_v14 = vpop.eup %10547 }
0x1d0e   :  { %10549 = vrcp.f32 %v6947_v55  ;;  %v6954_v20 = vadd.f32 1.0, %v10548_v14 }
0x1d10   :  { %10551 = vrcp.f32 %v6954_v20 }
0x1d1b   :  { %v10550_v37 = vpop.eup %10549 }
0x1d1c   :  { %v6957_v31 = vmul.f32 %v10550_v37, %v6938_v13  ;;  %v16276_v37 = vld [vmem:[#allocation21_spill] sm:$0xff] }
0x1d1d   :  { %v10552_v0 = vpop.eup %10551  ;;  %v5607_v46 = vadd.f32 %v16276_v37, %v15310_v48 }
0x1d1e   :  { %v6958_v12 = vadd.f32 %v6957_v31, %v5462_v24  ;;  %v6960_v7 = vsub.f32 1.0, %v10552_v0  ;;  %v6962_v27 = vmul.f32 %v10552_v0, %v15326_v50 }
0x1d20   :  { %10553 = vtanh.f32 %v6958_v12 }
0x1d2d   :  { %v10554_v43 = vpop.eup %10553 }
0x1d2e   :  { %v6961_v57 = vmul.f32 %v10554_v43, %v6960_v7 }
0x1d30   :  { %v15375_v60 = vadd.f32 %v6962_v27, %v6961_v57 }
0x1d32   :  { %v6964_v15 = vpack.c.bf16 %v15375_v60, %v15375_v60 }
0x1d34   :  { %6998 = vmatmul.mubr.bf16.vlgmr.msra.gmra.mxu0 %v6964_v15  ;;  %9809 = vmatmul.mubr.bf16.vlgmr.msra.gmra.mxu1 %v6964_v15  ;;  %v16277_v15 = vld [vmem:[#allocation4_spill] sm:$0xff] }
0x1d35   :  { %7069 = vmatpush1.bf16.msra.mxu0 %v15100_v51  ;;  %9813 = vmatpush3.bf16.msra.mxu1 %v15105_v62 }
0x1d36   :  { %7070 = vmatprep.subr.bf16.mxu0 %v15110_v18  ;;  %9814 = vmatprep.subr.bf16.mxu1 %v15900_v61 }
0x1d37   :  { %7100 = vmatprep.mubr.bf16.mxu0 %v15901_v2  ;;  %9828 = vmatprep.mubr.msk.bf16.mxu1 %vm10796_vm0, %v15900_v61 }
0x1d39   :  { %7071 = vmatpush1.bf16.msra.mxu0 %v15116_v5  ;;  %9815 = vmatpush3.bf16.msra.mxu1 %v15122_v53 }
0x1d3a   :  { %7072 = vmatprep.subr.bf16.mxu0 %v15128_v58  ;;  %9816 = vmatprep.subr.bf16.mxu1 %v15900_v61 }
0x1d3d   :  { %7073 = vmatpush1.bf16.msra.mxu0 %v15138_v25  ;;  %9817 = vmatpush3.bf16.msra.mxu1 %v15144_v49 }
0x1d3e   :  { %7074 = vmatprep.subr.bf16.mxu0 %v15150_v9  ;;  %9818 = vmatprep.subr.bf16.mxu1 %v15900_v61 }
0x1d41   :  { %7075 = vmatpush1.bf16.msra.mxu0 %v15157_v45  ;;  %9819 = vmatpush3.bf16.msra.mxu1 %v15163_v11 }
0x1d42   :  { %7076 = vmatprep.subr.bf16.mxu0 %v15169_v59  ;;  %9820 = vmatprep.subr.bf16.mxu1 %v15900_v61 }
0x1d45   :  { %7077 = vmatpush1.bf16.msra.mxu0 %v15176_v6  ;;  %9821 = vmatpush3.bf16.msra.mxu1 %v15182_v36 }
0x1d46   :  { %7078 = vmatprep.subr.bf16.mxu0 %v15188_v23  ;;  %9822 = vmatprep.subr.bf16.mxu1 %v15900_v61 }
0x1d49   :  { %7079 = vmatpush1.bf16.msra.mxu0 %v15195_v4  ;;  %9823 = vmatpush3.bf16.msra.mxu1 %v15201_v52 }
0x1d4a   :  { %7080 = vmatprep.subr.bf16.mxu0 %v15207_v21  ;;  %9824 = vmatprep.subr.bf16.mxu1 %v15900_v61 }
0x1d4d   :  { %7081 = vmatpush1.bf16.msra.mxu0 %v15214_v30  ;;  %9825 = vmatpush3.bf16.msra.mxu1 %v15220_v1 }
0x1d4e   :  { %7082 = vmatprep.subr.bf16.mxu0 %v15226_v16  ;;  %9826 = vmatprep.subr.bf16.mxu1 %v15900_v61 }
0x1d51   :  { %7083 = vmatpush1.bf16.msra.mxu0 %v15233_v28  ;;  %9827 = vmatpush3.bf16.msra.mxu1 %v15239_v19 }
0x1d52   :  { %7171 = vmatprep.subr.bf16.mxu0 %v15078_v44  ;;  %9832 = vmatprep.subr.bf16.mxu1 %v15900_v61 }
0x1df4   :  { %v6999_v50 = vpop.f32.mrf.mxu0  ;;  %v7040_v34 = vpop.f32.mrf.mxu1 }
0x1df5   :  { %v7000_v56 = vadd.f32 %v6999_v50, %v15299_v63  ;;  %v7041_v57 = vadd.f32 %v7040_v34, %v15318_v10  ;;  %v5646_v50 = vadd.f32 %v16277_v15, %v15321_v32 }
0x1df6   :  { %v7001_v41 = vpop.f32.mrf.mxu0  ;;  %v9810_v38 = vpop.f32.mrf.mxu1 }
0x1df7   :  { %v7046_v35 = vadd.f32 %v7000_v56, %v5605_v3  ;;  %v7002_v14 = vadd.f32 %v7001_v41, %v15307_v54 }
0x1df8   :  { %v7003_v40 = vpop.f32.mrf.mxu0  ;;  %v7043_v26 = vpop.f32.mrf.mxu1 }
0x1df9   :  { %v8178_v55 = vmul.f32 -1.442695, %v7046_v35  ;;  %v7053_v24 = vadd.f32 %v7002_v14, %v5607_v46  ;;  %v16278_v14 = vld [vmem:[#allocation8_spill] sm:$0xff] }
0x1dfa   :  { %v7004_v20 = vpop.f32.mrf.mxu0  ;;  %v9811_v13 = vpop.f32.mrf.mxu1 }
0x1dfb   :  { %10555 = vpow2.f32 %v8178_v55  ;;  %v8179_v31 = vmul.f32 -1.442695, %v7053_v24  ;;  %v5789_v20 = vadd.f32 %v16278_v14, %v15296_v8 }
0x1dfd   :  { %10557 = vpow2.f32 %v8179_v31 }
0x1e08   :  { %v10556_v12 = vpop.eup %10555 }
0x1e09   :  { %v7050_v0 = vadd.f32 1.0, %v10556_v12 }
0x1e0a   :  { %v10558_v7 = vpop.eup %10557 }
0x1e0b   :  { %10559 = vrcp.f32 %v7050_v0  ;;  %v7057_v43 = vadd.f32 1.0, %v10558_v7 }
0x1e0d   :  { %10561 = vrcp.f32 %v7057_v43 }
0x1e18   :  { %v10560_v27 = vpop.eup %10559 }
0x1e19   :  { %v7060_v17 = vmul.f32 %v10560_v27, %v7041_v57  ;;  %v16279_v27 = vld [vmem:[#allocation7_spill] sm:$0xff] }
0x1e1a   :  { %v10562_v56 = vpop.eup %10561  ;;  %v5791_v15 = vadd.f32 %v16279_v27, %v15310_v48 }
0x1e1b   :  { %v7061_v3 = vadd.f32 %v7060_v17, %v5646_v50  ;;  %v7063_v41 = vsub.f32 1.0, %v10562_v56  ;;  %v7065_v40 = vmul.f32 %v10562_v56, %v15375_v60 }
0x1e1d   :  { %10563 = vtanh.f32 %v7061_v3 }
0x1e2a   :  { %v10564_v38 = vpop.eup %10563 }
0x1e2b   :  { %v7064_v35 = vmul.f32 %v10564_v38, %v7063_v41 }
0x1e2d   :  { %v15424_v26 = vadd.f32 %v7065_v40, %v7064_v35 }
0x1e2f   :  { %v7067_v55 = vpack.c.bf16 %v15424_v26, %v15424_v26 }
0x1e31   :  { %7101 = vmatmul.mubr.bf16.vlgmr.msra.gmra.mxu0 %v7067_v55  ;;  %9829 = vmatmul.mubr.bf16.vlgmr.msra.gmra.mxu1 %v7067_v55  ;;  %v16280_v55 = vld [vmem:[#allocation14_spill] sm:$0xff] }
0x1e32   :  { %7172 = vmatpush1.bf16.msra.mxu0 %v15100_v51  ;;  %9833 = vmatpush3.bf16.msra.mxu1 %v15105_v62 }
0x1e33   :  { %7173 = vmatprep.subr.bf16.mxu0 %v15110_v18  ;;  %9834 = vmatprep.subr.bf16.mxu1 %v15900_v61 }
0x1e34   :  { %7203 = vmatprep.mubr.bf16.mxu0 %v15901_v2  ;;  %9848 = vmatprep.mubr.msk.bf16.mxu1 %vm10796_vm0, %v15900_v61 }
0x1e36   :  { %7174 = vmatpush1.bf16.msra.mxu0 %v15116_v5  ;;  %9835 = vmatpush3.bf16.msra.mxu1 %v15122_v53 }
0x1e37   :  { %7175 = vmatprep.subr.bf16.mxu0 %v15128_v58  ;;  %9836 = vmatprep.subr.bf16.mxu1 %v15900_v61 }
0x1e3a   :  { %7176 = vmatpush1.bf16.msra.mxu0 %v15138_v25  ;;  %9837 = vmatpush3.bf16.msra.mxu1 %v15144_v49 }
0x1e3b   :  { %7177 = vmatprep.subr.bf16.mxu0 %v15150_v9  ;;  %9838 = vmatprep.subr.bf16.mxu1 %v15900_v61 }
0x1e3e   :  { %7178 = vmatpush1.bf16.msra.mxu0 %v15157_v45  ;;  %9839 = vmatpush3.bf16.msra.mxu1 %v15163_v11 }
0x1e3f   :  { %7179 = vmatprep.subr.bf16.mxu0 %v15169_v59  ;;  %9840 = vmatprep.subr.bf16.mxu1 %v15900_v61 }
0x1e42   :  { %7180 = vmatpush1.bf16.msra.mxu0 %v15176_v6  ;;  %9841 = vmatpush3.bf16.msra.mxu1 %v15182_v36 }
0x1e43   :  { %7181 = vmatprep.subr.bf16.mxu0 %v15188_v23  ;;  %9842 = vmatprep.subr.bf16.mxu1 %v15900_v61 }
0x1e46   :  { %7182 = vmatpush1.bf16.msra.mxu0 %v15195_v4  ;;  %9843 = vmatpush3.bf16.msra.mxu1 %v15201_v52 }
0x1e47   :  { %7183 = vmatprep.subr.bf16.mxu0 %v15207_v21  ;;  %9844 = vmatprep.subr.bf16.mxu1 %v15900_v61 }
0x1e4a   :  { %7184 = vmatpush1.bf16.msra.mxu0 %v15214_v30  ;;  %9845 = vmatpush3.bf16.msra.mxu1 %v15220_v1 }
0x1e4b   :  { %7185 = vmatprep.subr.bf16.mxu0 %v15226_v16  ;;  %9846 = vmatprep.subr.bf16.mxu1 %v15900_v61 }
0x1e4e   :  { %7186 = vmatpush1.bf16.msra.mxu0 %v15233_v28  ;;  %9847 = vmatpush3.bf16.msra.mxu1 %v15239_v19 }
0x1e4f   :  { %7274 = vmatprep.subr.bf16.mxu0 %v15078_v44  ;;  %9852 = vmatprep.subr.bf16.mxu1 %v15900_v61 }
0x1ef1   :  { %v7102_v60 = vpop.f32.mrf.mxu0  ;;  %v7143_v34 = vpop.f32.mrf.mxu1 }
0x1ef2   :  { %v7103_v13 = vadd.f32 %v7102_v60, %v15299_v63  ;;  %v7144_v35 = vadd.f32 %v7143_v34, %v15318_v10  ;;  %v5830_v60 = vadd.f32 %v16280_v55, %v15321_v32 }
0x1ef3   :  { %v7104_v37 = vpop.f32.mrf.mxu0  ;;  %v9830_v46 = vpop.f32.mrf.mxu1 }
0x1ef4   :  { %v7149_v24 = vadd.f32 %v7103_v13, %v5789_v20  ;;  %v7105_v7 = vadd.f32 %v7104_v37, %v15307_v54 }
0x1ef5   :  { %v7106_v31 = vpop.f32.mrf.mxu0  ;;  %v7146_v12 = vpop.f32.mrf.mxu1 }
0x1ef6   :  { %v8180_v0 = vmul.f32 -1.442695, %v7149_v24  ;;  %v7156_v50 = vadd.f32 %v7105_v7, %v5791_v15  ;;  %v16281_v7 = vld [vmem:[#allocation44_spill] sm:$0xff] }
0x1ef7   :  { %v7107_v43 = vpop.f32.mrf.mxu0  ;;  %v9831_v57 = vpop.f32.mrf.mxu1 }
0x1ef8   :  { %10565 = vpow2.f32 %v8180_v0  ;;  %v8181_v17 = vmul.f32 -1.442695, %v7156_v50  ;;  %v5973_v43 = vadd.f32 %v16281_v7, %v15296_v8 }
0x1efa   :  { %10567 = vpow2.f32 %v8181_v17 }
0x1f05   :  { %v10566_v3 = vpop.eup %10565 }
0x1f06   :  { %v7153_v56 = vadd.f32 1.0, %v10566_v3 }
0x1f07   :  { %v10568_v41 = vpop.eup %10567 }
0x1f08   :  { %10569 = vrcp.f32 %v7153_v56  ;;  %v7160_v38 = vadd.f32 1.0, %v10568_v41 }
0x1f0a   :  { %10571 = vrcp.f32 %v7160_v38 }
0x1f15   :  { %v10570_v40 = vpop.eup %10569 }
0x1f16   :  { %v7163_v14 = vmul.f32 %v10570_v40, %v7144_v35 }
0x1f17   :  { %v10572_v13 = vpop.eup %10571 }
0x1f18   :  { %v7164_v20 = vadd.f32 %v7163_v14, %v5830_v60  ;;  %v7166_v37 = vsub.f32 1.0, %v10572_v13  ;;  %v7168_v31 = vmul.f32 %v10572_v13, %v15424_v26 }
0x1f1a   :  { %10573 = vtanh.f32 %v7164_v20 }
0x1f27   :  { %v10574_v46 = vpop.eup %10573 }
0x1f28   :  { %v7167_v24 = vmul.f32 %v10574_v46, %v7166_v37 }
0x1f2a   :  { %v15473_v12 = vadd.f32 %v7168_v31, %v7167_v24  ;;  %v16283_v31 = vld [vmem:[#allocation45_spill] sm:$0xff] }
0x1f2c   :  { %v7170_v0 = vpack.c.bf16 %v15473_v12, %v15473_v12 }
0x1f2e   :  { %7204 = vmatmul.mubr.bf16.vlgmr.msra.gmra.mxu0 %v7170_v0  ;;  %9849 = vmatmul.mubr.bf16.vlgmr.msra.gmra.mxu1 %v7170_v0  ;;  %v6014_v0 = vadd.f32 %v16283_v31, %v15321_v32 }
0x1f2f   :  { %7275 = vmatpush1.bf16.msra.mxu0 %v15100_v51  ;;  %9853 = vmatpush3.bf16.msra.mxu1 %v15105_v62 }
0x1f30   :  { %7276 = vmatprep.subr.bf16.mxu0 %v15110_v18  ;;  %9854 = vmatprep.subr.bf16.mxu1 %v15900_v61 }
0x1f31   :  { %7306 = vmatprep.mubr.bf16.mxu0 %v15901_v2  ;;  %9868 = vmatprep.mubr.msk.bf16.mxu1 %vm10796_vm0, %v15900_v61 }
0x1f33   :  { %7277 = vmatpush1.bf16.msra.mxu0 %v15116_v5  ;;  %9855 = vmatpush3.bf16.msra.mxu1 %v15122_v53 }
0x1f34   :  { %7278 = vmatprep.subr.bf16.mxu0 %v15128_v58  ;;  %9856 = vmatprep.subr.bf16.mxu1 %v15900_v61 }
0x1f37   :  { %7279 = vmatpush1.bf16.msra.mxu0 %v15138_v25  ;;  %9857 = vmatpush3.bf16.msra.mxu1 %v15144_v49 }
0x1f38   :  { %7280 = vmatprep.subr.bf16.mxu0 %v15150_v9  ;;  %9858 = vmatprep.subr.bf16.mxu1 %v15900_v61 }
0x1f3b   :  { %7281 = vmatpush1.bf16.msra.mxu0 %v15157_v45  ;;  %9859 = vmatpush3.bf16.msra.mxu1 %v15163_v11 }
0x1f3c   :  { %7282 = vmatprep.subr.bf16.mxu0 %v15169_v59  ;;  %9860 = vmatprep.subr.bf16.mxu1 %v15900_v61 }
0x1f3f   :  { %7283 = vmatpush1.bf16.msra.mxu0 %v15176_v6  ;;  %9861 = vmatpush3.bf16.msra.mxu1 %v15182_v36 }
0x1f40   :  { %7284 = vmatprep.subr.bf16.mxu0 %v15188_v23  ;;  %9862 = vmatprep.subr.bf16.mxu1 %v15900_v61 }
0x1f43   :  { %7285 = vmatpush1.bf16.msra.mxu0 %v15195_v4  ;;  %9863 = vmatpush3.bf16.msra.mxu1 %v15201_v52 }
0x1f44   :  { %7286 = vmatprep.subr.bf16.mxu0 %v15207_v21  ;;  %9864 = vmatprep.subr.bf16.mxu1 %v15900_v61 }
0x1f47   :  { %7287 = vmatpush1.bf16.msra.mxu0 %v15214_v30  ;;  %9865 = vmatpush3.bf16.msra.mxu1 %v15220_v1 }
0x1f48   :  { %7288 = vmatprep.subr.bf16.mxu0 %v15226_v16  ;;  %9866 = vmatprep.subr.bf16.mxu1 %v15900_v61 }
0x1f4b   :  { %7289 = vmatpush1.bf16.msra.mxu0 %v15233_v28  ;;  %9867 = vmatpush3.bf16.msra.mxu1 %v15239_v19 }
0x1f4c   :  { %7377 = vmatprep.subr.bf16.mxu0 %v15078_v44  ;;  %9872 = vmatprep.subr.bf16.mxu1 %v15900_v61  ;;  %v16282_v44 = vld [vmem:[#allocation46_spill] sm:$0xff] }
0x1f4d   :  { %v5975_v40 = vadd.f32 %v16282_v44, %v15310_v48 }
0x1fee   :  { %v7205_v26 = vpop.f32.mrf.mxu0  ;;  %v7246_v34 = vpop.f32.mrf.mxu1 }
0x1fef   :  { %v7206_v57 = vadd.f32 %v7205_v26, %v15299_v63  ;;  %v7247_v46 = vadd.f32 %v7246_v34, %v15318_v10 }
0x1ff0   :  { %v7207_v27 = vpop.f32.mrf.mxu0  ;;  %v9850_v15 = vpop.f32.mrf.mxu1 }
0x1ff1   :  { %v7252_v50 = vadd.f32 %v7206_v57, %v5973_v43  ;;  %v7208_v41 = vadd.f32 %v7207_v27, %v15307_v54 }
0x1ff2   :  { %v7209_v17 = vpop.f32.mrf.mxu0  ;;  %v7249_v3 = vpop.f32.mrf.mxu1 }
0x1ff3   :  { %v8182_v56 = vmul.f32 -1.442695, %v7252_v50  ;;  %v7259_v55 = vadd.f32 %v7208_v41, %v5975_v40 }
0x1ff4   :  { %v7210_v38 = vpop.f32.mrf.mxu0  ;;  %v9851_v35 = vpop.f32.mrf.mxu1 }
0x1ff5   :  { %10575 = vpow2.f32 %v8182_v56  ;;  %v8183_v60 = vmul.f32 -1.442695, %v7259_v55  ;;  %v16285_v35 = vld [vmem:[#allocation20_spill] sm:$0xff] }
0x1ff6   :  { %v6159_v44 = vadd.f32 %v16285_v35, %v15310_v48 }
0x1ff7   :  { %10577 = vpow2.f32 %v8183_v60 }
0x2002   :  { %v10576_v14 = vpop.eup %10575 }
0x2003   :  { %v7256_v20 = vadd.f32 1.0, %v10576_v14 }
0x2004   :  { %v10578_v13 = vpop.eup %10577 }
0x2005   :  { %10579 = vrcp.f32 %v7256_v20  ;;  %v7263_v37 = vadd.f32 1.0, %v10578_v13 }
0x2007   :  { %10581 = vrcp.f32 %v7263_v37 }
0x2012   :  { %v10580_v24 = vpop.eup %10579 }
0x2013   :  { %v7266_v26 = vmul.f32 %v10580_v24, %v7247_v46  ;;  %v16286_v24 = vld [vmem:[#allocation19_spill] sm:$0xff] }
0x2014   :  { %v10582_v43 = vpop.eup %10581  ;;  %v6198_v31 = vadd.f32 %v16286_v24, %v15321_v32  ;;  %v10288_v24 = vld [vmem:[%s15699_s5 + $0x30] sm:$0xff]  }
0x2015   :  { %v7267_v7 = vadd.f32 %v7266_v26, %v6014_v0  ;;  %v7269_v57 = vsub.f32 1.0, %v10582_v43  ;;  %v7271_v50 = vmul.f32 %v10582_v43, %v15473_v12 }
0x2017   :  { %10583 = vtanh.f32 %v7267_v7 }
0x2024   :  { %v10584_v27 = vpop.eup %10583 }
0x2025   :  { %v7270_v15 = vmul.f32 %v10584_v27, %v7269_v57 }
0x2027   :  { %v15522_v17 = vadd.f32 %v7271_v50, %v7270_v15 }
0x2029   :  { %v7273_v3 = vpack.c.bf16 %v15522_v17, %v15522_v17 }
0x202b   :  { %7307 = vmatmul.mubr.bf16.vlgmr.msra.gmra.mxu0 %v7273_v3  ;;  %9869 = vmatmul.mubr.bf16.vlgmr.msra.gmra.mxu1 %v7273_v3 }
0x202c   :  { %7378 = vmatpush1.bf16.msra.mxu0 %v15100_v51  ;;  %9873 = vmatpush3.bf16.msra.mxu1 %v15105_v62  ;;  %v10783_v51 = vld [vmem:[%s15696_s3 + $0x2ec] ss:$12 sps:$4 sm:$0xff]  }
0x202d   :  { %7379 = vmatprep.subr.bf16.mxu0 %v15110_v18  ;;  %9874 = vmatprep.subr.bf16.mxu1 %v15900_v61 }
0x202e   :  { %7409 = vmatprep.mubr.bf16.mxu0 %v15901_v2  ;;  %9888 = vmatprep.mubr.msk.bf16.mxu1 %vm10796_vm0, %v15900_v61 }
0x2030   :  { %7380 = vmatpush1.bf16.msra.mxu0 %v15116_v5  ;;  %9875 = vmatpush3.bf16.msra.mxu1 %v15122_v53  ;;  %v16284_v5 = vld [vmem:[#allocation18_spill] sm:$0xff] }
0x2031   :  { %7381 = vmatprep.subr.bf16.mxu0 %v15128_v58  ;;  %9876 = vmatprep.subr.bf16.mxu1 %v15900_v61  ;;  %v6157_v53 = vadd.f32 %v16284_v5, %v15296_v8  ;;  %v10788_v5 = vld [vmem:[%s15696_s3 + $0x2d8] ss:$12 sps:$4 sm:$0xff]  }
0x2034   :  { %7382 = vmatpush1.bf16.msra.mxu0 %v15138_v25  ;;  %9877 = vmatpush3.bf16.msra.mxu1 %v15144_v49 }
0x2035   :  { %7383 = vmatprep.subr.bf16.mxu0 %v15150_v9  ;;  %9878 = vmatprep.subr.bf16.mxu1 %v15900_v61 }
0x2038   :  { %7384 = vmatpush1.bf16.msra.mxu0 %v15157_v45  ;;  %9879 = vmatpush3.bf16.msra.mxu1 %v15163_v11 }
0x2039   :  { %7385 = vmatprep.subr.bf16.mxu0 %v15169_v59  ;;  %9880 = vmatprep.subr.bf16.mxu1 %v15900_v61 }
0x203c   :  { %7386 = vmatpush1.bf16.msra.mxu0 %v15176_v6  ;;  %9881 = vmatpush3.bf16.msra.mxu1 %v15182_v36 }
0x203d   :  { %7387 = vmatprep.subr.bf16.mxu0 %v15188_v23  ;;  %9882 = vmatprep.subr.bf16.mxu1 %v15900_v61 }
0x2040   :  { %7388 = vmatpush1.bf16.msra.mxu0 %v15195_v4  ;;  %9883 = vmatpush3.bf16.msra.mxu1 %v15201_v52 }
0x2041   :  { %7389 = vmatprep.subr.bf16.mxu0 %v15207_v21  ;;  %9884 = vmatprep.subr.bf16.mxu1 %v15900_v61 }
0x2044   :  { %7390 = vmatpush1.bf16.msra.mxu0 %v15214_v30  ;;  %9885 = vmatpush3.bf16.msra.mxu1 %v15220_v1 }
0x2045   :  { %7391 = vmatprep.subr.bf16.mxu0 %v15226_v16  ;;  %9886 = vmatprep.subr.bf16.mxu1 %v15900_v61 }
0x2048   :  { %7392 = vmatpush1.bf16.msra.mxu0 %v15233_v28  ;;  %9887 = vmatpush3.bf16.msra.mxu1 %v15239_v19 }
0x2049   :  { %7480 = vmatprep.subr.bf16.mxu0 %v10783_v51  ;;  %9892 = vmatprep.subr.bf16.mxu1 %v15900_v61  ;;  %v10784_v51 = vld [vmem:[%s15696_s3 + $0x2e8] ss:$12 sps:$4 sm:$0xff]  }
0x20eb   :  { %v7308_v62 = vpop.f32.mrf.mxu0  ;;  %v7349_v18 = vpop.f32.mrf.mxu1 }
0x20ec   :  { %v7309_v58 = vadd.f32 %v7308_v62, %v15299_v63  ;;  %v7350_v37 = vadd.f32 %v7349_v18, %v15318_v10  ;;  %v10785_v62 = vld [vmem:[%s15696_s3 + $0x2f0] ss:$12 sps:$4 sm:$0xff]  }
0x20ed   :  { %v7310_v25 = vpop.f32.mrf.mxu0  ;;  %v9870_v49 = vpop.f32.mrf.mxu1  ;;  %v10787_v18 = vld [vmem:[%s15696_s3 + $0x2d0] ss:$12 sps:$4 sm:$0xff]  }
0x20ee   :  { %v7355_v9 = vadd.f32 %v7309_v58, %v6157_v53  ;;  %v7311_v56 = vadd.f32 %v7310_v25, %v15307_v54  ;;  %v10789_v53 = vld [vmem:[%s15696_s3 + $0x2bc] ss:$12 sps:$4 sm:$0xff]   ;;  %v10791_v58 = vld [vmem:[%s15696_s3 + $0x2c0] ss:$12 sps:$4 sm:$0xff]   ;;  %v10792_v25 = vld [vmem:[%s15696_s3 + $0x2a4] ss:$12 sps:$4 sm:$0xff]  }
0x20ef   :  { %v7312_v45 = vpop.f32.mrf.mxu0  ;;  %v7352_v12 = vpop.f32.mrf.mxu1  ;;  %v10793_v49 = vld [vmem:[%s15696_s3 + $0x2a0] ss:$12 sps:$4 sm:$0xff]  }
0x20f0   :  { %v8184_v34 = vmul.f32 -1.442695, %v7355_v9  ;;  %v7362_v40 = vadd.f32 %v7311_v56, %v6159_v44  ;;  %v6382_v44 = vadd.f32 %v15083_v29, %v15321_v32  ;;  %v10287_v29 = vld [vmem:[%s15699_s5 + $0x38] sm:$0xff]  }
0x20f1   :  { %v7313_v41 = vpop.f32.mrf.mxu0  ;;  %v9871_v38 = vpop.f32.mrf.mxu1 }
0x20f2   :  { %10585 = vpow2.f32 %v8184_v34  ;;  %v8185_v55 = vmul.f32 -1.442695, %v7362_v40 }
0x20f4   :  { %10587 = vpow2.f32 %v8185_v55 }
0x20ff   :  { %v10586_v60 = vpop.eup %10585 }
0x2100   :  { %v7359_v14 = vadd.f32 1.0, %v10586_v60 }
0x2101   :  { %v10588_v20 = vpop.eup %10587 }
0x2102   :  { %10589 = vrcp.f32 %v7359_v14  ;;  %v7366_v13 = vadd.f32 1.0, %v10588_v20 }
0x2104   :  { %10591 = vrcp.f32 %v7366_v13 }
0x210f   :  { %v10590_v46 = vpop.eup %10589 }
0x2110   :  { %v7369_v0 = vmul.f32 %v10590_v46, %v7350_v37 }
0x2111   :  { %v10592_v7 = vpop.eup %10591 }
0x2112   :  { %v7370_v26 = vadd.f32 %v7369_v0, %v6198_v31  ;;  %v7372_v43 = vsub.f32 1.0, %v10592_v7  ;;  %v7374_v15 = vmul.f32 %v10592_v7, %v15522_v17  ;;  %v10786_v17 = vld [vmem:[%s15696_s3 + $0x2d4] ss:$12 sps:$4 sm:$0xff]   ;;  %v10289_v31 = vld [vmem:[%s15699_s5 + $0x28] sm:$0xff]  }
0x2113   :  { %v10290_v0 = vld [vmem:[%s15699_s5 + $0x20] sm:$0xff]   ;;  %v10292_v7 = vld [vmem:[%s15699_s5 + $0x10] sm:$0xff]  }
0x2114   :  { %10593 = vtanh.f32 %v7370_v26  ;;  %v10291_v26 = vld [vmem:[%s15699_s5 + $0x18] sm:$0xff]  }
0x2121   :  { %v10594_v57 = vpop.eup %10593 }
0x2122   :  { %v7373_v27 = vmul.f32 %v10594_v57, %v7372_v43  ;;  %v10293_v43 = vld [vmem:[%s15699_s5 + $0x8] sm:$0xff]   ;;  %v10294_v57 = vld [vmem:[%s15699_s5] sm:$0xff]  }
0x2124   :  { %v15573_v50 = vadd.f32 %v7374_v15, %v7373_v27 }
0x2126   :  { %v7376_v3 = vpack.c.bf16 %v15573_v50, %v15573_v50 }
0x2128   :  { %7410 = vmatmul.mubr.bf16.vlgmr.msra.gmra.mxu0 %v7376_v3  ;;  %9889 = vmatmul.mubr.bf16.vlgmr.msra.gmra.mxu1 %v7376_v3 }
0x2129   :  { %7481 = vmatpush1.bf16.msra.mxu0 %v10784_v51  ;;  %9893 = vmatpush3.bf16.msra.mxu1 %v10785_v62 }
0x212a   :  { %7482 = vmatprep.subr.bf16.mxu0 %v10786_v17  ;;  %9894 = vmatprep.subr.bf16.mxu1 %v15900_v61 }
0x212b   :  { %7512 = vmatprep.mubr.bf16.mxu0 %v15901_v2  ;;  %9908 = vmatprep.mubr.msk.bf16.mxu1 %vm10796_vm0, %v15900_v61  ;;  %v10790_v2 = vld [vmem:[%s15696_s3 + $0x2b8] ss:$12 sps:$4 sm:$0xff]  }
0x212d   :  { %7483 = vmatpush1.bf16.msra.mxu0 %v10787_v18  ;;  %9895 = vmatpush3.bf16.msra.mxu1 %v10788_v5 }
0x212e   :  { %7484 = vmatprep.subr.bf16.mxu0 %v10789_v53  ;;  %9896 = vmatprep.subr.bf16.mxu1 %v15900_v61 }
0x2131   :  { %7485 = vmatpush1.bf16.msra.mxu0 %v10790_v2  ;;  %9897 = vmatpush3.bf16.msra.mxu1 %v10791_v58 }
0x2132   :  { %7486 = vmatprep.subr.bf16.mxu0 %v10792_v25  ;;  %9898 = vmatprep.subr.bf16.mxu1 %v15900_v61 }
0x2135   :  { %7487 = vmatpush1.bf16.msra.mxu0 %v10793_v49  ;;  %9899 = vmatpush3.bf16.msra.mxu1 %v15163_v11 }
0x2136   :  { %7488 = vmatprep.subr.bf16.mxu0 %v15169_v59  ;;  %9900 = vmatprep.subr.bf16.mxu1 %v15900_v61 }
0x2139   :  { %7489 = vmatpush1.bf16.msra.mxu0 %v15176_v6  ;;  %9901 = vmatpush3.bf16.msra.mxu1 %v15182_v36  ;;  %v6341_v6 = vadd.f32 %v15081_v42, %v15296_v8 }
0x213a   :  { %7490 = vmatprep.subr.bf16.mxu0 %v15188_v23  ;;  %9902 = vmatprep.subr.bf16.mxu1 %v15900_v61 }
0x213d   :  { %7491 = vmatpush1.bf16.msra.mxu0 %v15195_v4  ;;  %9903 = vmatpush3.bf16.msra.mxu1 %v15201_v52 }
0x213e   :  { %7492 = vmatprep.subr.bf16.mxu0 %v15207_v21  ;;  %9904 = vmatprep.subr.bf16.mxu1 %v15900_v61 }
0x2141   :  { %7493 = vmatpush1.bf16.msra.mxu0 %v15214_v30  ;;  %9905 = vmatpush3.bf16.msra.mxu1 %v15220_v1 }
0x2142   :  { %7494 = vmatprep.subr.bf16.mxu0 %v15226_v16  ;;  %9906 = vmatprep.subr.bf16.mxu1 %v15900_v61 }
0x2145   :  { %7495 = vmatpush1.bf16.msra.mxu0 %v15233_v28  ;;  %9907 = vmatpush3.bf16.msra.mxu1 %v15239_v19  ;;  %v6343_v19 = vadd.f32 %v15085_v39, %v15310_v48 }
0x2146   :  { %9912 = vmatprep.subr.bf16.mxu0 %v15900_v61 }
0x21e8   :  { %v7411_v11 = vpop.f32.mrf.mxu0  ;;  %v7452_v59 = vpop.f32.mrf.mxu1 }
0x21e9   :  { %v7412_v36 = vadd.f32 %v7411_v11, %v15299_v63  ;;  %v7453_v38 = vadd.f32 %v7452_v59, %v15318_v10 }
0x21ea   :  { %v7413_v23 = vpop.f32.mrf.mxu0  ;;  %v9890_v4 = vpop.f32.mrf.mxu1 }
0x21eb   :  { %v7458_v52 = vadd.f32 %v7412_v36, %v6341_v6  ;;  %v7414_v16 = vadd.f32 %v7413_v23, %v15307_v54 }
0x21ec   :  { %v7415_v21 = vpop.f32.mrf.mxu0  ;;  %v7455_v30 = vpop.f32.mrf.mxu1 }
0x21ed   :  { %v8186_v1 = vmul.f32 -1.442695, %v7458_v52  ;;  %v7465_v45 = vadd.f32 %v7414_v16, %v6343_v19 }
0x21ee   :  { %v7416_v28 = vpop.f32.mrf.mxu0  ;;  %v9891_v9 = vpop.f32.mrf.mxu1 }
0x21ef   :  { %10595 = vpow2.f32 %v8186_v1  ;;  %v8187_v12 = vmul.f32 -1.442695, %v7465_v45 }
0x21f1   :  { %10597 = vpow2.f32 %v8187_v12 }
0x21fc   :  { %v10596_v42 = vpop.eup %10595 }
0x21fd   :  { %v7462_v34 = vadd.f32 1.0, %v10596_v42 }
0x21fe   :  { %v10598_v56 = vpop.eup %10597 }
0x21ff   :  { %10599 = vrcp.f32 %v7462_v34  ;;  %v7469_v41 = vadd.f32 1.0, %v10598_v56 }
0x2201   :  { %10601 = vrcp.f32 %v7469_v41 }
0x220c   :  { %v10600_v35 = vpop.eup %10599 }
0x220d   :  { %v7472_v40 = vmul.f32 %v10600_v35, %v7453_v38 }
0x220e   :  { %v10602_v39 = vpop.eup %10601 }
0x220f   :  { %v7473_v55 = vadd.f32 %v7472_v40, %v6382_v44  ;;  %v7475_v60 = vsub.f32 1.0, %v10602_v39  ;;  %v7477_v13 = vmul.f32 %v10602_v39, %v15573_v50  ;;  %v6525_v50 = vadd.f32 %v15284_v47, %v15296_v8 }
0x2211   :  { %10603 = vtanh.f32 %v7473_v55 }
0x221e   :  { %v10604_v14 = vpop.eup %10603 }
0x221f   :  { %v7476_v20 = vmul.f32 %v10604_v14, %v7475_v60 }
0x2221   :  { %v15641_v37 = vadd.f32 %v7477_v13, %v7476_v20 }
0x2223   :  { %v7479_v46 = vpack.c.bf16 %v15641_v37, %v15641_v37 }
0x2225   :  { %7513 = vmatmul.mubr.bf16.vlgmr.msra.gmra.mxu0 %v7479_v46  ;;  %9909 = vmatmul.mubr.bf16.vlgmr.msra.gmra.mxu1 %v7479_v46 }
0x2226   :  { %9928 = vmatprep.mubr.msk.bf16.mxu0 %vm10796_vm0, %v15900_v61  ;;  %9913 = vmatpush3.bf16.msra.mxu0 %v10287_v29 }
0x2227   :  { %9914 = vmatprep.subr.bf16.mxu0 %v15900_v61 }
0x222a   :  { %9915 = vmatpush3.bf16.msra.mxu0 %v10288_v24 }
0x222b   :  { %9916 = vmatprep.subr.bf16.mxu0 %v15900_v61 }
0x222e   :  { %9917 = vmatpush3.bf16.msra.mxu0 %v10289_v31 }
0x222f   :  { %9918 = vmatprep.subr.bf16.mxu0 %v15900_v61 }
0x2232   :  { %9919 = vmatpush3.bf16.msra.mxu0 %v10290_v0 }
0x2233   :  { %9920 = vmatprep.subr.bf16.mxu0 %v15900_v61 }
0x2236   :  { %9921 = vmatpush3.bf16.msra.mxu0 %v10291_v26 }
0x2237   :  { %9922 = vmatprep.subr.bf16.mxu0 %v15900_v61 }
0x223a   :  { %9923 = vmatpush3.bf16.msra.mxu0 %v10292_v7 }
0x223b   :  { %9924 = vmatprep.subr.bf16.mxu0 %v15900_v61 }
0x223e   :  { %9925 = vmatpush3.bf16.msra.mxu0 %v10293_v43 }
0x223f   :  { %9926 = vmatprep.subr.bf16.mxu0 %v15900_v61  ;;  %v6527_v61 = vadd.f32 %v15288_v22, %v15310_v48 }
0x2242   :  { %9927 = vmatpush3.bf16.msra.mxu0 %v10294_v57 }
0x22e5   :  { %v7514_v27 = vpop.f32.mrf.mxu0  ;;  %v7555_v15 = vpop.f32.mrf.mxu1 }
0x22e6   :  { %v7515_v3 = vadd.f32 %v7514_v27, %v15299_v63  ;;  %v7556_v6 = vadd.f32 %v7555_v15, %v15318_v10  ;;  %v8190_v10 = vld [vmem:[%s15700_s6] ss:$0 sm:$0xff] }
0x22e7   :  { %v7516_v51 = vpop.f32.mrf.mxu0  ;;  %v9910_v62 = vpop.f32.mrf.mxu1 }
0x22e8   :  { %v7561_v17 = vadd.f32 %v7515_v3, %v6525_v50  ;;  %v7517_v2 = vadd.f32 %v7516_v51, %v15307_v54  ;;  %v6566_v54 = vadd.f32 %v15286_v33, %v15321_v32 }
0x22e9   :  { %v7518_v18 = vpop.f32.mrf.mxu0  ;;  %v7558_v5 = vpop.f32.mrf.mxu1 }
0x22ea   :  { %v8188_v53 = vmul.f32 -1.442695, %v7561_v17  ;;  %v7568_v49 = vadd.f32 %v7517_v2, %v6527_v61 }
0x22eb   :  { %v7519_v58 = vpop.f32.mrf.mxu0  ;;  %v9911_v25 = vpop.f32.mrf.mxu1 }
0x22ec   :  { %10605 = vpow2.f32 %v8188_v53  ;;  %v8189_v11 = vmul.f32 -1.442695, %v7568_v49 }
0x22ee   :  { %10607 = vpow2.f32 %v8189_v11 }
0x22f9   :  { %v10606_v47 = vpop.eup %10605 }
0x22fa   :  { %v7565_v8 = vadd.f32 1.0, %v10606_v47 }
0x22fb   :  { %v10608_v63 = vpop.eup %10607 }
0x22fc   :  { %10609 = vrcp.f32 %v7565_v8  ;;  %v7572_v59 = vadd.f32 1.0, %v10608_v63 }
0x22fe   :  { %10611 = vrcp.f32 %v7572_v59 }
0x2309   :  { %v10610_v36 = vpop.eup %10609 }
0x230a   :  { %v7575_v23 = vmul.f32 %v10610_v36, %v7556_v6 }
0x230b   :  { %v10612_v22 = vpop.eup %10611 }
0x230c   :  { %v7576_v4 = vadd.f32 %v7575_v23, %v6566_v54  ;;  %v7578_v48 = vsub.f32 1.0, %v10612_v22  ;;  %v7580_v30 = vmul.f32 %v10612_v22, %v15641_v37 }
0x230e   :  { %10613 = vtanh.f32 %v7576_v4 }
0x231b   :  { %v10614_v52 = vpop.eup %10613 }
0x231c   :  { %v7579_v21 = vmul.f32 %v10614_v52, %v7578_v48 }
0x231e   :  { %v7581_v1 = vadd.f32 %v7580_v30, %v7579_v21 }
0x2320   :  { %v7582_v16 = vpack.c.bf16 %v7581_v1, %v7581_v1 }
0x2322   :  { %9929 = vmatmul.mubr.bf16.vlgmr.msra.gmra.mxu0 %v7582_v16 }
0x23e2   :  { %v7688_v28 = vpop.f32.mrf.mxu0 }
0x23e3   :  { %v7689_v9 = vadd.f32 %v8190_v10, %v7688_v28 }
0x23e4   :  { %v9930_v33 = vpop.f32.mrf.mxu0 }
0x23e5   :  { %7694 = vst [vmem:[%s15701_s7] sm:$0xff] %v7689_v9 }
0x23e6   :  { %v7691_v32 = vpop.f32.mrf.mxu0 }
0x23e8   :  { %v9931_v19 = vpop.f32.mrf.mxu0 }

</bundles_post_ra>
